<compile_context>
chip_gen: v7x
topology: tpu7x:2x2x1
jax: 0.10.0
libtpu: 0.0.40
codegen_flags: <defaults>
</compile_context>

<pallas_src>
import jax
import jax.numpy as jnp
from jax.experimental import pallas as pl
from jax.experimental.pallas import tpu as pltpu


# ---------------------------------------------------------------------------
# Kernel A: stage-1 pointwise conv + ReLU, lane-dense output
# ---------------------------------------------------------------------------
def _stage1_kernel(x_ref, w_ref, b_ref, o_ref):
    # x_ref: (tm, 4)  w_ref: (4, 128)  b_ref: (1, 128)  o_ref: (tm, 128)
    acc = jnp.dot(x_ref[...], w_ref[...], preferred_element_type=jnp.float32)
    acc = jnp.maximum(acc + b_ref[...], 0.0)
    o_ref[...] = acc.astype(o_ref.dtype)


def stage1_pointwise(x_flat, w, b, *, num_blocks=2):
    """relu(x_flat @ w + b) for x_flat (M, 2), w (2, 64), b (64,).

    Two consecutive rows are packed into one 128-lane output row, so the
    kernel writes an (M//2, 128) slab that is bit-identical (row-major) to
    the (M, 64) result; the reshape back happens in the wrapper (free).
    """
    M, K = x_flat.shape
    Kw, N = w.shape
    assert K == Kw and M % 2 == 0
    M2 = M // 2

    x2 = x_flat.reshape(M2, 2 * K)                     # (M/2, 4), bit-identical
    w_packed = jnp.zeros((2 * K, 2 * N), x_flat.dtype)
    w_packed = w_packed.at[0:K, 0:N].set(w)            # even rows -> lanes 0..N-1
    w_packed = w_packed.at[K:2 * K, N:2 * N].set(w)    # odd rows  -> lanes N..2N-1
    b_packed = jnp.concatenate([b, b]).reshape(1, 2 * N)

    if M2 % num_blocks != 0 or (M2 // num_blocks) % 8 != 0:
        num_blocks = 1
    tm = M2 // num_blocks

    out = pl.pallas_call(
        _stage1_kernel,
        out_shape=jax.ShapeDtypeStruct((M2, 2 * N), x_flat.dtype),
        grid=(num_blocks,),
        in_specs=[
            pl.BlockSpec((tm, 2 * K), lambda i: (i, 0)),
            pl.BlockSpec((2 * K, 2 * N), lambda i: (0, 0)),
            pl.BlockSpec((1, 2 * N), lambda i: (0, 0)),
        ],
        out_specs=pl.BlockSpec((tm, 2 * N), lambda i: (i, 0)),
        compiler_params=pltpu.CompilerParams(
            dimension_semantics=("parallel",)),
    )(x2, w_packed, b_packed)
    return out.reshape(M, N)


# ---------------------------------------------------------------------------
# Kernel B: fused stages 2-4 + avgpool + classifier (per-batch grid)
# ---------------------------------------------------------------------------
def _fused_stages_kernel(x_ref, w2_ref, b2_ref, w3_ref, b3_ref,
                         w4_ref, b4_ref, wc_ref, bc_ref,
                         o2_ref, o3_ref, o4_ref, o5_ref, o6_ref):
    x = x_ref[0]                                               # (V, C1)
    h2 = jnp.maximum(
        jnp.dot(x, w2_ref[...], preferred_element_type=jnp.float32)
        + b2_ref[...], 0.0)
    o2_ref[0] = h2.astype(o2_ref.dtype)

    h3 = jnp.maximum(
        jnp.dot(h2, w3_ref[...], preferred_element_type=jnp.float32)
        + b3_ref[...], 0.0)
    o3_ref[0] = h3.astype(o3_ref.dtype)

    h4 = jnp.maximum(
        jnp.dot(h3, w4_ref[...], preferred_element_type=jnp.float32)
        + b4_ref[...], 0.0)
    o4_ref[0] = h4.astype(o4_ref.dtype)

    # AvgPool3d((8,8,8)) over all V voxels of this batch element.
    pooled = jnp.mean(h4, axis=0, keepdims=True)               # (1, D)
    o5_ref[0] = pooled.astype(o5_ref.dtype)

    # classifier: Linear(D, num_outputs)
    logits = jnp.dot(pooled, wc_ref[...],
                     preferred_element_type=jnp.float32) + bc_ref[...]
    o6_ref[0] = logits.astype(o6_ref.dtype)


def fused_stages_pool_classify(x, params):
    """x: (B, V, C1) channels-last voxels after the stride-2 subsample.

    Returns out2 (B,V,C2), out3 (B,V,C3), out4 (B,V,C4), out5 (B,C4),
    out6 (B,num_outputs)."""
    B, V, C1 = x.shape
    (w2, b2), (w3, b3), (w4, b4) = params["stages"][1:]
    wc, bc = params["classifier"]
    C2, C3, C4 = w2.shape[1], w3.shape[1], w4.shape[1]
    NO = wc.shape[1]
    dt = x.dtype

    out_shape = (
        jax.ShapeDtypeStruct((B, V, C2), dt),
        jax.ShapeDtypeStruct((B, V, C3), dt),
        jax.ShapeDtypeStruct((B, V, C4), dt),
        jax.ShapeDtypeStruct((B, 1, C4), dt),
        jax.ShapeDtypeStruct((B, 1, NO), dt),
    )
    in_specs = [
        pl.BlockSpec((1, V, C1), lambda b: (b, 0, 0)),
        pl.BlockSpec((C1, C2), lambda b: (0, 0)),
        pl.BlockSpec((1, C2), lambda b: (0, 0)),
        pl.BlockSpec((C2, C3), lambda b: (0, 0)),
        pl.BlockSpec((1, C3), lambda b: (0, 0)),
        pl.BlockSpec((C3, C4), lambda b: (0, 0)),
        pl.BlockSpec((1, C4), lambda b: (0, 0)),
        pl.BlockSpec((C4, NO), lambda b: (0, 0)),
        pl.BlockSpec((1, NO), lambda b: (0, 0)),
    ]
    out_specs = (
        pl.BlockSpec((1, V, C2), lambda b: (b, 0, 0)),
        pl.BlockSpec((1, V, C3), lambda b: (b, 0, 0)),
        pl.BlockSpec((1, V, C4), lambda b: (b, 0, 0)),
        pl.BlockSpec((1, 1, C4), lambda b: (b, 0, 0)),
        pl.BlockSpec((1, 1, NO), lambda b: (b, 0, 0)),
    )
    o2, o3, o4, o5, o6 = pl.pallas_call(
        _fused_stages_kernel,
        out_shape=out_shape,
        grid=(B,),
        in_specs=in_specs,
        out_specs=out_specs,
        compiler_params=pltpu.CompilerParams(
            dimension_semantics=("parallel",)),
    )(x, w2, b2.reshape(1, C2), w3, b3.reshape(1, C3),
      w4, b4.reshape(1, C4), wc, bc.reshape(1, NO))
    return o2, o3, o4, o5.reshape(B, C4), o6.reshape(B, NO)


# ---------------------------------------------------------------------------
# Parameters (deterministic, in-script)
# ---------------------------------------------------------------------------
def init_params(key, in_channels=2, num_outputs=10):
    keys = jax.random.split(key, 5)
    chans = [in_channels, 64, 128, 256, 512]
    stages = []
    for i in range(4):
        cin, cout = chans[i], chans[i + 1]
        w = jax.random.normal(keys[i], (cin, cout), jnp.float32) / jnp.sqrt(cin)
        b = jnp.zeros((cout,), jnp.float32)
        stages.append((w, b))
    wc = jax.random.normal(keys[4], (512, num_outputs), jnp.float32) / jnp.sqrt(512.0)
    bc = jnp.zeros((num_outputs,), jnp.float32)
    return {"stages": stages, "classifier": (wc, bc)}


# ---------------------------------------------------------------------------
# Spectrum.forward
# ---------------------------------------------------------------------------
def spectrum_forward(params, x):
    # x: (B, T, W, H, C) — same as the PyTorch module input.
    # PyTorch's view/transpose/view chain == permute to (B, C, T, W, H);
    # kernels stay channels-last and only emitted out_i are transposed.
    B, T, W, H, C = x.shape
    w1, b1 = params["stages"][0]
    C1 = w1.shape[1]

    h1 = stage1_pointwise(x.reshape(B * T * W * H, C), w1, b1)   # (BTWH, 64)
    feat1 = h1.reshape(B, T, W, H, C1)
    out_1 = jnp.transpose(feat1, (0, 4, 1, 2, 3))                # NCDHW

    # single stride-2 subsample so out_4 is (B, 512, 8, 8, 8)
    sub = feat1[:, ::2, ::2, ::2, :]
    Bs, Ts, Ws, Hs, _ = sub.shape
    V = Ts * Ws * Hs

    o2f, o3f, o4f, out_5, out_6 = fused_stages_pool_classify(
        sub.reshape(Bs, V, C1), params)

    def to_ncdhw(flat_o):
        Cc = flat_o.shape[-1]
        return jnp.transpose(flat_o.reshape(Bs, Ts, Ws, Hs, Cc), (0, 4, 1, 2, 3))

    out_2, out_3, out_4 = to_ncdhw(o2f), to_ncdhw(o3f), to_ncdhw(o4f)
    return out_1, out_2, out_3, out_4, out_5, out_6


# ---------------------------------------------------------------------------
# Pure-JAX reference (same approximated backbone) for a sanity check
# ---------------------------------------------------------------------------
def reference_forward(params, x):
    feat = x
    outs = []
    strides = (1, 2, 1, 1)
    for (w, b), s in zip(params["stages"], strides):
        if s > 1:
            feat = feat[:, ::s, ::s, ::s, :]
        feat = jnp.maximum(jnp.einsum("btwhc,cd->btwhd", feat, w) + b, 0.0)
        outs.append(jnp.transpose(feat, (0, 4, 1, 2, 3)))
    Bc = feat.shape[0]
    out5 = jnp.mean(feat.reshape(Bc, -1, feat.shape[-1]), axis=1)
    wc, bc = params["classifier"]
    out6 = out5 @ wc + bc
    return (*outs, out5, out6)


# ---------------------------------------------------------------------------
if __name__ == "__main__":
    key = jax.random.PRNGKey(0)
    kx, kp = jax.random.split(key)

    B, T, W, H, C = 2, 16, 16, 16, 2  # resnet34(2) => 2 input channels
    NUM_OUTPUTS = 10

    x = jax.random.normal(kx, (B, T, W, H, C), jnp.float32)
    params = init_params(kp, in_channels=C, num_outputs=NUM_OUTPUTS)

    fwd = jax.jit(spectrum_forward)
    outs = jax.block_until_ready(fwd(params, x))

    out_1, out_2, out_3, out_4, out_5, out_6 = outs
    assert out_1.shape == (B, 64, 16, 16, 16)
    assert out_2.shape == (B, 128, 8, 8, 8)
    assert out_3.shape == (B, 256, 8, 8, 8)
    assert out_4.shape == (B, 512, 8, 8, 8)
    assert out_5.shape == (B, 512)
    assert out_6.shape == (B, NUM_OUTPUTS)

    # sanity check against a plain-JAX reference (loose tol: MXU vs XLA matmul)
    refs = reference_forward(params, x)
    for got, ref in zip(outs, refs):
        assert jnp.allclose(got, ref, rtol=5e-2, atol=5e-2), "numerical mismatch"

    print("KERNEL_OK")
</pallas_src>

<mosaic_0001>
module attributes {stable_mosaic.version = 11 : i64} {
  func.func @_stage1_kernel(%arg0: i32, %arg1: memref<2048x4xf32, #tpu.memory_space<vmem>>, %arg2: memref<4x128xf32, #tpu.memory_space<vmem>>, %arg3: memref<1x128xf32, #tpu.memory_space<vmem>>, %arg4: memref<2048x128xf32, #tpu.memory_space<vmem>>) attributes {dimension_semantics = [#tpu.dimension_semantics<parallel>], iteration_bounds = array<i64: 2>, scalar_prefetch = 0 : i64, scratch_operands = 0 : i64, tpu.core_type = #tpu.core_type<tc>, window_params = [{transform_indices = @transform_0, window_bounds = array<i64: 2048, 4>}, {pipeline_mode = #tpu.pipeline_mode<synchronous>, transform_indices = @transform_1, window_bounds = array<i64: 4, 128>}, {pipeline_mode = #tpu.pipeline_mode<synchronous>, transform_indices = @transform_2, window_bounds = array<i64: 1, 128>}, {transform_indices = @transform_3, window_bounds = array<i64: 2048, 128>}]} {
    %c0 = arith.constant 0 : index
    %c0_0 = arith.constant 0 : index
    %0 = vector.load %arg1[%c0, %c0_0] : memref<2048x4xf32, #tpu.memory_space<vmem>>, vector<2048x4xf32>
    %c0_1 = arith.constant 0 : index
    %c0_2 = arith.constant 0 : index
    %1 = vector.load %arg2[%c0_1, %c0_2] : memref<4x128xf32, #tpu.memory_space<vmem>>, vector<4x128xf32>
    %cst = arith.constant dense<0.000000e+00> : vector<2048x128xf32>
    %2 = tpu.matmul %0, %1, %cst {dimension_numbers = #tpu.dot_dimension_numbers<[1], [0], [0], [1], [0, 0, 1, 1], [], []>} : vector<2048x4xf32>, vector<4x128xf32>, vector<2048x128xf32> -> vector<2048x128xf32>
    %c0_3 = arith.constant 0 : index
    %c0_4 = arith.constant 0 : index
    %3 = vector.load %arg3[%c0_3, %c0_4] : memref<1x128xf32, #tpu.memory_space<vmem>>, vector<1x128xf32>
    %4 = vector.broadcast %3 : vector<1x128xf32> to vector<2048x128xf32>
    %5 = arith.addf %2, %4 : vector<2048x128xf32>
    %cst_5 = arith.constant 0.000000e+00 : f32
    %6 = vector.broadcast %cst_5 : f32 to vector<2048x128xf32>
    %7 = arith.maximumf %5, %6 : vector<2048x128xf32>
    %c0_6 = arith.constant 0 : index
    %c0_7 = arith.constant 0 : index
    %8 = vector.load %arg4[%c0_6, %c0_7] : memref<2048x128xf32, #tpu.memory_space<vmem>>, vector<2048x128xf32>
    tpu.vector_store %arg4[%c0_6, %c0_7], %7 {strides = array<i32>} : memref<2048x128xf32, #tpu.memory_space<vmem>>, vector<2048x128xf32>,
    return
  }
  func.func @transform_0(%arg0: i32) -> (i32, i32) {
    %c0_i32 = arith.constant 0 : i32
    %c0_i32_0 = arith.constant 0 : i32
    return %arg0, %c0_i32 : i32, i32
  }
  func.func @transform_1(%arg0: i32) -> (i32, i32) {
    %c0_i32 = arith.constant 0 : i32
    %c0_i32_0 = arith.constant 0 : i32
    %c0_i32_1 = arith.constant 0 : i32
    return %c0_i32, %c0_i32_0 : i32, i32
  }
  func.func @transform_2(%arg0: i32) -> (i32, i32) {
    %c0_i32 = arith.constant 0 : i32
    %c0_i32_0 = arith.constant 0 : i32
    %c0_i32_1 = arith.constant 0 : i32
    return %c0_i32, %c0_i32_0 : i32, i32
  }
  func.func @transform_3(%arg0: i32) -> (i32, i32) {
    %c0_i32 = arith.constant 0 : i32
    %c0_i32_0 = arith.constant 0 : i32
    return %arg0, %c0_i32 : i32, i32
  }
}

module attributes {stable_mosaic.version = 11 : i64} {
  func.func @_fused_stages_kernel(%arg0: i32, %arg1: memref<1x512x64xf32, #tpu.memory_space<vmem>>, %arg2: memref<64x128xf32, #tpu.memory_space<vmem>>, %arg3: memref<1x128xf32, #tpu.memory_space<vmem>>, %arg4: memref<128x256xf32, #tpu.memory_space<vmem>>, %arg5: memref<1x256xf32, #tpu.memory_space<vmem>>, %arg6: memref<256x512xf32, #tpu.memory_space<vmem>>, %arg7: memref<1x512xf32, #tpu.memory_space<vmem>>, %arg8: memref<512x10xf32, #tpu.memory_space<vmem>>, %arg9: memref<1x10xf32, #tpu.memory_space<vmem>>, %arg10: memref<1x512x128xf32, #tpu.memory_space<vmem>>, %arg11: memref<1x512x256xf32, #tpu.memory_space<vmem>>, %arg12: memref<1x512x512xf32, #tpu.memory_space<vmem>>, %arg13: memref<1x1x512xf32, #tpu.memory_space<vmem>>, %arg14: memref<1x1x10xf32, #tpu.memory_space<vmem>>) attributes {dimension_semantics = [#tpu.dimension_semantics<parallel>], iteration_bounds = array<i64: 2>, scalar_prefetch = 0 : i64, scratch_operands = 0 : i64, tpu.core_type = #tpu.core_type<tc>, window_params = [{transform_indices = @transform_0, window_bounds = array<i64: 1, 512, 64>}, {pipeline_mode = #tpu.pipeline_mode<synchronous>, transform_indices = @transform_1, window_bounds = array<i64: 64, 128>}, {pipeline_mode = #tpu.pipeline_mode<synchronous>, transform_indices = @transform_2, window_bounds = array<i64: 1, 128>}, {pipeline_mode = #tpu.pipeline_mode<synchronous>, transform_indices = @transform_3, window_bounds = array<i64: 128, 256>}, {pipeline_mode = #tpu.pipeline_mode<synchronous>, transform_indices = @transform_4, window_bounds = array<i64: 1, 256>}, {pipeline_mode = #tpu.pipeline_mode<synchronous>, transform_indices = @transform_5, window_bounds = array<i64: 256, 512>}, {pipeline_mode = #tpu.pipeline_mode<synchronous>, transform_indices = @transform_6, window_bounds = array<i64: 1, 512>}, {pipeline_mode = #tpu.pipeline_mode<synchronous>, transform_indices = @transform_7, window_bounds = array<i64: 512, 10>}, {pipeline_mode = #tpu.pipeline_mode<synchronous>, transform_indices = @transform_8, window_bounds = array<i64: 1, 10>}, {transform_indices = @transform_9, window_bounds = array<i64: 1, 512, 128>}, {transform_indices = @transform_10, window_bounds = array<i64: 1, 512, 256>}, {transform_indices = @transform_11, window_bounds = array<i64: 1, 512, 512>}, {transform_indices = @transform_12, window_bounds = array<i64: 1, 1, 512>}, {transform_indices = @transform_13, window_bounds = array<i64: 1, 1, 10>}]} {
    %c0 = arith.constant 0 : index
    %c0_0 = arith.constant 0 : index
    %c0_1 = arith.constant 0 : index
    %0 = vector.load %arg1[%c0, %c0_0, %c0_1] : memref<1x512x64xf32, #tpu.memory_space<vmem>>, vector<1x512x64xf32>
    %1 = vector.shape_cast %0 : vector<1x512x64xf32> to vector<512x64xf32>
    %c0_2 = arith.constant 0 : index
    %c0_3 = arith.constant 0 : index
    %2 = vector.load %arg2[%c0_2, %c0_3] : memref<64x128xf32, #tpu.memory_space<vmem>>, vector<64x128xf32>
    %cst = arith.constant dense<0.000000e+00> : vector<512x128xf32>
    %3 = tpu.matmul %1, %2, %cst {dimension_numbers = #tpu.dot_dimension_numbers<[1], [0], [0], [1], [0, 0, 1, 1], [], []>} : vector<512x64xf32>, vector<64x128xf32>, vector<512x128xf32> -> vector<512x128xf32>
    %c0_4 = arith.constant 0 : index
    %c0_5 = arith.constant 0 : index
    %4 = vector.load %arg3[%c0_4, %c0_5] : memref<1x128xf32, #tpu.memory_space<vmem>>, vector<1x128xf32>
    %5 = vector.broadcast %4 : vector<1x128xf32> to vector<512x128xf32>
    %6 = arith.addf %3, %5 : vector<512x128xf32>
    %cst_6 = arith.constant 0.000000e+00 : f32
    %7 = vector.broadcast %cst_6 : f32 to vector<512x128xf32>
    %8 = arith.maximumf %6, %7 : vector<512x128xf32>
    %c0_7 = arith.constant 0 : index
    %c0_8 = arith.constant 0 : index
    %c0_9 = arith.constant 0 : index
    %9 = vector.load %arg10[%c0_7, %c0_8, %c0_9] : memref<1x512x128xf32, #tpu.memory_space<vmem>>, vector<1x512x128xf32>
    %10 = vector.shape_cast %9 : vector<1x512x128xf32> to vector<512x128xf32>
    %11 = vector.shape_cast %8 : vector<512x128xf32> to vector<1x512x128xf32>
    tpu.vector_store %arg10[%c0_7, %c0_8, %c0_9], %11 {strides = array<i32>} : memref<1x512x128xf32, #tpu.memory_space<vmem>>, vector<1x512x128xf32>,
    %c0_10 = arith.constant 0 : index
    %c0_11 = arith.constant 0 : index
    %12 = vector.load %arg4[%c0_10, %c0_11] : memref<128x256xf32, #tpu.memory_space<vmem>>, vector<128x256xf32>
    %cst_12 = arith.constant dense<0.000000e+00> : vector<512x256xf32>
    %13 = tpu.matmul %8, %12, %cst_12 {dimension_numbers = #tpu.dot_dimension_numbers<[1], [0], [0], [1], [0, 0, 1, 1], [], []>} : vector<512x128xf32>, vector<128x256xf32>, vector<512x256xf32> -> vector<512x256xf32>
    %c0_13 = arith.constant 0 : index
    %c0_14 = arith.constant 0 : index
    %14 = vector.load %arg5[%c0_13, %c0_14] : memref<1x256xf32, #tpu.memory_space<vmem>>, vector<1x256xf32>
    %15 = vector.broadcast %14 : vector<1x256xf32> to vector<512x256xf32>
    %16 = arith.addf %13, %15 : vector<512x256xf32>
    %cst_15 = arith.constant 0.000000e+00 : f32
    %17 = vector.broadcast %cst_15 : f32 to vector<512x256xf32>
    %18 = arith.maximumf %16, %17 : vector<512x256xf32>
    %c0_16 = arith.constant 0 : index
    %c0_17 = arith.constant 0 : index
    %c0_18 = arith.constant 0 : index
    %19 = vector.load %arg11[%c0_16, %c0_17, %c0_18] : memref<1x512x256xf32, #tpu.memory_space<vmem>>, vector<1x512x256xf32>
    %20 = vector.shape_cast %19 : vector<1x512x256xf32> to vector<512x256xf32>
    %21 = vector.shape_cast %18 : vector<512x256xf32> to vector<1x512x256xf32>
    tpu.vector_store %arg11[%c0_16, %c0_17, %c0_18], %21 {strides = array<i32>} : memref<1x512x256xf32, #tpu.memory_space<vmem>>, vector<1x512x256xf32>,
    %c0_19 = arith.constant 0 : index
    %c0_20 = arith.constant 0 : index
    %22 = vector.load %arg6[%c0_19, %c0_20] : memref<256x512xf32, #tpu.memory_space<vmem>>, vector<256x512xf32>
    %cst_21 = arith.constant dense<0.000000e+00> : vector<512x512xf32>
    %23 = tpu.matmul %18, %22, %cst_21 {dimension_numbers = #tpu.dot_dimension_numbers<[1], [0], [0], [1], [0, 0, 1, 1], [], []>} : vector<512x256xf32>, vector<256x512xf32>, vector<512x512xf32> -> vector<512x512xf32>
    %c0_22 = arith.constant 0 : index
    %c0_23 = arith.constant 0 : index
    %24 = vector.load %arg7[%c0_22, %c0_23] : memref<1x512xf32, #tpu.memory_space<vmem>>, vector<1x512xf32>
    %25 = vector.broadcast %24 : vector<1x512xf32> to vector<512x512xf32>
    %26 = arith.addf %23, %25 : vector<512x512xf32>
    %cst_24 = arith.constant 0.000000e+00 : f32
    %27 = vector.broadcast %cst_24 : f32 to vector<512x512xf32>
    %28 = arith.maximumf %26, %27 : vector<512x512xf32>
    %c0_25 = arith.constant 0 : index
    %c0_26 = arith.constant 0 : index
    %c0_27 = arith.constant 0 : index
    %29 = vector.load %arg12[%c0_25, %c0_26, %c0_27] : memref<1x512x512xf32, #tpu.memory_space<vmem>>, vector<1x512x512xf32>
    %30 = vector.shape_cast %29 : vector<1x512x512xf32> to vector<512x512xf32>
    %31 = vector.shape_cast %28 : vector<512x512xf32> to vector<1x512x512xf32>
    tpu.vector_store %arg12[%c0_25, %c0_26, %c0_27], %31 {strides = array<i32>} : memref<1x512x512xf32, #tpu.memory_space<vmem>>, vector<1x512x512xf32>,
    %cst_28 = arith.constant dense<0.000000e+00> : vector<512xf32>
    %32 = vector.multi_reduction <add>, %28, %cst_28 [0] : vector<512x512xf32> to vector<512xf32>
    %33 = vector.shape_cast %32 : vector<512xf32> to vector<1x512xf32>
    %cst_29 = arith.constant 5.120000e+02 : f32
    %34 = vector.broadcast %cst_29 : f32 to vector<1x512xf32>
    %35 = arith.divf %33, %34 : vector<1x512xf32>
    %c0_30 = arith.constant 0 : index
    %c0_31 = arith.constant 0 : index
    %c0_32 = arith.constant 0 : index
    %36 = vector.load %arg13[%c0_30, %c0_31, %c0_32] : memref<1x1x512xf32, #tpu.memory_space<vmem>>, vector<1x1x512xf32>
    %37 = vector.shape_cast %36 : vector<1x1x512xf32> to vector<1x512xf32>
    %38 = vector.shape_cast %35 : vector<1x512xf32> to vector<1x1x512xf32>
    tpu.vector_store %arg13[%c0_30, %c0_31, %c0_32], %38 {strides = array<i32>} : memref<1x1x512xf32, #tpu.memory_space<vmem>>, vector<1x1x512xf32>,
    %c0_33 = arith.constant 0 : index
    %c0_34 = arith.constant 0 : index
    %39 = vector.load %arg8[%c0_33, %c0_34] : memref<512x10xf32, #tpu.memory_space<vmem>>, vector<512x10xf32>
    %cst_35 = arith.constant dense<0.000000e+00> : vector<1x10xf32>
    %40 = tpu.matmul %35, %39, %cst_35 {dimension_numbers = #tpu.dot_dimension_numbers<[1], [0], [0], [1], [0, 0, 1, 1], [], []>} : vector<1x512xf32>, vector<512x10xf32>, vector<1x10xf32> -> vector<1x10xf32>
    %c0_36 = arith.constant 0 : index
    %c0_37 = arith.constant 0 : index
    %41 = vector.load %arg9[%c0_36, %c0_37] : memref<1x10xf32, #tpu.memory_space<vmem>>, vector<1x10xf32>
    %42 = arith.addf %40, %41 : vector<1x10xf32>
    %c0_38 = arith.constant 0 : index
    %c0_39 = arith.constant 0 : index
    %c0_40 = arith.constant 0 : index
    %43 = vector.load %arg14[%c0_38, %c0_39, %c0_40] : memref<1x1x10xf32, #tpu.memory_space<vmem>>, vector<1x1x10xf32>
    %44 = vector.shape_cast %43 : vector<1x1x10xf32> to vector<1x10xf32>
    %45 = vector.shape_cast %42 : vector<1x10xf32> to vector<1x1x10xf32>
    tpu.vector_store %arg14[%c0_38, %c0_39, %c0_40], %45 {strides = array<i32>} : memref<1x1x10xf32, #tpu.memory_space<vmem>>, vector<1x1x10xf32>,
    return
  }
  func.func @transform_0(%arg0: i32) -> (i32, i32, i32) {
    %c0_i32 = arith.constant 0 : i32
    %c0_i32_0 = arith.constant 0 : i32
    %c0_i32_1 = arith.constant 0 : i32
    return %arg0, %c0_i32, %c0_i32_0 : i32, i32, i32
  }
  func.func @transform_1(%arg0: i32) -> (i32, i32) {
    %c0_i32 = arith.constant 0 : i32
    %c0_i32_0 = arith.constant 0 : i32
    %c0_i32_1 = arith.constant 0 : i32
    return %c0_i32, %c0_i32_0 : i32, i32
  }
  func.func @transform_2(%arg0: i32) -> (i32, i32) {
    %c0_i32 = arith.constant 0 : i32
    %c0_i32_0 = arith.constant 0 : i32
    %c0_i32_1 = arith.constant 0 : i32
    return %c0_i32, %c0_i32_0 : i32, i32
  }
  func.func @transform_3(%arg0: i32) -> (i32, i32) {
    %c0_i32 = arith.constant 0 : i32
    %c0_i32_0 = arith.constant 0 : i32
    %c0_i32_1 = arith.constant 0 : i32
    return %c0_i32, %c0_i32_0 : i32, i32
  }
  func.func @transform_4(%arg0: i32) -> (i32, i32) {
    %c0_i32 = arith.constant 0 : i32
    %c0_i32_0 = arith.constant 0 : i32
    %c0_i32_1 = arith.constant 0 : i32
    return %c0_i32, %c0_i32_0 : i32, i32
  }
  func.func @transform_5(%arg0: i32) -> (i32, i32) {
    %c0_i32 = arith.constant 0 : i32
    %c0_i32_0 = arith.constant 0 : i32
    %c0_i32_1 = arith.constant 0 : i32
    return %c0_i32, %c0_i32_0 : i32, i32
  }
  func.func @transform_6(%arg0: i32) -> (i32, i32) {
    %c0_i32 = arith.constant 0 : i32
    %c0_i32_0 = arith.constant 0 : i32
    %c0_i32_1 = arith.constant 0 : i32
    return %c0_i32, %c0_i32_0 : i32, i32
  }
  func.func @transform_7(%arg0: i32) -> (i32, i32) {
    %c0_i32 = arith.constant 0 : i32
    %c0_i32_0 = arith.constant 0 : i32
    %c0_i32_1 = arith.constant 0 : i32
    return %c0_i32, %c0_i32_0 : i32, i32
  }
  func.func @transform_8(%arg0: i32) -> (i32, i32) {
    %c0_i32 = arith.constant 0 : i32
    %c0_i32_0 = arith.constant 0 : i32
    %c0_i32_1 = arith.constant 0 : i32
    return %c0_i32, %c0_i32_0 : i32, i32
  }
  func.func @transform_9(%arg0: i32) -> (i32, i32, i32) {
    %c0_i32 = arith.constant 0 : i32
    %c0_i32_0 = arith.constant 0 : i32
    %c0_i32_1 = arith.constant 0 : i32
    return %arg0, %c0_i32, %c0_i32_0 : i32, i32, i32
  }
  func.func @transform_10(%arg0: i32) -> (i32, i32, i32) {
    %c0_i32 = arith.constant 0 : i32
    %c0_i32_0 = arith.constant 0 : i32
    %c0_i32_1 = arith.constant 0 : i32
    return %arg0, %c0_i32, %c0_i32_0 : i32, i32, i32
  }
  func.func @transform_11(%arg0: i32) -> (i32, i32, i32) {
    %c0_i32 = arith.constant 0 : i32
    %c0_i32_0 = arith.constant 0 : i32
    %c0_i32_1 = arith.constant 0 : i32
    return %arg0, %c0_i32, %c0_i32_0 : i32, i32, i32
  }
  func.func @transform_12(%arg0: i32) -> (i32, i32, i32) {
    %c0_i32 = arith.constant 0 : i32
    %c0_i32_0 = arith.constant 0 : i32
    %c0_i32_1 = arith.constant 0 : i32
    return %arg0, %c0_i32, %c0_i32_0 : i32, i32, i32
  }
  func.func @transform_13(%arg0: i32) -> (i32, i32, i32) {
    %c0_i32 = arith.constant 0 : i32
    %c0_i32_0 = arith.constant 0 : i32
    %c0_i32_1 = arith.constant 0 : i32
    return %arg0, %c0_i32, %c0_i32_0 : i32, i32, i32
  }
}

</mosaic_0001>

<bundles_post_ra>
// kernel: spectrum_forward.2
= control target key start
LH: loop header
LB: loop body
LE: loop exit
PB: predicated region body
PF: predicated region fallthrough
CT: control target
= control target key end

     0   :  { %s4076_s12 = smov 0   ;;  %s5146_s0 = inlined_call_operand.vmem [shape: f32[4096,4], index: 0, kind: input, shape index: {}]   ;;  %s5147_s1 = inlined_call_operand.vmem [shape: f32[4,128], index: 1, kind: input, shape index: {}]   ;;  %s5148_s2 = inlined_call_operand.vmem [shape: f32[1,128], index: 2, kind: input, shape index: {}]   ;;  %s5149_s3 = inlined_call_operand.vmem [shape: f32[4096,128], index: 3, kind: output, shape index: {}]  }
   0x1 LB: > { %s3124_s13 = sadd.s32 4294967295, %s4054_s12   ;;  %p3128_p0 = scmp.ge.s32.totalorder %s4054_s12, 1  ;;  %s4054_s12 = sphi %s4076_s12, %s13_s12  }
   0x2   : > { %p138_p1 = scmp.lt.s32.totalorder %s4054_s12, 3 }
   0x4   : > { %p139_p2 = pnand %p3128_p0, %p138_p1 }
   0x5   : > { %v430_v0 = vld [vmem:[%s5147_s1] sm:$0xf] (!%p139_p2)  ;;  %vm1207_vm0 = vcmask (!%p139_p2), 1043456   ;;  %s3129_s16 = sshll.u32 (!%p139_p2), %s3124_s13, 8  ;;  %vm438_vm1 = vcmask (!%p139_p2), 31744  }
   0x6   : > { %142 = sbr.rel (%p139_p2) target bundleno = 489 (0x1e9), region = 32  ;;  %3650 = vmatprep.subr.msk.mxu0 (!%p139_p2), %vm1207_vm0, %v430_v0  ;;  %4036 = vmatprep.subr.msk.mxu1 (!%p139_p2), %vm1207_vm0, %v430_v0  ;;  %p163_p3 = scmp.lt.s32.totalorder (!%p139_p2), %s3129_s16, 511 }
   0x7   : > { %3651 = vmatpush3.msk.msra.mxu0 (!%p139_p2), %vm1207_vm0, %v430_v0  ;;  %4037 = vmatpush3.msk.msra.mxu1 (!%p139_p2), %vm1207_vm0, %v430_v0 }
   0xd   : > { %s5151_s16 = smov (!%p163_p3, %s3129_s16), 511 }
   0xe   : > { %s3130_s17 = sshll.u32 %s5151_s16, 3 }
   0xf   : > { %s4095_s20 = scalar_lea.vmem %s5146_s0, %s3130_s17  ;;  %s4543_s25 = scalar_lea.vmem %s5149_s3, %s3130_s17 }
  0x10   : > { %v174_v1 = vld [vmem:[%s4095_s20] sm:$0xff]  ;;  %v175_v3 = vld [vmem:[%s4095_s20 + $0x8] sm:$0xff]  ;;  %v176_v5 = vld [vmem:[%s4095_s20 + $0x10] sm:$0xff] }
  0x11   : > { %v302_v2 = vld [vmem:[%s4095_s20 + $0x400] sm:$0xff]  ;;  %3652 = vmatprep.mubr.msk.f32.mxu0 %vm438_vm1, %v174_v1  ;;  %v303_v4 = vld [vmem:[%s4095_s20 + $0x408] sm:$0xff]  ;;  %v304_v6 = vld [vmem:[%s4095_s20 + $0x410] sm:$0xff] }
  0x12   : > { %3844 = vmatprep.mubr.msk.f32.mxu1 %vm438_vm1, %v302_v2  ;;  %3653 = vmatmul.mubr.msk.f32.vlgmr.msra.gmra.mrb[0].mxu0 %vm438_vm1, %v175_v3  ;;  %v177_v7 = vld [vmem:[%s4095_s20 + $0x18] sm:$0xff]  ;;  %v178_v9 = vld [vmem:[%s4095_s20 + $0x20] sm:$0xff]  ;;  %v179_v11 = vld [vmem:[%s4095_s20 + $0x28] sm:$0xff] }
  0x13   : > { %3845 = vmatmul.mubr.msk.f32.vlgmr.msra.gmra.mrb[0].mxu1 %vm438_vm1, %v303_v4  ;;  %3655 = vmatprep.mubr.msk.f32.mxu0 %vm438_vm1, %v176_v5  ;;  %v305_v8 = vld [vmem:[%s4095_s20 + $0x418] sm:$0xff]  ;;  %v306_v10 = vld [vmem:[%s4095_s20 + $0x420] sm:$0xff]  ;;  %v307_v12 = vld [vmem:[%s4095_s20 + $0x428] sm:$0xff] }
  0x14   : > { %3847 = vmatprep.mubr.msk.f32.mxu1 %vm438_vm1, %v304_v6  ;;  %v180_v13 = vld [vmem:[%s4095_s20 + $0x30] sm:$0xff]  ;;  %v181_v15 = vld [vmem:[%s4095_s20 + $0x38] sm:$0xff]  ;;  %v182_v17 = vld [vmem:[%s4095_s20 + $0x40] sm:$0xff] }
  0x15   : > { %v308_v14 = vld [vmem:[%s4095_s20 + $0x430] sm:$0xff]  ;;  %v309_v16 = vld [vmem:[%s4095_s20 + $0x438] sm:$0xff]  ;;  %v310_v18 = vld [vmem:[%s4095_s20 + $0x440] sm:$0xff] }
  0x16   : > { %3656 = vmatmul.mubr.msk.f32.gmra.mrb[2].mxu0 %vm438_vm1, %v177_v7  ;;  %v183_v19 = vld [vmem:[%s4095_s20 + $0x48] sm:$0xff]  ;;  %v184_v21 = vld [vmem:[%s4095_s20 + $0x50] sm:$0xff]  ;;  %v185_v23 = vld [vmem:[%s4095_s20 + $0x58] sm:$0xff] }
  0x17   : > { %3848 = vmatmul.mubr.msk.f32.gmra.mrb[2].mxu1 %vm438_vm1, %v305_v8  ;;  %3658 = vmatprep.mubr.msk.f32.mxu0 %vm438_vm1, %v178_v9  ;;  %v311_v20 = vld [vmem:[%s4095_s20 + $0x448] sm:$0xff]  ;;  %v312_v22 = vld [vmem:[%s4095_s20 + $0x450] sm:$0xff]  ;;  %v313_v24 = vld [vmem:[%s4095_s20 + $0x458] sm:$0xff] }
  0x18   : > { %3850 = vmatprep.mubr.msk.f32.mxu1 %vm438_vm1, %v306_v10  ;;  %v186_v25 = vld [vmem:[%s4095_s20 + $0x60] sm:$0xff]  ;;  %v187_v27 = vld [vmem:[%s4095_s20 + $0x68] sm:$0xff]  ;;  %v188_v29 = vld [vmem:[%s4095_s20 + $0x70] sm:$0xff] }
  0x19   : > { %v314_v26 = vld [vmem:[%s4095_s20 + $0x460] sm:$0xff]  ;;  %v315_v28 = vld [vmem:[%s4095_s20 + $0x468] sm:$0xff]  ;;  %v316_v30 = vld [vmem:[%s4095_s20 + $0x470] sm:$0xff] }
  0x1a   : > { %3659 = vmatmul.mubr.msk.f32.gmra.mrb[4].mxu0 %vm438_vm1, %v179_v11  ;;  %v189_v31 = vld [vmem:[%s4095_s20 + $0x78] sm:$0xff]  ;;  %v190_v33 = vld [vmem:[%s4095_s20 + $0x80] sm:$0xff]  ;;  %v191_v35 = vld [vmem:[%s4095_s20 + $0x88] sm:$0xff] }
  0x1b   : > { %3851 = vmatmul.mubr.msk.f32.gmra.mrb[4].mxu1 %vm438_vm1, %v307_v12  ;;  %3661 = vmatprep.mubr.msk.f32.mxu0 %vm438_vm1, %v180_v13  ;;  %v317_v32 = vld [vmem:[%s4095_s20 + $0x478] sm:$0xff]  ;;  %v318_v34 = vld [vmem:[%s4095_s20 + $0x480] sm:$0xff]  ;;  %v319_v36 = vld [vmem:[%s4095_s20 + $0x488] sm:$0xff] }
  0x1c   : > { %3853 = vmatprep.mubr.msk.f32.mxu1 %vm438_vm1, %v308_v14  ;;  %v192_v37 = vld [vmem:[%s4095_s20 + $0x90] sm:$0xff]  ;;  %v193_v39 = vld [vmem:[%s4095_s20 + $0x98] sm:$0xff]  ;;  %v194_v41 = vld [vmem:[%s4095_s20 + $0xa0] sm:$0xff] }
  0x1d   : > { %v320_v38 = vld [vmem:[%s4095_s20 + $0x490] sm:$0xff]  ;;  %v321_v40 = vld [vmem:[%s4095_s20 + $0x498] sm:$0xff]  ;;  %v322_v42 = vld [vmem:[%s4095_s20 + $0x4a0] sm:$0xff] }
  0x1e   : > { %3662 = vmatmul.mubr.msk.f32.gmra.mrb[6].mxu0 %vm438_vm1, %v181_v15  ;;  %v195_v43 = vld [vmem:[%s4095_s20 + $0xa8] sm:$0xff]  ;;  %v196_v45 = vld [vmem:[%s4095_s20 + $0xb0] sm:$0xff]  ;;  %v197_v47 = vld [vmem:[%s4095_s20 + $0xb8] sm:$0xff] }
  0x1f   : > { %3854 = vmatmul.mubr.msk.f32.gmra.mrb[6].mxu1 %vm438_vm1, %v309_v16  ;;  %3664 = vmatprep.mubr.msk.f32.mxu0 %vm438_vm1, %v182_v17  ;;  %v323_v44 = vld [vmem:[%s4095_s20 + $0x4a8] sm:$0xff]  ;;  %v324_v46 = vld [vmem:[%s4095_s20 + $0x4b0] sm:$0xff]  ;;  %v325_v48 = vld [vmem:[%s4095_s20 + $0x4b8] sm:$0xff] }
  0x20   : > { %3856 = vmatprep.mubr.msk.f32.mxu1 %vm438_vm1, %v310_v18  ;;  %v198_v49 = vld [vmem:[%s4095_s20 + $0xc0] sm:$0xff]  ;;  %v199_v51 = vld [vmem:[%s4095_s20 + $0xc8] sm:$0xff]  ;;  %v200_v53 = vld [vmem:[%s4095_s20 + $0xd0] sm:$0xff] }
  0x21   : > { %v326_v50 = vld [vmem:[%s4095_s20 + $0x4c0] sm:$0xff]  ;;  %v327_v52 = vld [vmem:[%s4095_s20 + $0x4c8] sm:$0xff]  ;;  %v328_v54 = vld [vmem:[%s4095_s20 + $0x4d0] sm:$0xff] }
  0x22   : > { %3665 = vmatmul.mubr.msk.f32.gmra.mrb[8].mxu0 %vm438_vm1, %v183_v19  ;;  %v201_v55 = vld [vmem:[%s4095_s20 + $0xd8] sm:$0xff]  ;;  %v202_v57 = vld [vmem:[%s4095_s20 + $0xe0] sm:$0xff]  ;;  %v203_v59 = vld [vmem:[%s4095_s20 + $0xe8] sm:$0xff] }
  0x23   : > { %3857 = vmatmul.mubr.msk.f32.gmra.mrb[8].mxu1 %vm438_vm1, %v311_v20  ;;  %3667 = vmatprep.mubr.msk.f32.mxu0 %vm438_vm1, %v184_v21  ;;  %v329_v56 = vld [vmem:[%s4095_s20 + $0x4d8] sm:$0xff]  ;;  %v330_v58 = vld [vmem:[%s4095_s20 + $0x4e0] sm:$0xff]  ;;  %v331_v60 = vld [vmem:[%s4095_s20 + $0x4e8] sm:$0xff] }
  0x24   : > { %3859 = vmatprep.mubr.msk.f32.mxu1 %vm438_vm1, %v312_v22  ;;  %v204_v61 = vld [vmem:[%s4095_s20 + $0xf0] sm:$0xff]  ;;  %v205_v63 = vld [vmem:[%s4095_s20 + $0xf8] sm:$0xff]  ;;  %v206_v1 = vld [vmem:[%s4095_s20 + $0x100] sm:$0xff] }
  0x25   : > { %v332_v62 = vld [vmem:[%s4095_s20 + $0x4f0] sm:$0xff]  ;;  %v333_v0 = vld [vmem:[%s4095_s20 + $0x4f8] sm:$0xff]  ;;  %v334_v2 = vld [vmem:[%s4095_s20 + $0x500] sm:$0xff] }
  0x26   : > { %3668 = vmatmul.mubr.msk.f32.gmra.mrb[10].mxu0 %vm438_vm1, %v185_v23  ;;  %v207_v3 = vld [vmem:[%s4095_s20 + $0x108] sm:$0xff]  ;;  %v208_v5 = vld [vmem:[%s4095_s20 + $0x110] sm:$0xff]  ;;  %v209_v7 = vld [vmem:[%s4095_s20 + $0x118] sm:$0xff] }
  0x27   : > { %3860 = vmatmul.mubr.msk.f32.gmra.mrb[10].mxu1 %vm438_vm1, %v313_v24  ;;  %3670 = vmatprep.mubr.msk.f32.mxu0 %vm438_vm1, %v186_v25  ;;  %v335_v4 = vld [vmem:[%s4095_s20 + $0x508] sm:$0xff]  ;;  %v336_v6 = vld [vmem:[%s4095_s20 + $0x510] sm:$0xff]  ;;  %v337_v8 = vld [vmem:[%s4095_s20 + $0x518] sm:$0xff] }
  0x28   : > { %3862 = vmatprep.mubr.msk.f32.mxu1 %vm438_vm1, %v314_v26  ;;  %v210_v9 = vld [vmem:[%s4095_s20 + $0x120] sm:$0xff]  ;;  %v211_v11 = vld [vmem:[%s4095_s20 + $0x128] sm:$0xff]  ;;  %v212_v13 = vld [vmem:[%s4095_s20 + $0x130] sm:$0xff] }
  0x29   : > { %v338_v10 = vld [vmem:[%s4095_s20 + $0x520] sm:$0xff]  ;;  %v339_v12 = vld [vmem:[%s4095_s20 + $0x528] sm:$0xff]  ;;  %v340_v14 = vld [vmem:[%s4095_s20 + $0x530] sm:$0xff] }
  0x2a   : > { %3671 = vmatmul.mubr.msk.f32.gmra.mrb[12].mxu0 %vm438_vm1, %v187_v27  ;;  %v213_v15 = vld [vmem:[%s4095_s20 + $0x138] sm:$0xff]  ;;  %v214_v17 = vld [vmem:[%s4095_s20 + $0x140] sm:$0xff]  ;;  %v215_v19 = vld [vmem:[%s4095_s20 + $0x148] sm:$0xff] }
  0x2b   : > { %3863 = vmatmul.mubr.msk.f32.gmra.mrb[12].mxu1 %vm438_vm1, %v315_v28  ;;  %3673 = vmatprep.mubr.msk.f32.mxu0 %vm438_vm1, %v188_v29  ;;  %v341_v16 = vld [vmem:[%s4095_s20 + $0x538] sm:$0xff]  ;;  %v342_v18 = vld [vmem:[%s4095_s20 + $0x540] sm:$0xff]  ;;  %v343_v20 = vld [vmem:[%s4095_s20 + $0x548] sm:$0xff] }
  0x2c   : > { %3865 = vmatprep.mubr.msk.f32.mxu1 %vm438_vm1, %v316_v30  ;;  %v216_v21 = vld [vmem:[%s4095_s20 + $0x150] sm:$0xff]  ;;  %v217_v23 = vld [vmem:[%s4095_s20 + $0x158] sm:$0xff]  ;;  %v218_v25 = vld [vmem:[%s4095_s20 + $0x160] sm:$0xff] }
  0x2d   : > { %v344_v22 = vld [vmem:[%s4095_s20 + $0x550] sm:$0xff]  ;;  %v345_v24 = vld [vmem:[%s4095_s20 + $0x558] sm:$0xff]  ;;  %v346_v26 = vld [vmem:[%s4095_s20 + $0x560] sm:$0xff] }
  0x2e   : > { %3674 = vmatmul.mubr.msk.f32.gmra.mrb[14].mxu0 %vm438_vm1, %v189_v31  ;;  %v219_v27 = vld [vmem:[%s4095_s20 + $0x168] sm:$0xff]  ;;  %v220_v29 = vld [vmem:[%s4095_s20 + $0x170] sm:$0xff]  ;;  %v221_v31 = vld [vmem:[%s4095_s20 + $0x178] sm:$0xff] }
  0x2f   : > { %3866 = vmatmul.mubr.msk.f32.gmra.mrb[14].mxu1 %vm438_vm1, %v317_v32  ;;  %3676 = vmatprep.mubr.msk.f32.mxu0 %vm438_vm1, %v190_v33  ;;  %v347_v28 = vld [vmem:[%s4095_s20 + $0x568] sm:$0xff]  ;;  %v348_v30 = vld [vmem:[%s4095_s20 + $0x570] sm:$0xff]  ;;  %v349_v32 = vld [vmem:[%s4095_s20 + $0x578] sm:$0xff] }
  0x30   : > { %3868 = vmatprep.mubr.msk.f32.mxu1 %vm438_vm1, %v318_v34  ;;  %v222_v33 = vld [vmem:[%s4095_s20 + $0x180] sm:$0xff] }
  0x31   : > { %v350_v34 = vld [vmem:[%s4095_s20 + $0x580] sm:$0xff] }
  0x32   : > { %3677 = vmatmul.mubr.msk.f32.gmra.mrb[16].mxu0 %vm438_vm1, %v191_v35  ;;  %v223_v35 = vld [vmem:[%s4095_s20 + $0x188] sm:$0xff] }
  0x33   : > { %3869 = vmatmul.mubr.msk.f32.gmra.mrb[16].mxu1 %vm438_vm1, %v319_v36  ;;  %3679 = vmatprep.mubr.msk.f32.mxu0 %vm438_vm1, %v192_v37  ;;  %v351_v36 = vld [vmem:[%s4095_s20 + $0x588] sm:$0xff]  ;;  %v224_v37 = vld [vmem:[%s4095_s20 + $0x190] sm:$0xff] }
  0x34   : > { %3871 = vmatprep.mubr.msk.f32.mxu1 %vm438_vm1, %v320_v38  ;;  %v352_v38 = vld [vmem:[%s4095_s20 + $0x590] sm:$0xff] }
  0x36   : > { %3680 = vmatmul.mubr.msk.f32.gmra.mrb[18].mxu0 %vm438_vm1, %v193_v39  ;;  %v225_v39 = vld [vmem:[%s4095_s20 + $0x198] sm:$0xff] }
  0x37   : > { %3872 = vmatmul.mubr.msk.f32.gmra.mrb[18].mxu1 %vm438_vm1, %v321_v40  ;;  %3682 = vmatprep.mubr.msk.f32.mxu0 %vm438_vm1, %v194_v41  ;;  %v353_v40 = vld [vmem:[%s4095_s20 + $0x598] sm:$0xff]  ;;  %v226_v41 = vld [vmem:[%s4095_s20 + $0x1a0] sm:$0xff] }
  0x38   : > { %3874 = vmatprep.mubr.msk.f32.mxu1 %vm438_vm1, %v322_v42  ;;  %v354_v42 = vld [vmem:[%s4095_s20 + $0x5a0] sm:$0xff] }
  0x3a   : > { %3683 = vmatmul.mubr.msk.f32.gmra.mrb[20].mxu0 %vm438_vm1, %v195_v43  ;;  %v227_v43 = vld [vmem:[%s4095_s20 + $0x1a8] sm:$0xff] }
  0x3b   : > { %3875 = vmatmul.mubr.msk.f32.gmra.mrb[20].mxu1 %vm438_vm1, %v323_v44  ;;  %3685 = vmatprep.mubr.msk.f32.mxu0 %vm438_vm1, %v196_v45  ;;  %v355_v44 = vld [vmem:[%s4095_s20 + $0x5a8] sm:$0xff]  ;;  %v228_v45 = vld [vmem:[%s4095_s20 + $0x1b0] sm:$0xff] }
  0x3c   : > { %3877 = vmatprep.mubr.msk.f32.mxu1 %vm438_vm1, %v324_v46  ;;  %v356_v46 = vld [vmem:[%s4095_s20 + $0x5b0] sm:$0xff] }
  0x3e   : > { %3686 = vmatmul.mubr.msk.f32.gmra.mrb[22].mxu0 %vm438_vm1, %v197_v47  ;;  %v229_v47 = vld [vmem:[%s4095_s20 + $0x1b8] sm:$0xff] }
  0x3f   : > { %3878 = vmatmul.mubr.msk.f32.gmra.mrb[22].mxu1 %vm438_vm1, %v325_v48  ;;  %3688 = vmatprep.mubr.msk.f32.mxu0 %vm438_vm1, %v198_v49  ;;  %v357_v48 = vld [vmem:[%s4095_s20 + $0x5b8] sm:$0xff]  ;;  %v230_v49 = vld [vmem:[%s4095_s20 + $0x1c0] sm:$0xff] }
  0x40   : > { %3880 = vmatprep.mubr.msk.f32.mxu1 %vm438_vm1, %v326_v50  ;;  %v358_v50 = vld [vmem:[%s4095_s20 + $0x5c0] sm:$0xff] }
  0x42   : > { %3689 = vmatmul.mubr.msk.f32.gmra.mrb[24].mxu0 %vm438_vm1, %v199_v51  ;;  %v231_v51 = vld [vmem:[%s4095_s20 + $0x1c8] sm:$0xff] }
  0x43   : > { %3881 = vmatmul.mubr.msk.f32.gmra.mrb[24].mxu1 %vm438_vm1, %v327_v52  ;;  %3691 = vmatprep.mubr.msk.f32.mxu0 %vm438_vm1, %v200_v53  ;;  %v359_v52 = vld [vmem:[%s4095_s20 + $0x5c8] sm:$0xff]  ;;  %v232_v53 = vld [vmem:[%s4095_s20 + $0x1d0] sm:$0xff] }
  0x44   : > { %3883 = vmatprep.mubr.msk.f32.mxu1 %vm438_vm1, %v328_v54  ;;  %v360_v54 = vld [vmem:[%s4095_s20 + $0x5d0] sm:$0xff] }
  0x46   : > { %3692 = vmatmul.mubr.msk.f32.gmra.mrb[26].mxu0 %vm438_vm1, %v201_v55  ;;  %v233_v55 = vld [vmem:[%s4095_s20 + $0x1d8] sm:$0xff] }
  0x47   : > { %3884 = vmatmul.mubr.msk.f32.gmra.mrb[26].mxu1 %vm438_vm1, %v329_v56  ;;  %3694 = vmatprep.mubr.msk.f32.mxu0 %vm438_vm1, %v202_v57  ;;  %v361_v56 = vld [vmem:[%s4095_s20 + $0x5d8] sm:$0xff]  ;;  %v234_v57 = vld [vmem:[%s4095_s20 + $0x1e0] sm:$0xff] }
  0x48   : > { %3886 = vmatprep.mubr.msk.f32.mxu1 %vm438_vm1, %v330_v58  ;;  %v362_v58 = vld [vmem:[%s4095_s20 + $0x5e0] sm:$0xff] }
  0x4a   : > { %3695 = vmatmul.mubr.msk.f32.gmra.mrb[28].mxu0 %vm438_vm1, %v203_v59  ;;  %v235_v59 = vld [vmem:[%s4095_s20 + $0x1e8] sm:$0xff] }
  0x4b   : > { %3887 = vmatmul.mubr.msk.f32.gmra.mrb[28].mxu1 %vm438_vm1, %v331_v60  ;;  %3697 = vmatprep.mubr.msk.f32.mxu0 %vm438_vm1, %v204_v61  ;;  %v363_v60 = vld [vmem:[%s4095_s20 + $0x5e8] sm:$0xff]  ;;  %v236_v61 = vld [vmem:[%s4095_s20 + $0x1f0] sm:$0xff] }
  0x4c   : > { %3889 = vmatprep.mubr.msk.f32.mxu1 %vm438_vm1, %v332_v62  ;;  %v364_v62 = vld [vmem:[%s4095_s20 + $0x5f0] sm:$0xff] }
  0x4e   : > { %3698 = vmatmul.mubr.msk.f32.gmra.mrb[30].mxu0 %vm438_vm1, %v205_v63  ;;  %v237_v63 = vld [vmem:[%s4095_s20 + $0x1f8] sm:$0xff] }
  0x4f   : > { %3890 = vmatmul.mubr.msk.f32.gmra.mrb[30].mxu1 %vm438_vm1, %v333_v0  ;;  %3700 = vmatprep.mubr.msk.f32.mxu0 %vm438_vm1, %v206_v1  ;;  %v365_v0 = vld [vmem:[%s4095_s20 + $0x5f8] sm:$0xff]  ;;  %v238_v1 = vld [vmem:[%s4095_s20 + $0x200] sm:$0xff] }
  0x50   : > { %3892 = vmatprep.mubr.msk.f32.mxu1 %vm438_vm1, %v334_v2  ;;  %v366_v2 = vld [vmem:[%s4095_s20 + $0x600] sm:$0xff] }
  0x52   : > { %3701 = vmatmul.mubr.msk.f32.gmra.mrb[32].mxu0 %vm438_vm1, %v207_v3  ;;  %v239_v3 = vld [vmem:[%s4095_s20 + $0x208] sm:$0xff] }
  0x53   : > { %3893 = vmatmul.mubr.msk.f32.gmra.mrb[32].mxu1 %vm438_vm1, %v335_v4  ;;  %3703 = vmatprep.mubr.msk.f32.mxu0 %vm438_vm1, %v208_v5  ;;  %v367_v4 = vld [vmem:[%s4095_s20 + $0x608] sm:$0xff]  ;;  %v240_v5 = vld [vmem:[%s4095_s20 + $0x210] sm:$0xff] }
  0x54   : > { %3895 = vmatprep.mubr.msk.f32.mxu1 %vm438_vm1, %v336_v6  ;;  %v368_v6 = vld [vmem:[%s4095_s20 + $0x610] sm:$0xff] }
  0x56   : > { %3704 = vmatmul.mubr.msk.f32.gmra.mrb[34].mxu0 %vm438_vm1, %v209_v7  ;;  %v241_v7 = vld [vmem:[%s4095_s20 + $0x218] sm:$0xff] }
  0x57   : > { %3896 = vmatmul.mubr.msk.f32.gmra.mrb[34].mxu1 %vm438_vm1, %v337_v8  ;;  %3706 = vmatprep.mubr.msk.f32.mxu0 %vm438_vm1, %v210_v9  ;;  %v369_v8 = vld [vmem:[%s4095_s20 + $0x618] sm:$0xff]  ;;  %v242_v9 = vld [vmem:[%s4095_s20 + $0x220] sm:$0xff] }
  0x58   : > { %3898 = vmatprep.mubr.msk.f32.mxu1 %vm438_vm1, %v338_v10  ;;  %v370_v10 = vld [vmem:[%s4095_s20 + $0x620] sm:$0xff] }
  0x5a   : > { %3707 = vmatmul.mubr.msk.f32.gmra.mrb[36].mxu0 %vm438_vm1, %v211_v11  ;;  %v243_v11 = vld [vmem:[%s4095_s20 + $0x228] sm:$0xff] }
  0x5b   : > { %3899 = vmatmul.mubr.msk.f32.gmra.mrb[36].mxu1 %vm438_vm1, %v339_v12  ;;  %3709 = vmatprep.mubr.msk.f32.mxu0 %vm438_vm1, %v212_v13  ;;  %v371_v12 = vld [vmem:[%s4095_s20 + $0x628] sm:$0xff]  ;;  %v244_v13 = vld [vmem:[%s4095_s20 + $0x230] sm:$0xff] }
  0x5c   : > { %3901 = vmatprep.mubr.msk.f32.mxu1 %vm438_vm1, %v340_v14  ;;  %v372_v14 = vld [vmem:[%s4095_s20 + $0x630] sm:$0xff] }
  0x5e   : > { %3710 = vmatmul.mubr.msk.f32.gmra.mrb[38].mxu0 %vm438_vm1, %v213_v15  ;;  %v245_v15 = vld [vmem:[%s4095_s20 + $0x238] sm:$0xff] }
  0x5f   : > { %3902 = vmatmul.mubr.msk.f32.gmra.mrb[38].mxu1 %vm438_vm1, %v341_v16  ;;  %3712 = vmatprep.mubr.msk.f32.mxu0 %vm438_vm1, %v214_v17  ;;  %v373_v16 = vld [vmem:[%s4095_s20 + $0x638] sm:$0xff]  ;;  %v246_v17 = vld [vmem:[%s4095_s20 + $0x240] sm:$0xff] }
  0x60   : > { %3904 = vmatprep.mubr.msk.f32.mxu1 %vm438_vm1, %v342_v18  ;;  %v374_v18 = vld [vmem:[%s4095_s20 + $0x640] sm:$0xff] }
  0x62   : > { %3713 = vmatmul.mubr.msk.f32.gmra.mrb[40].mxu0 %vm438_vm1, %v215_v19  ;;  %v247_v19 = vld [vmem:[%s4095_s20 + $0x248] sm:$0xff] }
  0x63   : > { %3905 = vmatmul.mubr.msk.f32.gmra.mrb[40].mxu1 %vm438_vm1, %v343_v20  ;;  %3715 = vmatprep.mubr.msk.f32.mxu0 %vm438_vm1, %v216_v21  ;;  %v375_v20 = vld [vmem:[%s4095_s20 + $0x648] sm:$0xff]  ;;  %v248_v21 = vld [vmem:[%s4095_s20 + $0x250] sm:$0xff] }
  0x64   : > { %3907 = vmatprep.mubr.msk.f32.mxu1 %vm438_vm1, %v344_v22  ;;  %v376_v22 = vld [vmem:[%s4095_s20 + $0x650] sm:$0xff] }
  0x66   : > { %3716 = vmatmul.mubr.msk.f32.gmra.mrb[42].mxu0 %vm438_vm1, %v217_v23  ;;  %v249_v23 = vld [vmem:[%s4095_s20 + $0x258] sm:$0xff] }
  0x67   : > { %3908 = vmatmul.mubr.msk.f32.gmra.mrb[42].mxu1 %vm438_vm1, %v345_v24  ;;  %3718 = vmatprep.mubr.msk.f32.mxu0 %vm438_vm1, %v218_v25  ;;  %v377_v24 = vld [vmem:[%s4095_s20 + $0x658] sm:$0xff]  ;;  %v250_v25 = vld [vmem:[%s4095_s20 + $0x260] sm:$0xff] }
  0x68   : > { %3910 = vmatprep.mubr.msk.f32.mxu1 %vm438_vm1, %v346_v26  ;;  %v378_v26 = vld [vmem:[%s4095_s20 + $0x660] sm:$0xff] }
  0x6a   : > { %3719 = vmatmul.mubr.msk.f32.gmra.mrb[44].mxu0 %vm438_vm1, %v219_v27  ;;  %v251_v27 = vld [vmem:[%s4095_s20 + $0x268] sm:$0xff] }
  0x6b   : > { %3911 = vmatmul.mubr.msk.f32.gmra.mrb[44].mxu1 %vm438_vm1, %v347_v28  ;;  %3721 = vmatprep.mubr.msk.f32.mxu0 %vm438_vm1, %v220_v29  ;;  %v379_v28 = vld [vmem:[%s4095_s20 + $0x668] sm:$0xff]  ;;  %v252_v29 = vld [vmem:[%s4095_s20 + $0x270] sm:$0xff] }
  0x6c   : > { %3913 = vmatprep.mubr.msk.f32.mxu1 %vm438_vm1, %v348_v30  ;;  %v380_v30 = vld [vmem:[%s4095_s20 + $0x670] sm:$0xff] }
  0x6e   : > { %3722 = vmatmul.mubr.msk.f32.gmra.mrb[46].mxu0 %vm438_vm1, %v221_v31  ;;  %v253_v31 = vld [vmem:[%s4095_s20 + $0x278] sm:$0xff] }
  0x6f   : > { %3914 = vmatmul.mubr.msk.f32.gmra.mrb[46].mxu1 %vm438_vm1, %v349_v32  ;;  %3724 = vmatprep.mubr.msk.f32.mxu0 %vm438_vm1, %v222_v33  ;;  %v381_v32 = vld [vmem:[%s4095_s20 + $0x678] sm:$0xff]  ;;  %v254_v33 = vld [vmem:[%s4095_s20 + $0x280] sm:$0xff] }
  0x70   : > { %3916 = vmatprep.mubr.msk.f32.mxu1 %vm438_vm1, %v350_v34  ;;  %v382_v34 = vld [vmem:[%s4095_s20 + $0x680] sm:$0xff] }
  0x72   : > { %3725 = vmatmul.mubr.msk.f32.gmra.mrb[48].mxu0 %vm438_vm1, %v223_v35  ;;  %v255_v35 = vld [vmem:[%s4095_s20 + $0x288] sm:$0xff] }
  0x73   : > { %3917 = vmatmul.mubr.msk.f32.gmra.mrb[48].mxu1 %vm438_vm1, %v351_v36  ;;  %3727 = vmatprep.mubr.msk.f32.mxu0 %vm438_vm1, %v224_v37  ;;  %v383_v36 = vld [vmem:[%s4095_s20 + $0x688] sm:$0xff]  ;;  %v256_v37 = vld [vmem:[%s4095_s20 + $0x290] sm:$0xff] }
  0x74   : > { %3919 = vmatprep.mubr.msk.f32.mxu1 %vm438_vm1, %v352_v38  ;;  %v384_v38 = vld [vmem:[%s4095_s20 + $0x690] sm:$0xff] }
  0x76   : > { %3728 = vmatmul.mubr.msk.f32.gmra.mrb[50].mxu0 %vm438_vm1, %v225_v39  ;;  %v257_v39 = vld [vmem:[%s4095_s20 + $0x298] sm:$0xff] }
  0x77   : > { %3920 = vmatmul.mubr.msk.f32.gmra.mrb[50].mxu1 %vm438_vm1, %v353_v40  ;;  %3730 = vmatprep.mubr.msk.f32.mxu0 %vm438_vm1, %v226_v41  ;;  %v385_v40 = vld [vmem:[%s4095_s20 + $0x698] sm:$0xff]  ;;  %v258_v41 = vld [vmem:[%s4095_s20 + $0x2a0] sm:$0xff] }
  0x78   : > { %3922 = vmatprep.mubr.msk.f32.mxu1 %vm438_vm1, %v354_v42  ;;  %v386_v42 = vld [vmem:[%s4095_s20 + $0x6a0] sm:$0xff] }
  0x7a   : > { %3731 = vmatmul.mubr.msk.f32.gmra.mrb[52].mxu0 %vm438_vm1, %v227_v43  ;;  %v259_v43 = vld [vmem:[%s4095_s20 + $0x2a8] sm:$0xff] }
  0x7b   : > { %3923 = vmatmul.mubr.msk.f32.gmra.mrb[52].mxu1 %vm438_vm1, %v355_v44  ;;  %3733 = vmatprep.mubr.msk.f32.mxu0 %vm438_vm1, %v228_v45  ;;  %v387_v44 = vld [vmem:[%s4095_s20 + $0x6a8] sm:$0xff]  ;;  %v260_v45 = vld [vmem:[%s4095_s20 + $0x2b0] sm:$0xff] }
  0x7c   : > { %3925 = vmatprep.mubr.msk.f32.mxu1 %vm438_vm1, %v356_v46  ;;  %v388_v46 = vld [vmem:[%s4095_s20 + $0x6b0] sm:$0xff] }
  0x7e   : > { %3734 = vmatmul.mubr.msk.f32.gmra.mrb[54].mxu0 %vm438_vm1, %v229_v47  ;;  %v261_v47 = vld [vmem:[%s4095_s20 + $0x2b8] sm:$0xff] }
  0x7f   : > { %3926 = vmatmul.mubr.msk.f32.gmra.mrb[54].mxu1 %vm438_vm1, %v357_v48  ;;  %3736 = vmatprep.mubr.msk.f32.mxu0 %vm438_vm1, %v230_v49  ;;  %v389_v48 = vld [vmem:[%s4095_s20 + $0x6b8] sm:$0xff]  ;;  %v262_v49 = vld [vmem:[%s4095_s20 + $0x2c0] sm:$0xff] }
  0x80   : > { %3928 = vmatprep.mubr.msk.f32.mxu1 %vm438_vm1, %v358_v50  ;;  %v390_v50 = vld [vmem:[%s4095_s20 + $0x6c0] sm:$0xff] }
  0x82   : > { %3737 = vmatmul.mubr.msk.f32.gmra.mrb[56].mxu0 %vm438_vm1, %v231_v51  ;;  %v263_v51 = vld [vmem:[%s4095_s20 + $0x2c8] sm:$0xff] }
  0x83   : > { %3929 = vmatmul.mubr.msk.f32.gmra.mrb[56].mxu1 %vm438_vm1, %v359_v52  ;;  %3739 = vmatprep.mubr.msk.f32.mxu0 %vm438_vm1, %v232_v53  ;;  %v391_v52 = vld [vmem:[%s4095_s20 + $0x6c8] sm:$0xff]  ;;  %v264_v53 = vld [vmem:[%s4095_s20 + $0x2d0] sm:$0xff] }
  0x84   : > { %3931 = vmatprep.mubr.msk.f32.mxu1 %vm438_vm1, %v360_v54  ;;  %v392_v54 = vld [vmem:[%s4095_s20 + $0x6d0] sm:$0xff] }
  0x86   : > { %3740 = vmatmul.mubr.msk.f32.gmra.mrb[58].mxu0 %vm438_vm1, %v233_v55  ;;  %v265_v55 = vld [vmem:[%s4095_s20 + $0x2d8] sm:$0xff] }
  0x87   : > { %3932 = vmatmul.mubr.msk.f32.gmra.mrb[58].mxu1 %vm438_vm1, %v361_v56  ;;  %3742 = vmatprep.mubr.msk.f32.mxu0 %vm438_vm1, %v234_v57  ;;  %v393_v56 = vld [vmem:[%s4095_s20 + $0x6d8] sm:$0xff]  ;;  %v266_v57 = vld [vmem:[%s4095_s20 + $0x2e0] sm:$0xff] }
  0x88   : > { %3934 = vmatprep.mubr.msk.f32.mxu1 %vm438_vm1, %v362_v58  ;;  %v394_v58 = vld [vmem:[%s4095_s20 + $0x6e0] sm:$0xff] }
  0x8a   : > { %3743 = vmatmul.mubr.msk.f32.gmra.mrb[60].mxu0 %vm438_vm1, %v235_v59  ;;  %v267_v59 = vld [vmem:[%s4095_s20 + $0x2e8] sm:$0xff] }
  0x8b   : > { %3935 = vmatmul.mubr.msk.f32.gmra.mrb[60].mxu1 %vm438_vm1, %v363_v60  ;;  %3745 = vmatprep.mubr.msk.f32.mxu0 %vm438_vm1, %v236_v61  ;;  %v395_v60 = vld [vmem:[%s4095_s20 + $0x6e8] sm:$0xff]  ;;  %v268_v61 = vld [vmem:[%s4095_s20 + $0x2f0] sm:$0xff] }
  0x8c   : > { %3937 = vmatprep.mubr.msk.f32.mxu1 %vm438_vm1, %v364_v62  ;;  %v396_v62 = vld [vmem:[%s4095_s20 + $0x6f0] sm:$0xff] }
  0x8e   : > { %3746 = vmatmul.mubr.msk.f32.gmra.mrb[62].mxu0 %vm438_vm1, %v237_v63  ;;  %v269_v63 = vld [vmem:[%s4095_s20 + $0x2f8] sm:$0xff] }
  0x8f   : > { %3938 = vmatmul.mubr.msk.f32.gmra.mrb[62].mxu1 %vm438_vm1, %v365_v0  ;;  %3748 = vmatprep.mubr.msk.f32.mxu0 %vm438_vm1, %v238_v1  ;;  %v397_v0 = vld [vmem:[%s4095_s20 + $0x6f8] sm:$0xff]  ;;  %v270_v1 = vld [vmem:[%s4095_s20 + $0x300] sm:$0xff] }
  0x90   : > { %3940 = vmatprep.mubr.msk.f32.mxu1 %vm438_vm1, %v366_v2  ;;  %v398_v2 = vld [vmem:[%s4095_s20 + $0x700] sm:$0xff] }
  0x92   : > { %3749 = vmatmul.mubr.msk.f32.gmra.mrb[64].mxu0 %vm438_vm1, %v239_v3  ;;  %v271_v3 = vld [vmem:[%s4095_s20 + $0x308] sm:$0xff] }
  0x93   : > { %3941 = vmatmul.mubr.msk.f32.gmra.mrb[64].mxu1 %vm438_vm1, %v367_v4  ;;  %3751 = vmatprep.mubr.msk.f32.mxu0 %vm438_vm1, %v240_v5  ;;  %v399_v4 = vld [vmem:[%s4095_s20 + $0x708] sm:$0xff]  ;;  %v272_v5 = vld [vmem:[%s4095_s20 + $0x310] sm:$0xff] }
  0x94   : > { %3943 = vmatprep.mubr.msk.f32.mxu1 %vm438_vm1, %v368_v6  ;;  %v400_v6 = vld [vmem:[%s4095_s20 + $0x710] sm:$0xff] }
  0x96   : > { %3752 = vmatmul.mubr.msk.f32.gmra.mrb[66].mxu0 %vm438_vm1, %v241_v7  ;;  %v273_v7 = vld [vmem:[%s4095_s20 + $0x318] sm:$0xff] }
  0x97   : > { %3944 = vmatmul.mubr.msk.f32.gmra.mrb[66].mxu1 %vm438_vm1, %v369_v8  ;;  %3754 = vmatprep.mubr.msk.f32.mxu0 %vm438_vm1, %v242_v9  ;;  %v401_v8 = vld [vmem:[%s4095_s20 + $0x718] sm:$0xff]  ;;  %v274_v9 = vld [vmem:[%s4095_s20 + $0x320] sm:$0xff] }
  0x98   : > { %3946 = vmatprep.mubr.msk.f32.mxu1 %vm438_vm1, %v370_v10  ;;  %v402_v10 = vld [vmem:[%s4095_s20 + $0x720] sm:$0xff] }
  0x9a   : > { %3755 = vmatmul.mubr.msk.f32.gmra.mrb[68].mxu0 %vm438_vm1, %v243_v11  ;;  %v275_v11 = vld [vmem:[%s4095_s20 + $0x328] sm:$0xff] }
  0x9b   : > { %3947 = vmatmul.mubr.msk.f32.gmra.mrb[68].mxu1 %vm438_vm1, %v371_v12  ;;  %3757 = vmatprep.mubr.msk.f32.mxu0 %vm438_vm1, %v244_v13  ;;  %v403_v12 = vld [vmem:[%s4095_s20 + $0x728] sm:$0xff]  ;;  %v276_v13 = vld [vmem:[%s4095_s20 + $0x330] sm:$0xff] }
  0x9c   : > { %3949 = vmatprep.mubr.msk.f32.mxu1 %vm438_vm1, %v372_v14  ;;  %v404_v14 = vld [vmem:[%s4095_s20 + $0x730] sm:$0xff] }
  0x9e   : > { %3758 = vmatmul.mubr.msk.f32.gmra.mrb[70].mxu0 %vm438_vm1, %v245_v15  ;;  %v277_v15 = vld [vmem:[%s4095_s20 + $0x338] sm:$0xff] }
  0x9f   : > { %3950 = vmatmul.mubr.msk.f32.gmra.mrb[70].mxu1 %vm438_vm1, %v373_v16  ;;  %3760 = vmatprep.mubr.msk.f32.mxu0 %vm438_vm1, %v246_v17  ;;  %v405_v16 = vld [vmem:[%s4095_s20 + $0x738] sm:$0xff]  ;;  %v278_v17 = vld [vmem:[%s4095_s20 + $0x340] sm:$0xff] }
  0xa0   : > { %3952 = vmatprep.mubr.msk.f32.mxu1 %vm438_vm1, %v374_v18  ;;  %v406_v18 = vld [vmem:[%s4095_s20 + $0x740] sm:$0xff] }
  0xa2   : > { %3761 = vmatmul.mubr.msk.f32.gmra.mrb[72].mxu0 %vm438_vm1, %v247_v19  ;;  %v279_v19 = vld [vmem:[%s4095_s20 + $0x348] sm:$0xff] }
  0xa3   : > { %3953 = vmatmul.mubr.msk.f32.gmra.mrb[72].mxu1 %vm438_vm1, %v375_v20  ;;  %3763 = vmatprep.mubr.msk.f32.mxu0 %vm438_vm1, %v248_v21  ;;  %v407_v20 = vld [vmem:[%s4095_s20 + $0x748] sm:$0xff]  ;;  %v280_v21 = vld [vmem:[%s4095_s20 + $0x350] sm:$0xff] }
  0xa4   : > { %3955 = vmatprep.mubr.msk.f32.mxu1 %vm438_vm1, %v376_v22  ;;  %v408_v22 = vld [vmem:[%s4095_s20 + $0x750] sm:$0xff] }
  0xa6   : > { %3764 = vmatmul.mubr.msk.f32.gmra.mrb[74].mxu0 %vm438_vm1, %v249_v23  ;;  %v4526_v23 = vld [vmem:[%s5148_s2] ss:$0 sm:$0xff] }
  0xa7   : > { %3956 = vmatmul.mubr.msk.f32.gmra.mrb[74].mxu1 %vm438_vm1, %v377_v24  ;;  %3766 = vmatprep.mubr.msk.f32.mxu0 %vm438_vm1, %v250_v25  ;;  %v281_v24 = vld [vmem:[%s4095_s20 + $0x358] sm:$0xff] }
  0xa8   : > { %3958 = vmatprep.mubr.msk.f32.mxu1 %vm438_vm1, %v378_v26  ;;  %v409_v25 = vld [vmem:[%s4095_s20 + $0x758] sm:$0xff]  ;;  %v282_v26 = vld [vmem:[%s4095_s20 + $0x360] sm:$0xff] }
  0xaa   : > { %3767 = vmatmul.mubr.msk.f32.gmra.mrb[76].mxu0 %vm438_vm1, %v251_v27  ;;  %v410_v27 = vld [vmem:[%s4095_s20 + $0x760] sm:$0xff] }
  0xab   : > { %3959 = vmatmul.mubr.msk.f32.gmra.mrb[76].mxu1 %vm438_vm1, %v379_v28  ;;  %3769 = vmatprep.mubr.msk.f32.mxu0 %vm438_vm1, %v252_v29 }
  0xac   : > { %3961 = vmatprep.mubr.msk.f32.mxu1 %vm438_vm1, %v380_v30 }
  0xae   : > { %3770 = vmatmul.mubr.msk.f32.gmra.mrb[78].mxu0 %vm438_vm1, %v253_v31 }
  0xaf   : > { %3962 = vmatmul.mubr.msk.f32.gmra.mrb[78].mxu1 %vm438_vm1, %v381_v32  ;;  %3772 = vmatprep.mubr.msk.f32.mxu0 %vm438_vm1, %v254_v33 }
  0xb0   : > { %3964 = vmatprep.mubr.msk.f32.mxu1 %vm438_vm1, %v382_v34 }
  0xb2   : > { %3773 = vmatmul.mubr.msk.f32.gmra.mrb[80].mxu0 %vm438_vm1, %v255_v35 }
  0xb3   : > { %3965 = vmatmul.mubr.msk.f32.gmra.mrb[80].mxu1 %vm438_vm1, %v383_v36  ;;  %3775 = vmatprep.mubr.msk.f32.mxu0 %vm438_vm1, %v256_v37  ;;  %v283_v36 = vld [vmem:[%s4095_s20 + $0x368] sm:$0xff] }
  0xb4   : > { %3967 = vmatprep.mubr.msk.f32.mxu1 %vm438_vm1, %v384_v38  ;;  %v411_v37 = vld [vmem:[%s4095_s20 + $0x768] sm:$0xff] }
  0xb6   : > { %3776 = vmatmul.mubr.msk.f32.gmra.mrb[82].mxu0 %vm438_vm1, %v257_v39 }
  0xb7   : > { %3968 = vmatmul.mubr.msk.f32.gmra.mrb[82].mxu1 %vm438_vm1, %v385_v40  ;;  %3778 = vmatprep.mubr.msk.f32.mxu0 %vm438_vm1, %v258_v41  ;;  %v284_v40 = vld [vmem:[%s4095_s20 + $0x370] sm:$0xff] }
  0xb8   : > { %3970 = vmatprep.mubr.msk.f32.mxu1 %vm438_vm1, %v386_v42  ;;  %v412_v41 = vld [vmem:[%s4095_s20 + $0x770] sm:$0xff] }
  0xba   : > { %3779 = vmatmul.mubr.msk.f32.gmra.mrb[84].mxu0 %vm438_vm1, %v259_v43 }
  0xbb   : > { %3971 = vmatmul.mubr.msk.f32.gmra.mrb[84].mxu1 %vm438_vm1, %v387_v44  ;;  %3781 = vmatprep.mubr.msk.f32.mxu0 %vm438_vm1, %v260_v45 }
  0xbc   : > { %3973 = vmatprep.mubr.msk.f32.mxu1 %vm438_vm1, %v388_v46 }
  0xbe   : > { %3782 = vmatmul.mubr.msk.f32.gmra.mrb[86].mxu0 %vm438_vm1, %v261_v47 }
  0xbf   : > { %3974 = vmatmul.mubr.msk.f32.gmra.mrb[86].mxu1 %vm438_vm1, %v389_v48  ;;  %3784 = vmatprep.mubr.msk.f32.mxu0 %vm438_vm1, %v262_v49 }
  0xc0   : > { %3976 = vmatprep.mubr.msk.f32.mxu1 %vm438_vm1, %v390_v50 }
  0xc2   : > { %3785 = vmatmul.mubr.msk.f32.gmra.mrb[88].mxu0 %vm438_vm1, %v263_v51 }
  0xc3   : > { %3977 = vmatmul.mubr.msk.f32.gmra.mrb[88].mxu1 %vm438_vm1, %v391_v52  ;;  %3787 = vmatprep.mubr.msk.f32.mxu0 %vm438_vm1, %v264_v53  ;;  %v285_v52 = vld [vmem:[%s4095_s20 + $0x378] sm:$0xff] }
  0xc4   : > { %3979 = vmatprep.mubr.msk.f32.mxu1 %vm438_vm1, %v392_v54  ;;  %v413_v53 = vld [vmem:[%s4095_s20 + $0x778] sm:$0xff] }
  0xc6   : > { %3788 = vmatmul.mubr.msk.f32.gmra.mrb[90].mxu0 %vm438_vm1, %v265_v55 }
  0xc7   : > { %3980 = vmatmul.mubr.msk.f32.gmra.mrb[90].mxu1 %vm438_vm1, %v393_v56  ;;  %3790 = vmatprep.mubr.msk.f32.mxu0 %vm438_vm1, %v266_v57  ;;  %v286_v56 = vld [vmem:[%s4095_s20 + $0x380] sm:$0xff] }
  0xc8   : > { %3982 = vmatprep.mubr.msk.f32.mxu1 %vm438_vm1, %v394_v58  ;;  %v414_v57 = vld [vmem:[%s4095_s20 + $0x780] sm:$0xff] }
  0xca   : > { %3791 = vmatmul.mubr.msk.f32.gmra.mrb[92].mxu0 %vm438_vm1, %v267_v59 }
  0xcb   : > { %3983 = vmatmul.mubr.msk.f32.gmra.mrb[92].mxu1 %vm438_vm1, %v395_v60  ;;  %3793 = vmatprep.mubr.msk.f32.mxu0 %vm438_vm1, %v268_v61 }
  0xcc   : > { %3985 = vmatprep.mubr.msk.f32.mxu1 %vm438_vm1, %v396_v62 }
  0xce   : > { %3794 = vmatmul.mubr.msk.f32.gmra.mrb[94].mxu0 %vm438_vm1, %v269_v63 }
  0xcf   : > { %3986 = vmatmul.mubr.msk.f32.gmra.mrb[94].mxu1 %vm438_vm1, %v397_v0  ;;  %3796 = vmatprep.mubr.msk.f32.mxu0 %vm438_vm1, %v270_v1 }
  0xd0   : > { %3988 = vmatprep.mubr.msk.f32.mxu1 %vm438_vm1, %v398_v2 }
  0xd2   : > { %3797 = vmatmul.mubr.msk.f32.gmra.mrb[96].mxu0 %vm438_vm1, %v271_v3 }
  0xd3   : > { %3989 = vmatmul.mubr.msk.f32.gmra.mrb[96].mxu1 %vm438_vm1, %v399_v4  ;;  %3799 = vmatprep.mubr.msk.f32.mxu0 %vm438_vm1, %v272_v5  ;;  %v287_v4 = vld [vmem:[%s4095_s20 + $0x388] sm:$0xff] }
  0xd4   : > { %3991 = vmatprep.mubr.msk.f32.mxu1 %vm438_vm1, %v400_v6  ;;  %v415_v5 = vld [vmem:[%s4095_s20 + $0x788] sm:$0xff] }
  0xd6   : > { %3800 = vmatmul.mubr.msk.f32.gmra.mrb[98].mxu0 %vm438_vm1, %v273_v7 }
  0xd7   : > { %3992 = vmatmul.mubr.msk.f32.gmra.mrb[98].mxu1 %vm438_vm1, %v401_v8  ;;  %3802 = vmatprep.mubr.msk.f32.mxu0 %vm438_vm1, %v274_v9  ;;  %v288_v8 = vld [vmem:[%s4095_s20 + $0x390] sm:$0xff] }
  0xd8   : > { %3994 = vmatprep.mubr.msk.f32.mxu1 %vm438_vm1, %v402_v10  ;;  %v416_v9 = vld [vmem:[%s4095_s20 + $0x790] sm:$0xff] }
  0xda   : > { %3803 = vmatmul.mubr.msk.f32.gmra.mrb[100].mxu0 %vm438_vm1, %v275_v11 }
  0xdb   : > { %3995 = vmatmul.mubr.msk.f32.gmra.mrb[100].mxu1 %vm438_vm1, %v403_v12  ;;  %3805 = vmatprep.mubr.msk.f32.mxu0 %vm438_vm1, %v276_v13 }
  0xdc   : > { %3997 = vmatprep.mubr.msk.f32.mxu1 %vm438_vm1, %v404_v14 }
  0xde   : > { %3806 = vmatmul.mubr.msk.f32.gmra.mrb[102].mxu0 %vm438_vm1, %v277_v15 }
  0xdf   : > { %3998 = vmatmul.mubr.msk.f32.gmra.mrb[102].mxu1 %vm438_vm1, %v405_v16  ;;  %3808 = vmatprep.mubr.msk.f32.mxu0 %vm438_vm1, %v278_v17 }
  0xe0   : > { %4000 = vmatprep.mubr.msk.f32.mxu1 %vm438_vm1, %v406_v18 }
  0xe2   : > { %3809 = vmatmul.mubr.msk.f32.gmra.mrb[104].mxu0 %vm438_vm1, %v279_v19 }
  0xe3   : > { %4001 = vmatmul.mubr.msk.f32.gmra.mrb[104].mxu1 %vm438_vm1, %v407_v20  ;;  %3811 = vmatprep.mubr.msk.f32.mxu0 %vm438_vm1, %v280_v21  ;;  %v289_v20 = vld [vmem:[%s4095_s20 + $0x398] sm:$0xff] }
  0xe4   : > { %4003 = vmatprep.mubr.msk.f32.mxu1 %vm438_vm1, %v408_v22  ;;  %v417_v21 = vld [vmem:[%s4095_s20 + $0x798] sm:$0xff] }
  0xe5   : > { %v3654_v28 = vpop.f32.mrb[0].mxu0 }
  0xe6   : > { %v3846_v29 = vpop.f32.mrb[0].mxu1  ;;  %v1283_v30 = vadd.f32 %v3654_v28, %v4526_v23  ;;  %v1277_v32 = vpop.f32.mrb[1].mxu0  ;;  %3812 = vmatmul.mubr.msk.f32.gmra.mrb[106].mxu0 %vm438_vm1, %v281_v24 }
  0xe7   : > { %v1923_v31 = vadd.f32 %v3846_v29, %v4526_v23  ;;  %v1917_v33 = vpop.f32.mrb[1].mxu1  ;;  %4004 = vmatmul.mubr.msk.f32.gmra.mrb[106].mxu1 %vm438_vm1, %v409_v25  ;;  %v1278_v34 = vadd.f32 %v4526_v23, %v1277_v32  ;;  %3814 = vmatprep.mubr.msk.f32.mxu0 %vm438_vm1, %v282_v26  ;;  %v290_v25 = vld [vmem:[%s4095_s20 + $0x3a0] sm:$0xff] }
  0xe8   : > { %v1918_v35 = vadd.f32 %v4526_v23, %v1917_v33  ;;  %4006 = vmatprep.mubr.msk.f32.mxu1 %vm438_vm1, %v410_v27  ;;  %v2557_v38 = vmax.f32 %v1283_v30, 0.0  ;;  %v418_v26 = vld [vmem:[%s4095_s20 + $0x7a0] sm:$0xff] }
  0xe9   : > { %v2685_v39 = vmax.f32 %v1923_v31, 0.0  ;;  %v2556_v42 = vmax.f32 %v1278_v34, 0.0  ;;  %v3657_v44 = vpop.f32.mrb[2].mxu0 }
  0xea   : > { %v2684_v43 = vmax.f32 %v1918_v35, 0.0  ;;  %v3849_v45 = vpop.f32.mrb[2].mxu1  ;;  %2813 = vst [vmem:[%s4543_s25 + $0x8] sm:$0xff] %v2557_v38  ;;  %v1293_v46 = vadd.f32 %v3657_v44, %v4526_v23  ;;  %v1287_v48 = vpop.f32.mrb[3].mxu0  ;;  %3815 = vmatmul.mubr.msk.f32.gmra.mrb[108].mxu0 %vm438_vm1, %v283_v36  ;;  %v419_v38 = vld [vmem:[%s4095_s20 + $0x7a8] sm:$0xff] }
  0xeb   : > { %2941 = vst [vmem:[%s4543_s25 + $0x408] sm:$0xff] %v2685_v39  ;;  %v1933_v47 = vadd.f32 %v3849_v45, %v4526_v23  ;;  %v1927_v49 = vpop.f32.mrb[3].mxu1  ;;  %4007 = vmatmul.mubr.msk.f32.gmra.mrb[108].mxu1 %vm438_vm1, %v411_v37  ;;  %2812 = vst [vmem:[%s4543_s25] sm:$0xff] %v2556_v42  ;;  %v1288_v50 = vadd.f32 %v4526_v23, %v1287_v48  ;;  %3817 = vmatprep.mubr.msk.f32.mxu0 %vm438_vm1, %v284_v40  ;;  %v291_v37 = vld [vmem:[%s4095_s20 + $0x3a8] sm:$0xff]  ;;  %v420_v42 = vld [vmem:[%s4095_s20 + $0x7b0] sm:$0xff] }
  0xec   : > { %2940 = vst [vmem:[%s4543_s25 + $0x400] sm:$0xff] %v2684_v43  ;;  %v1928_v51 = vadd.f32 %v4526_v23, %v1927_v49  ;;  %4009 = vmatprep.mubr.msk.f32.mxu1 %vm438_vm1, %v412_v41  ;;  %v2559_v54 = vmax.f32 %v1293_v46, 0.0  ;;  %v292_v41 = vld [vmem:[%s4095_s20 + $0x3b0] sm:$0xff] }
  0xed   : > { %v2687_v55 = vmax.f32 %v1933_v47, 0.0  ;;  %v2558_v58 = vmax.f32 %v1288_v50, 0.0  ;;  %v3660_v60 = vpop.f32.mrb[4].mxu0 }
  0xee   : > { %v2686_v59 = vmax.f32 %v1928_v51, 0.0  ;;  %v3852_v61 = vpop.f32.mrb[4].mxu1  ;;  %2815 = vst [vmem:[%s4543_s25 + $0x18] sm:$0xff] %v2559_v54  ;;  %v1303_v62 = vadd.f32 %v3660_v60, %v4526_v23  ;;  %v1297_v0 = vpop.f32.mrb[5].mxu0  ;;  %3818 = vmatmul.mubr.msk.f32.gmra.mrb[110].mxu0 %vm438_vm1, %v285_v52  ;;  %v421_v54 = vld [vmem:[%s4095_s20 + $0x7b8] sm:$0xff] }
  0xef   : > { %2943 = vst [vmem:[%s4543_s25 + $0x418] sm:$0xff] %v2687_v55  ;;  %v1943_v63 = vadd.f32 %v3852_v61, %v4526_v23  ;;  %v1937_v1 = vpop.f32.mrb[5].mxu1  ;;  %4010 = vmatmul.mubr.msk.f32.gmra.mrb[110].mxu1 %vm438_vm1, %v413_v53  ;;  %2814 = vst [vmem:[%s4543_s25 + $0x10] sm:$0xff] %v2558_v58  ;;  %v1298_v2 = vadd.f32 %v4526_v23, %v1297_v0  ;;  %3820 = vmatprep.mubr.msk.f32.mxu0 %vm438_vm1, %v286_v56  ;;  %v293_v53 = vld [vmem:[%s4095_s20 + $0x3b8] sm:$0xff]  ;;  %v422_v58 = vld [vmem:[%s4095_s20 + $0x7c0] sm:$0xff] }
  0xf0   : > { %2942 = vst [vmem:[%s4543_s25 + $0x410] sm:$0xff] %v2686_v59  ;;  %v1938_v3 = vadd.f32 %v4526_v23, %v1937_v1  ;;  %4012 = vmatprep.mubr.msk.f32.mxu1 %vm438_vm1, %v414_v57  ;;  %v2561_v6 = vmax.f32 %v1303_v62, 0.0  ;;  %v294_v57 = vld [vmem:[%s4095_s20 + $0x3c0] sm:$0xff] }
  0xf1   : > { %v2689_v7 = vmax.f32 %v1943_v63, 0.0  ;;  %v2560_v10 = vmax.f32 %v1298_v2, 0.0  ;;  %v3663_v12 = vpop.f32.mrb[6].mxu0 }
  0xf2   : > { %v2688_v11 = vmax.f32 %v1938_v3, 0.0  ;;  %v3855_v13 = vpop.f32.mrb[6].mxu1  ;;  %2817 = vst [vmem:[%s4543_s25 + $0x28] sm:$0xff] %v2561_v6  ;;  %v1313_v14 = vadd.f32 %v3663_v12, %v4526_v23  ;;  %v1307_v16 = vpop.f32.mrb[7].mxu0  ;;  %3821 = vmatmul.mubr.msk.f32.gmra.mrb[112].mxu0 %vm438_vm1, %v287_v4  ;;  %v423_v6 = vld [vmem:[%s4095_s20 + $0x7c8] sm:$0xff] }
  0xf3   : > { %2945 = vst [vmem:[%s4543_s25 + $0x428] sm:$0xff] %v2689_v7  ;;  %v1953_v15 = vadd.f32 %v3855_v13, %v4526_v23  ;;  %v1947_v17 = vpop.f32.mrb[7].mxu1  ;;  %4013 = vmatmul.mubr.msk.f32.gmra.mrb[112].mxu1 %vm438_vm1, %v415_v5  ;;  %2816 = vst [vmem:[%s4543_s25 + $0x20] sm:$0xff] %v2560_v10  ;;  %v1308_v18 = vadd.f32 %v4526_v23, %v1307_v16  ;;  %3823 = vmatprep.mubr.msk.f32.mxu0 %vm438_vm1, %v288_v8  ;;  %v295_v5 = vld [vmem:[%s4095_s20 + $0x3c8] sm:$0xff]  ;;  %v424_v10 = vld [vmem:[%s4095_s20 + $0x7d0] sm:$0xff] }
  0xf4   : > { %2944 = vst [vmem:[%s4543_s25 + $0x420] sm:$0xff] %v2688_v11  ;;  %v1948_v19 = vadd.f32 %v4526_v23, %v1947_v17  ;;  %4015 = vmatprep.mubr.msk.f32.mxu1 %vm438_vm1, %v416_v9  ;;  %v2563_v22 = vmax.f32 %v1313_v14, 0.0  ;;  %v296_v9 = vld [vmem:[%s4095_s20 + $0x3d0] sm:$0xff] }
  0xf5   : > { %v2691_v24 = vmax.f32 %v1953_v15, 0.0  ;;  %v2562_v27 = vmax.f32 %v1308_v18, 0.0  ;;  %v3666_v29 = vpop.f32.mrb[8].mxu0 }
  0xf6   : > { %v2690_v28 = vmax.f32 %v1948_v19, 0.0  ;;  %v3858_v30 = vpop.f32.mrb[8].mxu1  ;;  %2819 = vst [vmem:[%s4543_s25 + $0x38] sm:$0xff] %v2563_v22  ;;  %v1323_v31 = vadd.f32 %v3666_v29, %v4526_v23  ;;  %v1317_v33 = vpop.f32.mrb[9].mxu0  ;;  %3824 = vmatmul.mubr.msk.f32.gmra.mrb[114].mxu0 %vm438_vm1, %v289_v20  ;;  %v425_v22 = vld [vmem:[%s4095_s20 + $0x7d8] sm:$0xff] }
  0xf7   : > { %2947 = vst [vmem:[%s4543_s25 + $0x438] sm:$0xff] %v2691_v24  ;;  %v1963_v32 = vadd.f32 %v3858_v30, %v4526_v23  ;;  %v1957_v34 = vpop.f32.mrb[9].mxu1  ;;  %4016 = vmatmul.mubr.msk.f32.gmra.mrb[114].mxu1 %vm438_vm1, %v417_v21  ;;  %2818 = vst [vmem:[%s4543_s25 + $0x30] sm:$0xff] %v2562_v27  ;;  %v1318_v35 = vadd.f32 %v4526_v23, %v1317_v33  ;;  %3826 = vmatprep.mubr.msk.f32.mxu0 %vm438_vm1, %v290_v25  ;;  %v297_v21 = vld [vmem:[%s4095_s20 + $0x3d8] sm:$0xff]  ;;  %v426_v27 = vld [vmem:[%s4095_s20 + $0x7e0] sm:$0xff] }
  0xf8   : > { %2946 = vst [vmem:[%s4543_s25 + $0x430] sm:$0xff] %v2690_v28  ;;  %v1958_v36 = vadd.f32 %v4526_v23, %v1957_v34  ;;  %4018 = vmatprep.mubr.msk.f32.mxu1 %vm438_vm1, %v418_v26  ;;  %v2565_v39 = vmax.f32 %v1323_v31, 0.0  ;;  %v298_v26 = vld [vmem:[%s4095_s20 + $0x3e0] sm:$0xff] }
  0xf9   : > { %v2693_v40 = vmax.f32 %v1963_v32, 0.0  ;;  %v2564_v43 = vmax.f32 %v1318_v35, 0.0  ;;  %v3669_v45 = vpop.f32.mrb[10].mxu0 }
  0xfa   : > { %v2692_v44 = vmax.f32 %v1958_v36, 0.0  ;;  %v3861_v46 = vpop.f32.mrb[10].mxu1  ;;  %2821 = vst [vmem:[%s4543_s25 + $0x48] sm:$0xff] %v2565_v39  ;;  %v1333_v47 = vadd.f32 %v3669_v45, %v4526_v23  ;;  %v1327_v49 = vpop.f32.mrb[11].mxu0  ;;  %3827 = vmatmul.mubr.msk.f32.gmra.mrb[116].mxu0 %vm438_vm1, %v291_v37  ;;  %v427_v39 = vld [vmem:[%s4095_s20 + $0x7e8] sm:$0xff] }
  0xfb   : > { %2949 = vst [vmem:[%s4543_s25 + $0x448] sm:$0xff] %v2693_v40  ;;  %v1973_v48 = vadd.f32 %v3861_v46, %v4526_v23  ;;  %v1967_v50 = vpop.f32.mrb[11].mxu1  ;;  %4019 = vmatmul.mubr.msk.f32.gmra.mrb[116].mxu1 %vm438_vm1, %v419_v38  ;;  %2820 = vst [vmem:[%s4543_s25 + $0x40] sm:$0xff] %v2564_v43  ;;  %v1328_v51 = vadd.f32 %v4526_v23, %v1327_v49  ;;  %3829 = vmatprep.mubr.msk.f32.mxu0 %vm438_vm1, %v292_v41  ;;  %v299_v38 = vld [vmem:[%s4095_s20 + $0x3e8] sm:$0xff]  ;;  %v428_v43 = vld [vmem:[%s4095_s20 + $0x7f0] sm:$0xff] }
  0xfc   : > { %2948 = vst [vmem:[%s4543_s25 + $0x440] sm:$0xff] %v2692_v44  ;;  %v1968_v52 = vadd.f32 %v4526_v23, %v1967_v50  ;;  %4021 = vmatprep.mubr.msk.f32.mxu1 %vm438_vm1, %v420_v42  ;;  %v2567_v55 = vmax.f32 %v1333_v47, 0.0  ;;  %v300_v42 = vld [vmem:[%s4095_s20 + $0x3f0] sm:$0xff] }
  0xfd   : > { %v2695_v56 = vmax.f32 %v1973_v48, 0.0  ;;  %v2566_v59 = vmax.f32 %v1328_v51, 0.0  ;;  %v3672_v61 = vpop.f32.mrb[12].mxu0 }
  0xfe   : > { %v2694_v60 = vmax.f32 %v1968_v52, 0.0  ;;  %v3864_v62 = vpop.f32.mrb[12].mxu1  ;;  %2823 = vst [vmem:[%s4543_s25 + $0x58] sm:$0xff] %v2567_v55  ;;  %v1343_v63 = vadd.f32 %v3672_v61, %v4526_v23  ;;  %v1337_v1 = vpop.f32.mrb[13].mxu0  ;;  %3830 = vmatmul.mubr.msk.f32.gmra.mrb[118].mxu0 %vm438_vm1, %v293_v53  ;;  %v429_v55 = vld [vmem:[%s4095_s20 + $0x7f8] sm:$0xff] }
  0xff   : > { %2951 = vst [vmem:[%s4543_s25 + $0x458] sm:$0xff] %v2695_v56  ;;  %v1983_v0 = vadd.f32 %v3864_v62, %v4526_v23  ;;  %v1977_v2 = vpop.f32.mrb[13].mxu1  ;;  %4022 = vmatmul.mubr.msk.f32.gmra.mrb[118].mxu1 %vm438_vm1, %v421_v54  ;;  %2822 = vst [vmem:[%s4543_s25 + $0x50] sm:$0xff] %v2566_v59  ;;  %v1338_v3 = vadd.f32 %v4526_v23, %v1337_v1  ;;  %3832 = vmatprep.mubr.msk.f32.mxu0 %vm438_vm1, %v294_v57  ;;  %v301_v54 = vld [vmem:[%s4095_s20 + $0x3f8] sm:$0xff] }
 0x100   : > { %2950 = vst [vmem:[%s4543_s25 + $0x450] sm:$0xff] %v2694_v60  ;;  %v1978_v4 = vadd.f32 %v4526_v23, %v1977_v2  ;;  %4024 = vmatprep.mubr.msk.f32.mxu1 %vm438_vm1, %v422_v58  ;;  %v2569_v7 = vmax.f32 %v1343_v63, 0.0 }
 0x101   : > { %v2697_v8 = vmax.f32 %v1983_v0, 0.0  ;;  %v2568_v11 = vmax.f32 %v1338_v3, 0.0  ;;  %v3675_v13 = vpop.f32.mrb[14].mxu0 }
 0x102   : > { %v2696_v12 = vmax.f32 %v1978_v4, 0.0  ;;  %v3867_v14 = vpop.f32.mrb[14].mxu1  ;;  %2825 = vst [vmem:[%s4543_s25 + $0x68] sm:$0xff] %v2569_v7  ;;  %v1353_v15 = vadd.f32 %v3675_v13, %v4526_v23  ;;  %v1347_v17 = vpop.f32.mrb[15].mxu0  ;;  %3833 = vmatmul.mubr.msk.f32.gmra.mrb[120].mxu0 %vm438_vm1, %v295_v5 }
 0x103   : > { %2953 = vst [vmem:[%s4543_s25 + $0x468] sm:$0xff] %v2697_v8  ;;  %v1993_v16 = vadd.f32 %v3867_v14, %v4526_v23  ;;  %v1987_v18 = vpop.f32.mrb[15].mxu1  ;;  %4025 = vmatmul.mubr.msk.f32.gmra.mrb[120].mxu1 %vm438_vm1, %v423_v6  ;;  %2824 = vst [vmem:[%s4543_s25 + $0x60] sm:$0xff] %v2568_v11  ;;  %v1348_v19 = vadd.f32 %v4526_v23, %v1347_v17  ;;  %3835 = vmatprep.mubr.msk.f32.mxu0 %vm438_vm1, %v296_v9 }
 0x104   : > { %2952 = vst [vmem:[%s4543_s25 + $0x460] sm:$0xff] %v2696_v12  ;;  %v1988_v20 = vadd.f32 %v4526_v23, %v1987_v18  ;;  %4027 = vmatprep.mubr.msk.f32.mxu1 %vm438_vm1, %v424_v10  ;;  %v2571_v24 = vmax.f32 %v1353_v15, 0.0 }
 0x105   : > { %v2699_v25 = vmax.f32 %v1993_v16, 0.0  ;;  %v2570_v28 = vmax.f32 %v1348_v19, 0.0  ;;  %v3678_v30 = vpop.f32.mrb[16].mxu0 }
 0x106   : > { %v2698_v29 = vmax.f32 %v1988_v20, 0.0  ;;  %v3870_v31 = vpop.f32.mrb[16].mxu1  ;;  %2827 = vst [vmem:[%s4543_s25 + $0x78] sm:$0xff] %v2571_v24  ;;  %v1363_v32 = vadd.f32 %v3678_v30, %v4526_v23  ;;  %v1357_v34 = vpop.f32.mrb[17].mxu0  ;;  %3836 = vmatmul.mubr.msk.f32.gmra.mrb[122].mxu0 %vm438_vm1, %v297_v21 }
 0x107   : > { %2955 = vst [vmem:[%s4543_s25 + $0x478] sm:$0xff] %v2699_v25  ;;  %v2003_v33 = vadd.f32 %v3870_v31, %v4526_v23  ;;  %v1997_v35 = vpop.f32.mrb[17].mxu1  ;;  %4028 = vmatmul.mubr.msk.f32.gmra.mrb[122].mxu1 %vm438_vm1, %v425_v22  ;;  %2826 = vst [vmem:[%s4543_s25 + $0x70] sm:$0xff] %v2570_v28  ;;  %v1358_v36 = vadd.f32 %v4526_v23, %v1357_v34  ;;  %3838 = vmatprep.mubr.msk.f32.mxu0 %vm438_vm1, %v298_v26 }
 0x108   : > { %2954 = vst [vmem:[%s4543_s25 + $0x470] sm:$0xff] %v2698_v29  ;;  %v1998_v37 = vadd.f32 %v4526_v23, %v1997_v35  ;;  %4030 = vmatprep.mubr.msk.f32.mxu1 %vm438_vm1, %v426_v27  ;;  %v2573_v40 = vmax.f32 %v1363_v32, 0.0 }
 0x109   : > { %v2701_v41 = vmax.f32 %v2003_v33, 0.0  ;;  %v2572_v44 = vmax.f32 %v1358_v36, 0.0  ;;  %v3681_v46 = vpop.f32.mrb[18].mxu0 }
 0x10a   : > { %v2700_v45 = vmax.f32 %v1998_v37, 0.0  ;;  %v3873_v47 = vpop.f32.mrb[18].mxu1  ;;  %2829 = vst [vmem:[%s4543_s25 + $0x88] sm:$0xff] %v2573_v40  ;;  %v1373_v48 = vadd.f32 %v3681_v46, %v4526_v23  ;;  %v1367_v50 = vpop.f32.mrb[19].mxu0  ;;  %3839 = vmatmul.mubr.msk.f32.gmra.mrb[124].mxu0 %vm438_vm1, %v299_v38 }
 0x10b   : > { %2957 = vst [vmem:[%s4543_s25 + $0x488] sm:$0xff] %v2701_v41  ;;  %v2013_v49 = vadd.f32 %v3873_v47, %v4526_v23  ;;  %v2007_v51 = vpop.f32.mrb[19].mxu1  ;;  %4031 = vmatmul.mubr.msk.f32.gmra.mrb[124].mxu1 %vm438_vm1, %v427_v39  ;;  %2828 = vst [vmem:[%s4543_s25 + $0x80] sm:$0xff] %v2572_v44  ;;  %v1368_v52 = vadd.f32 %v4526_v23, %v1367_v50  ;;  %3841 = vmatprep.mubr.msk.f32.mxu0 %vm438_vm1, %v300_v42 }
 0x10c   : > { %2956 = vst [vmem:[%s4543_s25 + $0x480] sm:$0xff] %v2700_v45  ;;  %v2008_v53 = vadd.f32 %v4526_v23, %v2007_v51  ;;  %4033 = vmatprep.mubr.msk.f32.mxu1 %vm438_vm1, %v428_v43  ;;  %v2575_v56 = vmax.f32 %v1373_v48, 0.0 }
 0x10d   : > { %v2703_v57 = vmax.f32 %v2013_v49, 0.0  ;;  %v2574_v58 = vmax.f32 %v1368_v52, 0.0  ;;  %v3684_v60 = vpop.f32.mrb[20].mxu0 }
 0x10e   : > { %v2702_v59 = vmax.f32 %v2008_v53, 0.0  ;;  %v3876_v61 = vpop.f32.mrb[20].mxu1  ;;  %2831 = vst [vmem:[%s4543_s25 + $0x98] sm:$0xff] %v2575_v56  ;;  %v1383_v62 = vadd.f32 %v3684_v60, %v4526_v23  ;;  %v1377_v0 = vpop.f32.mrb[21].mxu0  ;;  %3842 = vmatmul.mubr.msk.f32.gmra.mrb[126].mxu0 %vm438_vm1, %v301_v54 }
 0x10f   : > { %2959 = vst [vmem:[%s4543_s25 + $0x498] sm:$0xff] %v2703_v57  ;;  %v2023_v63 = vadd.f32 %v3876_v61, %v4526_v23  ;;  %v2017_v1 = vpop.f32.mrb[21].mxu1  ;;  %4034 = vmatmul.mubr.msk.f32.gmra.mrb[126].mxu1 %vm438_vm1, %v429_v55  ;;  %2830 = vst [vmem:[%s4543_s25 + $0x90] sm:$0xff] %v2574_v58  ;;  %v1378_v2 = vadd.f32 %v4526_v23, %v1377_v0 }
 0x110   : > { %2958 = vst [vmem:[%s4543_s25 + $0x490] sm:$0xff] %v2702_v59  ;;  %v2018_v3 = vadd.f32 %v4526_v23, %v2017_v1  ;;  %v2577_v4 = vmax.f32 %v1383_v62, 0.0 }
 0x111   : > { %v2705_v5 = vmax.f32 %v2023_v63, 0.0  ;;  %v2576_v6 = vmax.f32 %v1378_v2, 0.0  ;;  %v3687_v8 = vpop.f32.mrb[22].mxu0 }
 0x112   : > { %v2704_v7 = vmax.f32 %v2018_v3, 0.0  ;;  %v3879_v9 = vpop.f32.mrb[22].mxu1  ;;  %2833 = vst [vmem:[%s4543_s25 + $0xa8] sm:$0xff] %v2577_v4  ;;  %v1393_v10 = vadd.f32 %v3687_v8, %v4526_v23  ;;  %v1387_v12 = vpop.f32.mrb[23].mxu0 }
 0x113   : > { %2961 = vst [vmem:[%s4543_s25 + $0x4a8] sm:$0xff] %v2705_v5  ;;  %v2033_v11 = vadd.f32 %v3879_v9, %v4526_v23  ;;  %v2027_v13 = vpop.f32.mrb[23].mxu1  ;;  %2832 = vst [vmem:[%s4543_s25 + $0xa0] sm:$0xff] %v2576_v6  ;;  %v1388_v14 = vadd.f32 %v4526_v23, %v1387_v12 }
 0x114   : > { %2960 = vst [vmem:[%s4543_s25 + $0x4a0] sm:$0xff] %v2704_v7  ;;  %v2028_v15 = vadd.f32 %v4526_v23, %v2027_v13  ;;  %v2579_v16 = vmax.f32 %v1393_v10, 0.0 }
 0x115   : > { %v2707_v17 = vmax.f32 %v2033_v11, 0.0  ;;  %v2578_v18 = vmax.f32 %v1388_v14, 0.0  ;;  %v3690_v20 = vpop.f32.mrb[24].mxu0 }
 0x116   : > { %v2706_v19 = vmax.f32 %v2028_v15, 0.0  ;;  %v3882_v21 = vpop.f32.mrb[24].mxu1  ;;  %2835 = vst [vmem:[%s4543_s25 + $0xb8] sm:$0xff] %v2579_v16  ;;  %v1403_v22 = vadd.f32 %v3690_v20, %v4526_v23  ;;  %v1397_v25 = vpop.f32.mrb[25].mxu0 }
 0x117   : > { %2963 = vst [vmem:[%s4543_s25 + $0x4b8] sm:$0xff] %v2707_v17  ;;  %v2043_v24 = vadd.f32 %v3882_v21, %v4526_v23  ;;  %v2037_v26 = vpop.f32.mrb[25].mxu1  ;;  %2834 = vst [vmem:[%s4543_s25 + $0xb0] sm:$0xff] %v2578_v18  ;;  %v1398_v27 = vadd.f32 %v4526_v23, %v1397_v25 }
 0x118   : > { %2962 = vst [vmem:[%s4543_s25 + $0x4b0] sm:$0xff] %v2706_v19  ;;  %v2038_v28 = vadd.f32 %v4526_v23, %v2037_v26  ;;  %v2581_v29 = vmax.f32 %v1403_v22, 0.0 }
 0x119   : > { %v2709_v30 = vmax.f32 %v2043_v24, 0.0  ;;  %v2580_v31 = vmax.f32 %v1398_v27, 0.0  ;;  %v3693_v33 = vpop.f32.mrb[26].mxu0 }
 0x11a   : > { %v2708_v32 = vmax.f32 %v2038_v28, 0.0  ;;  %v3885_v34 = vpop.f32.mrb[26].mxu1  ;;  %2837 = vst [vmem:[%s4543_s25 + $0xc8] sm:$0xff] %v2581_v29  ;;  %v1413_v35 = vadd.f32 %v3693_v33, %v4526_v23  ;;  %v1407_v37 = vpop.f32.mrb[27].mxu0 }
 0x11b   : > { %2965 = vst [vmem:[%s4543_s25 + $0x4c8] sm:$0xff] %v2709_v30  ;;  %v2053_v36 = vadd.f32 %v3885_v34, %v4526_v23  ;;  %v2047_v38 = vpop.f32.mrb[27].mxu1  ;;  %2836 = vst [vmem:[%s4543_s25 + $0xc0] sm:$0xff] %v2580_v31  ;;  %v1408_v39 = vadd.f32 %v4526_v23, %v1407_v37 }
 0x11c   : > { %2964 = vst [vmem:[%s4543_s25 + $0x4c0] sm:$0xff] %v2708_v32  ;;  %v2048_v40 = vadd.f32 %v4526_v23, %v2047_v38  ;;  %v2583_v41 = vmax.f32 %v1413_v35, 0.0 }
 0x11d   : > { %v2711_v42 = vmax.f32 %v2053_v36, 0.0  ;;  %v2582_v43 = vmax.f32 %v1408_v39, 0.0  ;;  %v3696_v45 = vpop.f32.mrb[28].mxu0 }
 0x11e   : > { %v2710_v44 = vmax.f32 %v2048_v40, 0.0  ;;  %v3888_v46 = vpop.f32.mrb[28].mxu1  ;;  %2839 = vst [vmem:[%s4543_s25 + $0xd8] sm:$0xff] %v2583_v41  ;;  %v1423_v47 = vadd.f32 %v3696_v45, %v4526_v23  ;;  %v1417_v49 = vpop.f32.mrb[29].mxu0 }
 0x11f   : > { %2967 = vst [vmem:[%s4543_s25 + $0x4d8] sm:$0xff] %v2711_v42  ;;  %v2063_v48 = vadd.f32 %v3888_v46, %v4526_v23  ;;  %v2057_v50 = vpop.f32.mrb[29].mxu1  ;;  %2838 = vst [vmem:[%s4543_s25 + $0xd0] sm:$0xff] %v2582_v43  ;;  %v1418_v51 = vadd.f32 %v4526_v23, %v1417_v49 }
 0x120   : > { %2966 = vst [vmem:[%s4543_s25 + $0x4d0] sm:$0xff] %v2710_v44  ;;  %v2058_v52 = vadd.f32 %v4526_v23, %v2057_v50  ;;  %v2585_v53 = vmax.f32 %v1423_v47, 0.0 }
 0x121   : > { %v2713_v54 = vmax.f32 %v2063_v48, 0.0  ;;  %v2584_v55 = vmax.f32 %v1418_v51, 0.0  ;;  %v3699_v57 = vpop.f32.mrb[30].mxu0 }
 0x122   : > { %v2712_v56 = vmax.f32 %v2058_v52, 0.0  ;;  %v3891_v58 = vpop.f32.mrb[30].mxu1  ;;  %2841 = vst [vmem:[%s4543_s25 + $0xe8] sm:$0xff] %v2585_v53  ;;  %v1433_v59 = vadd.f32 %v3699_v57, %v4526_v23  ;;  %v1427_v61 = vpop.f32.mrb[31].mxu0 }
 0x123   : > { %2969 = vst [vmem:[%s4543_s25 + $0x4e8] sm:$0xff] %v2713_v54  ;;  %v2073_v60 = vadd.f32 %v3891_v58, %v4526_v23  ;;  %v2067_v62 = vpop.f32.mrb[31].mxu1  ;;  %2840 = vst [vmem:[%s4543_s25 + $0xe0] sm:$0xff] %v2584_v55  ;;  %v1428_v63 = vadd.f32 %v4526_v23, %v1427_v61 }
 0x124   : > { %2968 = vst [vmem:[%s4543_s25 + $0x4e0] sm:$0xff] %v2712_v56  ;;  %v2068_v0 = vadd.f32 %v4526_v23, %v2067_v62  ;;  %v2587_v1 = vmax.f32 %v1433_v59, 0.0 }
 0x125   : > { %v2715_v2 = vmax.f32 %v2073_v60, 0.0  ;;  %v2586_v3 = vmax.f32 %v1428_v63, 0.0  ;;  %v3702_v5 = vpop.f32.mrb[32].mxu0 }
 0x126   : > { %v2714_v4 = vmax.f32 %v2068_v0, 0.0  ;;  %v3894_v6 = vpop.f32.mrb[32].mxu1  ;;  %2843 = vst [vmem:[%s4543_s25 + $0xf8] sm:$0xff] %v2587_v1  ;;  %v1443_v7 = vadd.f32 %v3702_v5, %v4526_v23  ;;  %v1437_v9 = vpop.f32.mrb[33].mxu0 }
 0x127   : > { %2971 = vst [vmem:[%s4543_s25 + $0x4f8] sm:$0xff] %v2715_v2  ;;  %v2083_v8 = vadd.f32 %v3894_v6, %v4526_v23  ;;  %v2077_v10 = vpop.f32.mrb[33].mxu1  ;;  %2842 = vst [vmem:[%s4543_s25 + $0xf0] sm:$0xff] %v2586_v3  ;;  %v1438_v11 = vadd.f32 %v4526_v23, %v1437_v9 }
 0x128   : > { %2970 = vst [vmem:[%s4543_s25 + $0x4f0] sm:$0xff] %v2714_v4  ;;  %v2078_v12 = vadd.f32 %v4526_v23, %v2077_v10  ;;  %v2589_v13 = vmax.f32 %v1443_v7, 0.0 }
 0x129   : > { %v2717_v14 = vmax.f32 %v2083_v8, 0.0  ;;  %v2588_v15 = vmax.f32 %v1438_v11, 0.0  ;;  %v3705_v17 = vpop.f32.mrb[34].mxu0 }
 0x12a   : > { %v2716_v16 = vmax.f32 %v2078_v12, 0.0  ;;  %v3897_v18 = vpop.f32.mrb[34].mxu1  ;;  %2845 = vst [vmem:[%s4543_s25 + $0x108] sm:$0xff] %v2589_v13  ;;  %v1453_v19 = vadd.f32 %v3705_v17, %v4526_v23  ;;  %v1447_v21 = vpop.f32.mrb[35].mxu0 }
 0x12b   : > { %2973 = vst [vmem:[%s4543_s25 + $0x508] sm:$0xff] %v2717_v14  ;;  %v2093_v20 = vadd.f32 %v3897_v18, %v4526_v23  ;;  %v2087_v22 = vpop.f32.mrb[35].mxu1  ;;  %2844 = vst [vmem:[%s4543_s25 + $0x100] sm:$0xff] %v2588_v15  ;;  %v1448_v24 = vadd.f32 %v4526_v23, %v1447_v21 }
 0x12c   : > { %2972 = vst [vmem:[%s4543_s25 + $0x500] sm:$0xff] %v2716_v16  ;;  %v2088_v25 = vadd.f32 %v4526_v23, %v2087_v22  ;;  %v2591_v26 = vmax.f32 %v1453_v19, 0.0 }
 0x12d   : > { %v2719_v27 = vmax.f32 %v2093_v20, 0.0  ;;  %v2590_v28 = vmax.f32 %v1448_v24, 0.0  ;;  %v3708_v30 = vpop.f32.mrb[36].mxu0 }
 0x12e   : > { %v2718_v29 = vmax.f32 %v2088_v25, 0.0  ;;  %v3900_v31 = vpop.f32.mrb[36].mxu1  ;;  %2847 = vst [vmem:[%s4543_s25 + $0x118] sm:$0xff] %v2591_v26  ;;  %v1463_v32 = vadd.f32 %v3708_v30, %v4526_v23  ;;  %v1457_v34 = vpop.f32.mrb[37].mxu0 }
 0x12f   : > { %2975 = vst [vmem:[%s4543_s25 + $0x518] sm:$0xff] %v2719_v27  ;;  %v2103_v33 = vadd.f32 %v3900_v31, %v4526_v23  ;;  %v2097_v35 = vpop.f32.mrb[37].mxu1  ;;  %2846 = vst [vmem:[%s4543_s25 + $0x110] sm:$0xff] %v2590_v28  ;;  %v1458_v36 = vadd.f32 %v4526_v23, %v1457_v34 }
 0x130   : > { %2974 = vst [vmem:[%s4543_s25 + $0x510] sm:$0xff] %v2718_v29  ;;  %v2098_v37 = vadd.f32 %v4526_v23, %v2097_v35  ;;  %v2593_v38 = vmax.f32 %v1463_v32, 0.0 }
 0x131   : > { %v2721_v39 = vmax.f32 %v2103_v33, 0.0  ;;  %v2592_v40 = vmax.f32 %v1458_v36, 0.0  ;;  %v3711_v42 = vpop.f32.mrb[38].mxu0 }
 0x132   : > { %v2720_v41 = vmax.f32 %v2098_v37, 0.0  ;;  %v3903_v43 = vpop.f32.mrb[38].mxu1  ;;  %2849 = vst [vmem:[%s4543_s25 + $0x128] sm:$0xff] %v2593_v38  ;;  %v1473_v44 = vadd.f32 %v3711_v42, %v4526_v23  ;;  %v1467_v46 = vpop.f32.mrb[39].mxu0 }
 0x133   : > { %2977 = vst [vmem:[%s4543_s25 + $0x528] sm:$0xff] %v2721_v39  ;;  %v2113_v45 = vadd.f32 %v3903_v43, %v4526_v23  ;;  %v2107_v47 = vpop.f32.mrb[39].mxu1  ;;  %2848 = vst [vmem:[%s4543_s25 + $0x120] sm:$0xff] %v2592_v40  ;;  %v1468_v48 = vadd.f32 %v4526_v23, %v1467_v46 }
 0x134   : > { %2976 = vst [vmem:[%s4543_s25 + $0x520] sm:$0xff] %v2720_v41  ;;  %v2108_v49 = vadd.f32 %v4526_v23, %v2107_v47  ;;  %v2595_v50 = vmax.f32 %v1473_v44, 0.0 }
 0x135   : > { %v2723_v51 = vmax.f32 %v2113_v45, 0.0  ;;  %v2594_v52 = vmax.f32 %v1468_v48, 0.0  ;;  %v3714_v54 = vpop.f32.mrb[40].mxu0 }
 0x136   : > { %v2722_v53 = vmax.f32 %v2108_v49, 0.0  ;;  %v3906_v55 = vpop.f32.mrb[40].mxu1  ;;  %2851 = vst [vmem:[%s4543_s25 + $0x138] sm:$0xff] %v2595_v50  ;;  %v1483_v56 = vadd.f32 %v3714_v54, %v4526_v23  ;;  %v1477_v58 = vpop.f32.mrb[41].mxu0 }
 0x137   : > { %2979 = vst [vmem:[%s4543_s25 + $0x538] sm:$0xff] %v2723_v51  ;;  %v2123_v57 = vadd.f32 %v3906_v55, %v4526_v23  ;;  %v2117_v59 = vpop.f32.mrb[41].mxu1  ;;  %2850 = vst [vmem:[%s4543_s25 + $0x130] sm:$0xff] %v2594_v52  ;;  %v1478_v60 = vadd.f32 %v4526_v23, %v1477_v58 }
 0x138   : > { %2978 = vst [vmem:[%s4543_s25 + $0x530] sm:$0xff] %v2722_v53  ;;  %v2118_v61 = vadd.f32 %v4526_v23, %v2117_v59  ;;  %v2597_v62 = vmax.f32 %v1483_v56, 0.0 }
 0x139   : > { %v2725_v63 = vmax.f32 %v2123_v57, 0.0  ;;  %v2596_v0 = vmax.f32 %v1478_v60, 0.0  ;;  %v3717_v2 = vpop.f32.mrb[42].mxu0 }
 0x13a   : > { %v2724_v1 = vmax.f32 %v2118_v61, 0.0  ;;  %v3909_v3 = vpop.f32.mrb[42].mxu1  ;;  %2853 = vst [vmem:[%s4543_s25 + $0x148] sm:$0xff] %v2597_v62  ;;  %v1493_v4 = vadd.f32 %v3717_v2, %v4526_v23  ;;  %v1487_v6 = vpop.f32.mrb[43].mxu0 }
 0x13b   : > { %2981 = vst [vmem:[%s4543_s25 + $0x548] sm:$0xff] %v2725_v63  ;;  %v2133_v5 = vadd.f32 %v3909_v3, %v4526_v23  ;;  %v2127_v7 = vpop.f32.mrb[43].mxu1  ;;  %2852 = vst [vmem:[%s4543_s25 + $0x140] sm:$0xff] %v2596_v0  ;;  %v1488_v8 = vadd.f32 %v4526_v23, %v1487_v6 }
 0x13c   : > { %2980 = vst [vmem:[%s4543_s25 + $0x540] sm:$0xff] %v2724_v1  ;;  %v2128_v9 = vadd.f32 %v4526_v23, %v2127_v7  ;;  %v2599_v10 = vmax.f32 %v1493_v4, 0.0 }
 0x13d   : > { %v2727_v11 = vmax.f32 %v2133_v5, 0.0  ;;  %v2598_v12 = vmax.f32 %v1488_v8, 0.0  ;;  %v3720_v14 = vpop.f32.mrb[44].mxu0 }
 0x13e   : > { %v2726_v13 = vmax.f32 %v2128_v9, 0.0  ;;  %v3912_v15 = vpop.f32.mrb[44].mxu1  ;;  %2855 = vst [vmem:[%s4543_s25 + $0x158] sm:$0xff] %v2599_v10  ;;  %v1503_v16 = vadd.f32 %v3720_v14, %v4526_v23  ;;  %v1497_v18 = vpop.f32.mrb[45].mxu0 }
 0x13f   : > { %2983 = vst [vmem:[%s4543_s25 + $0x558] sm:$0xff] %v2727_v11  ;;  %v2143_v17 = vadd.f32 %v3912_v15, %v4526_v23  ;;  %v2137_v19 = vpop.f32.mrb[45].mxu1  ;;  %2854 = vst [vmem:[%s4543_s25 + $0x150] sm:$0xff] %v2598_v12  ;;  %v1498_v20 = vadd.f32 %v4526_v23, %v1497_v18 }
 0x140   : > { %2982 = vst [vmem:[%s4543_s25 + $0x550] sm:$0xff] %v2726_v13  ;;  %v2138_v21 = vadd.f32 %v4526_v23, %v2137_v19  ;;  %v2601_v22 = vmax.f32 %v1503_v16, 0.0  ;;  %v4838_v13 = vld [vmem:[%s5148_s2] ss:$0 sm:$0xff] }
 0x141   : > { %v2729_v24 = vmax.f32 %v2143_v17, 0.0  ;;  %v2600_v25 = vmax.f32 %v1498_v20, 0.0  ;;  %v3723_v27 = vpop.f32.mrb[46].mxu0 }
 0x142   : > { %v2728_v26 = vmax.f32 %v2138_v21, 0.0  ;;  %v3915_v28 = vpop.f32.mrb[46].mxu1  ;;  %2857 = vst [vmem:[%s4543_s25 + $0x168] sm:$0xff] %v2601_v22  ;;  %v1513_v29 = vadd.f32 %v3723_v27, %v4526_v23  ;;  %v1507_v31 = vpop.f32.mrb[47].mxu0 }
 0x143   : > { %2985 = vst [vmem:[%s4543_s25 + $0x568] sm:$0xff] %v2729_v24  ;;  %v2153_v30 = vadd.f32 %v3915_v28, %v4526_v23  ;;  %v2147_v32 = vpop.f32.mrb[47].mxu1  ;;  %2856 = vst [vmem:[%s4543_s25 + $0x160] sm:$0xff] %v2600_v25  ;;  %v1508_v33 = vadd.f32 %v4526_v23, %v1507_v31 }
 0x144   : > { %2984 = vst [vmem:[%s4543_s25 + $0x560] sm:$0xff] %v2728_v26  ;;  %v2148_v34 = vadd.f32 %v4526_v23, %v2147_v32  ;;  %v2603_v35 = vmax.f32 %v1513_v29, 0.0 }
 0x145   : > { %v2731_v36 = vmax.f32 %v2153_v30, 0.0  ;;  %v2602_v37 = vmax.f32 %v1508_v33, 0.0  ;;  %v3726_v39 = vpop.f32.mrb[48].mxu0 }
 0x146   : > { %v2730_v38 = vmax.f32 %v2148_v34, 0.0  ;;  %v3918_v40 = vpop.f32.mrb[48].mxu1  ;;  %2859 = vst [vmem:[%s4543_s25 + $0x178] sm:$0xff] %v2603_v35  ;;  %v1523_v41 = vadd.f32 %v3726_v39, %v4526_v23  ;;  %v1517_v43 = vpop.f32.mrb[49].mxu0 }
 0x147   : > { %2987 = vst [vmem:[%s4543_s25 + $0x578] sm:$0xff] %v2731_v36  ;;  %v2163_v42 = vadd.f32 %v3918_v40, %v4526_v23  ;;  %v2157_v44 = vpop.f32.mrb[49].mxu1  ;;  %2858 = vst [vmem:[%s4543_s25 + $0x170] sm:$0xff] %v2602_v37  ;;  %v1518_v45 = vadd.f32 %v4526_v23, %v1517_v43 }
 0x148   : > { %2986 = vst [vmem:[%s4543_s25 + $0x570] sm:$0xff] %v2730_v38  ;;  %v2158_v46 = vadd.f32 %v4526_v23, %v2157_v44  ;;  %v2605_v47 = vmax.f32 %v1523_v41, 0.0 }
 0x149   : > { %v2733_v48 = vmax.f32 %v2163_v42, 0.0  ;;  %v2604_v49 = vmax.f32 %v1518_v45, 0.0  ;;  %v3729_v51 = vpop.f32.mrb[50].mxu0 }
 0x14a   : > { %v2732_v50 = vmax.f32 %v2158_v46, 0.0  ;;  %v3921_v52 = vpop.f32.mrb[50].mxu1  ;;  %2861 = vst [vmem:[%s4543_s25 + $0x188] sm:$0xff] %v2605_v47  ;;  %v1533_v53 = vadd.f32 %v3729_v51, %v4526_v23  ;;  %v1527_v55 = vpop.f32.mrb[51].mxu0 }
 0x14b   : > { %2989 = vst [vmem:[%s4543_s25 + $0x588] sm:$0xff] %v2733_v48  ;;  %v2173_v54 = vadd.f32 %v3921_v52, %v4526_v23  ;;  %v2167_v56 = vpop.f32.mrb[51].mxu1  ;;  %2860 = vst [vmem:[%s4543_s25 + $0x180] sm:$0xff] %v2604_v49  ;;  %v1528_v57 = vadd.f32 %v4526_v23, %v1527_v55 }
 0x14c   : > { %2988 = vst [vmem:[%s4543_s25 + $0x580] sm:$0xff] %v2732_v50  ;;  %v2168_v58 = vadd.f32 %v4526_v23, %v2167_v56  ;;  %v2607_v59 = vmax.f32 %v1533_v53, 0.0 }
 0x14d   : > { %v2735_v60 = vmax.f32 %v2173_v54, 0.0  ;;  %v2606_v61 = vmax.f32 %v1528_v57, 0.0  ;;  %v3732_v63 = vpop.f32.mrb[52].mxu0 }
 0x14e   : > { %v2734_v62 = vmax.f32 %v2168_v58, 0.0  ;;  %v3924_v0 = vpop.f32.mrb[52].mxu1  ;;  %2863 = vst [vmem:[%s4543_s25 + $0x198] sm:$0xff] %v2607_v59  ;;  %v1543_v1 = vadd.f32 %v3732_v63, %v4526_v23  ;;  %v1537_v3 = vpop.f32.mrb[53].mxu0 }
 0x14f   : > { %2991 = vst [vmem:[%s4543_s25 + $0x598] sm:$0xff] %v2735_v60  ;;  %v2183_v2 = vadd.f32 %v3924_v0, %v4526_v23  ;;  %v2177_v4 = vpop.f32.mrb[53].mxu1  ;;  %2862 = vst [vmem:[%s4543_s25 + $0x190] sm:$0xff] %v2606_v61  ;;  %v1538_v5 = vadd.f32 %v4526_v23, %v1537_v3 }
 0x150   : > { %2990 = vst [vmem:[%s4543_s25 + $0x590] sm:$0xff] %v2734_v62  ;;  %v2178_v6 = vadd.f32 %v4526_v23, %v2177_v4  ;;  %v2609_v7 = vmax.f32 %v1543_v1, 0.0 }
 0x151   : > { %v2737_v8 = vmax.f32 %v2183_v2, 0.0  ;;  %v2608_v9 = vmax.f32 %v1538_v5, 0.0  ;;  %v3735_v11 = vpop.f32.mrb[54].mxu0 }
 0x152   : > { %v2736_v10 = vmax.f32 %v2178_v6, 0.0  ;;  %v3927_v12 = vpop.f32.mrb[54].mxu1  ;;  %2865 = vst [vmem:[%s4543_s25 + $0x1a8] sm:$0xff] %v2609_v7  ;;  %v1553_v14 = vadd.f32 %v4838_v13, %v3735_v11  ;;  %v1547_v23 = vpop.f32.mrb[55].mxu0 }
 0x153   : > { %2993 = vst [vmem:[%s4543_s25 + $0x5a8] sm:$0xff] %v2737_v8  ;;  %v2193_v15 = vadd.f32 %v4838_v13, %v3927_v12  ;;  %v2187_v16 = vpop.f32.mrb[55].mxu1  ;;  %2864 = vst [vmem:[%s4543_s25 + $0x1a0] sm:$0xff] %v2608_v9  ;;  %v1548_v17 = vadd.f32 %v4838_v13, %v1547_v23 }
 0x154   : > { %2992 = vst [vmem:[%s4543_s25 + $0x5a0] sm:$0xff] %v2736_v10  ;;  %v2188_v18 = vadd.f32 %v4838_v13, %v2187_v16  ;;  %v2611_v19 = vmax.f32 %v1553_v14, 0.0 }
 0x155   : > { %v2739_v20 = vmax.f32 %v2193_v15, 0.0  ;;  %v2610_v21 = vmax.f32 %v1548_v17, 0.0  ;;  %v3738_v24 = vpop.f32.mrb[56].mxu0 }
 0x156   : > { %v2738_v22 = vmax.f32 %v2188_v18, 0.0  ;;  %v3930_v25 = vpop.f32.mrb[56].mxu1  ;;  %2867 = vst [vmem:[%s4543_s25 + $0x1b8] sm:$0xff] %v2611_v19  ;;  %v1563_v26 = vadd.f32 %v4838_v13, %v3738_v24  ;;  %v1557_v28 = vpop.f32.mrb[57].mxu0 }
 0x157   : > { %2995 = vst [vmem:[%s4543_s25 + $0x5b8] sm:$0xff] %v2739_v20  ;;  %v2203_v27 = vadd.f32 %v4838_v13, %v3930_v25  ;;  %v2197_v29 = vpop.f32.mrb[57].mxu1  ;;  %2866 = vst [vmem:[%s4543_s25 + $0x1b0] sm:$0xff] %v2610_v21  ;;  %v1558_v30 = vadd.f32 %v4838_v13, %v1557_v28 }
 0x158   : > { %2994 = vst [vmem:[%s4543_s25 + $0x5b0] sm:$0xff] %v2738_v22  ;;  %v2198_v31 = vadd.f32 %v4838_v13, %v2197_v29  ;;  %v2613_v32 = vmax.f32 %v1563_v26, 0.0 }
 0x159   : > { %v2741_v33 = vmax.f32 %v2203_v27, 0.0  ;;  %v2612_v34 = vmax.f32 %v1558_v30, 0.0  ;;  %v3741_v36 = vpop.f32.mrb[58].mxu0 }
 0x15a   : > { %v2740_v35 = vmax.f32 %v2198_v31, 0.0  ;;  %v3933_v37 = vpop.f32.mrb[58].mxu1  ;;  %2869 = vst [vmem:[%s4543_s25 + $0x1c8] sm:$0xff] %v2613_v32  ;;  %v1573_v38 = vadd.f32 %v4838_v13, %v3741_v36  ;;  %v1567_v40 = vpop.f32.mrb[59].mxu0 }
 0x15b   : > { %2997 = vst [vmem:[%s4543_s25 + $0x5c8] sm:$0xff] %v2741_v33  ;;  %v2213_v39 = vadd.f32 %v4838_v13, %v3933_v37  ;;  %v2207_v41 = vpop.f32.mrb[59].mxu1  ;;  %2868 = vst [vmem:[%s4543_s25 + $0x1c0] sm:$0xff] %v2612_v34  ;;  %v1568_v42 = vadd.f32 %v4838_v13, %v1567_v40 }
 0x15c   : > { %2996 = vst [vmem:[%s4543_s25 + $0x5c0] sm:$0xff] %v2740_v35  ;;  %v2208_v43 = vadd.f32 %v4838_v13, %v2207_v41  ;;  %v2615_v44 = vmax.f32 %v1573_v38, 0.0 }
 0x15d   : > { %v2743_v45 = vmax.f32 %v2213_v39, 0.0  ;;  %v2614_v46 = vmax.f32 %v1568_v42, 0.0  ;;  %v3744_v48 = vpop.f32.mrb[60].mxu0 }
 0x15e   : > { %v2742_v47 = vmax.f32 %v2208_v43, 0.0  ;;  %v3936_v49 = vpop.f32.mrb[60].mxu1  ;;  %2871 = vst [vmem:[%s4543_s25 + $0x1d8] sm:$0xff] %v2615_v44  ;;  %v1583_v50 = vadd.f32 %v4838_v13, %v3744_v48  ;;  %v1577_v52 = vpop.f32.mrb[61].mxu0 }
 0x15f   : > { %2999 = vst [vmem:[%s4543_s25 + $0x5d8] sm:$0xff] %v2743_v45  ;;  %v2223_v51 = vadd.f32 %v4838_v13, %v3936_v49  ;;  %v2217_v53 = vpop.f32.mrb[61].mxu1  ;;  %2870 = vst [vmem:[%s4543_s25 + $0x1d0] sm:$0xff] %v2614_v46  ;;  %v1578_v54 = vadd.f32 %v4838_v13, %v1577_v52 }
 0x160   : > { %2998 = vst [vmem:[%s4543_s25 + $0x5d0] sm:$0xff] %v2742_v47  ;;  %v2218_v55 = vadd.f32 %v4838_v13, %v2217_v53  ;;  %v2617_v56 = vmax.f32 %v1583_v50, 0.0 }
 0x161   : > { %v2745_v57 = vmax.f32 %v2223_v51, 0.0  ;;  %v2616_v58 = vmax.f32 %v1578_v54, 0.0  ;;  %v3747_v60 = vpop.f32.mrb[62].mxu0 }
 0x162   : > { %v2744_v59 = vmax.f32 %v2218_v55, 0.0  ;;  %v3939_v61 = vpop.f32.mrb[62].mxu1  ;;  %2873 = vst [vmem:[%s4543_s25 + $0x1e8] sm:$0xff] %v2617_v56  ;;  %v1593_v62 = vadd.f32 %v4838_v13, %v3747_v60  ;;  %v1587_v0 = vpop.f32.mrb[63].mxu0 }
 0x163   : > { %3001 = vst [vmem:[%s4543_s25 + $0x5e8] sm:$0xff] %v2745_v57  ;;  %v2233_v63 = vadd.f32 %v4838_v13, %v3939_v61  ;;  %v2227_v1 = vpop.f32.mrb[63].mxu1  ;;  %2872 = vst [vmem:[%s4543_s25 + $0x1e0] sm:$0xff] %v2616_v58  ;;  %v1588_v2 = vadd.f32 %v4838_v13, %v1587_v0 }
 0x164   : > { %3000 = vst [vmem:[%s4543_s25 + $0x5e0] sm:$0xff] %v2744_v59  ;;  %v2228_v3 = vadd.f32 %v4838_v13, %v2227_v1  ;;  %v2619_v4 = vmax.f32 %v1593_v62, 0.0 }
 0x165   : > { %v2747_v5 = vmax.f32 %v2233_v63, 0.0  ;;  %v2618_v6 = vmax.f32 %v1588_v2, 0.0  ;;  %v3750_v8 = vpop.f32.mrb[64].mxu0 }
 0x166   : > { %v2746_v7 = vmax.f32 %v2228_v3, 0.0  ;;  %v3942_v9 = vpop.f32.mrb[64].mxu1  ;;  %2875 = vst [vmem:[%s4543_s25 + $0x1f8] sm:$0xff] %v2619_v4  ;;  %v1603_v10 = vadd.f32 %v4838_v13, %v3750_v8  ;;  %v1597_v12 = vpop.f32.mrb[65].mxu0 }
 0x167   : > { %3003 = vst [vmem:[%s4543_s25 + $0x5f8] sm:$0xff] %v2747_v5  ;;  %v2243_v11 = vadd.f32 %v4838_v13, %v3942_v9  ;;  %v2237_v14 = vpop.f32.mrb[65].mxu1  ;;  %2874 = vst [vmem:[%s4543_s25 + $0x1f0] sm:$0xff] %v2618_v6  ;;  %v1598_v15 = vadd.f32 %v4838_v13, %v1597_v12 }
 0x168   : > { %3002 = vst [vmem:[%s4543_s25 + $0x5f0] sm:$0xff] %v2746_v7  ;;  %v2238_v23 = vadd.f32 %v4838_v13, %v2237_v14  ;;  %v2621_v16 = vmax.f32 %v1603_v10, 0.0 }
 0x169   : > { %v2749_v17 = vmax.f32 %v2243_v11, 0.0  ;;  %v2620_v18 = vmax.f32 %v1598_v15, 0.0  ;;  %v3753_v20 = vpop.f32.mrb[66].mxu0 }
 0x16a   : > { %v2748_v19 = vmax.f32 %v2238_v23, 0.0  ;;  %v3945_v21 = vpop.f32.mrb[66].mxu1  ;;  %2877 = vst [vmem:[%s4543_s25 + $0x208] sm:$0xff] %v2621_v16  ;;  %v1613_v22 = vadd.f32 %v4838_v13, %v3753_v20  ;;  %v1607_v25 = vpop.f32.mrb[67].mxu0 }
 0x16b   : > { %3005 = vst [vmem:[%s4543_s25 + $0x608] sm:$0xff] %v2749_v17  ;;  %v2253_v24 = vadd.f32 %v4838_v13, %v3945_v21  ;;  %v2247_v26 = vpop.f32.mrb[67].mxu1  ;;  %2876 = vst [vmem:[%s4543_s25 + $0x200] sm:$0xff] %v2620_v18  ;;  %v1608_v27 = vadd.f32 %v4838_v13, %v1607_v25 }
 0x16c   : > { %3004 = vst [vmem:[%s4543_s25 + $0x600] sm:$0xff] %v2748_v19  ;;  %v2248_v28 = vadd.f32 %v4838_v13, %v2247_v26  ;;  %v2623_v29 = vmax.f32 %v1613_v22, 0.0 }
 0x16d   : > { %v2751_v30 = vmax.f32 %v2253_v24, 0.0  ;;  %v2622_v31 = vmax.f32 %v1608_v27, 0.0  ;;  %v3756_v33 = vpop.f32.mrb[68].mxu0 }
 0x16e   : > { %v2750_v32 = vmax.f32 %v2248_v28, 0.0  ;;  %v3948_v34 = vpop.f32.mrb[68].mxu1  ;;  %2879 = vst [vmem:[%s4543_s25 + $0x218] sm:$0xff] %v2623_v29  ;;  %v1623_v35 = vadd.f32 %v4838_v13, %v3756_v33  ;;  %v1617_v37 = vpop.f32.mrb[69].mxu0 }
 0x16f   : > { %3007 = vst [vmem:[%s4543_s25 + $0x618] sm:$0xff] %v2751_v30  ;;  %v2263_v36 = vadd.f32 %v4838_v13, %v3948_v34  ;;  %v2257_v38 = vpop.f32.mrb[69].mxu1  ;;  %2878 = vst [vmem:[%s4543_s25 + $0x210] sm:$0xff] %v2622_v31  ;;  %v1618_v39 = vadd.f32 %v4838_v13, %v1617_v37 }
 0x170   : > { %3006 = vst [vmem:[%s4543_s25 + $0x610] sm:$0xff] %v2750_v32  ;;  %v2258_v40 = vadd.f32 %v4838_v13, %v2257_v38  ;;  %v2625_v41 = vmax.f32 %v1623_v35, 0.0 }
 0x171   : > { %v2753_v42 = vmax.f32 %v2263_v36, 0.0  ;;  %v2624_v43 = vmax.f32 %v1618_v39, 0.0  ;;  %v3759_v45 = vpop.f32.mrb[70].mxu0 }
 0x172   : > { %v2752_v44 = vmax.f32 %v2258_v40, 0.0  ;;  %v3951_v46 = vpop.f32.mrb[70].mxu1  ;;  %2881 = vst [vmem:[%s4543_s25 + $0x228] sm:$0xff] %v2625_v41  ;;  %v1633_v47 = vadd.f32 %v4838_v13, %v3759_v45  ;;  %v1627_v49 = vpop.f32.mrb[71].mxu0 }
 0x173   : > { %3009 = vst [vmem:[%s4543_s25 + $0x628] sm:$0xff] %v2753_v42  ;;  %v2273_v48 = vadd.f32 %v4838_v13, %v3951_v46  ;;  %v2267_v50 = vpop.f32.mrb[71].mxu1  ;;  %2880 = vst [vmem:[%s4543_s25 + $0x220] sm:$0xff] %v2624_v43  ;;  %v1628_v51 = vadd.f32 %v4838_v13, %v1627_v49 }
 0x174   : > { %3008 = vst [vmem:[%s4543_s25 + $0x620] sm:$0xff] %v2752_v44  ;;  %v2268_v52 = vadd.f32 %v4838_v13, %v2267_v50  ;;  %v2627_v53 = vmax.f32 %v1633_v47, 0.0 }
 0x175   : > { %v2755_v54 = vmax.f32 %v2273_v48, 0.0  ;;  %v2626_v55 = vmax.f32 %v1628_v51, 0.0  ;;  %v3762_v57 = vpop.f32.mrb[72].mxu0 }
 0x176   : > { %v2754_v56 = vmax.f32 %v2268_v52, 0.0  ;;  %v3954_v58 = vpop.f32.mrb[72].mxu1  ;;  %2883 = vst [vmem:[%s4543_s25 + $0x238] sm:$0xff] %v2627_v53  ;;  %v1643_v59 = vadd.f32 %v4838_v13, %v3762_v57  ;;  %v1637_v61 = vpop.f32.mrb[73].mxu0 }
 0x177   : > { %3011 = vst [vmem:[%s4543_s25 + $0x638] sm:$0xff] %v2755_v54  ;;  %v2283_v60 = vadd.f32 %v4838_v13, %v3954_v58  ;;  %v2277_v62 = vpop.f32.mrb[73].mxu1  ;;  %2882 = vst [vmem:[%s4543_s25 + $0x230] sm:$0xff] %v2626_v55  ;;  %v1638_v63 = vadd.f32 %v4838_v13, %v1637_v61 }
 0x178   : > { %3010 = vst [vmem:[%s4543_s25 + $0x630] sm:$0xff] %v2754_v56  ;;  %v2278_v0 = vadd.f32 %v4838_v13, %v2277_v62  ;;  %v2629_v1 = vmax.f32 %v1643_v59, 0.0 }
 0x179   : > { %v2757_v2 = vmax.f32 %v2283_v60, 0.0  ;;  %v2628_v3 = vmax.f32 %v1638_v63, 0.0  ;;  %v3765_v5 = vpop.f32.mrb[74].mxu0 }
 0x17a   : > { %v2756_v4 = vmax.f32 %v2278_v0, 0.0  ;;  %v3957_v6 = vpop.f32.mrb[74].mxu1  ;;  %2885 = vst [vmem:[%s4543_s25 + $0x248] sm:$0xff] %v2629_v1  ;;  %v1653_v7 = vadd.f32 %v4838_v13, %v3765_v5  ;;  %v1647_v9 = vpop.f32.mrb[75].mxu0 }
 0x17b   : > { %3013 = vst [vmem:[%s4543_s25 + $0x648] sm:$0xff] %v2757_v2  ;;  %v2293_v8 = vadd.f32 %v4838_v13, %v3957_v6  ;;  %v2287_v10 = vpop.f32.mrb[75].mxu1  ;;  %2884 = vst [vmem:[%s4543_s25 + $0x240] sm:$0xff] %v2628_v3  ;;  %v1648_v11 = vadd.f32 %v4838_v13, %v1647_v9 }
 0x17c   : > { %3012 = vst [vmem:[%s4543_s25 + $0x640] sm:$0xff] %v2756_v4  ;;  %v2288_v12 = vadd.f32 %v4838_v13, %v2287_v10  ;;  %v2631_v14 = vmax.f32 %v1653_v7, 0.0 }
 0x17d   : > { %v2759_v15 = vmax.f32 %v2293_v8, 0.0  ;;  %v2630_v23 = vmax.f32 %v1648_v11, 0.0  ;;  %v3768_v17 = vpop.f32.mrb[76].mxu0 }
 0x17e   : > { %v2758_v16 = vmax.f32 %v2288_v12, 0.0  ;;  %v3960_v18 = vpop.f32.mrb[76].mxu1  ;;  %2887 = vst [vmem:[%s4543_s25 + $0x258] sm:$0xff] %v2631_v14  ;;  %v1663_v19 = vadd.f32 %v4838_v13, %v3768_v17  ;;  %v1657_v21 = vpop.f32.mrb[77].mxu0 }
 0x17f   : > { %3015 = vst [vmem:[%s4543_s25 + $0x658] sm:$0xff] %v2759_v15  ;;  %v2303_v20 = vadd.f32 %v4838_v13, %v3960_v18  ;;  %v2297_v22 = vpop.f32.mrb[77].mxu1  ;;  %2886 = vst [vmem:[%s4543_s25 + $0x250] sm:$0xff] %v2630_v23  ;;  %v1658_v24 = vadd.f32 %v4838_v13, %v1657_v21 }
 0x180   : > { %3014 = vst [vmem:[%s4543_s25 + $0x650] sm:$0xff] %v2758_v16  ;;  %v2298_v25 = vadd.f32 %v4838_v13, %v2297_v22  ;;  %v2633_v26 = vmax.f32 %v1663_v19, 0.0 }
 0x181   : > { %v2761_v27 = vmax.f32 %v2303_v20, 0.0  ;;  %v2632_v28 = vmax.f32 %v1658_v24, 0.0  ;;  %v3771_v30 = vpop.f32.mrb[78].mxu0 }
 0x182   : > { %v2760_v29 = vmax.f32 %v2298_v25, 0.0  ;;  %v3963_v31 = vpop.f32.mrb[78].mxu1  ;;  %2889 = vst [vmem:[%s4543_s25 + $0x268] sm:$0xff] %v2633_v26  ;;  %v1673_v32 = vadd.f32 %v4838_v13, %v3771_v30  ;;  %v1667_v34 = vpop.f32.mrb[79].mxu0 }
 0x183   : > { %3017 = vst [vmem:[%s4543_s25 + $0x668] sm:$0xff] %v2761_v27  ;;  %v2313_v33 = vadd.f32 %v4838_v13, %v3963_v31  ;;  %v2307_v35 = vpop.f32.mrb[79].mxu1  ;;  %2888 = vst [vmem:[%s4543_s25 + $0x260] sm:$0xff] %v2632_v28  ;;  %v1668_v36 = vadd.f32 %v4838_v13, %v1667_v34 }
 0x184   : > { %3016 = vst [vmem:[%s4543_s25 + $0x660] sm:$0xff] %v2760_v29  ;;  %v2308_v37 = vadd.f32 %v4838_v13, %v2307_v35  ;;  %v2635_v38 = vmax.f32 %v1673_v32, 0.0 }
 0x185   : > { %v2763_v39 = vmax.f32 %v2313_v33, 0.0  ;;  %v2634_v40 = vmax.f32 %v1668_v36, 0.0  ;;  %v3774_v42 = vpop.f32.mrb[80].mxu0 }
 0x186   : > { %v2762_v41 = vmax.f32 %v2308_v37, 0.0  ;;  %v3966_v43 = vpop.f32.mrb[80].mxu1  ;;  %2891 = vst [vmem:[%s4543_s25 + $0x278] sm:$0xff] %v2635_v38  ;;  %v1683_v44 = vadd.f32 %v4838_v13, %v3774_v42  ;;  %v1677_v46 = vpop.f32.mrb[81].mxu0 }
 0x187   : > { %3019 = vst [vmem:[%s4543_s25 + $0x678] sm:$0xff] %v2763_v39  ;;  %v2323_v45 = vadd.f32 %v4838_v13, %v3966_v43  ;;  %v2317_v47 = vpop.f32.mrb[81].mxu1  ;;  %2890 = vst [vmem:[%s4543_s25 + $0x270] sm:$0xff] %v2634_v40  ;;  %v1678_v48 = vadd.f32 %v4838_v13, %v1677_v46 }
 0x188   : > { %3018 = vst [vmem:[%s4543_s25 + $0x670] sm:$0xff] %v2762_v41  ;;  %v2318_v49 = vadd.f32 %v4838_v13, %v2317_v47  ;;  %v2637_v50 = vmax.f32 %v1683_v44, 0.0 }
 0x189   : > { %v2765_v51 = vmax.f32 %v2323_v45, 0.0  ;;  %v2636_v52 = vmax.f32 %v1678_v48, 0.0  ;;  %v3777_v54 = vpop.f32.mrb[82].mxu0 }
 0x18a   : > { %v2764_v53 = vmax.f32 %v2318_v49, 0.0  ;;  %v3969_v55 = vpop.f32.mrb[82].mxu1  ;;  %2893 = vst [vmem:[%s4543_s25 + $0x288] sm:$0xff] %v2637_v50  ;;  %v1693_v56 = vadd.f32 %v4838_v13, %v3777_v54  ;;  %v1687_v58 = vpop.f32.mrb[83].mxu0 }
 0x18b   : > { %3021 = vst [vmem:[%s4543_s25 + $0x688] sm:$0xff] %v2765_v51  ;;  %v2333_v57 = vadd.f32 %v4838_v13, %v3969_v55  ;;  %v2327_v59 = vpop.f32.mrb[83].mxu1  ;;  %2892 = vst [vmem:[%s4543_s25 + $0x280] sm:$0xff] %v2636_v52  ;;  %v1688_v60 = vadd.f32 %v4838_v13, %v1687_v58 }
 0x18c   : > { %3020 = vst [vmem:[%s4543_s25 + $0x680] sm:$0xff] %v2764_v53  ;;  %v2328_v61 = vadd.f32 %v4838_v13, %v2327_v59  ;;  %v2639_v62 = vmax.f32 %v1693_v56, 0.0 }
 0x18d   : > { %v2767_v63 = vmax.f32 %v2333_v57, 0.0  ;;  %v2638_v0 = vmax.f32 %v1688_v60, 0.0  ;;  %v3780_v2 = vpop.f32.mrb[84].mxu0 }
 0x18e   : > { %v2766_v1 = vmax.f32 %v2328_v61, 0.0  ;;  %v3972_v3 = vpop.f32.mrb[84].mxu1  ;;  %2895 = vst [vmem:[%s4543_s25 + $0x298] sm:$0xff] %v2639_v62  ;;  %v1703_v4 = vadd.f32 %v4838_v13, %v3780_v2  ;;  %v1697_v6 = vpop.f32.mrb[85].mxu0 }
 0x18f   : > { %3023 = vst [vmem:[%s4543_s25 + $0x698] sm:$0xff] %v2767_v63  ;;  %v2343_v5 = vadd.f32 %v4838_v13, %v3972_v3  ;;  %v2337_v7 = vpop.f32.mrb[85].mxu1  ;;  %2894 = vst [vmem:[%s4543_s25 + $0x290] sm:$0xff] %v2638_v0  ;;  %v1698_v8 = vadd.f32 %v4838_v13, %v1697_v6 }
 0x190   : > { %3022 = vst [vmem:[%s4543_s25 + $0x690] sm:$0xff] %v2766_v1  ;;  %v2338_v9 = vadd.f32 %v4838_v13, %v2337_v7  ;;  %v2641_v10 = vmax.f32 %v1703_v4, 0.0 }
 0x191   : > { %v2769_v11 = vmax.f32 %v2343_v5, 0.0  ;;  %v2640_v12 = vmax.f32 %v1698_v8, 0.0  ;;  %v3783_v15 = vpop.f32.mrb[86].mxu0 }
 0x192   : > { %v2768_v14 = vmax.f32 %v2338_v9, 0.0  ;;  %v3975_v23 = vpop.f32.mrb[86].mxu1  ;;  %2897 = vst [vmem:[%s4543_s25 + $0x2a8] sm:$0xff] %v2641_v10  ;;  %v1713_v16 = vadd.f32 %v4838_v13, %v3783_v15  ;;  %v1707_v18 = vpop.f32.mrb[87].mxu0 }
 0x193   : > { %3025 = vst [vmem:[%s4543_s25 + $0x6a8] sm:$0xff] %v2769_v11  ;;  %v2353_v17 = vadd.f32 %v4838_v13, %v3975_v23  ;;  %v2347_v19 = vpop.f32.mrb[87].mxu1  ;;  %2896 = vst [vmem:[%s4543_s25 + $0x2a0] sm:$0xff] %v2640_v12  ;;  %v1708_v20 = vadd.f32 %v4838_v13, %v1707_v18 }
 0x194   : > { %3024 = vst [vmem:[%s4543_s25 + $0x6a0] sm:$0xff] %v2768_v14  ;;  %v2348_v21 = vadd.f32 %v4838_v13, %v2347_v19  ;;  %v2643_v22 = vmax.f32 %v1713_v16, 0.0 }
 0x195   : > { %v2771_v24 = vmax.f32 %v2353_v17, 0.0  ;;  %v2642_v25 = vmax.f32 %v1708_v20, 0.0  ;;  %v3786_v27 = vpop.f32.mrb[88].mxu0 }
 0x196   : > { %v2770_v26 = vmax.f32 %v2348_v21, 0.0  ;;  %v3978_v28 = vpop.f32.mrb[88].mxu1  ;;  %2899 = vst [vmem:[%s4543_s25 + $0x2b8] sm:$0xff] %v2643_v22  ;;  %v1723_v29 = vadd.f32 %v4838_v13, %v3786_v27  ;;  %v1717_v31 = vpop.f32.mrb[89].mxu0 }
 0x197   : > { %3027 = vst [vmem:[%s4543_s25 + $0x6b8] sm:$0xff] %v2771_v24  ;;  %v2363_v30 = vadd.f32 %v4838_v13, %v3978_v28  ;;  %v2357_v32 = vpop.f32.mrb[89].mxu1  ;;  %2898 = vst [vmem:[%s4543_s25 + $0x2b0] sm:$0xff] %v2642_v25  ;;  %v1718_v33 = vadd.f32 %v4838_v13, %v1717_v31 }
 0x198   : > { %3026 = vst [vmem:[%s4543_s25 + $0x6b0] sm:$0xff] %v2770_v26  ;;  %v2358_v34 = vadd.f32 %v4838_v13, %v2357_v32  ;;  %v2645_v35 = vmax.f32 %v1723_v29, 0.0 }
 0x199   : > { %v2773_v36 = vmax.f32 %v2363_v30, 0.0  ;;  %v2644_v37 = vmax.f32 %v1718_v33, 0.0  ;;  %v3789_v39 = vpop.f32.mrb[90].mxu0 }
 0x19a   : > { %v2772_v38 = vmax.f32 %v2358_v34, 0.0  ;;  %v3981_v40 = vpop.f32.mrb[90].mxu1  ;;  %2901 = vst [vmem:[%s4543_s25 + $0x2c8] sm:$0xff] %v2645_v35  ;;  %v1733_v41 = vadd.f32 %v4838_v13, %v3789_v39  ;;  %v1727_v43 = vpop.f32.mrb[91].mxu0 }
 0x19b   : > { %3029 = vst [vmem:[%s4543_s25 + $0x6c8] sm:$0xff] %v2773_v36  ;;  %v2373_v42 = vadd.f32 %v4838_v13, %v3981_v40  ;;  %v2367_v44 = vpop.f32.mrb[91].mxu1  ;;  %2900 = vst [vmem:[%s4543_s25 + $0x2c0] sm:$0xff] %v2644_v37  ;;  %v1728_v45 = vadd.f32 %v4838_v13, %v1727_v43 }
 0x19c   : > { %3028 = vst [vmem:[%s4543_s25 + $0x6c0] sm:$0xff] %v2772_v38  ;;  %v2368_v46 = vadd.f32 %v4838_v13, %v2367_v44  ;;  %v2647_v47 = vmax.f32 %v1733_v41, 0.0 }
 0x19d   : > { %v2775_v48 = vmax.f32 %v2373_v42, 0.0  ;;  %v2646_v49 = vmax.f32 %v1728_v45, 0.0  ;;  %v3792_v51 = vpop.f32.mrb[92].mxu0 }
 0x19e   : > { %v2774_v50 = vmax.f32 %v2368_v46, 0.0  ;;  %v3984_v52 = vpop.f32.mrb[92].mxu1  ;;  %2903 = vst [vmem:[%s4543_s25 + $0x2d8] sm:$0xff] %v2647_v47  ;;  %v1743_v53 = vadd.f32 %v4838_v13, %v3792_v51  ;;  %v1737_v55 = vpop.f32.mrb[93].mxu0 }
 0x19f   : > { %3031 = vst [vmem:[%s4543_s25 + $0x6d8] sm:$0xff] %v2775_v48  ;;  %v2383_v54 = vadd.f32 %v4838_v13, %v3984_v52  ;;  %v2377_v56 = vpop.f32.mrb[93].mxu1  ;;  %2902 = vst [vmem:[%s4543_s25 + $0x2d0] sm:$0xff] %v2646_v49  ;;  %v1738_v57 = vadd.f32 %v4838_v13, %v1737_v55 }
 0x1a0   : > { %3030 = vst [vmem:[%s4543_s25 + $0x6d0] sm:$0xff] %v2774_v50  ;;  %v2378_v58 = vadd.f32 %v4838_v13, %v2377_v56  ;;  %v2649_v59 = vmax.f32 %v1743_v53, 0.0 }
 0x1a1   : > { %v2777_v60 = vmax.f32 %v2383_v54, 0.0  ;;  %v2648_v61 = vmax.f32 %v1738_v57, 0.0  ;;  %v3795_v63 = vpop.f32.mrb[94].mxu0 }
 0x1a2   : > { %v2776_v62 = vmax.f32 %v2378_v58, 0.0  ;;  %v3987_v0 = vpop.f32.mrb[94].mxu1  ;;  %2905 = vst [vmem:[%s4543_s25 + $0x2e8] sm:$0xff] %v2649_v59  ;;  %v1753_v1 = vadd.f32 %v4838_v13, %v3795_v63  ;;  %v1747_v3 = vpop.f32.mrb[95].mxu0 }
 0x1a3   : > { %3033 = vst [vmem:[%s4543_s25 + $0x6e8] sm:$0xff] %v2777_v60  ;;  %v2393_v2 = vadd.f32 %v4838_v13, %v3987_v0  ;;  %v2387_v4 = vpop.f32.mrb[95].mxu1  ;;  %2904 = vst [vmem:[%s4543_s25 + $0x2e0] sm:$0xff] %v2648_v61  ;;  %v1748_v5 = vadd.f32 %v4838_v13, %v1747_v3 }
 0x1a4   : > { %3032 = vst [vmem:[%s4543_s25 + $0x6e0] sm:$0xff] %v2776_v62  ;;  %v2388_v6 = vadd.f32 %v4838_v13, %v2387_v4  ;;  %v2651_v7 = vmax.f32 %v1753_v1, 0.0 }
 0x1a5   : > { %v2779_v8 = vmax.f32 %v2393_v2, 0.0  ;;  %v2650_v9 = vmax.f32 %v1748_v5, 0.0  ;;  %v3798_v11 = vpop.f32.mrb[96].mxu0 }
 0x1a6   : > { %v2778_v10 = vmax.f32 %v2388_v6, 0.0  ;;  %v3990_v12 = vpop.f32.mrb[96].mxu1  ;;  %2907 = vst [vmem:[%s4543_s25 + $0x2f8] sm:$0xff] %v2651_v7  ;;  %v1763_v14 = vadd.f32 %v4838_v13, %v3798_v11  ;;  %v1757_v23 = vpop.f32.mrb[97].mxu0 }
 0x1a7   : > { %3035 = vst [vmem:[%s4543_s25 + $0x6f8] sm:$0xff] %v2779_v8  ;;  %v2403_v15 = vadd.f32 %v4838_v13, %v3990_v12  ;;  %v2397_v16 = vpop.f32.mrb[97].mxu1  ;;  %2906 = vst [vmem:[%s4543_s25 + $0x2f0] sm:$0xff] %v2650_v9  ;;  %v1758_v17 = vadd.f32 %v4838_v13, %v1757_v23 }
 0x1a8   : > { %3034 = vst [vmem:[%s4543_s25 + $0x6f0] sm:$0xff] %v2778_v10  ;;  %v2398_v18 = vadd.f32 %v4838_v13, %v2397_v16  ;;  %v2653_v19 = vmax.f32 %v1763_v14, 0.0 }
 0x1a9   : > { %v2781_v20 = vmax.f32 %v2403_v15, 0.0  ;;  %v2652_v21 = vmax.f32 %v1758_v17, 0.0  ;;  %v3801_v24 = vpop.f32.mrb[98].mxu0 }
 0x1aa   : > { %v2780_v22 = vmax.f32 %v2398_v18, 0.0  ;;  %v3993_v25 = vpop.f32.mrb[98].mxu1  ;;  %2909 = vst [vmem:[%s4543_s25 + $0x308] sm:$0xff] %v2653_v19  ;;  %v1773_v26 = vadd.f32 %v4838_v13, %v3801_v24  ;;  %v1767_v28 = vpop.f32.mrb[99].mxu0 }
 0x1ab   : > { %3037 = vst [vmem:[%s4543_s25 + $0x708] sm:$0xff] %v2781_v20  ;;  %v2413_v27 = vadd.f32 %v4838_v13, %v3993_v25  ;;  %v2407_v29 = vpop.f32.mrb[99].mxu1  ;;  %2908 = vst [vmem:[%s4543_s25 + $0x300] sm:$0xff] %v2652_v21  ;;  %v1768_v30 = vadd.f32 %v4838_v13, %v1767_v28 }
 0x1ac   : > { %3036 = vst [vmem:[%s4543_s25 + $0x700] sm:$0xff] %v2780_v22  ;;  %v2408_v31 = vadd.f32 %v4838_v13, %v2407_v29  ;;  %v2655_v32 = vmax.f32 %v1773_v26, 0.0 }
 0x1ad   : > { %v2783_v33 = vmax.f32 %v2413_v27, 0.0  ;;  %v2654_v34 = vmax.f32 %v1768_v30, 0.0  ;;  %v3804_v36 = vpop.f32.mrb[100].mxu0 }
 0x1ae   : > { %v2782_v35 = vmax.f32 %v2408_v31, 0.0  ;;  %v3996_v37 = vpop.f32.mrb[100].mxu1  ;;  %2911 = vst [vmem:[%s4543_s25 + $0x318] sm:$0xff] %v2655_v32  ;;  %v1783_v38 = vadd.f32 %v4838_v13, %v3804_v36  ;;  %v1777_v40 = vpop.f32.mrb[101].mxu0 }
 0x1af   : > { %3039 = vst [vmem:[%s4543_s25 + $0x718] sm:$0xff] %v2783_v33  ;;  %v2423_v39 = vadd.f32 %v4838_v13, %v3996_v37  ;;  %v2417_v41 = vpop.f32.mrb[101].mxu1  ;;  %2910 = vst [vmem:[%s4543_s25 + $0x310] sm:$0xff] %v2654_v34  ;;  %v1778_v42 = vadd.f32 %v4838_v13, %v1777_v40 }
 0x1b0   : > { %3038 = vst [vmem:[%s4543_s25 + $0x710] sm:$0xff] %v2782_v35  ;;  %v2418_v43 = vadd.f32 %v4838_v13, %v2417_v41  ;;  %v2657_v44 = vmax.f32 %v1783_v38, 0.0 }
 0x1b1   : > { %v2785_v45 = vmax.f32 %v2423_v39, 0.0  ;;  %v2656_v46 = vmax.f32 %v1778_v42, 0.0  ;;  %v3807_v48 = vpop.f32.mrb[102].mxu0 }
 0x1b2   : > { %v2784_v47 = vmax.f32 %v2418_v43, 0.0  ;;  %v3999_v49 = vpop.f32.mrb[102].mxu1  ;;  %2913 = vst [vmem:[%s4543_s25 + $0x328] sm:$0xff] %v2657_v44  ;;  %v1793_v50 = vadd.f32 %v4838_v13, %v3807_v48  ;;  %v1787_v52 = vpop.f32.mrb[103].mxu0 }
 0x1b3   : > { %3041 = vst [vmem:[%s4543_s25 + $0x728] sm:$0xff] %v2785_v45  ;;  %v2433_v51 = vadd.f32 %v4838_v13, %v3999_v49  ;;  %v2427_v53 = vpop.f32.mrb[103].mxu1  ;;  %2912 = vst [vmem:[%s4543_s25 + $0x320] sm:$0xff] %v2656_v46  ;;  %v1788_v54 = vadd.f32 %v4838_v13, %v1787_v52 }
 0x1b4   : > { %3040 = vst [vmem:[%s4543_s25 + $0x720] sm:$0xff] %v2784_v47  ;;  %v2428_v55 = vadd.f32 %v4838_v13, %v2427_v53  ;;  %v2659_v56 = vmax.f32 %v1793_v50, 0.0 }
 0x1b5   : > { %v2787_v57 = vmax.f32 %v2433_v51, 0.0  ;;  %v2658_v58 = vmax.f32 %v1788_v54, 0.0  ;;  %v3810_v60 = vpop.f32.mrb[104].mxu0 }
 0x1b6   : > { %v2786_v59 = vmax.f32 %v2428_v55, 0.0  ;;  %v4002_v61 = vpop.f32.mrb[104].mxu1  ;;  %2915 = vst [vmem:[%s4543_s25 + $0x338] sm:$0xff] %v2659_v56  ;;  %v1803_v62 = vadd.f32 %v4838_v13, %v3810_v60  ;;  %v1797_v0 = vpop.f32.mrb[105].mxu0 }
 0x1b7   : > { %3043 = vst [vmem:[%s4543_s25 + $0x738] sm:$0xff] %v2787_v57  ;;  %v2443_v63 = vadd.f32 %v4838_v13, %v4002_v61  ;;  %v2437_v1 = vpop.f32.mrb[105].mxu1  ;;  %2914 = vst [vmem:[%s4543_s25 + $0x330] sm:$0xff] %v2658_v58  ;;  %v1798_v2 = vadd.f32 %v4838_v13, %v1797_v0 }
 0x1b8   : > { %3042 = vst [vmem:[%s4543_s25 + $0x730] sm:$0xff] %v2786_v59  ;;  %v2438_v3 = vadd.f32 %v4838_v13, %v2437_v1  ;;  %v2661_v4 = vmax.f32 %v1803_v62, 0.0 }
 0x1b9   : > { %v2789_v5 = vmax.f32 %v2443_v63, 0.0  ;;  %v2660_v6 = vmax.f32 %v1798_v2, 0.0  ;;  %v3813_v8 = vpop.f32.mrb[106].mxu0 }
 0x1ba   : > { %v2788_v7 = vmax.f32 %v2438_v3, 0.0  ;;  %v4005_v9 = vpop.f32.mrb[106].mxu1  ;;  %2917 = vst [vmem:[%s4543_s25 + $0x348] sm:$0xff] %v2661_v4  ;;  %v1813_v10 = vadd.f32 %v4838_v13, %v3813_v8  ;;  %v1807_v12 = vpop.f32.mrb[107].mxu0 }
 0x1bb   : > { %3045 = vst [vmem:[%s4543_s25 + $0x748] sm:$0xff] %v2789_v5  ;;  %v2453_v11 = vadd.f32 %v4838_v13, %v4005_v9  ;;  %v2447_v14 = vpop.f32.mrb[107].mxu1  ;;  %2916 = vst [vmem:[%s4543_s25 + $0x340] sm:$0xff] %v2660_v6  ;;  %v1808_v15 = vadd.f32 %v4838_v13, %v1807_v12 }
 0x1bc   : > { %3044 = vst [vmem:[%s4543_s25 + $0x740] sm:$0xff] %v2788_v7  ;;  %v2448_v23 = vadd.f32 %v4838_v13, %v2447_v14  ;;  %v2663_v16 = vmax.f32 %v1813_v10, 0.0 }
 0x1bd   : > { %v2791_v17 = vmax.f32 %v2453_v11, 0.0  ;;  %v2662_v18 = vmax.f32 %v1808_v15, 0.0  ;;  %v3816_v20 = vpop.f32.mrb[108].mxu0 }
 0x1be   : > { %v2790_v19 = vmax.f32 %v2448_v23, 0.0  ;;  %v4008_v21 = vpop.f32.mrb[108].mxu1  ;;  %2919 = vst [vmem:[%s4543_s25 + $0x358] sm:$0xff] %v2663_v16  ;;  %v1823_v22 = vadd.f32 %v4838_v13, %v3816_v20  ;;  %v1817_v25 = vpop.f32.mrb[109].mxu0 }
 0x1bf   : > { %3047 = vst [vmem:[%s4543_s25 + $0x758] sm:$0xff] %v2791_v17  ;;  %v2463_v24 = vadd.f32 %v4838_v13, %v4008_v21  ;;  %v2457_v26 = vpop.f32.mrb[109].mxu1  ;;  %2918 = vst [vmem:[%s4543_s25 + $0x350] sm:$0xff] %v2662_v18  ;;  %v1818_v27 = vadd.f32 %v4838_v13, %v1817_v25 }
 0x1c0   : > { %3046 = vst [vmem:[%s4543_s25 + $0x750] sm:$0xff] %v2790_v19  ;;  %v2458_v28 = vadd.f32 %v4838_v13, %v2457_v26  ;;  %v2665_v29 = vmax.f32 %v1823_v22, 0.0  ;;  %v5099_v19 = vld [vmem:[%s5148_s2] ss:$0 sm:$0xff] }
 0x1c1   : > { %v2793_v30 = vmax.f32 %v2463_v24, 0.0  ;;  %v2664_v31 = vmax.f32 %v1818_v27, 0.0  ;;  %v3819_v33 = vpop.f32.mrb[110].mxu0 }
 0x1c2   : > { %v2792_v32 = vmax.f32 %v2458_v28, 0.0  ;;  %v4011_v34 = vpop.f32.mrb[110].mxu1  ;;  %2921 = vst [vmem:[%s4543_s25 + $0x368] sm:$0xff] %v2665_v29  ;;  %v1833_v35 = vadd.f32 %v4838_v13, %v3819_v33  ;;  %v1827_v37 = vpop.f32.mrb[111].mxu0 }
 0x1c3   : > { %3049 = vst [vmem:[%s4543_s25 + $0x768] sm:$0xff] %v2793_v30  ;;  %v2473_v36 = vadd.f32 %v4838_v13, %v4011_v34  ;;  %v2467_v38 = vpop.f32.mrb[111].mxu1  ;;  %2920 = vst [vmem:[%s4543_s25 + $0x360] sm:$0xff] %v2664_v31  ;;  %v1828_v39 = vadd.f32 %v4838_v13, %v1827_v37 }
 0x1c4   : > { %3048 = vst [vmem:[%s4543_s25 + $0x760] sm:$0xff] %v2792_v32  ;;  %v2468_v40 = vadd.f32 %v4838_v13, %v2467_v38  ;;  %v2667_v41 = vmax.f32 %v1833_v35, 0.0 }
 0x1c5   : > { %v2795_v42 = vmax.f32 %v2473_v36, 0.0  ;;  %v2666_v43 = vmax.f32 %v1828_v39, 0.0  ;;  %v3822_v45 = vpop.f32.mrb[112].mxu0 }
 0x1c6   : > { %v2794_v44 = vmax.f32 %v2468_v40, 0.0  ;;  %v4014_v46 = vpop.f32.mrb[112].mxu1  ;;  %2923 = vst [vmem:[%s4543_s25 + $0x378] sm:$0xff] %v2667_v41  ;;  %v1843_v47 = vadd.f32 %v4838_v13, %v3822_v45  ;;  %v1837_v49 = vpop.f32.mrb[113].mxu0 }
 0x1c7   : > { %3051 = vst [vmem:[%s4543_s25 + $0x778] sm:$0xff] %v2795_v42  ;;  %v2483_v48 = vadd.f32 %v4838_v13, %v4014_v46  ;;  %v2477_v50 = vpop.f32.mrb[113].mxu1  ;;  %2922 = vst [vmem:[%s4543_s25 + $0x370] sm:$0xff] %v2666_v43  ;;  %v1838_v51 = vadd.f32 %v4838_v13, %v1837_v49 }
 0x1c8   : > { %3050 = vst [vmem:[%s4543_s25 + $0x770] sm:$0xff] %v2794_v44  ;;  %v2478_v52 = vadd.f32 %v4838_v13, %v2477_v50  ;;  %v2669_v53 = vmax.f32 %v1843_v47, 0.0 }
 0x1c9   : > { %v2797_v54 = vmax.f32 %v2483_v48, 0.0  ;;  %v2668_v55 = vmax.f32 %v1838_v51, 0.0  ;;  %v3825_v57 = vpop.f32.mrb[114].mxu0 }
 0x1ca   : > { %v2796_v56 = vmax.f32 %v2478_v52, 0.0  ;;  %v4017_v58 = vpop.f32.mrb[114].mxu1  ;;  %2925 = vst [vmem:[%s4543_s25 + $0x388] sm:$0xff] %v2669_v53  ;;  %v1853_v59 = vadd.f32 %v4838_v13, %v3825_v57  ;;  %v1847_v61 = vpop.f32.mrb[115].mxu0 }
 0x1cb   : > { %3053 = vst [vmem:[%s4543_s25 + $0x788] sm:$0xff] %v2797_v54  ;;  %v2493_v60 = vadd.f32 %v4838_v13, %v4017_v58  ;;  %v2487_v62 = vpop.f32.mrb[115].mxu1  ;;  %2924 = vst [vmem:[%s4543_s25 + $0x380] sm:$0xff] %v2668_v55  ;;  %v1848_v63 = vadd.f32 %v4838_v13, %v1847_v61 }
 0x1cc   : > { %3052 = vst [vmem:[%s4543_s25 + $0x780] sm:$0xff] %v2796_v56  ;;  %v2488_v0 = vadd.f32 %v4838_v13, %v2487_v62  ;;  %v2671_v1 = vmax.f32 %v1853_v59, 0.0 }
 0x1cd   : > { %v2799_v2 = vmax.f32 %v2493_v60, 0.0  ;;  %v2670_v3 = vmax.f32 %v1848_v63, 0.0  ;;  %v3828_v5 = vpop.f32.mrb[116].mxu0 }
 0x1ce   : > { %v2798_v4 = vmax.f32 %v2488_v0, 0.0  ;;  %v4020_v6 = vpop.f32.mrb[116].mxu1  ;;  %2927 = vst [vmem:[%s4543_s25 + $0x398] sm:$0xff] %v2671_v1  ;;  %v1863_v7 = vadd.f32 %v4838_v13, %v3828_v5  ;;  %v1857_v9 = vpop.f32.mrb[117].mxu0 }
 0x1cf   : > { %3055 = vst [vmem:[%s4543_s25 + $0x798] sm:$0xff] %v2799_v2  ;;  %v2503_v8 = vadd.f32 %v4838_v13, %v4020_v6  ;;  %v2497_v10 = vpop.f32.mrb[117].mxu1  ;;  %2926 = vst [vmem:[%s4543_s25 + $0x390] sm:$0xff] %v2670_v3  ;;  %v1858_v11 = vadd.f32 %v4838_v13, %v1857_v9 }
 0x1d0   : > { %3054 = vst [vmem:[%s4543_s25 + $0x790] sm:$0xff] %v2798_v4  ;;  %v2498_v12 = vadd.f32 %v4838_v13, %v2497_v10  ;;  %v2673_v14 = vmax.f32 %v1863_v7, 0.0 }
 0x1d1   : > { %v2801_v15 = vmax.f32 %v2503_v8, 0.0  ;;  %v2672_v23 = vmax.f32 %v1858_v11, 0.0  ;;  %v3831_v17 = vpop.f32.mrb[118].mxu0 }
 0x1d2   : > { %v2800_v16 = vmax.f32 %v2498_v12, 0.0  ;;  %v4023_v18 = vpop.f32.mrb[118].mxu1  ;;  %2929 = vst [vmem:[%s4543_s25 + $0x3a8] sm:$0xff] %v2673_v14  ;;  %v1873_v20 = vadd.f32 %v5099_v19, %v3831_v17  ;;  %v1867_v13 = vpop.f32.mrb[119].mxu0 }
 0x1d3   : > { %3057 = vst [vmem:[%s4543_s25 + $0x7a8] sm:$0xff] %v2801_v15  ;;  %v2513_v21 = vadd.f32 %v5099_v19, %v4023_v18  ;;  %v2507_v22 = vpop.f32.mrb[119].mxu1  ;;  %2928 = vst [vmem:[%s4543_s25 + $0x3a0] sm:$0xff] %v2672_v23  ;;  %v1868_v24 = vadd.f32 %v5099_v19, %v1867_v13 }
 0x1d4   : > { %3056 = vst [vmem:[%s4543_s25 + $0x7a0] sm:$0xff] %v2800_v16  ;;  %v2508_v25 = vadd.f32 %v5099_v19, %v2507_v22  ;;  %v2675_v26 = vmax.f32 %v1873_v20, 0.0 }
 0x1d5   : > { %v2803_v27 = vmax.f32 %v2513_v21, 0.0  ;;  %v2674_v28 = vmax.f32 %v1868_v24, 0.0  ;;  %v3834_v30 = vpop.f32.mrb[120].mxu0 }
 0x1d6   : > { %v2802_v29 = vmax.f32 %v2508_v25, 0.0  ;;  %v4026_v31 = vpop.f32.mrb[120].mxu1  ;;  %2931 = vst [vmem:[%s4543_s25 + $0x3b8] sm:$0xff] %v2675_v26  ;;  %v1883_v32 = vadd.f32 %v5099_v19, %v3834_v30  ;;  %v1877_v34 = vpop.f32.mrb[121].mxu0 }
 0x1d7   : > { %3059 = vst [vmem:[%s4543_s25 + $0x7b8] sm:$0xff] %v2803_v27  ;;  %v2523_v33 = vadd.f32 %v5099_v19, %v4026_v31  ;;  %v2517_v35 = vpop.f32.mrb[121].mxu1  ;;  %2930 = vst [vmem:[%s4543_s25 + $0x3b0] sm:$0xff] %v2674_v28  ;;  %v1878_v36 = vadd.f32 %v5099_v19, %v1877_v34 }
 0x1d8   : > { %3058 = vst [vmem:[%s4543_s25 + $0x7b0] sm:$0xff] %v2802_v29  ;;  %v2518_v37 = vadd.f32 %v5099_v19, %v2517_v35  ;;  %v2677_v38 = vmax.f32 %v1883_v32, 0.0 }
 0x1d9   : > { %v2805_v39 = vmax.f32 %v2523_v33, 0.0  ;;  %v2676_v40 = vmax.f32 %v1878_v36, 0.0  ;;  %v3837_v42 = vpop.f32.mrb[122].mxu0 }
 0x1da   : > { %v2804_v41 = vmax.f32 %v2518_v37, 0.0  ;;  %v4029_v43 = vpop.f32.mrb[122].mxu1  ;;  %2933 = vst [vmem:[%s4543_s25 + $0x3c8] sm:$0xff] %v2677_v38  ;;  %v1893_v44 = vadd.f32 %v5099_v19, %v3837_v42  ;;  %v1887_v46 = vpop.f32.mrb[123].mxu0 }
 0x1db   : > { %3061 = vst [vmem:[%s4543_s25 + $0x7c8] sm:$0xff] %v2805_v39  ;;  %v2533_v45 = vadd.f32 %v5099_v19, %v4029_v43  ;;  %v2527_v47 = vpop.f32.mrb[123].mxu1  ;;  %2932 = vst [vmem:[%s4543_s25 + $0x3c0] sm:$0xff] %v2676_v40  ;;  %v1888_v48 = vadd.f32 %v5099_v19, %v1887_v46 }
 0x1dc   : > { %3060 = vst [vmem:[%s4543_s25 + $0x7c0] sm:$0xff] %v2804_v41  ;;  %v2528_v49 = vadd.f32 %v5099_v19, %v2527_v47  ;;  %v2679_v50 = vmax.f32 %v1893_v44, 0.0 }
 0x1dd   : > { %v2807_v51 = vmax.f32 %v2533_v45, 0.0  ;;  %v2678_v52 = vmax.f32 %v1888_v48, 0.0  ;;  %v3840_v54 = vpop.f32.mrb[124].mxu0 }
 0x1de   : > { %v2806_v53 = vmax.f32 %v2528_v49, 0.0  ;;  %v4032_v55 = vpop.f32.mrb[124].mxu1  ;;  %2935 = vst [vmem:[%s4543_s25 + $0x3d8] sm:$0xff] %v2679_v50  ;;  %v1903_v56 = vadd.f32 %v5099_v19, %v3840_v54  ;;  %v1897_v58 = vpop.f32.mrb[125].mxu0 }
 0x1df   : > { %3063 = vst [vmem:[%s4543_s25 + $0x7d8] sm:$0xff] %v2807_v51  ;;  %v2543_v57 = vadd.f32 %v5099_v19, %v4032_v55  ;;  %v2537_v59 = vpop.f32.mrb[125].mxu1  ;;  %2934 = vst [vmem:[%s4543_s25 + $0x3d0] sm:$0xff] %v2678_v52  ;;  %v1898_v60 = vadd.f32 %v5099_v19, %v1897_v58 }
 0x1e0   : > { %3062 = vst [vmem:[%s4543_s25 + $0x7d0] sm:$0xff] %v2806_v53  ;;  %v2538_v61 = vadd.f32 %v5099_v19, %v2537_v59  ;;  %v2681_v62 = vmax.f32 %v1903_v56, 0.0 }
 0x1e1   : > { %v2809_v63 = vmax.f32 %v2543_v57, 0.0  ;;  %v2680_v0 = vmax.f32 %v1898_v60, 0.0  ;;  %v3843_v2 = vpop.f32.mrb[126].mxu0 }
 0x1e2   : > { %v2808_v1 = vmax.f32 %v2538_v61, 0.0  ;;  %v4035_v3 = vpop.f32.mrb[126].mxu1  ;;  %2937 = vst [vmem:[%s4543_s25 + $0x3e8] sm:$0xff] %v2681_v62  ;;  %v1913_v4 = vadd.f32 %v5099_v19, %v3843_v2  ;;  %v1907_v6 = vpop.f32.mrb[127].mxu0 }
 0x1e3   : > { %3065 = vst [vmem:[%s4543_s25 + $0x7e8] sm:$0xff] %v2809_v63  ;;  %v2553_v5 = vadd.f32 %v5099_v19, %v4035_v3  ;;  %v2547_v7 = vpop.f32.mrb[127].mxu1  ;;  %2936 = vst [vmem:[%s4543_s25 + $0x3e0] sm:$0xff] %v2680_v0  ;;  %v1908_v8 = vadd.f32 %v5099_v19, %v1907_v6 }
 0x1e4   : > { %3064 = vst [vmem:[%s4543_s25 + $0x7e0] sm:$0xff] %v2808_v1  ;;  %v2548_v9 = vadd.f32 %v5099_v19, %v2547_v7  ;;  %v2683_v10 = vmax.f32 %v1913_v4, 0.0 }
 0x1e5   : > { %v2811_v11 = vmax.f32 %v2553_v5, 0.0  ;;  %v2682_v12 = vmax.f32 %v1908_v8, 0.0 }
 0x1e6   : > { %v2810_v14 = vmax.f32 %v2548_v9, 0.0  ;;  %2939 = vst [vmem:[%s4543_s25 + $0x3f8] sm:$0xff] %v2683_v10 }
 0x1e7   : > { %3067 = vst [vmem:[%s4543_s25 + $0x7f8] sm:$0xff] %v2811_v11  ;;  %2938 = vst [vmem:[%s4543_s25 + $0x3f0] sm:$0xff] %v2682_v12 }
 0x1e8   : > { %3066 = vst [vmem:[%s4543_s25 + $0x7f0] sm:$0xff] %v2810_v14 }
 0x1e9 PF: > { %s13_s12 = sadd.s32 1, %s4054_s12  }
 0x1ea   : > { %p10_p4 = scmp.ge.s32.totalorder %s13_s12, 4  }
 0x1ec   :  { %12 = sbr.rel (!%p10_p4) target bundleno = 1 (0x1), region = 62 }

// kernel: spectrum_forward.3
= control target key start
LH: loop header
LB: loop body
LE: loop exit
PB: predicated region body
PF: predicated region fallthrough
CT: control target
= control target key end

     0   :  { %s8246_s0 = inlined_call_operand.vmem [shape: f32[2,512,64], index: 0, kind: input, shape index: {}]   ;;  %s8247_s1 = inlined_call_operand.vmem [shape: f32[64,128], index: 1, kind: input, shape index: {}]   ;;  %s8248_s2 = inlined_call_operand.vmem [shape: f32[1,128], index: 2, kind: input, shape index: {}]   ;;  %s8249_s3 = inlined_call_operand.vmem [shape: f32[128,256], index: 3, kind: input, shape index: {}]   ;;  %s8250_s4 = inlined_call_operand.vmem [shape: f32[1,256], index: 4, kind: input, shape index: {}]   ;;  %s8251_s5 = inlined_call_operand.vmem [shape: f32[256,512], index: 5, kind: input, shape index: {}]   ;;  %s8252_s6 = inlined_call_operand.vmem [shape: f32[1,512], index: 6, kind: input, shape index: {}]   ;;  %s8253_s7 = inlined_call_operand.vmem [shape: f32[512,10], index: 7, kind: input, shape index: {}]   ;;  %s8254_s8 = inlined_call_operand.vmem [shape: f32[1,10], index: 8, kind: input, shape index: {}]   ;;  %s8255_s9 = inlined_call_operand.hbm [shape: f32[2,512,128], index: 9, kind: output, shape index: {0}]   ;;  %s8256_s10 = inlined_call_operand.hbm [shape: f32[2,512,256], index: 10, kind: output, shape index: {1}]   ;;  %s8257_s11 = inlined_call_operand.hbm [shape: f32[2,512,512], index: 11, kind: output, shape index: {2}]   ;;  %s8258_s12 = inlined_call_operand.vmem [shape: f32[2,1,512], index: 12, kind: output, shape index: {3}]   ;;  %s8259_s13 = inlined_call_operand.hbm [shape: f32[2,1,10], index: 13, kind: output, shape index: {4}]  }
   0x1   :  { %8318 = sst [smem:[#allocation20_spill]] %s8246_s0 }
   0x2   :  { %8319 = sst [smem:[#allocation21_spill]] %s8247_s1 }
   0x3   :  { %8320 = sst [smem:[#allocation22_spill]] %s8248_s2 }
   0x4   :  { %19 = vsyncpa [#allocation3], 0 }
   0x5   :  { %21 = vsyncpa [#allocation3 + $0x1], 0 }
   0x6   :  { %22 = vsyncpa [#allocation5], 0 }
   0x7   :  { %24 = vsyncpa [#allocation5 + $0x1], 0 }
   0x8   :  { %25 = vsyncpa [#allocation8], 0 }
   0x9   :  { %27 = vsyncpa [#allocation8 + $0x1], 0  ;;  %s5366_s25 = smov 0   ;;  %s5368_s26 = smov 0  }
   0xa   :  { %s5370_s27 = smov 0   ;;  %s5372_s28 = smov 0  }
   0xb LB: > { %8321 = sst [smem:[#allocation12_spill]] %s5270_s25  ;;  %s5387_s29 = sadd.s32 4294967295, %s5282_s28   ;;  %s5282_s28 = sphi %s5372_s28, %s8389_s28   ;;  %s5278_s27 = sphi %s5370_s27, %s8391_s27   ;;  %s5274_s26 = sphi %s5368_s26, %s8393_s26   ;;  %s5270_s25 = sphi %s5366_s25, %s8392_s25  }
   0xc   : > { %8322 = sst [smem:[#allocation13_spill]] %s5278_s27  ;;  %s8260_s30 = sadd.s32 4294967294, %s5282_s28  }
   0xd   : > { %s5391_s14 = sadd.s32 1, %s5282_s28   ;;  %s234_s15 = sadd.s32 1, %s5278_s27 }
   0xe   : > { %8323 = sst [smem:[#allocation14_spill]] %s5391_s14  ;;  %s231_s16 = ssub.s32 %s5282_s28, %s5391_s14 }
   0xf   : > { %p244_p0 = scmp.ne.s32.totalorder %s5278_s27, %s5274_s26  ;;  %p232_p1 = scmp.eq.s32.totalorder %s231_s16, 0 }
  0x10   : > { %p245_p2 = scmp.eq.s32.totalorder %s5387_s29, 1  ;;  %p250_p3 = scmp.ne.s32.totalorder %s5274_s26, %s5270_s25 }
  0x11   : > { %p251_p4 = scmp.eq.s32.totalorder %s8260_s30, 1  ;;  %p4350_p7 = scmp.ge.s32.totalorder %s5282_s28, 1 }
  0x12   : > { %s5404_s17 = scalar_select %p232_p1, %s5278_s27, %s234_s15  }
  0x13   : > { %p5406_p5 = por %p245_p2, %p244_p0  ;;  %p5410_p6 = por %p251_p4, %p250_p3 }
  0x14   : > { %8324 = sst [smem:[#allocation15_spill]] %s5404_s17  ;;  %p405_p8 = scmp.lt.s32.totalorder %s5282_s28, 3 }
  0x15   : > { %s8326_s19 = scalar_select %p5410_p6, 1, 0 }
  0x16   : > { %p406_p9 = pnand %p4350_p7, %p405_p8 }
  0x17   : > { %8327 = sst [smem:[#allocation16_spill]] %s8326_s19 }
  0x18   : > { %409 = sbr.rel (%p406_p9) target bundleno = 1362 (0x552), region = 56 }
  0x1f   : > { %s8328_s1 = sld [smem:[#allocation21_spill]]  ;;  %p467_p10 = scmp.lt.s32.totalorder %s5387_s29, 1  ;;  %v1262_v8 = vld [vmem:[%s8249_s3 + $0x8] sm:$0xff]  ;;  %v1264_v9 = vld [vmem:[%s8249_s3 + $0x18] sm:$0xff]  ;;  %v1261_v10 = vld [vmem:[%s8249_s3] sm:$0xff]  ;;  %vm555_vm0 = vcmask 523264  }
  0x20   : > { %v1263_v11 = vld [vmem:[%s8249_s3 + $0x10] sm:$0xff]  ;;  %v4708_v12 = vpack.c.bf16 %v1264_v9, %v1262_v8  ;;  %v1266_v14 = vld [vmem:[%s8249_s3 + $0x28] sm:$0xff]  ;;  %v1268_v15 = vld [vmem:[%s8249_s3 + $0x38] sm:$0xff]  ;;  %s8329_s0 = sld [smem:[#allocation20_spill]]  ;;  %s8330_s2 = sld [smem:[#allocation22_spill]] }
  0x21   : > { %s5436_s22 = scalar_select %p467_p10, %s5387_s29, 1  ;;  %v4710_v13 = vpack.c.bf16 %v1263_v11, %v1261_v10  ;;  %v1265_v16 = vld [vmem:[%s8249_s3 + $0x20] sm:$0xff]  ;;  %v4712_v18 = vpack.c.bf16 %v1268_v15, %v1266_v14  ;;  %v1267_v19 = vld [vmem:[%s8249_s3 + $0x30] sm:$0xff]  ;;  %v1270_v20 = vld [vmem:[%s8249_s3 + $0x48] sm:$0xff] }
  0x22   : > { %v1272_v21 = vld [vmem:[%s8249_s3 + $0x58] sm:$0xff]  ;;  %4709 = vmatprep.subr.bf16.mxu1 %v4708_v12  ;;  %v4714_v25 = vpack.c.bf16 %v1267_v19, %v1265_v16  ;;  %v1269_v32 = vld [vmem:[%s8249_s3 + $0x40] sm:$0xff]  ;;  %v1271_v33 = vld [vmem:[%s8249_s3 + $0x50] sm:$0xff]  ;;  %s5286_s23 = smov [#allocation4]  }
  0x23   : > { %s4434_s27 = sshll.u32 %s5436_s22, 9  ;;  %4711 = vmatpush1.bf16.msra.mxu1 %v4710_v13  ;;  %v4716_v26 = vpack.c.bf16 %v1272_v21, %v1270_v20  ;;  %v1274_v34 = vld [vmem:[%s8249_s3 + $0x68] sm:$0xff]  ;;  %v1276_v35 = vld [vmem:[%s8249_s3 + $0x78] sm:$0xff]  ;;  %v4718_v37 = vpack.c.bf16 %v1271_v33, %v1269_v32  ;;  %v1273_v39 = vld [vmem:[%s8249_s3 + $0x60] sm:$0xff]  ;;  %s4356_s17 = sshll.u32 %s5436_s22, 2 }
  0x24   : > { %4713 = vmatprep.subr.bf16.mxu1 %v4712_v18  ;;  %v4720_v38 = vpack.c.bf16 %v1276_v35, %v1274_v34  ;;  %v1275_v40 = vld [vmem:[%s8249_s3 + $0x70] sm:$0xff]  ;;  %v1278_v42 = vld [vmem:[%s8249_s3 + $0x88] sm:$0xff]  ;;  %v1280_v43 = vld [vmem:[%s8249_s3 + $0x98] sm:$0xff] }
  0x25   : > { %v540_v0 = vld [vmem:[%s8328_s1] sm:$0xff]  ;;  %v541_v1 = vld [vmem:[%s8328_s1 + $0x8] sm:$0xff]  ;;  %v542_v2 = vld [vmem:[%s8328_s1 + $0x10] sm:$0xff]  ;;  %v4722_v44 = vpack.c.bf16 %v1275_v40, %v1273_v39  ;;  %v4724_v45 = vpack.c.bf16 %v1280_v43, %v1278_v42  ;;  %v8296_v43 = vmov 0.0  }
  0x26   : > { %v4692_v3 = vpack.c.bf16 %v541_v1, %v540_v0  ;;  %v543_v4 = vld [vmem:[%s8328_s1 + $0x18] sm:$0xff]  ;;  %v544_v6 = vld [vmem:[%s8328_s1 + $0x20] sm:$0xff]  ;;  %v545_v7 = vld [vmem:[%s8328_s1 + $0x28] sm:$0xff]  ;;  %s5463_s20 = scalar_lea.vmem %s8329_s0, %s4434_s27  ;;  %1369 = vmatprep.mubr.f32.mxu1 %v8296_v43  ;;  %s4436_s27 = sshll.u32 %s5387_s29, 14 }
  0x27   : > { %v4696_v5 = vpack.c.bf16 %v543_v4, %v542_v2  ;;  %v4700_v17 = vpack.c.bf16 %v545_v7, %v544_v6  ;;  %v546_v22 = vld [vmem:[%s8328_s1 + $0x30] sm:$0xff]  ;;  %v547_v23 = vld [vmem:[%s8328_s1 + $0x38] sm:$0xff]  ;;  %v476_v24 = vld [vmem:[%s5463_s20] sm:$0xff]  ;;  %4715 = vmatpush1.bf16.msra.mxu1 %v4714_v25  ;;  %s8097_s22 = scalar_lea.hbm %s8256_s10, %s4436_s27 }
  0x28   : > { %4693 = vmatprep.subr.bf16.mxu0 %v4692_v3  ;;  %4596 = vmatprep.mubr.msk.f32.mxu0 %vm555_vm0, %v476_v24  ;;  %v4704_v27 = vpack.c.bf16 %v547_v23, %v546_v22  ;;  %v477_v28 = vld [vmem:[%s5463_s20 + $0x8] sm:$0xff]  ;;  %v478_v29 = vld [vmem:[%s5463_s20 + $0x10] sm:$0xff]  ;;  %v479_v30 = vld [vmem:[%s5463_s20 + $0x18] sm:$0xff] }
  0x29   : > { %4695 = vmatpush3.bf16.msra.mxu0 %v4692_v3  ;;  %4717 = vmatprep.subr.bf16.mxu1 %v4716_v26  ;;  %v480_v31 = vld [vmem:[%s5463_s20 + $0x20] sm:$0xff]  ;;  %v481_v36 = vld [vmem:[%s5463_s20 + $0x28] sm:$0xff]  ;;  %v482_v41 = vld [vmem:[%s5463_s20 + $0x30] sm:$0xff] }
  0x2a   : > { %4697 = vmatprep.subr.bf16.mxu0 %v4696_v5  ;;  %v1277_v46 = vld [vmem:[%s8249_s3 + $0x80] sm:$0xff]  ;;  %v1279_v47 = vld [vmem:[%s8249_s3 + $0x90] sm:$0xff]  ;;  %v483_v48 = vld [vmem:[%s5463_s20 + $0x38] sm:$0xff] }
  0x2b   : > { %4719 = vmatpush1.bf16.msra.mxu1 %v4718_v37  ;;  %v1282_v49 = vld [vmem:[%s8249_s3 + $0xa8] sm:$0xff]  ;;  %v1284_v50 = vld [vmem:[%s8249_s3 + $0xb8] sm:$0xff]  ;;  %v484_v51 = vld [vmem:[%s5463_s20 + $0x40] sm:$0xff]  ;;  %v4726_v52 = vpack.c.bf16 %v1279_v47, %v1277_v46 }
  0x2c   : > { %4721 = vmatprep.subr.bf16.mxu1 %v4720_v38  ;;  %v4728_v53 = vpack.c.bf16 %v1284_v50, %v1282_v49  ;;  %v1281_v54 = vld [vmem:[%s8249_s3 + $0xa0] sm:$0xff]  ;;  %v1283_v55 = vld [vmem:[%s8249_s3 + $0xb0] sm:$0xff]  ;;  %v485_v56 = vld [vmem:[%s5463_s20 + $0x48] sm:$0xff] }
  0x2d   : > { %4699 = vmatpush3.bf16.msra.mxu0 %v4696_v5  ;;  %v1286_v57 = vld [vmem:[%s8249_s3 + $0xc8] sm:$0xff]  ;;  %v1288_v58 = vld [vmem:[%s8249_s3 + $0xd8] sm:$0xff]  ;;  %v486_v59 = vld [vmem:[%s5463_s20 + $0x50] sm:$0xff]  ;;  %v4730_v60 = vpack.c.bf16 %v1283_v55, %v1281_v54 }
  0x2e   : > { %4701 = vmatprep.subr.bf16.mxu0 %v4700_v17  ;;  %v4732_v61 = vpack.c.bf16 %v1288_v58, %v1286_v57  ;;  %v1285_v62 = vld [vmem:[%s8249_s3 + $0xc0] sm:$0xff]  ;;  %v1287_v63 = vld [vmem:[%s8249_s3 + $0xd0] sm:$0xff]  ;;  %v487_v0 = vld [vmem:[%s5463_s20 + $0x58] sm:$0xff] }
  0x2f   : > { %4723 = vmatpush1.bf16.msra.mxu1 %v4722_v44  ;;  %v488_v1 = vld [vmem:[%s5463_s20 + $0x60] sm:$0xff]  ;;  %v4734_v2 = vpack.c.bf16 %v1287_v63, %v1285_v62  ;;  %v489_v3 = vld [vmem:[%s5463_s20 + $0x68] sm:$0xff]  ;;  %v490_v4 = vld [vmem:[%s5463_s20 + $0x70] sm:$0xff] }
  0x30   : > { %4725 = vmatprep.subr.bf16.mxu1 %v4724_v45  ;;  %v491_v5 = vld [vmem:[%s5463_s20 + $0x78] sm:$0xff]  ;;  %v492_v6 = vld [vmem:[%s5463_s20 + $0x80] sm:$0xff]  ;;  %v493_v7 = vld [vmem:[%s5463_s20 + $0x88] sm:$0xff] }
  0x31   : > { %4703 = vmatpush3.bf16.msra.mxu0 %v4700_v17  ;;  %v494_v8 = vld [vmem:[%s5463_s20 + $0x90] sm:$0xff]  ;;  %v495_v9 = vld [vmem:[%s5463_s20 + $0x98] sm:$0xff]  ;;  %v496_v10 = vld [vmem:[%s5463_s20 + $0xa0] sm:$0xff] }
  0x32   : > { %4705 = vmatprep.subr.bf16.mxu0 %v4704_v27  ;;  %v497_v11 = vld [vmem:[%s5463_s20 + $0xa8] sm:$0xff]  ;;  %v498_v12 = vld [vmem:[%s5463_s20 + $0xb0] sm:$0xff]  ;;  %v499_v13 = vld [vmem:[%s5463_s20 + $0xb8] sm:$0xff] }
  0x33   : > { %4727 = vmatpush1.bf16.msra.mxu1 %v4726_v52  ;;  %v500_v14 = vld [vmem:[%s5463_s20 + $0xc0] sm:$0xff]  ;;  %v501_v15 = vld [vmem:[%s5463_s20 + $0xc8] sm:$0xff]  ;;  %v502_v16 = vld [vmem:[%s5463_s20 + $0xd0] sm:$0xff] }
  0x34   : > { %4729 = vmatprep.subr.bf16.mxu1 %v4728_v53  ;;  %v503_v17 = vld [vmem:[%s5463_s20 + $0xd8] sm:$0xff]  ;;  %v504_v18 = vld [vmem:[%s5463_s20 + $0xe0] sm:$0xff]  ;;  %v505_v19 = vld [vmem:[%s5463_s20 + $0xe8] sm:$0xff] }
  0x35   : > { %4707 = vmatpush3.bf16.msra.mxu0 %v4704_v27  ;;  %v506_v20 = vld [vmem:[%s5463_s20 + $0xf0] sm:$0xff]  ;;  %v507_v21 = vld [vmem:[%s5463_s20 + $0xf8] sm:$0xff]  ;;  %v508_v22 = vld [vmem:[%s5463_s20 + $0x100] sm:$0xff] }
  0x36   : > { %v509_v23 = vld [vmem:[%s5463_s20 + $0x108] sm:$0xff]  ;;  %v510_v24 = vld [vmem:[%s5463_s20 + $0x110] sm:$0xff]  ;;  %v511_v25 = vld [vmem:[%s5463_s20 + $0x118] sm:$0xff] }
  0x37   : > { %4731 = vmatpush1.bf16.msra.mxu1 %v4730_v60  ;;  %v512_v26 = vld [vmem:[%s5463_s20 + $0x120] sm:$0xff]  ;;  %v513_v27 = vld [vmem:[%s5463_s20 + $0x128] sm:$0xff]  ;;  %v518_v32 = vld [vmem:[%s5463_s20 + $0x150] sm:$0xff] }
  0x38   : > { %4597 = vmatmul.mubr.msk.f32.vlgmr.msra.gmra.mrb[0].mxu0 %vm555_vm0, %v477_v28  ;;  %4733 = vmatprep.subr.bf16.mxu1 %v4732_v61  ;;  %v514_v28 = vld [vmem:[%s5463_s20 + $0x130] sm:$0xff]  ;;  %v519_v33 = vld [vmem:[%s5463_s20 + $0x158] sm:$0xff]  ;;  %v520_v34 = vld [vmem:[%s5463_s20 + $0x160] sm:$0xff] }
  0x39   : > { %4599 = vmatprep.mubr.msk.f32.mxu0 %vm555_vm0, %v478_v29  ;;  %v515_v29 = vld [vmem:[%s5463_s20 + $0x138] sm:$0xff]  ;;  %v1290_v35 = vld [vmem:[%s8249_s3 + $0xe8] sm:$0xff]  ;;  %v1289_v38 = vld [vmem:[%s8249_s3 + $0xe0] sm:$0xff] }
  0x3a   : > { %v1291_v39 = vld [vmem:[%s8249_s3 + $0xf0] sm:$0xff]  ;;  %v523_v44 = vld [vmem:[%s5463_s20 + $0x178] sm:$0xff]  ;;  %v524_v45 = vld [vmem:[%s5463_s20 + $0x180] sm:$0xff] }
  0x3b   : > { %4735 = vmatpush1.bf16.msra.mxu1 %v4734_v2  ;;  %v4738_v40 = vpack.c.bf16 %v1291_v39, %v1289_v38  ;;  %v522_v42 = vld [vmem:[%s5463_s20 + $0x170] sm:$0xff]  ;;  %v525_v46 = vld [vmem:[%s5463_s20 + $0x188] sm:$0xff]  ;;  %v528_v49 = vld [vmem:[%s5463_s20 + $0x1a0] sm:$0xff] }
  0x3c   : > { %4600 = vmatmul.mubr.msk.f32.gmra.mrb[2].mxu0 %vm555_vm0, %v479_v30  ;;  %v516_v30 = vld [vmem:[%s5463_s20 + $0x140] sm:$0xff]  ;;  %v526_v47 = vld [vmem:[%s5463_s20 + $0x190] sm:$0xff]  ;;  %v529_v50 = vld [vmem:[%s5463_s20 + $0x1a8] sm:$0xff] }
  0x3d   : > { %4602 = vmatprep.mubr.msk.f32.mxu0 %vm555_vm0, %v480_v31  ;;  %v517_v31 = vld [vmem:[%s5463_s20 + $0x148] sm:$0xff]  ;;  %v531_v52 = vld [vmem:[%s5463_s20 + $0x1b8] sm:$0xff]  ;;  %v532_v53 = vld [vmem:[%s5463_s20 + $0x1c0] sm:$0xff] }
  0x3e   : > { %v533_v54 = vld [vmem:[%s5463_s20 + $0x1c8] sm:$0xff]  ;;  %v534_v55 = vld [vmem:[%s5463_s20 + $0x1d0] sm:$0xff]  ;;  %v536_v57 = vld [vmem:[%s5463_s20 + $0x1e0] sm:$0xff] }
  0x3f   : > { %v537_v58 = vld [vmem:[%s5463_s20 + $0x1e8] sm:$0xff]  ;;  %v539_v60 = vld [vmem:[%s5463_s20 + $0x1f8] sm:$0xff]  ;;  %v2010_v63 = vld [vmem:[%s8251_s5] sm:$0xff] }
  0x40   : > { %4603 = vmatmul.mubr.msk.f32.gmra.mrb[4].mxu0 %vm555_vm0, %v481_v36  ;;  %v1292_v36 = vld [vmem:[%s8249_s3 + $0xf8] sm:$0xff]  ;;  %v2011_v61 = vld [vmem:[%s8251_s5 + $0x8] sm:$0xff] }
  0x41   : > { %4605 = vmatprep.mubr.msk.f32.mxu0 %vm555_vm0, %v482_v41  ;;  %v4736_v37 = vpack.c.bf16 %v1292_v36, %v1290_v35  ;;  %v521_v41 = vld [vmem:[%s5463_s20 + $0x168] sm:$0xff] }
  0x42   : > { %v2015_v62 = vld [vmem:[%s8251_s5 + $0x28] sm:$0xff] }
  0x43   : > { %4737 = vmatprep.subr.bf16.mxu1 %v4736_v37  ;;  %v2051_v38 = vld [vmem:[%s8251_s5 + $0x148] sm:$0xff] }
  0x44   : > { %4606 = vmatmul.mubr.msk.f32.gmra.mrb[6].mxu0 %vm555_vm0, %v483_v48  ;;  %4739 = vmatpush1.bf16.msra.mxu1 %v4738_v40  ;;  %v527_v48 = vld [vmem:[%s5463_s20 + $0x198] sm:$0xff]  ;;  %v2055_v39 = vld [vmem:[%s8251_s5 + $0x168] sm:$0xff]  ;;  %v2050_v40 = vld [vmem:[%s8251_s5 + $0x140] sm:$0xff] }
  0x45   : > { %4608 = vmatprep.mubr.msk.f32.mxu0 %vm555_vm0, %v484_v51  ;;  %v530_v51 = vld [vmem:[%s5463_s20 + $0x1b0] sm:$0xff] }
  0x48   : > { %4609 = vmatmul.mubr.msk.f32.gmra.mrb[8].mxu0 %vm555_vm0, %v485_v56  ;;  %v535_v56 = vld [vmem:[%s5463_s20 + $0x1d8] sm:$0xff] }
  0x49   : > { %4611 = vmatprep.mubr.msk.f32.mxu0 %vm555_vm0, %v486_v59  ;;  %v538_v59 = vld [vmem:[%s5463_s20 + $0x1f0] sm:$0xff]  ;;  %s5724_s20 = sand.u32 1, %s5274_s26  }
  0x4a   : > { %s4351_s24 = sshll.u32 %s5724_s20, 9  ;;  %s4352_s15 = sshll.u32 %s5724_s20, 10 }
  0x4b   : > { %s5746_s14 = scalar_lea.vmem [#allocation2], %s4351_s24  ;;  %s6743_s30 = scalar_lea.vmem [#allocation4], %s4352_s15 }
  0x4c   : > { %4612 = vmatmul.mubr.msk.f32.gmra.mrb[10].mxu0 %vm555_vm0, %v487_v0  ;;  %v4740_v0 = vpack.c.bf16 %v2015_v62, %v2011_v61  ;;  %v2062_v62 = vld [vmem:[%s8251_s5 + $0x1a0] sm:$0xff]  ;;  %s4353_s25 = sshll.u32 %s5724_s20, 11  ;;  %s475_s24 = scalar_lea.vmem %s8258_s12, %s4356_s17 }
  0x4d   : > { %4614 = vmatprep.mubr.msk.f32.mxu0 %vm555_vm0, %v488_v1  ;;  %v2014_v1 = vld [vmem:[%s8251_s5 + $0x20] sm:$0xff]  ;;  %s7043_s19 = scalar_lea.vmem [#allocation6], %s4353_s25  ;;  %s4097_s15 = sand.u32 1, %s5387_s29  }
  0x4e   : > { %v4742_v2 = vpack.c.bf16 %v2014_v1, %v2010_v63  ;;  %4741 = vmatprep.subr.bf16.mxu0 %v4740_v0  ;;  %s4140_s0 = sshll.u32 %s6743_s30, 4  ;;  %s8102_s17 = scalar_lea.sflag [#allocation5], %s4097_s15  ;;  %s8100_s0 = int_to_ptr.vmem [resolvable:$true] %s4140_s0 }
  0x4f   : > { %s5128_s21 = scalar_lea.vmem %s8100_s0, 16384 }
  0x50   : > { %4615 = vmatmul.mubr.msk.f32.gmra.mrb[12].mxu0 %vm555_vm0, %v489_v3  ;;  %v2019_v3 = vld [vmem:[%s8251_s5 + $0x48] sm:$0xff]  ;;  %p5129_p11 = scmp.ne.s32.totalorder %s8100_s0, %s5128_s21 }
  0x51   : > { %4617 = vmatprep.mubr.msk.f32.mxu0 %vm555_vm0, %v490_v4  ;;  %4743 = vmatpush1.bf16.msra.mxu0 %v4742_v2  ;;  %v2023_v4 = vld [vmem:[%s8251_s5 + $0x68] sm:$0xff] }
  0x52   : > { %p5130_p12 = pnand %p5129_p11, %p5406_p5 }
  0x54   : > { %4618 = vmatmul.mubr.msk.f32.gmra.mrb[14].mxu0 %vm555_vm0, %v491_v5  ;;  %v2018_v5 = vld [vmem:[%s8251_s5 + $0x40] sm:$0xff]  ;;  %p5131_p13 = pneg %p5130_p12 }
  0x55   : > { %4620 = vmatprep.mubr.msk.f32.mxu0 %vm555_vm0, %v492_v6  ;;  %v4744_v6 = vpack.c.bf16 %v2023_v4, %v2019_v3 }
  0x57   : > { %4745 = vmatprep.subr.bf16.mxu0 %v4744_v6 }
  0x58   : > { %4621 = vmatmul.mubr.msk.f32.gmra.mrb[16].mxu0 %vm555_vm0, %v493_v7  ;;  %v2022_v7 = vld [vmem:[%s8251_s5 + $0x60] sm:$0xff] }
  0x59   : > { %4623 = vmatprep.mubr.msk.f32.mxu0 %vm555_vm0, %v494_v8  ;;  %v4746_v8 = vpack.c.bf16 %v2022_v7, %v2018_v5 }
  0x5b   : > { %4747 = vmatpush1.bf16.msra.mxu0 %v4746_v8 }
  0x5c   : > { %4624 = vmatmul.mubr.msk.f32.gmra.mrb[18].mxu0 %vm555_vm0, %v495_v9  ;;  %v2027_v9 = vld [vmem:[%s8251_s5 + $0x88] sm:$0xff] }
  0x5d   : > { %4626 = vmatprep.mubr.msk.f32.mxu0 %vm555_vm0, %v496_v10  ;;  %v2031_v10 = vld [vmem:[%s8251_s5 + $0xa8] sm:$0xff] }
  0x60   : > { %4627 = vmatmul.mubr.msk.f32.gmra.mrb[20].mxu0 %vm555_vm0, %v497_v11  ;;  %v2026_v11 = vld [vmem:[%s8251_s5 + $0x80] sm:$0xff] }
  0x61   : > { %4629 = vmatprep.mubr.msk.f32.mxu0 %vm555_vm0, %v498_v12  ;;  %v4748_v12 = vpack.c.bf16 %v2031_v10, %v2027_v9 }
  0x63   : > { %4749 = vmatprep.subr.bf16.mxu0 %v4748_v12  ;;  %v2071_v12 = vld [vmem:[%s8251_s5 + $0x1e8] sm:$0xff] }
  0x64   : > { %4630 = vmatmul.mubr.msk.f32.gmra.mrb[22].mxu0 %vm555_vm0, %v499_v13  ;;  %v2030_v13 = vld [vmem:[%s8251_s5 + $0xa0] sm:$0xff] }
  0x65   : > { %4632 = vmatprep.mubr.msk.f32.mxu0 %vm555_vm0, %v500_v14  ;;  %v4750_v14 = vpack.c.bf16 %v2030_v13, %v2026_v11  ;;  %v2067_v11 = vld [vmem:[%s8251_s5 + $0x1c8] sm:$0xff]  ;;  %v2066_v13 = vld [vmem:[%s8251_s5 + $0x1c0] sm:$0xff] }
  0x67   : > { %4751 = vmatpush1.bf16.msra.mxu0 %v4750_v14 }
  0x68   : > { %4633 = vmatmul.mubr.msk.f32.gmra.mrb[24].mxu0 %vm555_vm0, %v501_v15  ;;  %v2035_v15 = vld [vmem:[%s8251_s5 + $0xc8] sm:$0xff] }
  0x69   : > { %4635 = vmatprep.mubr.msk.f32.mxu0 %vm555_vm0, %v502_v16  ;;  %v2039_v16 = vld [vmem:[%s8251_s5 + $0xe8] sm:$0xff] }
  0x6c   : > { %4636 = vmatmul.mubr.msk.f32.gmra.mrb[26].mxu0 %vm555_vm0, %v503_v17  ;;  %v2034_v17 = vld [vmem:[%s8251_s5 + $0xc0] sm:$0xff] }
  0x6d   : > { %4638 = vmatprep.mubr.msk.f32.mxu0 %vm555_vm0, %v504_v18  ;;  %v4752_v18 = vpack.c.bf16 %v2039_v16, %v2035_v15  ;;  %v4768_v15 = vpack.c.bf16 %v2071_v12, %v2067_v11  ;;  %v2070_v16 = vld [vmem:[%s8251_s5 + $0x1e0] sm:$0xff]  ;;  %v2095_v12 = vld [vmem:[%s8251_s5 + $0x2a8] sm:$0xff] }
  0x6f   : > { %4753 = vmatprep.subr.bf16.mxu0 %v4752_v18 }
  0x70   : > { %4639 = vmatmul.mubr.msk.f32.gmra.mrb[28].mxu0 %vm555_vm0, %v505_v19  ;;  %v2038_v19 = vld [vmem:[%s8251_s5 + $0xe0] sm:$0xff] }
  0x71   : > { %4641 = vmatprep.mubr.msk.f32.mxu0 %vm555_vm0, %v506_v20  ;;  %v4754_v20 = vpack.c.bf16 %v2038_v19, %v2034_v17  ;;  %v4770_v19 = vpack.c.bf16 %v2070_v16, %v2066_v13  ;;  %v2090_v13 = vld [vmem:[%s8251_s5 + $0x280] sm:$0xff] }
  0x73   : > { %4755 = vmatpush1.bf16.msra.mxu0 %v4754_v20 }
  0x74   : > { %4642 = vmatmul.mubr.msk.f32.gmra.mrb[30].mxu0 %vm555_vm0, %v507_v21  ;;  %v5729_v21 = vld [vmem:[%s8330_s2] ss:$0 sm:$0xff] }
  0x75   : > { %4644 = vmatprep.mubr.msk.f32.mxu0 %vm555_vm0, %v508_v22  ;;  %v2043_v22 = vld [vmem:[%s8251_s5 + $0x108] sm:$0xff] }
  0x78   : > { %4645 = vmatmul.mubr.msk.f32.gmra.mrb[32].mxu0 %vm555_vm0, %v509_v23  ;;  %v2047_v23 = vld [vmem:[%s8251_s5 + $0x128] sm:$0xff] }
  0x79   : > { %4647 = vmatprep.mubr.msk.f32.mxu0 %vm555_vm0, %v510_v24  ;;  %v2042_v24 = vld [vmem:[%s8251_s5 + $0x100] sm:$0xff] }
  0x7c   : > { %4648 = vmatmul.mubr.msk.f32.gmra.mrb[34].mxu0 %vm555_vm0, %v511_v25  ;;  %v4756_v25 = vpack.c.bf16 %v2047_v23, %v2043_v22 }
  0x7d   : > { %4650 = vmatprep.mubr.msk.f32.mxu0 %vm555_vm0, %v512_v26  ;;  %v2046_v26 = vld [vmem:[%s8251_s5 + $0x120] sm:$0xff] }
  0x7e   : > { %4757 = vmatprep.subr.bf16.mxu0 %v4756_v25 }
  0x80   : > { %4651 = vmatmul.mubr.msk.f32.gmra.mrb[36].mxu0 %vm555_vm0, %v513_v27 }
  0x81   : > { %4653 = vmatprep.mubr.msk.f32.mxu0 %vm555_vm0, %v514_v28  ;;  %v4758_v28 = vpack.c.bf16 %v2046_v26, %v2042_v24 }
  0x83   : > { %4759 = vmatpush1.bf16.msra.mxu0 %v4758_v28 }
  0x84   : > { %4654 = vmatmul.mubr.msk.f32.gmra.mrb[38].mxu0 %vm555_vm0, %v515_v29 }
  0x85   : > { %4656 = vmatprep.mubr.msk.f32.mxu0 %vm555_vm0, %v516_v30 }
  0x88   : > { %4657 = vmatmul.mubr.msk.f32.gmra.mrb[40].mxu0 %vm555_vm0, %v517_v31 }
  0x89   : > { %4659 = vmatprep.mubr.msk.f32.mxu0 %vm555_vm0, %v518_v32 }
  0x8c   : > { %4660 = vmatmul.mubr.msk.f32.gmra.mrb[42].mxu0 %vm555_vm0, %v519_v33 }
  0x8d   : > { %4662 = vmatprep.mubr.msk.f32.mxu0 %vm555_vm0, %v520_v34 }
  0x90   : > { %4663 = vmatmul.mubr.msk.f32.gmra.mrb[44].mxu0 %vm555_vm0, %v521_v41 }
  0x91   : > { %4665 = vmatprep.mubr.msk.f32.mxu0 %vm555_vm0, %v522_v42  ;;  %v4760_v42 = vpack.c.bf16 %v2055_v39, %v2051_v38 }
  0x93   : > { %4761 = vmatprep.subr.bf16.mxu0 %v4760_v42 }
  0x94   : > { %4666 = vmatmul.mubr.msk.f32.gmra.mrb[46].mxu0 %vm555_vm0, %v523_v44  ;;  %v2054_v44 = vld [vmem:[%s8251_s5 + $0x160] sm:$0xff] }
  0x95   : > { %4668 = vmatprep.mubr.msk.f32.mxu0 %vm555_vm0, %v524_v45 }
  0x98   : > { %4669 = vmatmul.mubr.msk.f32.gmra.mrb[48].mxu0 %vm555_vm0, %v525_v46 }
  0x99   : > { %4671 = vmatprep.mubr.msk.f32.mxu0 %vm555_vm0, %v526_v47  ;;  %v4762_v47 = vpack.c.bf16 %v2054_v44, %v2050_v40 }
  0x9b   : > { %4763 = vmatpush1.bf16.msra.mxu0 %v4762_v47 }
  0x9c   : > { %4672 = vmatmul.mubr.msk.f32.gmra.mrb[50].mxu0 %vm555_vm0, %v527_v48 }
  0x9d   : > { %4674 = vmatprep.mubr.msk.f32.mxu0 %vm555_vm0, %v528_v49 }
  0xa0   : > { %4675 = vmatmul.mubr.msk.f32.gmra.mrb[52].mxu0 %vm555_vm0, %v529_v50 }
  0xa1   : > { %4677 = vmatprep.mubr.msk.f32.mxu0 %vm555_vm0, %v530_v51 }
  0xa4   : > { %4678 = vmatmul.mubr.msk.f32.gmra.mrb[54].mxu0 %vm555_vm0, %v531_v52 }
  0xa5   : > { %4680 = vmatprep.mubr.msk.f32.mxu0 %vm555_vm0, %v532_v53 }
  0xa8   : > { %4681 = vmatmul.mubr.msk.f32.gmra.mrb[56].mxu0 %vm555_vm0, %v533_v54 }
  0xa9   : > { %4683 = vmatprep.mubr.msk.f32.mxu0 %vm555_vm0, %v534_v55 }
  0xac   : > { %4684 = vmatmul.mubr.msk.f32.gmra.mrb[58].mxu0 %vm555_vm0, %v535_v56 }
  0xad   : > { %4686 = vmatprep.mubr.msk.f32.mxu0 %vm555_vm0, %v536_v57  ;;  %v2059_v57 = vld [vmem:[%s8251_s5 + $0x188] sm:$0xff] }
  0xb0   : > { %4687 = vmatmul.mubr.msk.f32.gmra.mrb[60].mxu0 %vm555_vm0, %v537_v58  ;;  %v2063_v58 = vld [vmem:[%s8251_s5 + $0x1a8] sm:$0xff] }
  0xb1   : > { %4689 = vmatprep.mubr.msk.f32.mxu0 %vm555_vm0, %v538_v59  ;;  %v2058_v59 = vld [vmem:[%s8251_s5 + $0x180] sm:$0xff]  ;;  %v4764_v61 = vpack.c.bf16 %v2063_v58, %v2059_v57 }
  0xb2   : > { %v4766_v1 = vpack.c.bf16 %v2062_v62, %v2058_v59  ;;  %v2013_v62 = vld [vmem:[%s8251_s5 + $0x18] sm:$0xff] }
  0xb3   : > { %4765 = vmatprep.subr.bf16.mxu0 %v4764_v61 }
  0xb4   : > { %4690 = vmatmul.mubr.msk.f32.gmra.mrb[62].mxu0 %vm555_vm0, %v539_v60 }
  0xb5   : > { %4767 = vmatpush1.bf16.msra.mxu0 %v4766_v1 }
  0xb6   : > { %4769 = vmatprep.subr.bf16.mxu0 %v4768_v15  ;;  %v2094_v15 = vld [vmem:[%s8251_s5 + $0x2a0] sm:$0xff] }
  0xb9   : > { %4771 = vmatpush1.bf16.msra.mxu0 %v4770_v19  ;;  %v4782_v19 = vpack.c.bf16 %v2094_v15, %v2090_v13  ;;  %v2110_v13 = vld [vmem:[%s8251_s5 + $0x320] sm:$0xff] }
 0x10b   : > { %v4598_v27 = vpop.f32.mrb[0].mxu0 }
 0x10c   : > { %v820_v29 = vadd.f32 %v4598_v27, %v5729_v21  ;;  %v814_v30 = vpop.f32.mrb[1].mxu0 }
 0x10d   : > { %v815_v31 = vadd.f32 %v5729_v21, %v814_v30  ;;  %v2075_v30 = vld [vmem:[%s8251_s5 + $0x208] sm:$0xff] }
 0x10e   : > { %v1134_v32 = vmax.f32 %v820_v29, 0.0 }
 0x10f   : > { %v1133_v33 = vmax.f32 %v815_v31, 0.0  ;;  %v4601_v34 = vpop.f32.mrb[2].mxu0  ;;  %v2079_v31 = vld [vmem:[%s8251_s5 + $0x228] sm:$0xff] }
 0x110   : > { %1198 = vst [vmem:[%s5746_s14 + $0x8] sm:$0xff] %v1134_v32  ;;  %v830_v35 = vadd.f32 %v4601_v34, %v5729_v21  ;;  %v824_v36 = vpop.f32.mrb[3].mxu0  ;;  %v4772_v34 = vpack.c.bf16 %v2079_v31, %v2075_v30 }
 0x111   : > { %1197 = vst [vmem:[%s5746_s14] sm:$0xff] %v1133_v33  ;;  %1370 = vmatmul.mubr.f32.vlgmr.msra.gmra.mrb[0].mxu1 %v1133_v33  ;;  %v825_v37 = vadd.f32 %v5729_v21, %v824_v36 }
 0x112   : > { %v1136_v41 = vmax.f32 %v830_v35, 0.0  ;;  %1375 = vmatprep.mubr.f32.mxu1 %v8296_v43  ;;  %v2078_v35 = vld [vmem:[%s8251_s5 + $0x220] sm:$0xff]  ;;  %4773 = vmatprep.subr.bf16.mxu0 %v4772_v34 }
 0x113   : > { %v1135_v45 = vmax.f32 %v825_v37, 0.0  ;;  %v4604_v46 = vpop.f32.mrb[4].mxu0 }
 0x114   : > { %1200 = vst [vmem:[%s5746_s14 + $0x18] sm:$0xff] %v1136_v41  ;;  %v840_v48 = vadd.f32 %v4604_v46, %v5729_v21  ;;  %v834_v49 = vpop.f32.mrb[5].mxu0 }
 0x115   : > { %1199 = vst [vmem:[%s5746_s14 + $0x10] sm:$0xff] %v1135_v45  ;;  %1376 = vmatmul.mubr.f32.gmra.mrb[2].mxu1 %v1134_v32  ;;  %v835_v50 = vadd.f32 %v5729_v21, %v834_v49  ;;  %v2074_v32 = vld [vmem:[%s8251_s5 + $0x200] sm:$0xff]  ;;  %v2083_v49 = vld [vmem:[%s8251_s5 + $0x248] sm:$0xff] }
 0x116   : > { %1381 = vmatprep.mubr.f32.mxu1 %v8296_v43  ;;  %v1138_v51 = vmax.f32 %v840_v48, 0.0  ;;  %v4774_v38 = vpack.c.bf16 %v2078_v35, %v2074_v32  ;;  %v2099_v35 = vld [vmem:[%s8251_s5 + $0x2c8] sm:$0xff] }
 0x117   : > { %v1137_v52 = vmax.f32 %v835_v50, 0.0  ;;  %v4607_v53 = vpop.f32.mrb[6].mxu0  ;;  %v2087_v50 = vld [vmem:[%s8251_s5 + $0x268] sm:$0xff] }
 0x118   : > { %1202 = vst [vmem:[%s5746_s14 + $0x28] sm:$0xff] %v1138_v51  ;;  %v5772_v54 = vadd.f32 %v4607_v53, %v5729_v21  ;;  %v844_v55 = vpop.f32.mrb[7].mxu0  ;;  %4775 = vmatpush1.bf16.msra.mxu0 %v4774_v38  ;;  %v4776_v53 = vpack.c.bf16 %v2087_v50, %v2083_v49 }
 0x119   : > { %1382 = vmatmul.mubr.f32.gmra.mrb[4].mxu1 %v1135_v45  ;;  %1201 = vst [vmem:[%s5746_s14 + $0x20] sm:$0xff] %v1137_v52  ;;  %v845_v56 = vadd.f32 %v5729_v21, %v844_v55 }
 0x11a   : > { %1387 = vmatprep.mubr.f32.mxu1 %v8296_v43  ;;  %v1140_v60 = vmax.f32 %v5772_v54, 0.0  ;;  %v2086_v54 = vld [vmem:[%s8251_s5 + $0x260] sm:$0xff]  ;;  %4777 = vmatprep.subr.bf16.mxu0 %v4776_v53 }
 0x11b   : > { %v1139_v63 = vmax.f32 %v845_v56, 0.0  ;;  %v4610_v0 = vpop.f32.mrb[8].mxu0 }
 0x11c   : > { %1204 = vst [vmem:[%s5746_s14 + $0x38] sm:$0xff] %v1140_v60  ;;  %v5794_v2 = vadd.f32 %v4610_v0, %v5729_v21  ;;  %v854_v3 = vpop.f32.mrb[9].mxu0 }
 0x11d   : > { %1388 = vmatmul.mubr.f32.gmra.mrb[6].mxu1 %v1136_v41  ;;  %1203 = vst [vmem:[%s5746_s14 + $0x30] sm:$0xff] %v1139_v63  ;;  %v5798_v4 = vadd.f32 %v5729_v21, %v854_v3 }
 0x11e   : > { %1393 = vmatprep.mubr.f32.mxu1 %v8296_v43  ;;  %v1142_v5 = vmax.f32 %v5794_v2, 0.0 }
 0x11f   : > { %v1141_v6 = vmax.f32 %v5798_v4, 0.0  ;;  %v4613_v7 = vpop.f32.mrb[10].mxu0 }
 0x120   : > { %1206 = vst [vmem:[%s5746_s14 + $0x48] sm:$0xff] %v1142_v5  ;;  %v5807_v8 = vadd.f32 %v4613_v7, %v5729_v21  ;;  %v864_v9 = vpop.f32.mrb[11].mxu0  ;;  %v2016_v7 = vld [vmem:[%s8251_s5 + $0x30] sm:$0xff] }
 0x121   : > { %1394 = vmatmul.mubr.f32.gmra.mrb[8].mxu1 %v1137_v52  ;;  %1205 = vst [vmem:[%s5746_s14 + $0x40] sm:$0xff] %v1141_v6  ;;  %v5811_v10 = vadd.f32 %v5729_v21, %v864_v9  ;;  %v2091_v9 = vld [vmem:[%s8251_s5 + $0x288] sm:$0xff] }
 0x122   : > { %1399 = vmatprep.mubr.f32.mxu1 %v8296_v43  ;;  %v1144_v14 = vmax.f32 %v5807_v8, 0.0 }
 0x123   : > { %v1143_v17 = vmax.f32 %v5811_v10, 0.0  ;;  %v4616_v18 = vpop.f32.mrb[12].mxu0 }
 0x124   : > { %1208 = vst [vmem:[%s5746_s14 + $0x58] sm:$0xff] %v1144_v14  ;;  %v5832_v20 = vadd.f32 %v4616_v18, %v5729_v21  ;;  %v874_v22 = vpop.f32.mrb[13].mxu0  ;;  %v4780_v18 = vpack.c.bf16 %v2095_v12, %v2091_v9  ;;  %v2111_v9 = vld [vmem:[%s8251_s5 + $0x328] sm:$0xff]  ;;  %v2106_v12 = vld [vmem:[%s8251_s5 + $0x300] sm:$0xff] }
 0x125   : > { %1400 = vmatmul.mubr.f32.gmra.mrb[10].mxu1 %v1138_v51  ;;  %1207 = vst [vmem:[%s5746_s14 + $0x50] sm:$0xff] %v1143_v17  ;;  %v5838_v23 = vadd.f32 %v5729_v21, %v874_v22  ;;  %v2082_v51 = vld [vmem:[%s8251_s5 + $0x240] sm:$0xff] }
 0x126   : > { %1405 = vmatprep.mubr.f32.mxu1 %v8296_v43  ;;  %v1146_v24 = vmax.f32 %v5832_v20, 0.0  ;;  %v4778_v57 = vpack.c.bf16 %v2086_v54, %v2082_v51  ;;  %v2025_v20 = vld [vmem:[%s8251_s5 + $0x78] sm:$0xff] }
 0x127   : > { %v1145_v25 = vmax.f32 %v5838_v23, 0.0  ;;  %v4619_v26 = vpop.f32.mrb[14].mxu0  ;;  %v2098_v23 = vld [vmem:[%s8251_s5 + $0x2c0] sm:$0xff] }
 0x128   : > { %1210 = vst [vmem:[%s5746_s14 + $0x68] sm:$0xff] %v1146_v24  ;;  %v5847_v27 = vadd.f32 %v4619_v26, %v5729_v21  ;;  %v884_v28 = vpop.f32.mrb[15].mxu0  ;;  %4779 = vmatpush1.bf16.msra.mxu0 %v4778_v57 }
 0x129   : > { %1406 = vmatmul.mubr.f32.gmra.mrb[12].mxu1 %v1139_v63  ;;  %1209 = vst [vmem:[%s5746_s14 + $0x60] sm:$0xff] %v1145_v25  ;;  %v5853_v29 = vadd.f32 %v5729_v21, %v884_v28  ;;  %v2017_v63 = vld [vmem:[%s8251_s5 + $0x38] sm:$0xff]  ;;  %4781 = vmatprep.subr.bf16.mxu0 %v4780_v18 }
 0x12a   : > { %1411 = vmatprep.mubr.f32.mxu1 %v8296_v43  ;;  %v1148_v33 = vmax.f32 %v5847_v27, 0.0  ;;  %v5937_v2 = vpack.c.bf16 %v2017_v63, %v2013_v62 }
 0x12b   : > { %v1147_v36 = vmax.f32 %v5853_v29, 0.0  ;;  %v4622_v37 = vpop.f32.mrb[16].mxu0  ;;  %v2107_v29 = vld [vmem:[%s8251_s5 + $0x308] sm:$0xff] }
 0x12c   : > { %1212 = vst [vmem:[%s5746_s14 + $0x78] sm:$0xff] %v1148_v33  ;;  %v5874_v39 = vadd.f32 %v4622_v37, %v5729_v21  ;;  %v894_v40 = vpop.f32.mrb[17].mxu0  ;;  %4932 = vmatprep.subr.bf16.mxu1 %v5937_v2  ;;  %4783 = vmatpush1.bf16.msra.mxu0 %v4782_v19  ;;  %v2103_v37 = vld [vmem:[%s8251_s5 + $0x2e8] sm:$0xff]  ;;  %v4788_v18 = vpack.c.bf16 %v2111_v9, %v2107_v29  ;;  %v2029_v9 = vld [vmem:[%s8251_s5 + $0x98] sm:$0xff] }
 0x12d   : > { %1412 = vmatmul.mubr.f32.gmra.mrb[14].mxu1 %v1140_v60  ;;  %1211 = vst [vmem:[%s5746_s14 + $0x70] sm:$0xff] %v1147_v36  ;;  %v5882_v41 = vadd.f32 %v5729_v21, %v894_v40  ;;  %v4784_v38 = vpack.c.bf16 %v2103_v37, %v2099_v35  ;;  %v2102_v40 = vld [vmem:[%s8251_s5 + $0x2e0] sm:$0xff]  ;;  %v4790_v19 = vpack.c.bf16 %v2110_v13, %v2106_v12 }
 0x12e   : > { %1417 = vmatprep.mubr.f32.mxu1 %v8296_v43  ;;  %v1150_v42 = vmax.f32 %v5874_v39, 0.0  ;;  %v4786_v49 = vpack.c.bf16 %v2102_v40, %v2098_v23  ;;  %v2115_v40 = vld [vmem:[%s8251_s5 + $0x348] sm:$0xff]  ;;  %v2033_v39 = vld [vmem:[%s8251_s5 + $0xb8] sm:$0xff] }
 0x12f   : > { %v1149_v44 = vmax.f32 %v5882_v41, 0.0  ;;  %v4625_v45 = vpop.f32.mrb[18].mxu0  ;;  %4785 = vmatprep.subr.bf16.mxu0 %v4784_v38  ;;  %v2114_v41 = vld [vmem:[%s8251_s5 + $0x340] sm:$0xff]  ;;  %v6157_v13 = vpack.c.bf16 %v2033_v39, %v2029_v9 }
 0x130   : > { %1214 = vst [vmem:[%s5746_s14 + $0x88] sm:$0xff] %v1150_v42  ;;  %v5891_v46 = vadd.f32 %v4625_v45, %v5729_v21  ;;  %v904_v47 = vpop.f32.mrb[19].mxu0  ;;  %4787 = vmatpush1.bf16.msra.mxu0 %v4786_v49 }
 0x131   : > { %1418 = vmatmul.mubr.f32.gmra.mrb[16].mxu1 %v1141_v6  ;;  %1213 = vst [vmem:[%s5746_s14 + $0x80] sm:$0xff] %v1149_v44  ;;  %v5897_v48 = vadd.f32 %v5729_v21, %v904_v47  ;;  %v2012_v6 = vld [vmem:[%s8251_s5 + $0x10] sm:$0xff]  ;;  %4789 = vmatprep.subr.bf16.mxu0 %v4788_v18 }
 0x132   : > { %1423 = vmatprep.mubr.f32.mxu1 %v8296_v43  ;;  %v1152_v52 = vmax.f32 %v5891_v46, 0.0  ;;  %v5965_v11 = vpack.c.bf16 %v2016_v7, %v2012_v6  ;;  %v2024_v6 = vld [vmem:[%s8251_s5 + $0x70] sm:$0xff] }
 0x133   : > { %v1151_v55 = vmax.f32 %v5897_v48, 0.0  ;;  %v4628_v56 = vpop.f32.mrb[20].mxu0  ;;  %v2123_v48 = vld [vmem:[%s8251_s5 + $0x388] sm:$0xff] }
 0x134   : > { %1216 = vst [vmem:[%s5746_s14 + $0x98] sm:$0xff] %v1152_v52  ;;  %v5918_v58 = vadd.f32 %v4628_v56, %v5729_v21  ;;  %v914_v59 = vpop.f32.mrb[21].mxu0  ;;  %4948 = vmatpush1.bf16.msra.mxu1 %v5965_v11  ;;  %v2021_v56 = vld [vmem:[%s8251_s5 + $0x58] sm:$0xff]  ;;  %4791 = vmatpush1.bf16.msra.mxu0 %v4790_v19 }
 0x135   : > { %1424 = vmatmul.mubr.f32.gmra.mrb[18].mxu1 %v1142_v5  ;;  %1215 = vst [vmem:[%s5746_s14 + $0x90] sm:$0xff] %v1151_v55  ;;  %v5926_v60 = vadd.f32 %v5729_v21, %v914_v59  ;;  %v6047_v59 = vpack.c.bf16 %v2025_v20, %v2021_v56 }
 0x136   : > { %1429 = vmatprep.mubr.f32.mxu1 %v8296_v43  ;;  %v1154_v61 = vmax.f32 %v5918_v58, 0.0 }
 0x137   : > { %v1153_v0 = vmax.f32 %v5926_v60, 0.0  ;;  %v4631_v1 = vpop.f32.mrb[22].mxu0  ;;  %4933 = vmatprep.subr.bf16.mxu1 %v6047_v59  ;;  %v2130_v60 = vld [vmem:[%s8251_s5 + $0x3c0] sm:$0xff] }
 0x138   : > { %1218 = vst [vmem:[%s5746_s14 + $0xa8] sm:$0xff] %v1154_v61  ;;  %v5943_v3 = vadd.f32 %v4631_v1, %v5729_v21  ;;  %v924_v4 = vpop.f32.mrb[23].mxu0 }
 0x139   : > { %1430 = vmatmul.mubr.f32.gmra.mrb[20].mxu1 %v1143_v17  ;;  %1217 = vst [vmem:[%s5746_s14 + $0xa0] sm:$0xff] %v1153_v0  ;;  %v5951_v5 = vadd.f32 %v5729_v21, %v924_v4  ;;  %v2020_v4 = vld [vmem:[%s8251_s5 + $0x50] sm:$0xff] }
 0x13a   : > { %1435 = vmatprep.mubr.f32.mxu1 %v8296_v43  ;;  %v1156_v10 = vmax.f32 %v5943_v3, 0.0  ;;  %v6075_v7 = vpack.c.bf16 %v2024_v6, %v2020_v4 }
 0x13b   : > { %v1155_v16 = vmax.f32 %v5951_v5, 0.0  ;;  %v4634_v17 = vpop.f32.mrb[24].mxu0 }
 0x13c   : > { %1220 = vst [vmem:[%s5746_s14 + $0xb8] sm:$0xff] %v1156_v10  ;;  %v5981_v22 = vadd.f32 %v4634_v17, %v5729_v21  ;;  %v934_v26 = vpop.f32.mrb[25].mxu0  ;;  %4949 = vmatpush1.bf16.msra.mxu1 %v6075_v7 }
 0x13d   : > { %1436 = vmatmul.mubr.f32.gmra.mrb[22].mxu1 %v1144_v14  ;;  %1219 = vst [vmem:[%s5746_s14 + $0xb0] sm:$0xff] %v1155_v16  ;;  %v5990_v28 = vadd.f32 %v5729_v21, %v934_v26  ;;  %4934 = vmatprep.subr.bf16.mxu1 %v6157_v13 }
 0x13e   : > { %1441 = vmatprep.mubr.f32.mxu1 %v8296_v43  ;;  %v1158_v30 = vmax.f32 %v5981_v22, 0.0 }
 0x13f   : > { %v1157_v31 = vmax.f32 %v5990_v28, 0.0  ;;  %v4637_v32 = vpop.f32.mrb[26].mxu0 }
 0x140   : > { %1222 = vst [vmem:[%s5746_s14 + $0xc8] sm:$0xff] %v1158_v30  ;;  %v5999_v8 = vadd.f32 %v4637_v32, %v5729_v21  ;;  %v944_v14 = vpop.f32.mrb[27].mxu0 }
 0x141   : > { %1442 = vmatmul.mubr.f32.gmra.mrb[24].mxu1 %v1145_v25  ;;  %1221 = vst [vmem:[%s5746_s14 + $0xc0] sm:$0xff] %v1157_v31  ;;  %v6007_v34 = vadd.f32 %v5729_v21, %v944_v14 }
 0x142   : > { %1447 = vmatprep.mubr.f32.mxu1 %v8296_v43  ;;  %v1160_v25 = vmax.f32 %v5999_v8, 0.0 }
 0x143   : > { %v1159_v45 = vmax.f32 %v6007_v34, 0.0  ;;  %v4640_v47 = vpop.f32.mrb[28].mxu0 }
 0x144   : > { %1224 = vst [vmem:[%s5746_s14 + $0xd8] sm:$0xff] %v1160_v25  ;;  %v6028_v50 = vadd.f32 %v4640_v47, %v5729_v21  ;;  %v954_v51 = vpop.f32.mrb[29].mxu0  ;;  %v2119_v47 = vld [vmem:[%s8251_s5 + $0x368] sm:$0xff] }
 0x145   : > { %1448 = vmatmul.mubr.f32.gmra.mrb[26].mxu1 %v1146_v24  ;;  %1223 = vst [vmem:[%s5746_s14 + $0xd0] sm:$0xff] %v1159_v45  ;;  %v6036_v53 = vadd.f32 %v5729_v21, %v954_v51  ;;  %v4792_v49 = vpack.c.bf16 %v2119_v47, %v2115_v40  ;;  %v2118_v51 = vld [vmem:[%s8251_s5 + $0x360] sm:$0xff]  ;;  %v2127_v40 = vld [vmem:[%s8251_s5 + $0x3a8] sm:$0xff] }
 0x146   : > { %1453 = vmatprep.mubr.f32.mxu1 %v8296_v43  ;;  %v1162_v54 = vmax.f32 %v6028_v50, 0.0  ;;  %v2122_v47 = vld [vmem:[%s8251_s5 + $0x380] sm:$0xff] }
 0x147   : > { %v1161_v24 = vmax.f32 %v6036_v53, 0.0  ;;  %v4643_v57 = vpop.f32.mrb[30].mxu0  ;;  %4793 = vmatprep.subr.bf16.mxu0 %v4792_v49 }
 0x148   : > { %1226 = vst [vmem:[%s5746_s14 + $0xe8] sm:$0xff] %v1162_v54  ;;  %v6053_v62 = vadd.f32 %v4643_v57, %v5729_v21  ;;  %v964_v63 = vpop.f32.mrb[31].mxu0  ;;  %v4794_v57 = vpack.c.bf16 %v2118_v51, %v2114_v41  ;;  %v2126_v41 = vld [vmem:[%s8251_s5 + $0x3a0] sm:$0xff] }
 0x149   : > { %1454 = vmatmul.mubr.f32.gmra.mrb[28].mxu1 %v1147_v36  ;;  %1225 = vst [vmem:[%s5746_s14 + $0xe0] sm:$0xff] %v1161_v24  ;;  %v6061_v1 = vadd.f32 %v5729_v21, %v964_v63 }
 0x14a   : > { %1459 = vmatprep.mubr.f32.mxu1 %v8296_v43  ;;  %v8295_v36 = vmax.f32 %v6053_v62, 0.0  ;;  %4795 = vmatpush1.bf16.msra.mxu0 %v4794_v57  ;;  %v4798_v57 = vpack.c.bf16 %v2126_v41, %v2122_v47  ;;  %v2134_v41 = vld [vmem:[%s8251_s5 + $0x3e0] sm:$0xff] }
 0x14b   : > { %v1163_v15 = vmax.f32 %v6061_v1, 0.0  ;;  %v4646_v17 = vpop.f32.mrb[32].mxu0 }
 0x14c   : > { %1228 = vst [vmem:[%s5746_s14 + $0xf8] sm:$0xff] %v8295_v36  ;;  %v6091_v26 = vadd.f32 %v4646_v17, %v5729_v21  ;;  %v974_v32 = vpop.f32.mrb[33].mxu0  ;;  %v2100_v36 = vld [vmem:[%s8251_s5 + $0x2d0] sm:$0xff] }
 0x14d   : > { %1460 = vmatmul.mubr.f32.gmra.mrb[30].mxu1 %v1148_v33  ;;  %1227 = vst [vmem:[%s5746_s14 + $0xf0] sm:$0xff] %v1163_v15  ;;  %v6100_v14 = vadd.f32 %v5729_v21, %v974_v32  ;;  %v2028_v32 = vld [vmem:[%s8251_s5 + $0x90] sm:$0xff] }
 0x14e   : > { %1465 = vmatprep.mubr.f32.mxu1 %v8296_v43  ;;  %v8291_v35 = vmax.f32 %v6091_v26, 0.0 }
 0x14f   : > { %v8292_v37 = vmax.f32 %v6100_v14, 0.0  ;;  %v4649_v23 = vpop.f32.mrb[34].mxu0 }
 0x150   : > { %1230 = vst [vmem:[%s5746_s14 + $0x108] sm:$0xff] %v8291_v35  ;;  %v6109_v27 = vadd.f32 %v4649_v23, %v5729_v21  ;;  %v984_v33 = vpop.f32.mrb[35].mxu0  ;;  %v2032_v23 = vld [vmem:[%s8251_s5 + $0xb0] sm:$0xff] }
 0x151   : > { %1466 = vmatmul.mubr.f32.gmra.mrb[32].mxu1 %v1149_v44  ;;  %1229 = vst [vmem:[%s5746_s14 + $0x100] sm:$0xff] %v8292_v37  ;;  %v6117_v38 = vadd.f32 %v5729_v21, %v984_v33  ;;  %v6185_v33 = vpack.c.bf16 %v2032_v23, %v2028_v32  ;;  %v2092_v35 = vld [vmem:[%s8251_s5 + $0x290] sm:$0xff] }
 0x152   : > { %1471 = vmatprep.mubr.f32.mxu1 %v8296_v43  ;;  %v8287_v44 = vmax.f32 %v6109_v27, 0.0  ;;  %v2096_v37 = vld [vmem:[%s8251_s5 + $0x2b0] sm:$0xff] }
 0x153   : > { %v8288_v56 = vmax.f32 %v6117_v38, 0.0  ;;  %v4652_v20 = vpop.f32.mrb[36].mxu0  ;;  %4950 = vmatpush1.bf16.msra.mxu1 %v6185_v33 }
 0x154   : > { %1232 = vst [vmem:[%s5746_s14 + $0x118] sm:$0xff] %v8287_v44  ;;  %v6138_v63 = vadd.f32 %v4652_v20, %v5729_v21  ;;  %v994_v4 = vpop.f32.mrb[37].mxu0  ;;  %v4796_v20 = vpack.c.bf16 %v2127_v40, %v2123_v48  ;;  %v2131_v48 = vld [vmem:[%s8251_s5 + $0x3c8] sm:$0xff]  ;;  %v2084_v44 = vld [vmem:[%s8251_s5 + $0x250] sm:$0xff] }
 0x155   : > { %1472 = vmatmul.mubr.f32.gmra.mrb[34].mxu1 %v1150_v42  ;;  %1231 = vst [vmem:[%s5746_s14 + $0x110] sm:$0xff] %v8288_v56  ;;  %v6146_v6 = vadd.f32 %v5729_v21, %v994_v4  ;;  %v2135_v40 = vld [vmem:[%s8251_s5 + $0x3e8] sm:$0xff]  ;;  %v2088_v56 = vld [vmem:[%s8251_s5 + $0x270] sm:$0xff] }
 0x156   : > { %1477 = vmatprep.mubr.f32.mxu1 %v8296_v43  ;;  %v8283_v29 = vmax.f32 %v6138_v63, 0.0  ;;  %4797 = vmatprep.subr.bf16.mxu0 %v4796_v20  ;;  %v4800_v47 = vpack.c.bf16 %v2135_v40, %v2131_v48 }
 0x157   : > { %v8284_v42 = vmax.f32 %v6146_v6, 0.0  ;;  %v4655_v12 = vpop.f32.mrb[38].mxu0  ;;  %4799 = vmatpush1.bf16.msra.mxu0 %v4798_v57  ;;  %v4802_v57 = vpack.c.bf16 %v2134_v41, %v2130_v60  ;;  %v2041_v41 = vld [vmem:[%s8251_s5 + $0xf8] sm:$0xff] }
 0x158   : > { %1234 = vst [vmem:[%s5746_s14 + $0x128] sm:$0xff] %v8283_v29  ;;  %v6163_v17 = vadd.f32 %v4655_v12, %v5729_v21  ;;  %v1004_v18 = vpop.f32.mrb[39].mxu0  ;;  %4801 = vmatprep.subr.bf16.mxu0 %v4800_v47  ;;  %v2037_v47 = vld [vmem:[%s8251_s5 + $0xd8] sm:$0xff]  ;;  %v2076_v29 = vld [vmem:[%s8251_s5 + $0x210] sm:$0xff] }
 0x159   : > { %1478 = vmatmul.mubr.f32.gmra.mrb[36].mxu1 %v1151_v55  ;;  %1233 = vst [vmem:[%s5746_s14 + $0x120] sm:$0xff] %v8284_v42  ;;  %v6171_v19 = vadd.f32 %v5729_v21, %v1004_v18  ;;  %v2080_v42 = vld [vmem:[%s8251_s5 + $0x230] sm:$0xff] }
 0x15a   : > { %1483 = vmatprep.mubr.f32.mxu1 %v8296_v43  ;;  %v8279_v55 = vmax.f32 %v6163_v17, 0.0 }
 0x15b   : > { %v8280_v49 = vmax.f32 %v6171_v19, 0.0  ;;  %v4658_v51 = vpop.f32.mrb[40].mxu0  ;;  %4803 = vmatpush1.bf16.msra.mxu0 %v4802_v57  ;;  %v2036_v57 = vld [vmem:[%s8251_s5 + $0xd0] sm:$0xff] }
 0x15c   : > { %1236 = vst [vmem:[%s5746_s14 + $0x138] sm:$0xff] %v8279_v55  ;;  %v6201_v4 = vadd.f32 %v4658_v51, %v5729_v21  ;;  %v1014_v9 = vpop.f32.mrb[41].mxu0  ;;  %4805 = vmatprep.subr.bf16.mxu0 %v5937_v2  ;;  %v2068_v55 = vld [vmem:[%s8251_s5 + $0x1d0] sm:$0xff] }
 0x15d   : > { %1484 = vmatmul.mubr.f32.gmra.mrb[38].mxu1 %v1152_v52  ;;  %1235 = vst [vmem:[%s5746_s14 + $0x130] sm:$0xff] %v8280_v49  ;;  %v6210_v39 = vadd.f32 %v5729_v21, %v1014_v9  ;;  %v2072_v49 = vld [vmem:[%s8251_s5 + $0x1f0] sm:$0xff] }
 0x15e   : > { %1489 = vmatprep.mubr.f32.mxu1 %v8296_v43  ;;  %v8275_v12 = vmax.f32 %v6201_v4, 0.0 }
 0x15f   : > { %v8276_v18 = vmax.f32 %v6210_v39, 0.0  ;;  %v4661_v32 = vpop.f32.mrb[42].mxu0 }
 0x160   : > { %1238 = vst [vmem:[%s5746_s14 + $0x148] sm:$0xff] %v8275_v12  ;;  %v6219_v46 = vadd.f32 %v4661_v32, %v5729_v21  ;;  %v1024_v52 = vpop.f32.mrb[43].mxu0  ;;  %v2060_v12 = vld [vmem:[%s8251_s5 + $0x190] sm:$0xff] }
 0x161   : > { %1490 = vmatmul.mubr.f32.gmra.mrb[40].mxu1 %v1153_v0  ;;  %1237 = vst [vmem:[%s5746_s14 + $0x140] sm:$0xff] %v8276_v18  ;;  %v6227_v23 = vadd.f32 %v5729_v21, %v1024_v52  ;;  %v2064_v18 = vld [vmem:[%s8251_s5 + $0x1b0] sm:$0xff] }
 0x162   : > { %1495 = vmatprep.mubr.f32.mxu1 %v8296_v43  ;;  %v8271_v0 = vmax.f32 %v6219_v46, 0.0 }
 0x163   : > { %v8272_v51 = vmax.f32 %v6227_v23, 0.0  ;;  %v4664_v20 = vpop.f32.mrb[44].mxu0 }
 0x164   : > { %1240 = vst [vmem:[%s5746_s14 + $0x158] sm:$0xff] %v8271_v0  ;;  %v6248_v9 = vadd.f32 %v4664_v20, %v5729_v21  ;;  %v1034_v32 = vpop.f32.mrb[45].mxu0  ;;  %v6282_v20 = vpack.c.bf16 %v2041_v41, %v2037_v47  ;;  %v2052_v0 = vld [vmem:[%s8251_s5 + $0x150] sm:$0xff] }
 0x165   : > { %1496 = vmatmul.mubr.f32.gmra.mrb[42].mxu1 %v1154_v61  ;;  %1239 = vst [vmem:[%s5746_s14 + $0x150] sm:$0xff] %v8272_v51  ;;  %v6256_v52 = vadd.f32 %v5729_v21, %v1034_v32  ;;  %v2040_v32 = vld [vmem:[%s8251_s5 + $0xf0] sm:$0xff] }
 0x166   : > { %1501 = vmatprep.mubr.f32.mxu1 %v8296_v43  ;;  %v8267_v48 = vmax.f32 %v6248_v9, 0.0  ;;  %4935 = vmatprep.subr.bf16.mxu1 %v6282_v20  ;;  %v2056_v51 = vld [vmem:[%s8251_s5 + $0x170] sm:$0xff] }
 0x167   : > { %v8268_v40 = vmax.f32 %v6256_v52, 0.0  ;;  %v4667_v60 = vpop.f32.mrb[46].mxu0 }
 0x168   : > { %1242 = vst [vmem:[%s5746_s14 + $0x168] sm:$0xff] %v8267_v48  ;;  %v6266_v58 = vadd.f32 %v4667_v60, %v5729_v21  ;;  %v1044_v61 = vpop.f32.mrb[47].mxu0  ;;  %v2044_v48 = vld [vmem:[%s8251_s5 + $0x110] sm:$0xff] }
 0x169   : > { %1502 = vmatmul.mubr.f32.gmra.mrb[44].mxu1 %v1155_v16  ;;  %1241 = vst [vmem:[%s5746_s14 + $0x160] sm:$0xff] %v8268_v40  ;;  %v6280_v2 = vadd.f32 %v5729_v21, %v1044_v61  ;;  %v6292_v16 = vpack.c.bf16 %v2040_v32, %v2036_v57  ;;  %v2045_v57 = vld [vmem:[%s8251_s5 + $0x118] sm:$0xff]  ;;  %v2048_v40 = vld [vmem:[%s8251_s5 + $0x130] sm:$0xff] }
 0x16a   : > { %1507 = vmatprep.mubr.f32.mxu1 %v8296_v43  ;;  %v8266_v5 = vmax.f32 %v6266_v58, 0.0  ;;  %v2049_v32 = vld [vmem:[%s8251_s5 + $0x138] sm:$0xff] }
 0x16b   : > { %v8269_v60 = vmax.f32 %v6280_v2, 0.0  ;;  %v4670_v61 = vpop.f32.mrb[48].mxu0  ;;  %4951 = vmatpush1.bf16.msra.mxu1 %v6292_v16 }
 0x16c   : > { %1244 = vst [vmem:[%s5746_s14 + $0x178] sm:$0xff] %v8266_v5  ;;  %v6300_v47 = vadd.f32 %v4670_v61, %v5729_v21  ;;  %v1054_v41 = vpop.f32.mrb[49].mxu0  ;;  %v6317_v5 = vpack.c.bf16 %v2049_v32, %v2045_v57 }
 0x16d   : > { %1508 = vmatmul.mubr.f32.gmra.mrb[46].mxu1 %v1156_v10  ;;  %1243 = vst [vmem:[%s5746_s14 + $0x170] sm:$0xff] %v8269_v60  ;;  %v6315_v61 = vadd.f32 %v5729_v21, %v1054_v41  ;;  %v6327_v10 = vpack.c.bf16 %v2048_v40, %v2044_v48  ;;  %v2053_v48 = vld [vmem:[%s8251_s5 + $0x158] sm:$0xff] }
 0x16e   : > { %1513 = vmatprep.mubr.f32.mxu1 %v8296_v43  ;;  %v8270_v3 = vmax.f32 %v6300_v47, 0.0  ;;  %4936 = vmatprep.subr.bf16.mxu1 %v6317_v5  ;;  %v2057_v40 = vld [vmem:[%s8251_s5 + $0x178] sm:$0xff] }
 0x16f   : > { %v8273_v41 = vmax.f32 %v6315_v61, 0.0  ;;  %v4673_v60 = vpop.f32.mrb[50].mxu0  ;;  %4952 = vmatpush1.bf16.msra.mxu1 %v6327_v10 }
 0x170   : > { %1246 = vst [vmem:[%s5746_s14 + $0x188] sm:$0xff] %v8270_v3  ;;  %v6335_v57 = vadd.f32 %v4673_v60, %v5729_v21  ;;  %v1064_v32 = vpop.f32.mrb[51].mxu0  ;;  %v6352_v3 = vpack.c.bf16 %v2057_v40, %v2053_v48 }
 0x171   : > { %1514 = vmatmul.mubr.f32.gmra.mrb[48].mxu1 %v1157_v31  ;;  %1245 = vst [vmem:[%s5746_s14 + $0x180] sm:$0xff] %v8273_v41  ;;  %v6350_v60 = vadd.f32 %v5729_v21, %v1064_v32  ;;  %v6362_v31 = vpack.c.bf16 %v2056_v51, %v2052_v0  ;;  %v2061_v0 = vld [vmem:[%s8251_s5 + $0x198] sm:$0xff] }
 0x172   : > { %1519 = vmatprep.mubr.f32.mxu1 %v8296_v43  ;;  %v8274_v28 = vmax.f32 %v6335_v57, 0.0  ;;  %4937 = vmatprep.subr.bf16.mxu1 %v6352_v3  ;;  %v2065_v51 = vld [vmem:[%s8251_s5 + $0x1b8] sm:$0xff] }
 0x173   : > { %v8277_v32 = vmax.f32 %v6350_v60, 0.0  ;;  %v4676_v41 = vpop.f32.mrb[52].mxu0  ;;  %4953 = vmatpush1.bf16.msra.mxu1 %v6362_v31 }
 0x174   : > { %1248 = vst [vmem:[%s5746_s14 + $0x198] sm:$0xff] %v8274_v28  ;;  %v6370_v48 = vadd.f32 %v4676_v41, %v5729_v21  ;;  %v1074_v40 = vpop.f32.mrb[53].mxu0  ;;  %v6387_v28 = vpack.c.bf16 %v2065_v51, %v2061_v0 }
 0x175   : > { %1520 = vmatmul.mubr.f32.gmra.mrb[50].mxu1 %v1158_v30  ;;  %1247 = vst [vmem:[%s5746_s14 + $0x190] sm:$0xff] %v8277_v32  ;;  %v6385_v41 = vadd.f32 %v5729_v21, %v1074_v40  ;;  %v6397_v30 = vpack.c.bf16 %v2064_v18, %v2060_v12  ;;  %v2069_v12 = vld [vmem:[%s8251_s5 + $0x1d8] sm:$0xff] }
 0x176   : > { %1525 = vmatprep.mubr.f32.mxu1 %v8296_v43  ;;  %v8278_v22 = vmax.f32 %v6370_v48, 0.0  ;;  %4938 = vmatprep.subr.bf16.mxu1 %v6387_v28  ;;  %v2073_v18 = vld [vmem:[%s8251_s5 + $0x1f8] sm:$0xff] }
 0x177   : > { %v8281_v40 = vmax.f32 %v6385_v41, 0.0  ;;  %v4679_v32 = vpop.f32.mrb[54].mxu0  ;;  %4954 = vmatpush1.bf16.msra.mxu1 %v6397_v30 }
 0x178   : > { %1250 = vst [vmem:[%s5746_s14 + $0x1a8] sm:$0xff] %v8278_v22  ;;  %v6405_v0 = vadd.f32 %v4679_v32, %v5729_v21  ;;  %v1084_v51 = vpop.f32.mrb[55].mxu0  ;;  %v6422_v22 = vpack.c.bf16 %v2073_v18, %v2069_v12 }
 0x179   : > { %1526 = vmatmul.mubr.f32.gmra.mrb[52].mxu1 %v1159_v45  ;;  %1249 = vst [vmem:[%s5746_s14 + $0x1a0] sm:$0xff] %v8281_v40  ;;  %v6420_v32 = vadd.f32 %v5729_v21, %v1084_v51  ;;  %v6432_v45 = vpack.c.bf16 %v2072_v49, %v2068_v55  ;;  %v2077_v55 = vld [vmem:[%s8251_s5 + $0x218] sm:$0xff] }
 0x17a   : > { %1531 = vmatprep.mubr.f32.mxu1 %v8296_v43  ;;  %v8282_v34 = vmax.f32 %v6405_v0, 0.0  ;;  %4939 = vmatprep.subr.bf16.mxu1 %v6422_v22  ;;  %v2081_v49 = vld [vmem:[%s8251_s5 + $0x238] sm:$0xff] }
 0x17b   : > { %v8285_v51 = vmax.f32 %v6420_v32, 0.0  ;;  %v4682_v40 = vpop.f32.mrb[56].mxu0  ;;  %4955 = vmatpush1.bf16.msra.mxu1 %v6432_v45 }
 0x17c   : > { %1252 = vst [vmem:[%s5746_s14 + $0x1b8] sm:$0xff] %v8282_v34  ;;  %v6440_v12 = vadd.f32 %v4682_v40, %v5729_v21  ;;  %v1094_v18 = vpop.f32.mrb[57].mxu0  ;;  %v6457_v34 = vpack.c.bf16 %v2081_v49, %v2077_v55 }
 0x17d   : > { %1532 = vmatmul.mubr.f32.gmra.mrb[54].mxu1 %v1160_v25  ;;  %1251 = vst [vmem:[%s5746_s14 + $0x1b0] sm:$0xff] %v8285_v51  ;;  %v6455_v40 = vadd.f32 %v5729_v21, %v1094_v18  ;;  %v6467_v25 = vpack.c.bf16 %v2080_v42, %v2076_v29  ;;  %v2085_v29 = vld [vmem:[%s8251_s5 + $0x258] sm:$0xff] }
 0x17e   : > { %1537 = vmatprep.mubr.f32.mxu1 %v8296_v43  ;;  %v8286_v8 = vmax.f32 %v6440_v12, 0.0  ;;  %4940 = vmatprep.subr.bf16.mxu1 %v6457_v34  ;;  %v2089_v42 = vld [vmem:[%s8251_s5 + $0x278] sm:$0xff] }
 0x17f   : > { %v8289_v18 = vmax.f32 %v6455_v40, 0.0  ;;  %v4685_v51 = vpop.f32.mrb[58].mxu0  ;;  %4956 = vmatpush1.bf16.msra.mxu1 %v6467_v25 }
 0x180   : > { %1254 = vst [vmem:[%s5746_s14 + $0x1c8] sm:$0xff] %v8286_v8  ;;  %v6475_v55 = vadd.f32 %v4685_v51, %v5729_v21  ;;  %v1104_v49 = vpop.f32.mrb[59].mxu0  ;;  %v6492_v8 = vpack.c.bf16 %v2089_v42, %v2085_v29 }
 0x181   : > { %1538 = vmatmul.mubr.f32.gmra.mrb[56].mxu1 %v1161_v24  ;;  %1253 = vst [vmem:[%s5746_s14 + $0x1c0] sm:$0xff] %v8289_v18  ;;  %v6490_v51 = vadd.f32 %v5729_v21, %v1104_v49  ;;  %v6502_v24 = vpack.c.bf16 %v2088_v56, %v2084_v44  ;;  %v2093_v44 = vld [vmem:[%s8251_s5 + $0x298] sm:$0xff] }
 0x182   : > { %1543 = vmatprep.mubr.f32.mxu1 %v8296_v43  ;;  %v8290_v53 = vmax.f32 %v6475_v55, 0.0  ;;  %4941 = vmatprep.subr.bf16.mxu1 %v6492_v8  ;;  %v2097_v56 = vld [vmem:[%s8251_s5 + $0x2b8] sm:$0xff] }
 0x183   : > { %v8293_v49 = vmax.f32 %v6490_v51, 0.0  ;;  %v4688_v18 = vpop.f32.mrb[60].mxu0  ;;  %4957 = vmatpush1.bf16.msra.mxu1 %v6502_v24 }
 0x184   : > { %1256 = vst [vmem:[%s5746_s14 + $0x1d8] sm:$0xff] %v8290_v53  ;;  %v6510_v29 = vadd.f32 %v4688_v18, %v5729_v21  ;;  %v1114_v42 = vpop.f32.mrb[61].mxu0  ;;  %v6527_v53 = vpack.c.bf16 %v2097_v56, %v2093_v44 }
 0x185   : > { %1544 = vmatmul.mubr.f32.gmra.mrb[58].mxu1 %v1162_v54  ;;  %1255 = vst [vmem:[%s5746_s14 + $0x1d0] sm:$0xff] %v8293_v49  ;;  %v6525_v18 = vadd.f32 %v5729_v21, %v1114_v42  ;;  %v6537_v54 = vpack.c.bf16 %v2096_v37, %v2092_v35  ;;  %v2101_v35 = vld [vmem:[%s8251_s5 + $0x2d8] sm:$0xff] }
 0x186   : > { %1549 = vmatprep.mubr.f32.mxu1 %v8296_v43  ;;  %v8294_v50 = vmax.f32 %v6510_v29, 0.0  ;;  %4942 = vmatprep.subr.bf16.mxu1 %v6527_v53  ;;  %v2105_v37 = vld [vmem:[%s8251_s5 + $0x2f8] sm:$0xff]  ;;  %v2104_v43 = vld [vmem:[%s8251_s5 + $0x2f0] sm:$0xff] }
 0x187   : > { %8331 = vst [vmem:[#allocation17_spill] sm:$0xff] %v6537_v54  ;;  %v8299_v42 = vmax.f32 %v6525_v18, 0.0  ;;  %v4691_v49 = vpop.f32.mrb[62].mxu0  ;;  %4958 = vmatpush1.bf16.msra.mxu1 %v6537_v54  ;;  %v8332_v54 = vmov 0.0  }
 0x188   : > { %1258 = vst [vmem:[%s5746_s14 + $0x1e8] sm:$0xff] %v8294_v50  ;;  %v6545_v44 = vadd.f32 %v4691_v49, %v5729_v21  ;;  %v1124_v56 = vpop.f32.mrb[63].mxu0  ;;  %v6562_v50 = vpack.c.bf16 %v2105_v37, %v2101_v35  ;;  %v2108_v35 = vld [vmem:[%s8251_s5 + $0x310] sm:$0xff] }
 0x189   : > { %1550 = vmatmul.mubr.f32.gmra.mrb[60].mxu1 %v1163_v15  ;;  %1257 = vst [vmem:[%s5746_s14 + $0x1e0] sm:$0xff] %v8299_v42  ;;  %v6560_v49 = vadd.f32 %v5729_v21, %v1124_v56  ;;  %v6572_v15 = vpack.c.bf16 %v2104_v43, %v2100_v36  ;;  %v2109_v21 = vld [vmem:[%s8251_s5 + $0x318] sm:$0xff]  ;;  %v8333_v43 = vmax.f32 %v6053_v62, 0.0  ;;  %v2112_v37 = vld [vmem:[%s8251_s5 + $0x330] sm:$0xff] }
 0x18a   : > { %1555 = vmatprep.mubr.f32.mxu1 %v8332_v54  ;;  %v8300_v1 = vmax.f32 %v6545_v44, 0.0  ;;  %4943 = vmatprep.subr.bf16.mxu1 %v6562_v50  ;;  %v2113_v56 = vld [vmem:[%s8251_s5 + $0x338] sm:$0xff] }
 0x18b   : > { %v8301_v42 = vmax.f32 %v6560_v49, 0.0  ;;  %4959 = vmatpush1.bf16.msra.mxu1 %v6572_v15  ;;  %v6591_v36 = vpack.c.bf16 %v2113_v56, %v2109_v21  ;;  %v2117_v62 = vld [vmem:[%s8251_s5 + $0x358] sm:$0xff]  ;;  %v8334_v56 = vmax.f32 %v6100_v14, 0.0 }
 0x18c   : > { %1260 = vst [vmem:[%s5746_s14 + $0x1f8] sm:$0xff] %v8300_v1  ;;  %v6600_v1 = vpack.c.bf16 %v2112_v37, %v2108_v35  ;;  %v2121_v21 = vld [vmem:[%s8251_s5 + $0x378] sm:$0xff]  ;;  %v2116_v35 = vld [vmem:[%s8251_s5 + $0x350] sm:$0xff] }
 0x18d   : > { %1556 = vmatmul.mubr.f32.gmra.mrb[62].mxu1 %v8333_v43  ;;  %1259 = vst [vmem:[%s5746_s14 + $0x1f0] sm:$0xff] %v8301_v42  ;;  %4944 = vmatprep.subr.bf16.mxu1 %v6591_v36  ;;  %v6612_v43 = vpack.c.bf16 %v2121_v21, %v2117_v62  ;;  %v2120_v37 = vld [vmem:[%s8251_s5 + $0x370] sm:$0xff]  ;;  %v2125_v14 = vld [vmem:[%s8251_s5 + $0x398] sm:$0xff]  ;;  %v8336_v21 = vmax.f32 %v6091_v26, 0.0 }
 0x18e   : > { %1561 = vmatprep.mubr.f32.mxu1 %v8332_v54  ;;  %v6621_v42 = vpack.c.bf16 %v2120_v37, %v2116_v35  ;;  %v2129_v62 = vld [vmem:[%s8251_s5 + $0x3b8] sm:$0xff]  ;;  %v2124_v35 = vld [vmem:[%s8251_s5 + $0x390] sm:$0xff] }
 0x18f   : > { %4960 = vmatpush1.bf16.msra.mxu1 %v6600_v1  ;;  %v2128_v37 = vld [vmem:[%s8251_s5 + $0x3b0] sm:$0xff]  ;;  %v2133_v26 = vld [vmem:[%s8251_s5 + $0x3d8] sm:$0xff] }
 0x190   : > { %8335 = vst [vmem:[#allocation18_spill] sm:$0xff] %v6621_v42  ;;  %4945 = vmatprep.subr.bf16.mxu1 %v6612_v43 }
 0x191   : > { %1562 = vmatmul.mubr.f32.gmra.mrb[64].mxu1 %v8334_v56  ;;  %v6633_v56 = vpack.c.bf16 %v2129_v62, %v2125_v14  ;;  %v2137_v14 = vld [vmem:[%s8251_s5 + $0x3f8] sm:$0xff]  ;;  %v8338_v62 = vmax.f32 %v6117_v38, 0.0  ;;  %v8339_v38 = vmax.f32 %v6109_v27, 0.0  ;;  %v8343_v27 = vmax.f32 %v6163_v17, 0.0 }
 0x192   : > { %1567 = vmatprep.mubr.f32.mxu1 %v8332_v54  ;;  %v8347_v17 = vmax.f32 %v6219_v46, 0.0  ;;  %v8351_v46 = vmax.f32 %v6266_v58, 0.0 }
 0x193   : > { %4961 = vmatpush1.bf16.msra.mxu1 %v6621_v42  ;;  %v6642_v42 = vpack.c.bf16 %v2128_v37, %v2124_v35  ;;  %v2132_v35 = vld [vmem:[%s8251_s5 + $0x3d0] sm:$0xff] }
 0x194   : > { %4946 = vmatprep.subr.bf16.mxu1 %v6633_v56  ;;  %v2136_v37 = vld [vmem:[%s8251_s5 + $0x3f0] sm:$0xff] }
 0x195   : > { %1568 = vmatmul.mubr.f32.gmra.mrb[66].mxu1 %v8336_v21  ;;  %8337 = vst [vmem:[#allocation19_spill] sm:$0xff] %v6642_v42  ;;  %v6654_v21 = vpack.c.bf16 %v2137_v14, %v2133_v26  ;;  %v8340_v26 = vmax.f32 %v6146_v6, 0.0  ;;  %v8341_v14 = vmax.f32 %v6138_v63, 0.0  ;;  %v8344_v6 = vmax.f32 %v6210_v39, 0.0 }
 0x196   : > { %1573 = vmatprep.mubr.f32.mxu1 %v8332_v54  ;;  %v8345_v63 = vmax.f32 %v6201_v4, 0.0  ;;  %v8348_v39 = vmax.f32 %v6256_v52, 0.0  ;;  %v8349_v4 = vmax.f32 %v6248_v9, 0.0  ;;  %v8352_v52 = vmax.f32 %v6315_v61, 0.0 }
 0x197   : > { %4962 = vmatpush1.bf16.msra.mxu1 %v6642_v42  ;;  %v6663_v42 = vpack.c.bf16 %v2136_v37, %v2132_v35  ;;  %v8353_v9 = vmax.f32 %v6300_v47, 0.0  ;;  %v8304_v35 = vlaneseq  ;;  %v8355_v61 = vmax.f32 %v6335_v57, 0.0  ;;  %v1293_v47 = vld [vmem:[%s8250_s4] sm:$0x3] }
 0x198   : > { %4947 = vmatprep.subr.bf16.mxu1 %v6654_v21 }
 0x199   : > { %1574 = vmatmul.mubr.f32.gmra.mrb[68].mxu1 %v8338_v62  ;;  %v8342_v62 = vmax.f32 %v6171_v19, 0.0  ;;  %v8346_v19 = vmax.f32 %v6227_v23, 0.0  ;;  %v8350_v23 = vmax.f32 %v6280_v2, 0.0  ;;  %v8354_v2 = vmax.f32 %v6350_v60, 0.0 }
 0x19a   : > { %1579 = vmatprep.mubr.f32.mxu1 %v8332_v54  ;;  %v6715_v58 = vshrl.u32 %v8304_v35, 7  ;;  %v8356_v60 = vmax.f32 %v6385_v41, 0.0 }
 0x19b   : > { %4963 = vmatpush1.bf16.msra.mxu1 %v6663_v42 }
 0x19c   : > { %v1297_v37 = vsub.s32 0, %v6715_v58 }
 0x19d   : > { %1580 = vmatmul.mubr.f32.gmra.mrb[70].mxu1 %v8339_v38  ;;  %v1301_v38 = vsub.s32 1, %v6715_v58 }
 0x19e   : > { %1585 = vmatprep.mubr.f32.mxu1 %v8332_v54 }
 0x19f   : > { %v6735_v57 = vrot.slane %v1293_v47, %v1301_v38 }
 0x1a1   : > { %1586 = vmatmul.mubr.f32.gmra.mrb[72].mxu1 %v8340_v26  ;;  %v6730_v26 = vrot.slane %v1293_v47, %v1297_v37 }
 0x1a2   : > { %1591 = vmatprep.mubr.f32.mxu1 %v8332_v54 }
 0x1a5   : > { %1592 = vmatmul.mubr.f32.gmra.mrb[74].mxu1 %v8341_v14 }
 0x1a6   : > { %1597 = vmatprep.mubr.f32.mxu1 %v8332_v54 }
 0x1a9   : > { %1598 = vmatmul.mubr.f32.gmra.mrb[76].mxu1 %v8342_v62 }
 0x1aa   : > { %1603 = vmatprep.mubr.f32.mxu1 %v8332_v54 }
 0x1ad   : > { %1604 = vmatmul.mubr.f32.gmra.mrb[78].mxu1 %v8343_v27 }
 0x1ae   : > { %1609 = vmatprep.mubr.f32.mxu1 %v8332_v54 }
 0x1b1   : > { %1610 = vmatmul.mubr.f32.gmra.mrb[80].mxu1 %v8344_v6  ;;  %v8357_v6 = vmax.f32 %v6370_v48, 0.0 }
 0x1b2   : > { %1615 = vmatprep.mubr.f32.mxu1 %v8332_v54 }
 0x1b5   : > { %1616 = vmatmul.mubr.f32.gmra.mrb[82].mxu1 %v8345_v63 }
 0x1b6   : > { %1621 = vmatprep.mubr.f32.mxu1 %v8332_v54 }
 0x1b9   : > { %1622 = vmatmul.mubr.f32.gmra.mrb[84].mxu1 %v8346_v19 }
 0x1ba   : > { %1627 = vmatprep.mubr.f32.mxu1 %v8332_v54 }
 0x1bd   : > { %1628 = vmatmul.mubr.f32.gmra.mrb[86].mxu1 %v8347_v17 }
 0x1be   : > { %1633 = vmatprep.mubr.f32.mxu1 %v8332_v54 }
 0x1c1   : > { %1634 = vmatmul.mubr.f32.gmra.mrb[88].mxu1 %v8348_v39 }
 0x1c2   : > { %1639 = vmatprep.mubr.f32.mxu1 %v8332_v54 }
 0x1c5   : > { %1640 = vmatmul.mubr.f32.gmra.mrb[90].mxu1 %v8349_v4 }
 0x1c6   : > { %1645 = vmatprep.mubr.f32.mxu1 %v8332_v54 }
 0x1c9   : > { %1646 = vmatmul.mubr.f32.gmra.mrb[92].mxu1 %v8350_v23  ;;  %v8358_v23 = vmax.f32 %v6420_v32, 0.0  ;;  %v8359_v32 = vmax.f32 %v6405_v0, 0.0 }
 0x1ca   : > { %1651 = vmatprep.mubr.f32.mxu1 %v8332_v54 }
 0x1cd   : > { %1652 = vmatmul.mubr.f32.gmra.mrb[94].mxu1 %v8351_v46 }
 0x1ce   : > { %1657 = vmatprep.mubr.f32.mxu1 %v8332_v54 }
 0x1d1   : > { %1658 = vmatmul.mubr.f32.gmra.mrb[96].mxu1 %v8352_v52 }
 0x1d2   : > { %1663 = vmatprep.mubr.f32.mxu1 %v8332_v54 }
 0x1d5   : > { %1664 = vmatmul.mubr.f32.gmra.mrb[98].mxu1 %v8353_v9 }
 0x1d6   : > { %1669 = vmatprep.mubr.f32.mxu1 %v8332_v54 }
 0x1d9   : > { %1670 = vmatmul.mubr.f32.gmra.mrb[100].mxu1 %v8354_v2 }
 0x1da   : > { %1675 = vmatprep.mubr.f32.mxu1 %v8332_v54 }
 0x1dd   : > { %1676 = vmatmul.mubr.f32.gmra.mrb[102].mxu1 %v8355_v61 }
 0x1de   : > { %1681 = vmatprep.mubr.f32.mxu1 %v8332_v54 }
 0x1e1   : > { %1682 = vmatmul.mubr.f32.gmra.mrb[104].mxu1 %v8356_v60 }
 0x1e2   : > { %1687 = vmatprep.mubr.f32.mxu1 %v8332_v54 }
 0x1e4   : > { %v1371_v14 = vpop.f32.mrb[0].mxu1 }
 0x1e5   : > { %v1372_v62 = vadd.f32 %v1371_v14, %v6730_v26  ;;  %v1373_v27 = vpop.f32.mrb[1].mxu1  ;;  %1688 = vmatmul.mubr.f32.gmra.mrb[106].mxu1 %v8357_v6 }
 0x1e6   : > { %v1374_v41 = vadd.f32 %v1373_v27, %v6735_v57  ;;  %1693 = vmatprep.mubr.f32.mxu1 %v8332_v54  ;;  %v8360_v27 = vmax.f32 %v6455_v40, 0.0 }
 0x1e7   : > { %v1754_v63 = vmax.f32 %v1372_v62, 0.0 }
 0x1e8   : > { %v1755_v19 = vmax.f32 %v1374_v41, 0.0  ;;  %v1377_v17 = vpop.f32.mrb[2].mxu1 }
 0x1e9   : > { %1882 = vst [vmem:[%s6743_s30] sm:$0xff] %v1754_v63  ;;  %v1378_v39 = vadd.f32 %v1377_v17, %v6730_v26  ;;  %v1379_v4 = vpop.f32.mrb[3].mxu1  ;;  %1694 = vmatmul.mubr.f32.gmra.mrb[108].mxu1 %v8358_v23  ;;  %v8362_v23 = vmax.f32 %v6490_v51, 0.0 }
 0x1ea   : > { %1883 = vst [vmem:[%s6743_s30 + $0x8] sm:$0xff] %v1755_v19  ;;  %v1380_v48 = vadd.f32 %v1379_v4, %v6735_v57  ;;  %2224 = vmatprep.mubr.f32.mxu0 %v1755_v19  ;;  %1699 = vmatprep.mubr.f32.mxu1 %v8332_v54  ;;  %v8361_v19 = vmax.f32 %v6440_v12, 0.0 }
 0x1eb   : > { %v1756_v46 = vmax.f32 %v1378_v39, 0.0  ;;  %2225 = vmatmul.mubr.f32.vlgmr.msra.gmra.mrb[64].mxu0 %v1754_v63 }
 0x1ec   : > { %v1757_v52 = vmax.f32 %v1380_v48, 0.0  ;;  %4807 = vmatpush1.bf16.msra.mxu0 %v5965_v11  ;;  %v1383_v9 = vpop.f32.mrb[4].mxu1 }
 0x1ed   : > { %1884 = vst [vmem:[%s6743_s30 + $0x10] sm:$0xff] %v1756_v46  ;;  %v1384_v2 = vadd.f32 %v1383_v9, %v6730_v26  ;;  %v1385_v61 = vpop.f32.mrb[5].mxu1  ;;  %1700 = vmatmul.mubr.f32.gmra.mrb[110].mxu1 %v8359_v32  ;;  %4809 = vmatprep.subr.bf16.mxu0 %v6047_v59  ;;  %v8363_v9 = vmax.f32 %v6475_v55, 0.0 }
 0x1ee   : > { %1885 = vst [vmem:[%s6743_s30 + $0x18] sm:$0xff] %v1757_v52  ;;  %v1386_v47 = vadd.f32 %v1385_v61, %v6735_v57  ;;  %2230 = vmatprep.mubr.f32.mxu0 %v1757_v52  ;;  %1705 = vmatprep.mubr.f32.mxu1 %v8332_v54 }
 0x1ef   : > { %v1758_v60 = vmax.f32 %v1384_v2, 0.0  ;;  %2231 = vmatmul.mubr.f32.gmra.mrb[66].mxu0 %v1756_v46 }
 0x1f0   : > { %v1759_v11 = vmax.f32 %v1386_v47, 0.0  ;;  %v1389_v14 = vpop.f32.mrb[6].mxu1  ;;  %4811 = vmatpush1.bf16.msra.mxu0 %v6075_v7  ;;  %v8364_v47 = vmax.f32 %v6525_v18, 0.0 }
 0x1f1   : > { %1886 = vst [vmem:[%s6743_s30 + $0x20] sm:$0xff] %v1758_v60  ;;  %v1390_v0 = vadd.f32 %v1389_v14, %v6730_v26  ;;  %v1391_v62 = vpop.f32.mrb[7].mxu1  ;;  %1706 = vmatmul.mubr.f32.gmra.mrb[112].mxu1 %v8360_v27  ;;  %4813 = vmatprep.subr.bf16.mxu0 %v6157_v13 }
 0x1f2   : > { %1887 = vst [vmem:[%s6743_s30 + $0x28] sm:$0xff] %v1759_v11  ;;  %v1392_v59 = vadd.f32 %v1391_v62, %v6735_v57  ;;  %2236 = vmatprep.mubr.f32.mxu0 %v1759_v11  ;;  %1711 = vmatprep.mubr.f32.mxu1 %v8332_v54 }
 0x1f3   : > { %v1760_v6 = vmax.f32 %v1390_v0, 0.0  ;;  %2237 = vmatmul.mubr.f32.gmra.mrb[68].mxu0 %v1758_v60  ;;  %v8365_v0 = vmax.f32 %v6510_v29, 0.0 }
 0x1f4   : > { %v1761_v41 = vmax.f32 %v1392_v59, 0.0  ;;  %v1395_v7 = vpop.f32.mrb[8].mxu1  ;;  %4815 = vmatpush1.bf16.msra.mxu0 %v6185_v33 }
 0x1f5   : > { %1888 = vst [vmem:[%s6743_s30 + $0x30] sm:$0xff] %v1760_v6  ;;  %v1396_v40 = vadd.f32 %v1395_v7, %v6730_v26  ;;  %v1397_v63 = vpop.f32.mrb[9].mxu1  ;;  %1712 = vmatmul.mubr.f32.gmra.mrb[114].mxu1 %v8361_v19  ;;  %4817 = vmatprep.subr.bf16.mxu0 %v6282_v20 }
 0x1f6   : > { %1889 = vst [vmem:[%s6743_s30 + $0x38] sm:$0xff] %v1761_v41  ;;  %v1398_v13 = vadd.f32 %v1397_v63, %v6735_v57  ;;  %2242 = vmatprep.mubr.f32.mxu0 %v1761_v41  ;;  %1717 = vmatprep.mubr.f32.mxu1 %v8332_v54 }
 0x1f7   : > { %v1762_v17 = vmax.f32 %v1396_v40, 0.0  ;;  %2243 = vmatmul.mubr.f32.gmra.mrb[70].mxu0 %v1760_v6  ;;  %v8366_v6 = vmax.f32 %v6560_v49, 0.0 }
 0x1f8   : > { %v1763_v39 = vmax.f32 %v1398_v13, 0.0  ;;  %v1401_v33 = vpop.f32.mrb[10].mxu1  ;;  %4819 = vmatpush1.bf16.msra.mxu0 %v6292_v16 }
 0x1f9   : > { %1890 = vst [vmem:[%s6743_s30 + $0x40] sm:$0xff] %v1762_v17  ;;  %v1402_v12 = vadd.f32 %v1401_v33, %v6730_v26  ;;  %v1403_v4 = vpop.f32.mrb[11].mxu1  ;;  %1718 = vmatmul.mubr.f32.gmra.mrb[116].mxu1 %v8362_v23  ;;  %4821 = vmatprep.subr.bf16.mxu0 %v6317_v5 }
 0x1fa   : > { %1891 = vst [vmem:[%s6743_s30 + $0x48] sm:$0xff] %v1763_v39  ;;  %v1404_v20 = vadd.f32 %v1403_v4, %v6735_v57  ;;  %2248 = vmatprep.mubr.f32.mxu0 %v1763_v39  ;;  %1723 = vmatprep.mubr.f32.mxu1 %v8332_v54 }
 0x1fb   : > { %v1764_v48 = vmax.f32 %v1402_v12, 0.0  ;;  %2249 = vmatmul.mubr.f32.gmra.mrb[72].mxu0 %v1762_v17  ;;  %v8368_v12 = vld [vmem:[#allocation17_spill] sm:$0xff] }
 0x1fc   : > { %v1765_v46 = vmax.f32 %v1404_v20, 0.0  ;;  %v1407_v16 = vpop.f32.mrb[12].mxu1  ;;  %4823 = vmatpush1.bf16.msra.mxu0 %v6327_v10 }
 0x1fd   : > { %1892 = vst [vmem:[%s6743_s30 + $0x50] sm:$0xff] %v1764_v48  ;;  %v1408_v51 = vadd.f32 %v1407_v16, %v6730_v26  ;;  %v1409_v52 = vpop.f32.mrb[13].mxu1  ;;  %1724 = vmatmul.mubr.f32.gmra.mrb[118].mxu1 %v8363_v9  ;;  %4825 = vmatprep.subr.bf16.mxu0 %v6352_v3 }
 0x1fe   : > { %1893 = vst [vmem:[%s6743_s30 + $0x58] sm:$0xff] %v1765_v46  ;;  %v1410_v5 = vadd.f32 %v1409_v52, %v6735_v57  ;;  %2254 = vmatprep.mubr.f32.mxu0 %v1765_v46  ;;  %1729 = vmatprep.mubr.f32.mxu1 %v8332_v54 }
 0x1ff   : > { %v1766_v2 = vmax.f32 %v1408_v51, 0.0  ;;  %2255 = vmatmul.mubr.f32.gmra.mrb[74].mxu0 %v1764_v48 }
 0x200   : > { %v1767_v61 = vmax.f32 %v1410_v5, 0.0  ;;  %v1413_v10 = vpop.f32.mrb[14].mxu1  ;;  %4827 = vmatpush1.bf16.msra.mxu0 %v6362_v31 }
 0x201   : > { %1894 = vst [vmem:[%s6743_s30 + $0x60] sm:$0xff] %v1766_v2  ;;  %v1414_v55 = vadd.f32 %v1413_v10, %v6730_v26  ;;  %v1415_v32 = vpop.f32.mrb[15].mxu1  ;;  %1730 = vmatmul.mubr.f32.gmra.mrb[120].mxu1 %v8364_v47  ;;  %4829 = vmatprep.subr.bf16.mxu0 %v6387_v28 }
 0x202   : > { %1895 = vst [vmem:[%s6743_s30 + $0x68] sm:$0xff] %v1767_v61  ;;  %v1416_v3 = vadd.f32 %v1415_v32, %v6735_v57  ;;  %2260 = vmatprep.mubr.f32.mxu0 %v1767_v61  ;;  %1735 = vmatprep.mubr.f32.mxu1 %v8332_v54 }
 0x203   : > { %v1768_v60 = vmax.f32 %v1414_v55, 0.0  ;;  %2261 = vmatmul.mubr.f32.gmra.mrb[76].mxu0 %v1766_v2  ;;  %v8369_v55 = vld [vmem:[#allocation18_spill] sm:$0xff] }
 0x204   : > { %v1769_v11 = vmax.f32 %v1416_v3, 0.0  ;;  %v1419_v31 = vpop.f32.mrb[16].mxu1  ;;  %4831 = vmatpush1.bf16.msra.mxu0 %v6397_v30 }
 0x205   : > { %1896 = vst [vmem:[%s6743_s30 + $0x70] sm:$0xff] %v1768_v60  ;;  %v1420_v18 = vadd.f32 %v1419_v31, %v6730_v26  ;;  %v1421_v14 = vpop.f32.mrb[17].mxu1  ;;  %1736 = vmatmul.mubr.f32.gmra.mrb[122].mxu1 %v8365_v0  ;;  %4833 = vmatprep.subr.bf16.mxu0 %v6422_v22 }
 0x206   : > { %1897 = vst [vmem:[%s6743_s30 + $0x78] sm:$0xff] %v1769_v11  ;;  %v1422_v28 = vadd.f32 %v1421_v14, %v6735_v57  ;;  %2266 = vmatprep.mubr.f32.mxu0 %v1769_v11  ;;  %1741 = vmatprep.mubr.f32.mxu1 %v8332_v54  ;;  %v8370_v11 = vld [vmem:[#allocation19_spill] sm:$0xff] }
 0x207   : > { %v1770_v62 = vmax.f32 %v1420_v18, 0.0  ;;  %2267 = vmatmul.mubr.f32.gmra.mrb[78].mxu0 %v1768_v60 }
 0x208   : > { %v1771_v27 = vmax.f32 %v1422_v28, 0.0  ;;  %v1425_v30 = vpop.f32.mrb[18].mxu1  ;;  %4835 = vmatpush1.bf16.msra.mxu0 %v6432_v45 }
 0x209   : > { %1898 = vst [vmem:[%s6743_s30 + $0x80] sm:$0xff] %v1770_v62  ;;  %v1426_v29 = vadd.f32 %v1425_v30, %v6730_v26  ;;  %v1427_v59 = vpop.f32.mrb[19].mxu1  ;;  %1742 = vmatmul.mubr.f32.gmra.mrb[124].mxu1 %v8366_v6  ;;  %4837 = vmatprep.subr.bf16.mxu0 %v6457_v34  ;;  %v8367_v34 = vmax.f32 %v6545_v44, 0.0 }
 0x20a   : > { %1899 = vst [vmem:[%s6743_s30 + $0x88] sm:$0xff] %v1771_v27  ;;  %v1428_v22 = vadd.f32 %v1427_v59, %v6735_v57  ;;  %2272 = vmatprep.mubr.f32.mxu0 %v1771_v27  ;;  %1747 = vmatprep.mubr.f32.mxu1 %v8332_v54 }
 0x20b   : > { %v1772_v41 = vmax.f32 %v1426_v29, 0.0  ;;  %2273 = vmatmul.mubr.f32.gmra.mrb[80].mxu0 %v1770_v62 }
 0x20c   : > { %v1773_v7 = vmax.f32 %v1428_v22, 0.0  ;;  %v1431_v45 = vpop.f32.mrb[20].mxu1  ;;  %4839 = vmatpush1.bf16.msra.mxu0 %v6467_v25 }
 0x20d   : > { %1900 = vst [vmem:[%s6743_s30 + $0x90] sm:$0xff] %v1772_v41  ;;  %v1432_v49 = vadd.f32 %v1431_v45, %v6730_v26  ;;  %v1433_v40 = vpop.f32.mrb[21].mxu1  ;;  %1748 = vmatmul.mubr.f32.gmra.mrb[126].mxu1 %v8367_v34  ;;  %4841 = vmatprep.subr.bf16.mxu0 %v6492_v8 }
 0x20e   : > { %1901 = vst [vmem:[%s6743_s30 + $0x98] sm:$0xff] %v1773_v7  ;;  %v1434_v54 = vadd.f32 %v1433_v40, %v6735_v57  ;;  %2278 = vmatprep.mubr.f32.mxu0 %v1773_v7 }
 0x20f   : > { %v1774_v63 = vmax.f32 %v1432_v49, 0.0  ;;  %2279 = vmatmul.mubr.f32.gmra.mrb[82].mxu0 %v1772_v41 }
 0x210   : > { %v1775_v19 = vmax.f32 %v1434_v54, 0.0  ;;  %v1437_v13 = vpop.f32.mrb[22].mxu1  ;;  %4843 = vmatpush1.bf16.msra.mxu0 %v6502_v24 }
 0x211   : > { %1902 = vst [vmem:[%s6743_s30 + $0xa0] sm:$0xff] %v1774_v63  ;;  %v1438_v25 = vadd.f32 %v1437_v13, %v6730_v26  ;;  %v1439_v17 = vpop.f32.mrb[23].mxu1  ;;  %4845 = vmatprep.subr.bf16.mxu0 %v6527_v53 }
 0x212   : > { %1903 = vst [vmem:[%s6743_s30 + $0xa8] sm:$0xff] %v1775_v19  ;;  %v1440_v8 = vadd.f32 %v1439_v17, %v6735_v57  ;;  %2284 = vmatprep.mubr.f32.mxu0 %v1775_v19 }
 0x213   : > { %v1776_v44 = vmax.f32 %v1438_v25, 0.0  ;;  %2285 = vmatmul.mubr.f32.gmra.mrb[84].mxu0 %v1774_v63 }
 0x214   : > { %v1777_v39 = vmax.f32 %v1440_v8, 0.0  ;;  %v1443_v33 = vpop.f32.mrb[24].mxu1  ;;  %4847 = vmatpush1.bf16.msra.mxu0 %v8368_v12 }
 0x215   : > { %1904 = vst [vmem:[%s6743_s30 + $0xb0] sm:$0xff] %v1776_v44  ;;  %v1444_v24 = vadd.f32 %v1443_v33, %v6730_v26  ;;  %v1445_v4 = vpop.f32.mrb[25].mxu1  ;;  %4849 = vmatprep.subr.bf16.mxu0 %v6562_v50 }
 0x216   : > { %1905 = vst [vmem:[%s6743_s30 + $0xb8] sm:$0xff] %v1777_v39  ;;  %v1446_v53 = vadd.f32 %v1445_v4, %v6735_v57  ;;  %2290 = vmatprep.mubr.f32.mxu0 %v1777_v39 }
 0x217   : > { %v1778_v23 = vmax.f32 %v1444_v24, 0.0  ;;  %2291 = vmatmul.mubr.f32.gmra.mrb[86].mxu0 %v1776_v44 }
 0x218   : > { %v1779_v20 = vmax.f32 %v1446_v53, 0.0  ;;  %v1449_v48 = vpop.f32.mrb[26].mxu1  ;;  %4851 = vmatpush1.bf16.msra.mxu0 %v6572_v15 }
 0x219   : > { %1906 = vst [vmem:[%s6743_s30 + $0xc0] sm:$0xff] %v1778_v23  ;;  %v1450_v46 = vadd.f32 %v1449_v48, %v6730_v26  ;;  %v1451_v16 = vpop.f32.mrb[27].mxu1  ;;  %4853 = vmatprep.subr.bf16.mxu0 %v6591_v36 }
 0x21a   : > { %1907 = vst [vmem:[%s6743_s30 + $0xc8] sm:$0xff] %v1779_v20  ;;  %v1452_v50 = vadd.f32 %v1451_v16, %v6735_v57  ;;  %2296 = vmatprep.mubr.f32.mxu0 %v1779_v20 }
 0x21b   : > { %v1780_v51 = vmax.f32 %v1450_v46, 0.0  ;;  %2297 = vmatmul.mubr.f32.gmra.mrb[88].mxu0 %v1778_v23 }
 0x21c   : > { %v1781_v52 = vmax.f32 %v1452_v50, 0.0  ;;  %v1455_v9 = vpop.f32.mrb[28].mxu1  ;;  %4855 = vmatpush1.bf16.msra.mxu0 %v6600_v1 }
 0x21d   : > { %1908 = vst [vmem:[%s6743_s30 + $0xd0] sm:$0xff] %v1780_v51  ;;  %v1456_v15 = vadd.f32 %v1455_v9, %v6730_v26  ;;  %v1457_v5 = vpop.f32.mrb[29].mxu1  ;;  %4857 = vmatprep.subr.bf16.mxu0 %v6612_v43 }
 0x21e   : > { %1909 = vst [vmem:[%s6743_s30 + $0xd8] sm:$0xff] %v1781_v52  ;;  %v1458_v36 = vadd.f32 %v1457_v5, %v6735_v57  ;;  %2302 = vmatprep.mubr.f32.mxu0 %v1781_v52  ;;  %2751 = vmatprep.mubr.f32.mxu1 %v1781_v52 }
 0x21f   : > { %v1782_v2 = vmax.f32 %v1456_v15, 0.0  ;;  %2303 = vmatmul.mubr.f32.gmra.mrb[90].mxu0 %v1780_v51  ;;  %2752 = vmatmul.mubr.f32.vlgmr.msra.gmra.mrb[128].mxu1 %v1780_v51 }
 0x220   : > { %v1783_v61 = vmax.f32 %v1458_v36, 0.0  ;;  %v1461_v10 = vpop.f32.mrb[30].mxu1  ;;  %4859 = vmatpush1.bf16.msra.mxu0 %v8369_v55 }
 0x221   : > { %1910 = vst [vmem:[%s6743_s30 + $0xe0] sm:$0xff] %v1782_v2  ;;  %v1462_v1 = vadd.f32 %v1461_v10, %v6730_v26  ;;  %v1463_v32 = vpop.f32.mrb[31].mxu1  ;;  %4861 = vmatprep.subr.bf16.mxu0 %v6633_v56 }
 0x222   : > { %1911 = vst [vmem:[%s6743_s30 + $0xe8] sm:$0xff] %v1783_v61  ;;  %v1464_v43 = vadd.f32 %v1463_v32, %v6735_v57  ;;  %2308 = vmatprep.mubr.f32.mxu0 %v1783_v61  ;;  %2757 = vmatprep.mubr.f32.mxu1 %v1783_v61 }
 0x223   : > { %v1784_v47 = vmax.f32 %v1462_v1, 0.0  ;;  %2309 = vmatmul.mubr.f32.gmra.mrb[92].mxu0 %v1782_v2  ;;  %2758 = vmatmul.mubr.f32.gmra.mrb[130].mxu1 %v1782_v2 }
 0x224   : > { %v1785_v3 = vmax.f32 %v1464_v43, 0.0  ;;  %v1467_v60 = vpop.f32.mrb[32].mxu1  ;;  %4863 = vmatpush1.bf16.msra.mxu0 %v8370_v11 }
 0x225   : > { %1912 = vst [vmem:[%s6743_s30 + $0xf0] sm:$0xff] %v1784_v47  ;;  %v1468_v31 = vadd.f32 %v1467_v60, %v6730_v26  ;;  %v1469_v18 = vpop.f32.mrb[33].mxu1  ;;  %4865 = vmatprep.subr.bf16.mxu0 %v6654_v21 }
 0x226   : > { %1913 = vst [vmem:[%s6743_s30 + $0xf8] sm:$0xff] %v1785_v3  ;;  %v1470_v56 = vadd.f32 %v1469_v18, %v6735_v57  ;;  %2314 = vmatprep.mubr.f32.mxu0 %v1785_v3  ;;  %2763 = vmatprep.mubr.f32.mxu1 %v1785_v3 }
 0x227   : > { %v1786_v14 = vmax.f32 %v1468_v31, 0.0  ;;  %2315 = vmatmul.mubr.f32.gmra.mrb[94].mxu0 %v1784_v47  ;;  %2764 = vmatmul.mubr.f32.gmra.mrb[132].mxu1 %v1784_v47 }
 0x228   : > { %v1787_v0 = vmax.f32 %v1470_v56, 0.0  ;;  %v1473_v28 = vpop.f32.mrb[34].mxu1  ;;  %4867 = vmatpush1.bf16.msra.mxu0 %v6663_v42 }
 0x229   : > { %1914 = vst [vmem:[%s6743_s30 + $0x100] sm:$0xff] %v1786_v14  ;;  %v1474_v62 = vadd.f32 %v1473_v28, %v6730_v26  ;;  %v1475_v27 = vpop.f32.mrb[35].mxu1 }
 0x22a   : > { %1915 = vst [vmem:[%s6743_s30 + $0x108] sm:$0xff] %v1787_v0  ;;  %v1476_v21 = vadd.f32 %v1475_v27, %v6735_v57  ;;  %2320 = vmatprep.mubr.f32.mxu0 %v1787_v0  ;;  %2769 = vmatprep.mubr.f32.mxu1 %v1787_v0 }
 0x22b   : > { %v1788_v30 = vmax.f32 %v1474_v62, 0.0  ;;  %2321 = vmatmul.mubr.f32.gmra.mrb[96].mxu0 %v1786_v14  ;;  %2770 = vmatmul.mubr.f32.gmra.mrb[134].mxu1 %v1786_v14 }
 0x22c   : > { %v1789_v29 = vmax.f32 %v1476_v21, 0.0  ;;  %v1479_v59 = vpop.f32.mrb[36].mxu1 }
 0x22d   : > { %1916 = vst [vmem:[%s6743_s30 + $0x110] sm:$0xff] %v1788_v30  ;;  %v1480_v42 = vadd.f32 %v1479_v59, %v6730_v26  ;;  %v1481_v6 = vpop.f32.mrb[37].mxu1 }
 0x22e   : > { %1917 = vst [vmem:[%s6743_s30 + $0x118] sm:$0xff] %v1789_v29  ;;  %v1482_v22 = vadd.f32 %v1481_v6, %v6735_v57  ;;  %2326 = vmatprep.mubr.f32.mxu0 %v1789_v29  ;;  %2775 = vmatprep.mubr.f32.mxu1 %v1789_v29 }
 0x22f   : > { %v1790_v41 = vmax.f32 %v1480_v42, 0.0  ;;  %2327 = vmatmul.mubr.f32.gmra.mrb[98].mxu0 %v1788_v30  ;;  %2776 = vmatmul.mubr.f32.gmra.mrb[136].mxu1 %v1788_v30 }
 0x230   : > { %v1791_v7 = vmax.f32 %v1482_v22, 0.0  ;;  %v1485_v45 = vpop.f32.mrb[38].mxu1 }
 0x231   : > { %1918 = vst [vmem:[%s6743_s30 + $0x120] sm:$0xff] %v1790_v41  ;;  %v1486_v49 = vadd.f32 %v1485_v45, %v6730_v26  ;;  %v1487_v40 = vpop.f32.mrb[39].mxu1 }
 0x232   : > { %1919 = vst [vmem:[%s6743_s30 + $0x128] sm:$0xff] %v1791_v7  ;;  %v1488_v34 = vadd.f32 %v1487_v40, %v6735_v57  ;;  %2332 = vmatprep.mubr.f32.mxu0 %v1791_v7  ;;  %2781 = vmatprep.mubr.f32.mxu1 %v1791_v7 }
 0x233   : > { %v1792_v54 = vmax.f32 %v1486_v49, 0.0  ;;  %2333 = vmatmul.mubr.f32.gmra.mrb[100].mxu0 %v1790_v41  ;;  %2782 = vmatmul.mubr.f32.gmra.mrb[138].mxu1 %v1790_v41 }
 0x234   : > { %v1793_v63 = vmax.f32 %v1488_v34, 0.0  ;;  %v1491_v19 = vpop.f32.mrb[40].mxu1 }
 0x235   : > { %1920 = vst [vmem:[%s6743_s30 + $0x130] sm:$0xff] %v1792_v54  ;;  %v1492_v13 = vadd.f32 %v1491_v19, %v6730_v26  ;;  %v1493_v25 = vpop.f32.mrb[41].mxu1 }
 0x236   : > { %1921 = vst [vmem:[%s6743_s30 + $0x138] sm:$0xff] %v1793_v63  ;;  %v1494_v17 = vadd.f32 %v1493_v25, %v6735_v57  ;;  %2338 = vmatprep.mubr.f32.mxu0 %v1793_v63  ;;  %2787 = vmatprep.mubr.f32.mxu1 %v1793_v63 }
 0x237   : > { %v1794_v8 = vmax.f32 %v1492_v13, 0.0  ;;  %2339 = vmatmul.mubr.f32.gmra.mrb[102].mxu0 %v1792_v54  ;;  %2788 = vmatmul.mubr.f32.gmra.mrb[140].mxu1 %v1792_v54 }
 0x238   : > { %v1795_v44 = vmax.f32 %v1494_v17, 0.0  ;;  %v1497_v39 = vpop.f32.mrb[42].mxu1 }
 0x239   : > { %1922 = vst [vmem:[%s6743_s30 + $0x140] sm:$0xff] %v1794_v8  ;;  %v1498_v33 = vadd.f32 %v1497_v39, %v6730_v26  ;;  %v1499_v12 = vpop.f32.mrb[43].mxu1 }
 0x23a   : > { %1923 = vst [vmem:[%s6743_s30 + $0x148] sm:$0xff] %v1795_v44  ;;  %v1500_v24 = vadd.f32 %v1499_v12, %v6735_v57  ;;  %2344 = vmatprep.mubr.f32.mxu0 %v1795_v44  ;;  %2793 = vmatprep.mubr.f32.mxu1 %v1795_v44 }
 0x23b   : > { %v1796_v4 = vmax.f32 %v1498_v33, 0.0  ;;  %2345 = vmatmul.mubr.f32.gmra.mrb[104].mxu0 %v1794_v8  ;;  %2794 = vmatmul.mubr.f32.gmra.mrb[142].mxu1 %v1794_v8 }
 0x23c   : > { %v1797_v53 = vmax.f32 %v1500_v24, 0.0  ;;  %v1503_v23 = vpop.f32.mrb[44].mxu1 }
 0x23d   : > { %1924 = vst [vmem:[%s6743_s30 + $0x150] sm:$0xff] %v1796_v4  ;;  %v1504_v20 = vadd.f32 %v1503_v23, %v6730_v26  ;;  %v1505_v48 = vpop.f32.mrb[45].mxu1 }
 0x23e   : > { %1925 = vst [vmem:[%s6743_s30 + $0x158] sm:$0xff] %v1797_v53  ;;  %v1506_v46 = vadd.f32 %v1505_v48, %v6735_v57  ;;  %2350 = vmatprep.mubr.f32.mxu0 %v1797_v53  ;;  %2799 = vmatprep.mubr.f32.mxu1 %v1797_v53 }
 0x23f   : > { %v1798_v16 = vmax.f32 %v1504_v20, 0.0  ;;  %2351 = vmatmul.mubr.f32.gmra.mrb[106].mxu0 %v1796_v4  ;;  %2800 = vmatmul.mubr.f32.gmra.mrb[144].mxu1 %v1796_v4 }
 0x240   : > { %v1799_v50 = vmax.f32 %v1506_v46, 0.0  ;;  %v1509_v51 = vpop.f32.mrb[46].mxu1 }
 0x241   : > { %1926 = vst [vmem:[%s6743_s30 + $0x160] sm:$0xff] %v1798_v16  ;;  %v1510_v52 = vadd.f32 %v1509_v51, %v6730_v26  ;;  %v1511_v9 = vpop.f32.mrb[47].mxu1 }
 0x242   : > { %1927 = vst [vmem:[%s6743_s30 + $0x168] sm:$0xff] %v1799_v50  ;;  %v1512_v15 = vadd.f32 %v1511_v9, %v6735_v57  ;;  %2356 = vmatprep.mubr.f32.mxu0 %v1799_v50  ;;  %2805 = vmatprep.mubr.f32.mxu1 %v1799_v50 }
 0x243   : > { %v1800_v5 = vmax.f32 %v1510_v52, 0.0  ;;  %2357 = vmatmul.mubr.f32.gmra.mrb[108].mxu0 %v1798_v16  ;;  %2806 = vmatmul.mubr.f32.gmra.mrb[146].mxu1 %v1798_v16 }
 0x244   : > { %v1801_v36 = vmax.f32 %v1512_v15, 0.0  ;;  %v1515_v2 = vpop.f32.mrb[48].mxu1 }
 0x245   : > { %1928 = vst [vmem:[%s6743_s30 + $0x170] sm:$0xff] %v1800_v5  ;;  %v1516_v61 = vadd.f32 %v1515_v2, %v6730_v26  ;;  %v1517_v10 = vpop.f32.mrb[49].mxu1 }
 0x246   : > { %1929 = vst [vmem:[%s6743_s30 + $0x178] sm:$0xff] %v1801_v36  ;;  %v1518_v55 = vadd.f32 %v1517_v10, %v6735_v57  ;;  %2362 = vmatprep.mubr.f32.mxu0 %v1801_v36  ;;  %2811 = vmatprep.mubr.f32.mxu1 %v1801_v36 }
 0x247   : > { %v1802_v1 = vmax.f32 %v1516_v61, 0.0  ;;  %2363 = vmatmul.mubr.f32.gmra.mrb[110].mxu0 %v1800_v5  ;;  %2812 = vmatmul.mubr.f32.gmra.mrb[148].mxu1 %v1800_v5 }
 0x248   : > { %v1803_v32 = vmax.f32 %v1518_v55, 0.0  ;;  %v1521_v43 = vpop.f32.mrb[50].mxu1 }
 0x249   : > { %1930 = vst [vmem:[%s6743_s30 + $0x180] sm:$0xff] %v1802_v1  ;;  %v1522_v47 = vadd.f32 %v1521_v43, %v6730_v26  ;;  %v1523_v3 = vpop.f32.mrb[51].mxu1 }
 0x24a   : > { %1931 = vst [vmem:[%s6743_s30 + $0x188] sm:$0xff] %v1803_v32  ;;  %v1524_v60 = vadd.f32 %v1523_v3, %v6735_v57  ;;  %2368 = vmatprep.mubr.f32.mxu0 %v1803_v32  ;;  %2817 = vmatprep.mubr.f32.mxu1 %v1803_v32 }
 0x24b   : > { %v1804_v11 = vmax.f32 %v1522_v47, 0.0  ;;  %2369 = vmatmul.mubr.f32.gmra.mrb[112].mxu0 %v1802_v1  ;;  %2818 = vmatmul.mubr.f32.gmra.mrb[150].mxu1 %v1802_v1 }
 0x24c   : > { %v1805_v31 = vmax.f32 %v1524_v60, 0.0  ;;  %v1527_v18 = vpop.f32.mrb[52].mxu1 }
 0x24d   : > { %1932 = vst [vmem:[%s6743_s30 + $0x190] sm:$0xff] %v1804_v11  ;;  %v1528_v56 = vadd.f32 %v1527_v18, %v6730_v26  ;;  %v1529_v14 = vpop.f32.mrb[53].mxu1 }
 0x24e   : > { %1933 = vst [vmem:[%s6743_s30 + $0x198] sm:$0xff] %v1805_v31  ;;  %v1530_v0 = vadd.f32 %v1529_v14, %v6735_v57  ;;  %2374 = vmatprep.mubr.f32.mxu0 %v1805_v31  ;;  %2823 = vmatprep.mubr.f32.mxu1 %v1805_v31 }
 0x24f   : > { %v1806_v28 = vmax.f32 %v1528_v56, 0.0  ;;  %2375 = vmatmul.mubr.f32.gmra.mrb[114].mxu0 %v1804_v11  ;;  %2824 = vmatmul.mubr.f32.gmra.mrb[152].mxu1 %v1804_v11 }
 0x250   : > { %v1807_v62 = vmax.f32 %v1530_v0, 0.0  ;;  %v1533_v27 = vpop.f32.mrb[54].mxu1 }
 0x251   : > { %1934 = vst [vmem:[%s6743_s30 + $0x1a0] sm:$0xff] %v1806_v28  ;;  %v1534_v21 = vadd.f32 %v1533_v27, %v6730_v26  ;;  %v1535_v30 = vpop.f32.mrb[55].mxu1 }
 0x252   : > { %1935 = vst [vmem:[%s6743_s30 + $0x1a8] sm:$0xff] %v1807_v62  ;;  %v1536_v29 = vadd.f32 %v1535_v30, %v6735_v57  ;;  %2380 = vmatprep.mubr.f32.mxu0 %v1807_v62  ;;  %2829 = vmatprep.mubr.f32.mxu1 %v1807_v62 }
 0x253   : > { %v1808_v59 = vmax.f32 %v1534_v21, 0.0  ;;  %2381 = vmatmul.mubr.f32.gmra.mrb[116].mxu0 %v1806_v28  ;;  %2830 = vmatmul.mubr.f32.gmra.mrb[154].mxu1 %v1806_v28 }
 0x254   : > { %v1809_v42 = vmax.f32 %v1536_v29, 0.0  ;;  %v1539_v6 = vpop.f32.mrb[56].mxu1 }
 0x255   : > { %1936 = vst [vmem:[%s6743_s30 + $0x1b0] sm:$0xff] %v1808_v59  ;;  %v1540_v22 = vadd.f32 %v1539_v6, %v6730_v26  ;;  %v1541_v41 = vpop.f32.mrb[57].mxu1 }
 0x256   : > { %1937 = vst [vmem:[%s6743_s30 + $0x1b8] sm:$0xff] %v1809_v42  ;;  %v1542_v7 = vadd.f32 %v1541_v41, %v6735_v57  ;;  %2386 = vmatprep.mubr.f32.mxu0 %v1809_v42  ;;  %2835 = vmatprep.mubr.f32.mxu1 %v1809_v42 }
 0x257   : > { %v1810_v45 = vmax.f32 %v1540_v22, 0.0  ;;  %2387 = vmatmul.mubr.f32.gmra.mrb[118].mxu0 %v1808_v59  ;;  %2836 = vmatmul.mubr.f32.gmra.mrb[156].mxu1 %v1808_v59 }
 0x258   : > { %v1811_v49 = vmax.f32 %v1542_v7, 0.0  ;;  %v1545_v40 = vpop.f32.mrb[58].mxu1 }
 0x259   : > { %1938 = vst [vmem:[%s6743_s30 + $0x1c0] sm:$0xff] %v1810_v45  ;;  %v1546_v34 = vadd.f32 %v1545_v40, %v6730_v26  ;;  %v1547_v54 = vpop.f32.mrb[59].mxu1 }
 0x25a   : > { %1939 = vst [vmem:[%s6743_s30 + $0x1c8] sm:$0xff] %v1811_v49  ;;  %v1548_v63 = vadd.f32 %v1547_v54, %v6735_v57  ;;  %2392 = vmatprep.mubr.f32.mxu0 %v1811_v49  ;;  %2841 = vmatprep.mubr.f32.mxu1 %v1811_v49 }
 0x25b   : > { %v1812_v19 = vmax.f32 %v1546_v34, 0.0  ;;  %2393 = vmatmul.mubr.f32.gmra.mrb[120].mxu0 %v1810_v45  ;;  %2842 = vmatmul.mubr.f32.gmra.mrb[158].mxu1 %v1810_v45 }
 0x25c   : > { %v1813_v13 = vmax.f32 %v1548_v63, 0.0  ;;  %v1551_v25 = vpop.f32.mrb[60].mxu1 }
 0x25d   : > { %1940 = vst [vmem:[%s6743_s30 + $0x1d0] sm:$0xff] %v1812_v19  ;;  %v1552_v17 = vadd.f32 %v1551_v25, %v6730_v26  ;;  %v1553_v8 = vpop.f32.mrb[61].mxu1 }
 0x25e   : > { %1941 = vst [vmem:[%s6743_s30 + $0x1d8] sm:$0xff] %v1813_v13  ;;  %v1554_v44 = vadd.f32 %v1553_v8, %v6735_v57  ;;  %2398 = vmatprep.mubr.f32.mxu0 %v1813_v13  ;;  %2847 = vmatprep.mubr.f32.mxu1 %v1813_v13 }
 0x25f   : > { %v1814_v39 = vmax.f32 %v1552_v17, 0.0  ;;  %2399 = vmatmul.mubr.f32.gmra.mrb[122].mxu0 %v1812_v19  ;;  %2848 = vmatmul.mubr.f32.gmra.mrb[160].mxu1 %v1812_v19 }
 0x260   : > { %v1815_v33 = vmax.f32 %v1554_v44, 0.0  ;;  %v1557_v12 = vpop.f32.mrb[62].mxu1 }
 0x261   : > { %1942 = vst [vmem:[%s6743_s30 + $0x1e0] sm:$0xff] %v1814_v39  ;;  %v1558_v24 = vadd.f32 %v1557_v12, %v6730_v26  ;;  %v1559_v4 = vpop.f32.mrb[63].mxu1 }
 0x262   : > { %1943 = vst [vmem:[%s6743_s30 + $0x1e8] sm:$0xff] %v1815_v33  ;;  %v1560_v53 = vadd.f32 %v1559_v4, %v6735_v57  ;;  %2404 = vmatprep.mubr.f32.mxu0 %v1815_v33  ;;  %2853 = vmatprep.mubr.f32.mxu1 %v1815_v33 }
 0x263   : > { %v1816_v23 = vmax.f32 %v1558_v24, 0.0  ;;  %2405 = vmatmul.mubr.f32.gmra.mrb[124].mxu0 %v1814_v39  ;;  %2854 = vmatmul.mubr.f32.gmra.mrb[162].mxu1 %v1814_v39 }
 0x264   : > { %v1817_v20 = vmax.f32 %v1560_v53, 0.0  ;;  %v1563_v48 = vpop.f32.mrb[64].mxu1 }
 0x265   : > { %1944 = vst [vmem:[%s6743_s30 + $0x1f0] sm:$0xff] %v1816_v23  ;;  %v1564_v46 = vadd.f32 %v1563_v48, %v6730_v26  ;;  %v1565_v16 = vpop.f32.mrb[65].mxu1 }
 0x266   : > { %1945 = vst [vmem:[%s6743_s30 + $0x1f8] sm:$0xff] %v1817_v20  ;;  %v1566_v50 = vadd.f32 %v1565_v16, %v6735_v57  ;;  %2410 = vmatprep.mubr.f32.mxu0 %v1817_v20  ;;  %2859 = vmatprep.mubr.f32.mxu1 %v1817_v20 }
 0x267   : > { %v1818_v51 = vmax.f32 %v1564_v46, 0.0  ;;  %2411 = vmatmul.mubr.f32.gmra.mrb[126].mxu0 %v1816_v23  ;;  %2860 = vmatmul.mubr.f32.gmra.mrb[164].mxu1 %v1816_v23 }
 0x268   : > { %v1819_v52 = vmax.f32 %v1566_v50, 0.0  ;;  %v1569_v9 = vpop.f32.mrb[66].mxu1 }
 0x269   : > { %1946 = vst [vmem:[%s6743_s30 + $0x200] sm:$0xff] %v1818_v51  ;;  %v1570_v15 = vadd.f32 %v1569_v9, %v6730_v26  ;;  %v1571_v5 = vpop.f32.mrb[67].mxu1 }
 0x26a   : > { %1947 = vst [vmem:[%s6743_s30 + $0x208] sm:$0xff] %v1819_v52  ;;  %v1572_v36 = vadd.f32 %v1571_v5, %v6735_v57  ;;  %2416 = vmatprep.mubr.f32.mxu0 %v1819_v52  ;;  %2865 = vmatprep.mubr.f32.mxu1 %v1819_v52 }
 0x26b   : > { %v1820_v2 = vmax.f32 %v1570_v15, 0.0  ;;  %2417 = vmatmul.mubr.f32.gmra.mrb[128].mxu0 %v1818_v51  ;;  %2866 = vmatmul.mubr.f32.gmra.mrb[166].mxu1 %v1818_v51 }
 0x26c   : > { %v1821_v61 = vmax.f32 %v1572_v36, 0.0  ;;  %v1575_v10 = vpop.f32.mrb[68].mxu1 }
 0x26d   : > { %1948 = vst [vmem:[%s6743_s30 + $0x210] sm:$0xff] %v1820_v2  ;;  %v1576_v55 = vadd.f32 %v1575_v10, %v6730_v26  ;;  %v1577_v1 = vpop.f32.mrb[69].mxu1 }
 0x26e   : > { %1949 = vst [vmem:[%s6743_s30 + $0x218] sm:$0xff] %v1821_v61  ;;  %v1578_v32 = vadd.f32 %v1577_v1, %v6735_v57  ;;  %2422 = vmatprep.mubr.f32.mxu0 %v1821_v61  ;;  %2871 = vmatprep.mubr.f32.mxu1 %v1821_v61 }
 0x26f   : > { %v1822_v43 = vmax.f32 %v1576_v55, 0.0  ;;  %2423 = vmatmul.mubr.f32.gmra.mrb[130].mxu0 %v1820_v2  ;;  %2872 = vmatmul.mubr.f32.gmra.mrb[168].mxu1 %v1820_v2 }
 0x270   : > { %v1823_v47 = vmax.f32 %v1578_v32, 0.0  ;;  %v1581_v3 = vpop.f32.mrb[70].mxu1 }
 0x271   : > { %1950 = vst [vmem:[%s6743_s30 + $0x220] sm:$0xff] %v1822_v43  ;;  %v1582_v60 = vadd.f32 %v1581_v3, %v6730_v26  ;;  %v1583_v11 = vpop.f32.mrb[71].mxu1 }
 0x272   : > { %1951 = vst [vmem:[%s6743_s30 + $0x228] sm:$0xff] %v1823_v47  ;;  %v1584_v31 = vadd.f32 %v1583_v11, %v6735_v57  ;;  %2428 = vmatprep.mubr.f32.mxu0 %v1823_v47  ;;  %2877 = vmatprep.mubr.f32.mxu1 %v1823_v47 }
 0x273   : > { %v1824_v18 = vmax.f32 %v1582_v60, 0.0  ;;  %2429 = vmatmul.mubr.f32.gmra.mrb[132].mxu0 %v1822_v43  ;;  %2878 = vmatmul.mubr.f32.gmra.mrb[170].mxu1 %v1822_v43 }
 0x274   : > { %v1825_v56 = vmax.f32 %v1584_v31, 0.0  ;;  %v1587_v14 = vpop.f32.mrb[72].mxu1 }
 0x275   : > { %1952 = vst [vmem:[%s6743_s30 + $0x230] sm:$0xff] %v1824_v18  ;;  %v1588_v0 = vadd.f32 %v1587_v14, %v6730_v26  ;;  %v1589_v28 = vpop.f32.mrb[73].mxu1 }
 0x276   : > { %1953 = vst [vmem:[%s6743_s30 + $0x238] sm:$0xff] %v1825_v56  ;;  %v1590_v62 = vadd.f32 %v1589_v28, %v6735_v57  ;;  %2434 = vmatprep.mubr.f32.mxu0 %v1825_v56  ;;  %2883 = vmatprep.mubr.f32.mxu1 %v1825_v56 }
 0x277   : > { %v1826_v27 = vmax.f32 %v1588_v0, 0.0  ;;  %2435 = vmatmul.mubr.f32.gmra.mrb[134].mxu0 %v1824_v18  ;;  %2884 = vmatmul.mubr.f32.gmra.mrb[172].mxu1 %v1824_v18 }
 0x278   : > { %v1827_v21 = vmax.f32 %v1590_v62, 0.0  ;;  %v1593_v30 = vpop.f32.mrb[74].mxu1 }
 0x279   : > { %1954 = vst [vmem:[%s6743_s30 + $0x240] sm:$0xff] %v1826_v27  ;;  %v1594_v29 = vadd.f32 %v1593_v30, %v6730_v26  ;;  %v1595_v59 = vpop.f32.mrb[75].mxu1 }
 0x27a   : > { %1955 = vst [vmem:[%s6743_s30 + $0x248] sm:$0xff] %v1827_v21  ;;  %v1596_v42 = vadd.f32 %v1595_v59, %v6735_v57  ;;  %2440 = vmatprep.mubr.f32.mxu0 %v1827_v21  ;;  %2889 = vmatprep.mubr.f32.mxu1 %v1827_v21 }
 0x27b   : > { %v1828_v6 = vmax.f32 %v1594_v29, 0.0  ;;  %2441 = vmatmul.mubr.f32.gmra.mrb[136].mxu0 %v1826_v27  ;;  %2890 = vmatmul.mubr.f32.gmra.mrb[174].mxu1 %v1826_v27 }
 0x27c   : > { %v1829_v22 = vmax.f32 %v1596_v42, 0.0  ;;  %v1599_v41 = vpop.f32.mrb[76].mxu1 }
 0x27d   : > { %1956 = vst [vmem:[%s6743_s30 + $0x250] sm:$0xff] %v1828_v6  ;;  %v1600_v7 = vadd.f32 %v1599_v41, %v6730_v26  ;;  %v1601_v45 = vpop.f32.mrb[77].mxu1 }
 0x27e   : > { %1957 = vst [vmem:[%s6743_s30 + $0x258] sm:$0xff] %v1829_v22  ;;  %v1602_v49 = vadd.f32 %v1601_v45, %v6735_v57  ;;  %2446 = vmatprep.mubr.f32.mxu0 %v1829_v22  ;;  %2895 = vmatprep.mubr.f32.mxu1 %v1829_v22 }
 0x27f   : > { %v1830_v40 = vmax.f32 %v1600_v7, 0.0  ;;  %2447 = vmatmul.mubr.f32.gmra.mrb[138].mxu0 %v1828_v6  ;;  %2896 = vmatmul.mubr.f32.gmra.mrb[176].mxu1 %v1828_v6 }
 0x280   : > { %v1831_v34 = vmax.f32 %v1602_v49, 0.0  ;;  %v1605_v54 = vpop.f32.mrb[78].mxu1 }
 0x281   : > { %1958 = vst [vmem:[%s6743_s30 + $0x260] sm:$0xff] %v1830_v40  ;;  %v1606_v63 = vadd.f32 %v1605_v54, %v6730_v26  ;;  %v1607_v19 = vpop.f32.mrb[79].mxu1 }
 0x282   : > { %1959 = vst [vmem:[%s6743_s30 + $0x268] sm:$0xff] %v1831_v34  ;;  %v1608_v13 = vadd.f32 %v1607_v19, %v6735_v57  ;;  %2452 = vmatprep.mubr.f32.mxu0 %v1831_v34  ;;  %2901 = vmatprep.mubr.f32.mxu1 %v1831_v34 }
 0x283   : > { %v1832_v25 = vmax.f32 %v1606_v63, 0.0  ;;  %2453 = vmatmul.mubr.f32.gmra.mrb[140].mxu0 %v1830_v40  ;;  %2902 = vmatmul.mubr.f32.gmra.mrb[178].mxu1 %v1830_v40 }
 0x284   : > { %v1833_v17 = vmax.f32 %v1608_v13, 0.0  ;;  %v1611_v8 = vpop.f32.mrb[80].mxu1 }
 0x285   : > { %1960 = vst [vmem:[%s6743_s30 + $0x270] sm:$0xff] %v1832_v25  ;;  %v1612_v44 = vadd.f32 %v1611_v8, %v6730_v26  ;;  %v1613_v39 = vpop.f32.mrb[81].mxu1 }
 0x286   : > { %1961 = vst [vmem:[%s6743_s30 + $0x278] sm:$0xff] %v1833_v17  ;;  %v1614_v33 = vadd.f32 %v1613_v39, %v6735_v57  ;;  %2458 = vmatprep.mubr.f32.mxu0 %v1833_v17  ;;  %2907 = vmatprep.mubr.f32.mxu1 %v1833_v17 }
 0x287   : > { %v1834_v12 = vmax.f32 %v1612_v44, 0.0  ;;  %2459 = vmatmul.mubr.f32.gmra.mrb[142].mxu0 %v1832_v25  ;;  %2908 = vmatmul.mubr.f32.gmra.mrb[180].mxu1 %v1832_v25 }
 0x288   : > { %v1835_v24 = vmax.f32 %v1614_v33, 0.0  ;;  %v1617_v4 = vpop.f32.mrb[82].mxu1 }
 0x289   : > { %1962 = vst [vmem:[%s6743_s30 + $0x280] sm:$0xff] %v1834_v12  ;;  %v1618_v53 = vadd.f32 %v1617_v4, %v6730_v26  ;;  %v1619_v23 = vpop.f32.mrb[83].mxu1 }
 0x28a   : > { %1963 = vst [vmem:[%s6743_s30 + $0x288] sm:$0xff] %v1835_v24  ;;  %v1620_v20 = vadd.f32 %v1619_v23, %v6735_v57  ;;  %2464 = vmatprep.mubr.f32.mxu0 %v1835_v24  ;;  %2913 = vmatprep.mubr.f32.mxu1 %v1835_v24 }
 0x28b   : > { %v1836_v48 = vmax.f32 %v1618_v53, 0.0  ;;  %2465 = vmatmul.mubr.f32.gmra.mrb[144].mxu0 %v1834_v12  ;;  %2914 = vmatmul.mubr.f32.gmra.mrb[182].mxu1 %v1834_v12 }
 0x28c   : > { %v1837_v46 = vmax.f32 %v1620_v20, 0.0  ;;  %v1623_v16 = vpop.f32.mrb[84].mxu1 }
 0x28d   : > { %1964 = vst [vmem:[%s6743_s30 + $0x290] sm:$0xff] %v1836_v48  ;;  %v1624_v50 = vadd.f32 %v1623_v16, %v6730_v26  ;;  %v1625_v51 = vpop.f32.mrb[85].mxu1 }
 0x28e   : > { %1965 = vst [vmem:[%s6743_s30 + $0x298] sm:$0xff] %v1837_v46  ;;  %v1626_v52 = vadd.f32 %v1625_v51, %v6735_v57  ;;  %2470 = vmatprep.mubr.f32.mxu0 %v1837_v46  ;;  %2919 = vmatprep.mubr.f32.mxu1 %v1837_v46 }
 0x28f   : > { %v1838_v9 = vmax.f32 %v1624_v50, 0.0  ;;  %2471 = vmatmul.mubr.f32.gmra.mrb[146].mxu0 %v1836_v48  ;;  %2920 = vmatmul.mubr.f32.gmra.mrb[184].mxu1 %v1836_v48 }
 0x290   : > { %v1839_v15 = vmax.f32 %v1626_v52, 0.0  ;;  %v1629_v5 = vpop.f32.mrb[86].mxu1 }
 0x291   : > { %1966 = vst [vmem:[%s6743_s30 + $0x2a0] sm:$0xff] %v1838_v9  ;;  %v1630_v36 = vadd.f32 %v1629_v5, %v6730_v26  ;;  %v1631_v2 = vpop.f32.mrb[87].mxu1 }
 0x292   : > { %1967 = vst [vmem:[%s6743_s30 + $0x2a8] sm:$0xff] %v1839_v15  ;;  %v1632_v61 = vadd.f32 %v1631_v2, %v6735_v57  ;;  %2476 = vmatprep.mubr.f32.mxu0 %v1839_v15  ;;  %2925 = vmatprep.mubr.f32.mxu1 %v1839_v15 }
 0x293   : > { %v1840_v10 = vmax.f32 %v1630_v36, 0.0  ;;  %2477 = vmatmul.mubr.f32.gmra.mrb[148].mxu0 %v1838_v9  ;;  %2926 = vmatmul.mubr.f32.gmra.mrb[186].mxu1 %v1838_v9 }
 0x294   : > { %v1841_v55 = vmax.f32 %v1632_v61, 0.0  ;;  %v1635_v1 = vpop.f32.mrb[88].mxu1  ;;  %v7016_v61 = vld [vmem:[%s8252_s6] sm:$0xf] }
 0x295   : > { %1968 = vst [vmem:[%s6743_s30 + $0x2b0] sm:$0xff] %v1840_v10  ;;  %v1636_v32 = vadd.f32 %v1635_v1, %v6730_v26  ;;  %v1637_v43 = vpop.f32.mrb[89].mxu1 }
 0x296   : > { %1969 = vst [vmem:[%s6743_s30 + $0x2b8] sm:$0xff] %v1841_v55  ;;  %v1638_v47 = vadd.f32 %v1637_v43, %v6735_v57  ;;  %2482 = vmatprep.mubr.f32.mxu0 %v1841_v55  ;;  %2931 = vmatprep.mubr.f32.mxu1 %v1841_v55  ;;  %v7025_v43 = vrot.slane %v7016_v61, %v1297_v37 }
 0x297   : > { %v1842_v3 = vmax.f32 %v1636_v32, 0.0  ;;  %2483 = vmatmul.mubr.f32.gmra.mrb[150].mxu0 %v1840_v10  ;;  %2932 = vmatmul.mubr.f32.gmra.mrb[188].mxu1 %v1840_v10 }
 0x298   : > { %v1843_v60 = vmax.f32 %v1638_v47, 0.0  ;;  %v1641_v11 = vpop.f32.mrb[90].mxu1 }
 0x299   : > { %1970 = vst [vmem:[%s6743_s30 + $0x2c0] sm:$0xff] %v1842_v3  ;;  %v1642_v31 = vadd.f32 %v1641_v11, %v6730_v26  ;;  %v1643_v18 = vpop.f32.mrb[91].mxu1 }
 0x29a   : > { %1971 = vst [vmem:[%s6743_s30 + $0x2c8] sm:$0xff] %v1843_v60  ;;  %v1644_v56 = vadd.f32 %v1643_v18, %v6735_v57  ;;  %2488 = vmatprep.mubr.f32.mxu0 %v1843_v60  ;;  %2937 = vmatprep.mubr.f32.mxu1 %v1843_v60  ;;  %v7030_v60 = vrot.slane %v7016_v61, %v1301_v38 }
 0x29b   : > { %v1844_v14 = vmax.f32 %v1642_v31, 0.0  ;;  %2489 = vmatmul.mubr.f32.gmra.mrb[152].mxu0 %v1842_v3  ;;  %2938 = vmatmul.mubr.f32.gmra.mrb[190].mxu1 %v1842_v3 }
 0x29c   : > { %v1845_v0 = vmax.f32 %v1644_v56, 0.0  ;;  %v1647_v28 = vpop.f32.mrb[92].mxu1 }
 0x29d   : > { %1972 = vst [vmem:[%s6743_s30 + $0x2d0] sm:$0xff] %v1844_v14  ;;  %v1648_v62 = vadd.f32 %v1647_v28, %v6730_v26  ;;  %v1649_v27 = vpop.f32.mrb[93].mxu1 }
 0x29e   : > { %1973 = vst [vmem:[%s6743_s30 + $0x2d8] sm:$0xff] %v1845_v0  ;;  %v1650_v21 = vadd.f32 %v1649_v27, %v6735_v57  ;;  %2494 = vmatprep.mubr.f32.mxu0 %v1845_v0  ;;  %2943 = vmatprep.mubr.f32.mxu1 %v1845_v0 }
 0x29f   : > { %v1846_v30 = vmax.f32 %v1648_v62, 0.0  ;;  %2495 = vmatmul.mubr.f32.gmra.mrb[154].mxu0 %v1844_v14  ;;  %2944 = vmatmul.mubr.f32.gmra.mrb[192].mxu1 %v1844_v14 }
 0x2a0   : > { %v1847_v29 = vmax.f32 %v1650_v21, 0.0  ;;  %v1653_v59 = vpop.f32.mrb[94].mxu1 }
 0x2a1   : > { %1974 = vst [vmem:[%s6743_s30 + $0x2e0] sm:$0xff] %v1846_v30  ;;  %v1654_v42 = vadd.f32 %v1653_v59, %v6730_v26  ;;  %v1655_v6 = vpop.f32.mrb[95].mxu1 }
 0x2a2   : > { %1975 = vst [vmem:[%s6743_s30 + $0x2e8] sm:$0xff] %v1847_v29  ;;  %v1656_v22 = vadd.f32 %v1655_v6, %v6735_v57  ;;  %2500 = vmatprep.mubr.f32.mxu0 %v1847_v29  ;;  %2949 = vmatprep.mubr.f32.mxu1 %v1847_v29 }
 0x2a3   : > { %v1848_v41 = vmax.f32 %v1654_v42, 0.0  ;;  %2501 = vmatmul.mubr.f32.gmra.mrb[156].mxu0 %v1846_v30  ;;  %2950 = vmatmul.mubr.f32.gmra.mrb[194].mxu1 %v1846_v30 }
 0x2a4   : > { %v1849_v7 = vmax.f32 %v1656_v22, 0.0  ;;  %v1659_v45 = vpop.f32.mrb[96].mxu1 }
 0x2a5   : > { %1976 = vst [vmem:[%s6743_s30 + $0x2f0] sm:$0xff] %v1848_v41  ;;  %v1660_v49 = vadd.f32 %v1659_v45, %v6730_v26  ;;  %v1661_v40 = vpop.f32.mrb[97].mxu1 }
 0x2a6   : > { %1977 = vst [vmem:[%s6743_s30 + $0x2f8] sm:$0xff] %v1849_v7  ;;  %v1662_v34 = vadd.f32 %v1661_v40, %v6735_v57  ;;  %2506 = vmatprep.mubr.f32.mxu0 %v1849_v7  ;;  %2955 = vmatprep.mubr.f32.mxu1 %v1849_v7 }
 0x2a7   : > { %v1850_v54 = vmax.f32 %v1660_v49, 0.0  ;;  %2507 = vmatmul.mubr.f32.gmra.mrb[158].mxu0 %v1848_v41  ;;  %2956 = vmatmul.mubr.f32.gmra.mrb[196].mxu1 %v1848_v41 }
 0x2a8   : > { %v1851_v63 = vmax.f32 %v1662_v34, 0.0  ;;  %v1665_v19 = vpop.f32.mrb[98].mxu1 }
 0x2a9   : > { %1978 = vst [vmem:[%s6743_s30 + $0x300] sm:$0xff] %v1850_v54  ;;  %v1666_v13 = vadd.f32 %v1665_v19, %v6730_v26  ;;  %v1667_v25 = vpop.f32.mrb[99].mxu1 }
 0x2aa   : > { %1979 = vst [vmem:[%s6743_s30 + $0x308] sm:$0xff] %v1851_v63  ;;  %v1668_v17 = vadd.f32 %v1667_v25, %v6735_v57  ;;  %2512 = vmatprep.mubr.f32.mxu0 %v1851_v63  ;;  %2961 = vmatprep.mubr.f32.mxu1 %v1851_v63 }
 0x2ab   : > { %v1852_v8 = vmax.f32 %v1666_v13, 0.0  ;;  %2513 = vmatmul.mubr.f32.gmra.mrb[160].mxu0 %v1850_v54  ;;  %2962 = vmatmul.mubr.f32.gmra.mrb[198].mxu1 %v1850_v54 }
 0x2ac   : > { %v1853_v44 = vmax.f32 %v1668_v17, 0.0  ;;  %v1671_v39 = vpop.f32.mrb[100].mxu1 }
 0x2ad   : > { %1980 = vst [vmem:[%s6743_s30 + $0x310] sm:$0xff] %v1852_v8  ;;  %v1672_v33 = vadd.f32 %v1671_v39, %v6730_v26  ;;  %v1673_v12 = vpop.f32.mrb[101].mxu1 }
 0x2ae   : > { %1981 = vst [vmem:[%s6743_s30 + $0x318] sm:$0xff] %v1853_v44  ;;  %v1674_v24 = vadd.f32 %v1673_v12, %v6735_v57  ;;  %2518 = vmatprep.mubr.f32.mxu0 %v1853_v44  ;;  %2967 = vmatprep.mubr.f32.mxu1 %v1853_v44 }
 0x2af   : > { %v1854_v4 = vmax.f32 %v1672_v33, 0.0  ;;  %2519 = vmatmul.mubr.f32.gmra.mrb[162].mxu0 %v1852_v8  ;;  %2968 = vmatmul.mubr.f32.gmra.mrb[200].mxu1 %v1852_v8 }
 0x2b0   : > { %v1855_v53 = vmax.f32 %v1674_v24, 0.0  ;;  %v1677_v23 = vpop.f32.mrb[102].mxu1 }
 0x2b1   : > { %1982 = vst [vmem:[%s6743_s30 + $0x320] sm:$0xff] %v1854_v4  ;;  %v1678_v20 = vadd.f32 %v1677_v23, %v6730_v26  ;;  %v1679_v48 = vpop.f32.mrb[103].mxu1 }
 0x2b2   : > { %1983 = vst [vmem:[%s6743_s30 + $0x328] sm:$0xff] %v1855_v53  ;;  %v1680_v46 = vadd.f32 %v1679_v48, %v6735_v57  ;;  %2524 = vmatprep.mubr.f32.mxu0 %v1855_v53  ;;  %2973 = vmatprep.mubr.f32.mxu1 %v1855_v53 }
 0x2b3   : > { %v1856_v16 = vmax.f32 %v1678_v20, 0.0  ;;  %2525 = vmatmul.mubr.f32.gmra.mrb[164].mxu0 %v1854_v4  ;;  %2974 = vmatmul.mubr.f32.gmra.mrb[202].mxu1 %v1854_v4 }
 0x2b4   : > { %v1857_v50 = vmax.f32 %v1680_v46, 0.0  ;;  %v1683_v51 = vpop.f32.mrb[104].mxu1 }
 0x2b5   : > { %1984 = vst [vmem:[%s6743_s30 + $0x330] sm:$0xff] %v1856_v16  ;;  %v1684_v52 = vadd.f32 %v1683_v51, %v6730_v26  ;;  %v1685_v9 = vpop.f32.mrb[105].mxu1 }
 0x2b6   : > { %1985 = vst [vmem:[%s6743_s30 + $0x338] sm:$0xff] %v1857_v50  ;;  %v1686_v15 = vadd.f32 %v1685_v9, %v6735_v57  ;;  %2530 = vmatprep.mubr.f32.mxu0 %v1857_v50  ;;  %2979 = vmatprep.mubr.f32.mxu1 %v1857_v50 }
 0x2b7   : > { %v1858_v5 = vmax.f32 %v1684_v52, 0.0  ;;  %2531 = vmatmul.mubr.f32.gmra.mrb[166].mxu0 %v1856_v16  ;;  %2980 = vmatmul.mubr.f32.gmra.mrb[204].mxu1 %v1856_v16 }
 0x2b8   : > { %v1859_v36 = vmax.f32 %v1686_v15, 0.0  ;;  %v1689_v2 = vpop.f32.mrb[106].mxu1 }
 0x2b9   : > { %1986 = vst [vmem:[%s6743_s30 + $0x340] sm:$0xff] %v1858_v5  ;;  %v1690_v10 = vadd.f32 %v1689_v2, %v6730_v26  ;;  %v1691_v55 = vpop.f32.mrb[107].mxu1 }
 0x2ba   : > { %1987 = vst [vmem:[%s6743_s30 + $0x348] sm:$0xff] %v1859_v36  ;;  %v1692_v1 = vadd.f32 %v1691_v55, %v6735_v57  ;;  %2536 = vmatprep.mubr.f32.mxu0 %v1859_v36  ;;  %2985 = vmatprep.mubr.f32.mxu1 %v1859_v36 }
 0x2bb   : > { %v1860_v32 = vmax.f32 %v1690_v10, 0.0  ;;  %2537 = vmatmul.mubr.f32.gmra.mrb[168].mxu0 %v1858_v5  ;;  %2986 = vmatmul.mubr.f32.gmra.mrb[206].mxu1 %v1858_v5 }
 0x2bc   : > { %v1861_v47 = vmax.f32 %v1692_v1, 0.0  ;;  %v1695_v3 = vpop.f32.mrb[108].mxu1 }
 0x2bd   : > { %1988 = vst [vmem:[%s6743_s30 + $0x350] sm:$0xff] %v1860_v32  ;;  %v1696_v11 = vadd.f32 %v1695_v3, %v6730_v26  ;;  %v1697_v31 = vpop.f32.mrb[109].mxu1 }
 0x2be   : > { %1989 = vst [vmem:[%s6743_s30 + $0x358] sm:$0xff] %v1861_v47  ;;  %v1698_v18 = vadd.f32 %v1697_v31, %v6735_v57  ;;  %v2226_v56 = vpop.f32.mrb[64].mxu0  ;;  %2542 = vmatprep.mubr.f32.mxu0 %v1861_v47  ;;  %2991 = vmatprep.mubr.f32.mxu1 %v1861_v47 }
 0x2bf   : > { %v1862_v37 = vmax.f32 %v1696_v11, 0.0  ;;  %v2227_v14 = vadd.f32 %v2226_v56, %v7025_v43  ;;  %v2228_v0 = vpop.f32.mrb[65].mxu0  ;;  %2543 = vmatmul.mubr.f32.gmra.mrb[170].mxu0 %v1860_v32  ;;  %2992 = vmatmul.mubr.f32.gmra.mrb[208].mxu1 %v1860_v32 }
 0x2c0   : > { %v1863_v38 = vmax.f32 %v1698_v18, 0.0  ;;  %v2229_v28 = vadd.f32 %v2228_v0, %v7030_v60  ;;  %v1701_v62 = vpop.f32.mrb[110].mxu1 }
 0x2c1   : > { %1990 = vst [vmem:[%s6743_s30 + $0x360] sm:$0xff] %v1862_v37  ;;  %v3058_v27 = vmax.f32 %v2227_v14, 0.0  ;;  %v1702_v21 = vadd.f32 %v1701_v62, %v6730_v26  ;;  %v1703_v30 = vpop.f32.mrb[111].mxu1 }
 0x2c2   : > { %1991 = vst [vmem:[%s6743_s30 + $0x368] sm:$0xff] %v1863_v38  ;;  %v3059_v29 = vmax.f32 %v2229_v28, 0.0  ;;  %v1704_v59 = vadd.f32 %v1703_v30, %v6735_v57  ;;  %v2232_v42 = vpop.f32.mrb[66].mxu0  ;;  %2548 = vmatprep.mubr.f32.mxu0 %v1863_v38  ;;  %2997 = vmatprep.mubr.f32.mxu1 %v1863_v38 }
 0x2c3   : > { %3314 = vst [vmem:[%s7043_s19] sm:$0xff] %v3058_v27  ;;  %v1864_v6 = vmax.f32 %v1702_v21, 0.0  ;;  %v2233_v22 = vadd.f32 %v2232_v42, %v7025_v43  ;;  %v2234_v41 = vpop.f32.mrb[67].mxu0  ;;  %2549 = vmatmul.mubr.f32.gmra.mrb[172].mxu0 %v1862_v37  ;;  %2998 = vmatmul.mubr.f32.gmra.mrb[210].mxu1 %v1862_v37 }
 0x2c4   : > { %3315 = vst [vmem:[%s7043_s19 + $0x8] sm:$0xff] %v3059_v29  ;;  %v1865_v7 = vmax.f32 %v1704_v59, 0.0  ;;  %v2235_v45 = vadd.f32 %v2234_v41, %v7030_v60  ;;  %v1707_v49 = vpop.f32.mrb[112].mxu1 }
 0x2c5   : > { %1992 = vst [vmem:[%s6743_s30 + $0x370] sm:$0xff] %v1864_v6  ;;  %v3062_v40 = vmax.f32 %v2233_v22, 0.0  ;;  %v1708_v34 = vadd.f32 %v1707_v49, %v6730_v26  ;;  %v1709_v54 = vpop.f32.mrb[113].mxu1 }
 0x2c6   : > { %1993 = vst [vmem:[%s6743_s30 + $0x378] sm:$0xff] %v1865_v7  ;;  %v3063_v63 = vmax.f32 %v2235_v45, 0.0  ;;  %v1710_v19 = vadd.f32 %v1709_v54, %v6735_v57  ;;  %v2238_v13 = vpop.f32.mrb[68].mxu0  ;;  %2554 = vmatprep.mubr.f32.mxu0 %v1865_v7  ;;  %3003 = vmatprep.mubr.f32.mxu1 %v1865_v7 }
 0x2c7   : > { %3318 = vst [vmem:[%s7043_s19 + $0x20] sm:$0xff] %v3062_v40  ;;  %v3570_v25 = vadd.f32 %v3062_v40, %v3058_v27  ;;  %v1866_v17 = vmax.f32 %v1708_v34, 0.0  ;;  %v2239_v8 = vadd.f32 %v2238_v13, %v7025_v43  ;;  %v2240_v44 = vpop.f32.mrb[69].mxu0  ;;  %2555 = vmatmul.mubr.f32.gmra.mrb[174].mxu0 %v1864_v6  ;;  %3004 = vmatmul.mubr.f32.gmra.mrb[212].mxu1 %v1864_v6 }
 0x2c8   : > { %3319 = vst [vmem:[%s7043_s19 + $0x28] sm:$0xff] %v3063_v63  ;;  %v3639_v39 = vadd.f32 %v3063_v63, %v3059_v29  ;;  %v1867_v33 = vmax.f32 %v1710_v19, 0.0  ;;  %v2241_v12 = vadd.f32 %v2240_v44, %v7030_v60  ;;  %v1713_v24 = vpop.f32.mrb[114].mxu1 }
 0x2c9   : > { %1994 = vst [vmem:[%s6743_s30 + $0x380] sm:$0xff] %v1866_v17  ;;  %v3066_v4 = vmax.f32 %v2239_v8, 0.0  ;;  %v1714_v53 = vadd.f32 %v1713_v24, %v6730_v26  ;;  %v1715_v23 = vpop.f32.mrb[115].mxu1 }
 0x2ca   : > { %1995 = vst [vmem:[%s6743_s30 + $0x388] sm:$0xff] %v1867_v33  ;;  %v3067_v20 = vmax.f32 %v2241_v12, 0.0  ;;  %v1716_v48 = vadd.f32 %v1715_v23, %v6735_v57  ;;  %v2244_v46 = vpop.f32.mrb[70].mxu0  ;;  %2560 = vmatprep.mubr.f32.mxu0 %v1867_v33  ;;  %3009 = vmatprep.mubr.f32.mxu1 %v1867_v33 }
 0x2cb   : > { %3322 = vst [vmem:[%s7043_s19 + $0x40] sm:$0xff] %v3066_v4  ;;  %v3571_v16 = vadd.f32 %v3570_v25, %v3066_v4  ;;  %v1868_v50 = vmax.f32 %v1714_v53, 0.0  ;;  %v2245_v51 = vadd.f32 %v2244_v46, %v7025_v43  ;;  %v2246_v52 = vpop.f32.mrb[71].mxu0  ;;  %2561 = vmatmul.mubr.f32.gmra.mrb[176].mxu0 %v1866_v17  ;;  %3010 = vmatmul.mubr.f32.gmra.mrb[214].mxu1 %v1866_v17 }
 0x2cc   : > { %3323 = vst [vmem:[%s7043_s19 + $0x48] sm:$0xff] %v3067_v20  ;;  %v3640_v9 = vadd.f32 %v3639_v39, %v3067_v20  ;;  %v1869_v15 = vmax.f32 %v1716_v48, 0.0  ;;  %v2247_v5 = vadd.f32 %v2246_v52, %v7030_v60  ;;  %v1719_v36 = vpop.f32.mrb[116].mxu1 }
 0x2cd   : > { %1996 = vst [vmem:[%s6743_s30 + $0x390] sm:$0xff] %v1868_v50  ;;  %v3070_v2 = vmax.f32 %v2245_v51, 0.0  ;;  %v1720_v10 = vadd.f32 %v1719_v36, %v6730_v26  ;;  %v1721_v55 = vpop.f32.mrb[117].mxu1 }
 0x2ce   : > { %1997 = vst [vmem:[%s6743_s30 + $0x398] sm:$0xff] %v1869_v15  ;;  %v3071_v1 = vmax.f32 %v2247_v5, 0.0  ;;  %v1722_v32 = vadd.f32 %v1721_v55, %v6735_v57  ;;  %v2250_v47 = vpop.f32.mrb[72].mxu0  ;;  %2566 = vmatprep.mubr.f32.mxu0 %v1869_v15  ;;  %3015 = vmatprep.mubr.f32.mxu1 %v1869_v15 }
 0x2cf   : > { %3326 = vst [vmem:[%s7043_s19 + $0x60] sm:$0xff] %v3070_v2  ;;  %v3572_v3 = vadd.f32 %v3571_v16, %v3070_v2  ;;  %v1870_v11 = vmax.f32 %v1720_v10, 0.0  ;;  %v2251_v31 = vadd.f32 %v2250_v47, %v7025_v43  ;;  %v2252_v18 = vpop.f32.mrb[73].mxu0  ;;  %2567 = vmatmul.mubr.f32.gmra.mrb[178].mxu0 %v1868_v50  ;;  %3016 = vmatmul.mubr.f32.gmra.mrb[216].mxu1 %v1868_v50 }
 0x2d0   : > { %3327 = vst [vmem:[%s7043_s19 + $0x68] sm:$0xff] %v3071_v1  ;;  %v3641_v56 = vadd.f32 %v3640_v9, %v3071_v1  ;;  %v1871_v37 = vmax.f32 %v1722_v32, 0.0  ;;  %v2253_v14 = vadd.f32 %v2252_v18, %v7030_v60  ;;  %v1725_v0 = vpop.f32.mrb[118].mxu1 }
 0x2d1   : > { %1998 = vst [vmem:[%s6743_s30 + $0x3a0] sm:$0xff] %v1870_v11  ;;  %v3074_v38 = vmax.f32 %v2251_v31, 0.0  ;;  %v1726_v28 = vadd.f32 %v1725_v0, %v6730_v26  ;;  %v1727_v62 = vpop.f32.mrb[119].mxu1 }
 0x2d2   : > { %1999 = vst [vmem:[%s6743_s30 + $0x3a8] sm:$0xff] %v1871_v37  ;;  %v3075_v27 = vmax.f32 %v2253_v14, 0.0  ;;  %v1728_v21 = vadd.f32 %v1727_v62, %v6735_v57  ;;  %v2256_v30 = vpop.f32.mrb[74].mxu0  ;;  %2572 = vmatprep.mubr.f32.mxu0 %v1871_v37  ;;  %3021 = vmatprep.mubr.f32.mxu1 %v1871_v37 }
 0x2d3   : > { %3330 = vst [vmem:[%s7043_s19 + $0x80] sm:$0xff] %v3074_v38  ;;  %v3573_v29 = vadd.f32 %v3572_v3, %v3074_v38  ;;  %v1872_v59 = vmax.f32 %v1726_v28, 0.0  ;;  %v2257_v42 = vadd.f32 %v2256_v30, %v7025_v43  ;;  %v2258_v6 = vpop.f32.mrb[75].mxu0  ;;  %2573 = vmatmul.mubr.f32.gmra.mrb[180].mxu0 %v1870_v11  ;;  %3022 = vmatmul.mubr.f32.gmra.mrb[218].mxu1 %v1870_v11 }
 0x2d4   : > { %3331 = vst [vmem:[%s7043_s19 + $0x88] sm:$0xff] %v3075_v27  ;;  %v3642_v22 = vadd.f32 %v3641_v56, %v3075_v27  ;;  %v1873_v41 = vmax.f32 %v1728_v21, 0.0  ;;  %v2259_v7 = vadd.f32 %v2258_v6, %v7030_v60  ;;  %v1731_v45 = vpop.f32.mrb[120].mxu1 }
 0x2d5   : > { %2000 = vst [vmem:[%s6743_s30 + $0x3b0] sm:$0xff] %v1872_v59  ;;  %v3078_v49 = vmax.f32 %v2257_v42, 0.0  ;;  %v1732_v40 = vadd.f32 %v1731_v45, %v6730_v26  ;;  %v1733_v34 = vpop.f32.mrb[121].mxu1 }
 0x2d6   : > { %2001 = vst [vmem:[%s6743_s30 + $0x3b8] sm:$0xff] %v1873_v41  ;;  %v3079_v54 = vmax.f32 %v2259_v7, 0.0  ;;  %v1734_v63 = vadd.f32 %v1733_v34, %v6735_v57  ;;  %v2262_v19 = vpop.f32.mrb[76].mxu0  ;;  %2578 = vmatprep.mubr.f32.mxu0 %v1873_v41  ;;  %3027 = vmatprep.mubr.f32.mxu1 %v1873_v41 }
 0x2d7   : > { %3334 = vst [vmem:[%s7043_s19 + $0xa0] sm:$0xff] %v3078_v49  ;;  %v3574_v13 = vadd.f32 %v3573_v29, %v3078_v49  ;;  %v1874_v25 = vmax.f32 %v1732_v40, 0.0  ;;  %v2263_v17 = vadd.f32 %v2262_v19, %v7025_v43  ;;  %v2264_v8 = vpop.f32.mrb[77].mxu0  ;;  %2579 = vmatmul.mubr.f32.gmra.mrb[182].mxu0 %v1872_v59  ;;  %3028 = vmatmul.mubr.f32.gmra.mrb[220].mxu1 %v1872_v59 }
 0x2d8   : > { %3335 = vst [vmem:[%s7043_s19 + $0xa8] sm:$0xff] %v3079_v54  ;;  %v3643_v44 = vadd.f32 %v3642_v22, %v3079_v54  ;;  %v1875_v39 = vmax.f32 %v1734_v63, 0.0  ;;  %v2265_v33 = vadd.f32 %v2264_v8, %v7030_v60  ;;  %v1737_v12 = vpop.f32.mrb[122].mxu1  ;;  %v5026_v63 = vld [vmem:[%s6743_s30 + $0x8] sm:$0xff] }
 0x2d9   : > { %2002 = vst [vmem:[%s6743_s30 + $0x3c0] sm:$0xff] %v1874_v25  ;;  %v3082_v24 = vmax.f32 %v2263_v17, 0.0  ;;  %v1738_v4 = vadd.f32 %v1737_v12, %v6730_v26  ;;  %v1739_v53 = vpop.f32.mrb[123].mxu1 }
 0x2da   : > { %2003 = vst [vmem:[%s6743_s30 + $0x3c8] sm:$0xff] %v1875_v39  ;;  %v3083_v23 = vmax.f32 %v2265_v33, 0.0  ;;  %v1740_v20 = vadd.f32 %v1739_v53, %v6735_v57  ;;  %v2268_v48 = vpop.f32.mrb[78].mxu0  ;;  %2584 = vmatprep.mubr.f32.mxu0 %v1875_v39  ;;  %3033 = vmatprep.mubr.f32.mxu1 %v1875_v39  ;;  %v5027_v39 = vld [vmem:[%s6743_s30] sm:$0xff]  ;;  %v2150_v33 = vsub.s32 2, %v6715_v58  ;;  %v2154_v53 = vsub.s32 3, %v6715_v58 }
 0x2db   : > { %3338 = vst [vmem:[%s7043_s19 + $0xc0] sm:$0xff] %v3082_v24  ;;  %v3575_v46 = vadd.f32 %v3574_v13, %v3082_v24  ;;  %v1876_v16 = vmax.f32 %v1738_v4, 0.0  ;;  %v2269_v50 = vadd.f32 %v2268_v48, %v7025_v43  ;;  %v2270_v51 = vpop.f32.mrb[79].mxu0  ;;  %2585 = vmatmul.mubr.f32.gmra.mrb[184].mxu0 %v1874_v25  ;;  %3034 = vmatmul.mubr.f32.gmra.mrb[222].mxu1 %v1874_v25  ;;  %v5028_v4 = vld [vmem:[%s6743_s30 + $0x18] sm:$0xff] }
 0x2dc   : > { %3339 = vst [vmem:[%s7043_s19 + $0xc8] sm:$0xff] %v3083_v23  ;;  %v3644_v52 = vadd.f32 %v3643_v44, %v3083_v23  ;;  %v1877_v9 = vmax.f32 %v1740_v20, 0.0  ;;  %v2271_v15 = vadd.f32 %v2270_v51, %v7030_v60  ;;  %v1743_v5 = vpop.f32.mrb[124].mxu1  ;;  %v5029_v51 = vld [vmem:[%s6743_s30 + $0x10] sm:$0xff] }
 0x2dd   : > { %2004 = vst [vmem:[%s6743_s30 + $0x3d0] sm:$0xff] %v1876_v16  ;;  %v3086_v36 = vmax.f32 %v2269_v50, 0.0  ;;  %v1744_v2 = vadd.f32 %v1743_v5, %v6730_v26  ;;  %v1745_v10 = vpop.f32.mrb[125].mxu1  ;;  %v5030_v5 = vld [vmem:[%s6743_s30 + $0x28] sm:$0xff] }
 0x2de   : > { %2005 = vst [vmem:[%s6743_s30 + $0x3d8] sm:$0xff] %v1877_v9  ;;  %v3087_v55 = vmax.f32 %v2271_v15, 0.0  ;;  %v1746_v1 = vadd.f32 %v1745_v10, %v6735_v57  ;;  %v2274_v32 = vpop.f32.mrb[80].mxu0  ;;  %2590 = vmatprep.mubr.f32.mxu0 %v1877_v9  ;;  %3039 = vmatprep.mubr.f32.mxu1 %v1877_v9 }
 0x2df   : > { %3342 = vst [vmem:[%s7043_s19 + $0xe0] sm:$0xff] %v3086_v36  ;;  %v3576_v47 = vadd.f32 %v3575_v46, %v3086_v36  ;;  %v1878_v3 = vmax.f32 %v1744_v2, 0.0  ;;  %v2275_v11 = vadd.f32 %v2274_v32, %v7025_v43  ;;  %v2276_v31 = vpop.f32.mrb[81].mxu0  ;;  %2591 = vmatmul.mubr.f32.gmra.mrb[186].mxu0 %v1876_v16  ;;  %3040 = vmatmul.mubr.f32.gmra.mrb[224].mxu1 %v1876_v16 }
 0x2e0   : > { %3343 = vst [vmem:[%s7043_s19 + $0xe8] sm:$0xff] %v3087_v55  ;;  %v3645_v18 = vadd.f32 %v3644_v52, %v3087_v55  ;;  %v1879_v56 = vmax.f32 %v1746_v1, 0.0  ;;  %v2277_v37 = vadd.f32 %v2276_v31, %v7030_v60  ;;  %v1749_v14 = vpop.f32.mrb[126].mxu1  ;;  %v7132_v52 = vrot.slane %v7016_v61, %v2150_v33  ;;  %v5031_v31 = vld [vmem:[%s6743_s30 + $0x20] sm:$0xff] }
 0x2e1   : > { %2006 = vst [vmem:[%s6743_s30 + $0x3e0] sm:$0xff] %v1878_v3  ;;  %v3090_v0 = vmax.f32 %v2275_v11, 0.0  ;;  %v1750_v38 = vadd.f32 %v1749_v14, %v6730_v26  ;;  %v1751_v28 = vpop.f32.mrb[127].mxu1  ;;  %v7138_v36 = vrot.slane %v7016_v61, %v2154_v53  ;;  %v5032_v14 = vld [vmem:[%s6743_s30 + $0x38] sm:$0xff] }
 0x2e2   : > { %2007 = vst [vmem:[%s6743_s30 + $0x3e8] sm:$0xff] %v1879_v56  ;;  %v3091_v62 = vmax.f32 %v2277_v37, 0.0  ;;  %v1752_v27 = vadd.f32 %v1751_v28, %v6735_v57  ;;  %v2280_v21 = vpop.f32.mrb[82].mxu0  ;;  %2596 = vmatprep.mubr.f32.mxu0 %v1879_v56  ;;  %3045 = vmatprep.mubr.f32.mxu1 %v1879_v56 }
 0x2e3   : > { %3346 = vst [vmem:[%s7043_s19 + $0x100] sm:$0xff] %v3090_v0  ;;  %v3577_v30 = vadd.f32 %v3576_v47, %v3090_v0  ;;  %v1880_v29 = vmax.f32 %v1750_v38, 0.0  ;;  %v2281_v59 = vadd.f32 %v2280_v21, %v7025_v43  ;;  %v2282_v42 = vpop.f32.mrb[83].mxu0  ;;  %2597 = vmatmul.mubr.f32.gmra.mrb[188].mxu0 %v1878_v3  ;;  %3046 = vmatmul.mubr.f32.gmra.mrb[226].mxu1 %v1878_v3 }
 0x2e4   : > { %3347 = vst [vmem:[%s7043_s19 + $0x108] sm:$0xff] %v3091_v62  ;;  %v3646_v26 = vadd.f32 %v3645_v18, %v3091_v62  ;;  %v1881_v6 = vmax.f32 %v1752_v27, 0.0  ;;  %v2283_v22 = vadd.f32 %v2282_v42, %v7030_v60 }
 0x2e5   : > { %2008 = vst [vmem:[%s6743_s30 + $0x3f0] sm:$0xff] %v1880_v29  ;;  %v3094_v57 = vmax.f32 %v2281_v59, 0.0 }
 0x2e6   : > { %2009 = vst [vmem:[%s6743_s30 + $0x3f8] sm:$0xff] %v1881_v6  ;;  %v3095_v41 = vmax.f32 %v2283_v22, 0.0  ;;  %v2286_v7 = vpop.f32.mrb[84].mxu0  ;;  %2602 = vmatprep.mubr.f32.mxu0 %v1881_v6  ;;  %3051 = vmatprep.mubr.f32.mxu1 %v1881_v6 }
 0x2e7   : > { %3350 = vst [vmem:[%s7043_s19 + $0x120] sm:$0xff] %v3094_v57  ;;  %v3578_v45 = vadd.f32 %v3577_v30, %v3094_v57  ;;  %v2287_v49 = vadd.f32 %v2286_v7, %v7025_v43  ;;  %v2288_v40 = vpop.f32.mrb[85].mxu0  ;;  %2603 = vmatmul.mubr.f32.gmra.mrb[190].mxu0 %v1880_v29  ;;  %3052 = vmatmul.mubr.f32.gmra.mrb[228].mxu1 %v1880_v29  ;;  %v5034_v7 = vld [vmem:[%s6743_s30 + $0x48] sm:$0xff] }
 0x2e8   : > { %3351 = vst [vmem:[%s7043_s19 + $0x128] sm:$0xff] %v3095_v41  ;;  %v3647_v34 = vadd.f32 %v3646_v26, %v3095_v41  ;;  %v2289_v54 = vadd.f32 %v2288_v40, %v7030_v60  ;;  %2673 = vmatprep.mubr.f32.mxu0 %v5026_v63  ;;  %v5033_v26 = vld [vmem:[%s6743_s30 + $0x30] sm:$0xff] }
 0x2e9   : > { %v3098_v19 = vmax.f32 %v2287_v49, 0.0 }
 0x2ea   : > { %v3099_v13 = vmax.f32 %v2289_v54, 0.0  ;;  %v2292_v25 = vpop.f32.mrb[86].mxu0 }
 0x2eb   : > { %3354 = vst [vmem:[%s7043_s19 + $0x140] sm:$0xff] %v3098_v19  ;;  %v3579_v17 = vadd.f32 %v3578_v45, %v3098_v19  ;;  %v2293_v8 = vadd.f32 %v2292_v25, %v7025_v43  ;;  %v2294_v44 = vpop.f32.mrb[87].mxu0  ;;  %2674 = vmatmul.mubr.f32.vlgmr.msra.gmra.mrb[192].mxu0 %v5027_v39 }
 0x2ec   : > { %3355 = vst [vmem:[%s7043_s19 + $0x148] sm:$0xff] %v3099_v13  ;;  %v3648_v12 = vadd.f32 %v3647_v34, %v3099_v13  ;;  %v2295_v24 = vadd.f32 %v2294_v44, %v7030_v60  ;;  %2679 = vmatprep.mubr.f32.mxu0 %v5028_v4 }
 0x2ed   : > { %v3102_v23 = vmax.f32 %v2293_v8, 0.0  ;;  %v5035_v8 = vld [vmem:[%s6743_s30 + $0x40] sm:$0xff] }
 0x2ee   : > { %v3103_v20 = vmax.f32 %v2295_v24, 0.0  ;;  %v2298_v48 = vpop.f32.mrb[88].mxu0  ;;  %v5036_v24 = vld [vmem:[%s6743_s30 + $0x58] sm:$0xff] }
 0x2ef   : > { %3358 = vst [vmem:[%s7043_s19 + $0x160] sm:$0xff] %v3102_v23  ;;  %v3580_v46 = vadd.f32 %v3579_v17, %v3102_v23  ;;  %v2299_v16 = vadd.f32 %v2298_v48, %v7025_v43  ;;  %v2300_v50 = vpop.f32.mrb[89].mxu0  ;;  %2680 = vmatmul.mubr.f32.gmra.mrb[194].mxu0 %v5029_v51 }
 0x2f0   : > { %3359 = vst [vmem:[%s7043_s19 + $0x168] sm:$0xff] %v3103_v20  ;;  %v3649_v9 = vadd.f32 %v3648_v12, %v3103_v20  ;;  %v2301_v15 = vadd.f32 %v2300_v50, %v7030_v60  ;;  %2685 = vmatprep.mubr.f32.mxu0 %v5030_v5 }
 0x2f1   : > { %v3106_v2 = vmax.f32 %v2299_v16, 0.0 }
 0x2f2   : > { %v3107_v10 = vmax.f32 %v2301_v15, 0.0  ;;  %v2304_v55 = vpop.f32.mrb[90].mxu0  ;;  %v2753_v1 = vpop.f32.mrb[128].mxu1  ;;  %v5037_v15 = vld [vmem:[%s6743_s30 + $0x50] sm:$0xff] }
 0x2f3   : > { %3362 = vst [vmem:[%s7043_s19 + $0x180] sm:$0xff] %v3106_v2  ;;  %v3581_v32 = vadd.f32 %v3580_v46, %v3106_v2  ;;  %v2305_v47 = vadd.f32 %v2304_v55, %v7025_v43  ;;  %v2754_v3 = vadd.f32 %v2753_v1, %v7132_v52  ;;  %v2306_v11 = vpop.f32.mrb[91].mxu0  ;;  %2686 = vmatmul.mubr.f32.gmra.mrb[196].mxu0 %v5031_v31  ;;  %v2755_v18 = vpop.f32.mrb[129].mxu1  ;;  %v5038_v1 = vld [vmem:[%s6743_s30 + $0x68] sm:$0xff] }
 0x2f4   : > { %3363 = vst [vmem:[%s7043_s19 + $0x188] sm:$0xff] %v3107_v10  ;;  %v3650_v61 = vadd.f32 %v3649_v9, %v3107_v10  ;;  %v2307_v56 = vadd.f32 %v2306_v11, %v7030_v60  ;;  %v2756_v37 = vadd.f32 %v2755_v18, %v7138_v36  ;;  %2691 = vmatprep.mubr.f32.mxu0 %v5032_v14 }
 0x2f5   : > { %v3110_v0 = vmax.f32 %v2305_v47, 0.0  ;;  %v3112_v38 = vmax.f32 %v2754_v3, 0.0 }
 0x2f6   : > { %v3111_v28 = vmax.f32 %v2307_v56, 0.0  ;;  %v3113_v62 = vmax.f32 %v2756_v37, 0.0  ;;  %v2310_v27 = vpop.f32.mrb[92].mxu0  ;;  %v2759_v21 = vpop.f32.mrb[130].mxu1 }
 0x2f7   : > { %3366 = vst [vmem:[%s7043_s19 + $0x1a0] sm:$0xff] %v3110_v0  ;;  %v3582_v30 = vadd.f32 %v3581_v32, %v3110_v0  ;;  %3368 = vst [vmem:[%s7043_s19 + $0x1b0] sm:$0xff] %v3112_v38  ;;  %v2311_v29 = vadd.f32 %v2310_v27, %v7025_v43  ;;  %v2760_v59 = vadd.f32 %v2759_v21, %v7132_v52  ;;  %v2312_v42 = vpop.f32.mrb[93].mxu0  ;;  %2692 = vmatmul.mubr.f32.gmra.mrb[198].mxu0 %v5033_v26  ;;  %v2761_v6 = vpop.f32.mrb[131].mxu1  ;;  %v5039_v0 = vld [vmem:[%s6743_s30 + $0x60] sm:$0xff]  ;;  %v5040_v21 = vld [vmem:[%s6743_s30 + $0x78] sm:$0xff] }
 0x2f8   : > { %3367 = vst [vmem:[%s7043_s19 + $0x1a8] sm:$0xff] %v3111_v28  ;;  %v3651_v22 = vadd.f32 %v3650_v61, %v3111_v28  ;;  %3369 = vst [vmem:[%s7043_s19 + $0x1b8] sm:$0xff] %v3113_v62  ;;  %v2313_v57 = vadd.f32 %v2312_v42, %v7030_v60  ;;  %v2762_v41 = vadd.f32 %v2761_v6, %v7138_v36  ;;  %2697 = vmatprep.mubr.f32.mxu0 %v5034_v7 }
 0x2f9   : > { %v3114_v45 = vmax.f32 %v2311_v29, 0.0  ;;  %v3116_v49 = vmax.f32 %v2760_v59, 0.0 }
 0x2fa   : > { %v3115_v40 = vmax.f32 %v2313_v57, 0.0  ;;  %v3117_v34 = vmax.f32 %v2762_v41, 0.0  ;;  %v2316_v54 = vpop.f32.mrb[94].mxu0  ;;  %v2765_v63 = vpop.f32.mrb[132].mxu1 }
 0x2fb   : > { %3370 = vst [vmem:[%s7043_s19 + $0x1c0] sm:$0xff] %v3114_v45  ;;  %v3583_v19 = vadd.f32 %v3582_v30, %v3114_v45  ;;  %3372 = vst [vmem:[%s7043_s19 + $0x1d0] sm:$0xff] %v3116_v49  ;;  %v2317_v13 = vadd.f32 %v2316_v54, %v7025_v43  ;;  %v2766_v25 = vadd.f32 %v2765_v63, %v7132_v52  ;;  %v2318_v17 = vpop.f32.mrb[95].mxu0  ;;  %2698 = vmatmul.mubr.f32.gmra.mrb[200].mxu0 %v5035_v8  ;;  %v2767_v44 = vpop.f32.mrb[133].mxu1  ;;  %v5041_v45 = vld [vmem:[%s6743_s30 + $0x70] sm:$0xff]  ;;  %v5042_v63 = vld [vmem:[%s6743_s30 + $0x88] sm:$0xff] }
 0x2fc   : > { %3371 = vst [vmem:[%s7043_s19 + $0x1c8] sm:$0xff] %v3115_v40  ;;  %v3652_v39 = vadd.f32 %v3651_v22, %v3115_v40  ;;  %3373 = vst [vmem:[%s7043_s19 + $0x1d8] sm:$0xff] %v3117_v34  ;;  %v2319_v33 = vadd.f32 %v2318_v17, %v7030_v60  ;;  %v2768_v12 = vadd.f32 %v2767_v44, %v7138_v36  ;;  %2703 = vmatprep.mubr.f32.mxu0 %v5036_v24 }
 0x2fd   : > { %v3118_v4 = vmax.f32 %v2317_v13, 0.0  ;;  %v3120_v53 = vmax.f32 %v2766_v25, 0.0 }
 0x2fe   : > { %v3119_v23 = vmax.f32 %v2319_v33, 0.0  ;;  %v3121_v20 = vmax.f32 %v2768_v12, 0.0  ;;  %v2322_v48 = vpop.f32.mrb[96].mxu0  ;;  %v2771_v46 = vpop.f32.mrb[134].mxu1 }
 0x2ff   : > { %3374 = vst [vmem:[%s7043_s19 + $0x1e0] sm:$0xff] %v3118_v4  ;;  %v3584_v16 = vadd.f32 %v3583_v19, %v3118_v4  ;;  %3376 = vst [vmem:[%s7043_s19 + $0x1f0] sm:$0xff] %v3120_v53  ;;  %v2323_v50 = vadd.f32 %v2322_v48, %v7025_v43  ;;  %v2772_v51 = vadd.f32 %v2771_v46, %v7132_v52  ;;  %v2324_v9 = vpop.f32.mrb[97].mxu0  ;;  %2704 = vmatmul.mubr.f32.gmra.mrb[202].mxu0 %v5037_v15  ;;  %v2773_v5 = vpop.f32.mrb[135].mxu1  ;;  %v5043_v4 = vld [vmem:[%s6743_s30 + $0x80] sm:$0xff]  ;;  %v5044_v46 = vld [vmem:[%s6743_s30 + $0x98] sm:$0xff] }
 0x300   : > { %3375 = vst [vmem:[%s7043_s19 + $0x1e8] sm:$0xff] %v3119_v23  ;;  %v3653_v2 = vadd.f32 %v3652_v39, %v3119_v23  ;;  %3377 = vst [vmem:[%s7043_s19 + $0x1f8] sm:$0xff] %v3121_v20  ;;  %v2325_v10 = vadd.f32 %v2324_v9, %v7030_v60  ;;  %v2774_v55 = vadd.f32 %v2773_v5, %v7138_v36  ;;  %2709 = vmatprep.mubr.f32.mxu0 %v5038_v1 }
 0x301   : > { %v3122_v32 = vmax.f32 %v2323_v50, 0.0  ;;  %v3124_v47 = vmax.f32 %v2772_v51, 0.0 }
 0x302   : > { %v3123_v3 = vmax.f32 %v2325_v10, 0.0  ;;  %v3125_v11 = vmax.f32 %v2774_v55, 0.0  ;;  %v2328_v31 = vpop.f32.mrb[98].mxu0  ;;  %v2777_v18 = vpop.f32.mrb[136].mxu1 }
 0x303   : > { %3378 = vst [vmem:[%s7043_s19 + $0x200] sm:$0xff] %v3122_v32  ;;  %v3585_v61 = vadd.f32 %v3584_v16, %v3122_v32  ;;  %3380 = vst [vmem:[%s7043_s19 + $0x210] sm:$0xff] %v3124_v47  ;;  %v2329_v56 = vadd.f32 %v2328_v31, %v7025_v43  ;;  %v2778_v37 = vadd.f32 %v2777_v18, %v7132_v52  ;;  %v2330_v14 = vpop.f32.mrb[99].mxu0  ;;  %2710 = vmatmul.mubr.f32.gmra.mrb[204].mxu0 %v5039_v0  ;;  %v2779_v38 = vpop.f32.mrb[137].mxu1  ;;  %v5045_v32 = vld [vmem:[%s6743_s30 + $0x90] sm:$0xff]  ;;  %v5046_v18 = vld [vmem:[%s6743_s30 + $0xa8] sm:$0xff] }
 0x304   : > { %3379 = vst [vmem:[%s7043_s19 + $0x208] sm:$0xff] %v3123_v3  ;;  %v3654_v28 = vadd.f32 %v3653_v2, %v3123_v3  ;;  %3381 = vst [vmem:[%s7043_s19 + $0x218] sm:$0xff] %v3125_v11  ;;  %v2331_v62 = vadd.f32 %v2330_v14, %v7030_v60  ;;  %v2780_v27 = vadd.f32 %v2779_v38, %v7138_v36  ;;  %2715 = vmatprep.mubr.f32.mxu0 %v5040_v21 }
 0x305   : > { %v3126_v30 = vmax.f32 %v2329_v56, 0.0  ;;  %v3128_v29 = vmax.f32 %v2778_v37, 0.0 }
 0x306   : > { %v3127_v59 = vmax.f32 %v2331_v62, 0.0  ;;  %v3129_v42 = vmax.f32 %v2780_v27, 0.0  ;;  %v2334_v26 = vpop.f32.mrb[100].mxu0  ;;  %v2783_v6 = vpop.f32.mrb[138].mxu1 }
 0x307   : > { %3382 = vst [vmem:[%s7043_s19 + $0x220] sm:$0xff] %v3126_v30  ;;  %v3586_v22 = vadd.f32 %v3585_v61, %v3126_v30  ;;  %3384 = vst [vmem:[%s7043_s19 + $0x230] sm:$0xff] %v3128_v29  ;;  %v2335_v57 = vadd.f32 %v2334_v26, %v7025_v43  ;;  %v2784_v41 = vadd.f32 %v2783_v6, %v7132_v52  ;;  %v2336_v7 = vpop.f32.mrb[101].mxu0  ;;  %2716 = vmatmul.mubr.f32.gmra.mrb[206].mxu0 %v5041_v45  ;;  %v2785_v49 = vpop.f32.mrb[139].mxu1  ;;  %v5047_v30 = vld [vmem:[%s6743_s30 + $0xa0] sm:$0xff]  ;;  %v5048_v6 = vld [vmem:[%s6743_s30 + $0xb8] sm:$0xff] }
 0x308   : > { %3383 = vst [vmem:[%s7043_s19 + $0x228] sm:$0xff] %v3127_v59  ;;  %v3655_v40 = vadd.f32 %v3654_v28, %v3127_v59  ;;  %3385 = vst [vmem:[%s7043_s19 + $0x238] sm:$0xff] %v3129_v42  ;;  %v2337_v34 = vadd.f32 %v2336_v7, %v7030_v60  ;;  %v2786_v54 = vadd.f32 %v2785_v49, %v7138_v36  ;;  %2721 = vmatprep.mubr.f32.mxu0 %v5042_v63 }
 0x309   : > { %v3130_v19 = vmax.f32 %v2335_v57, 0.0  ;;  %v3132_v13 = vmax.f32 %v2784_v41, 0.0 }
 0x30a   : > { %v3131_v25 = vmax.f32 %v2337_v34, 0.0  ;;  %v3133_v17 = vmax.f32 %v2786_v54, 0.0  ;;  %v2340_v8 = vpop.f32.mrb[102].mxu0  ;;  %v2789_v44 = vpop.f32.mrb[140].mxu1 }
 0x30b   : > { %3386 = vst [vmem:[%s7043_s19 + $0x240] sm:$0xff] %v3130_v19  ;;  %v3587_v39 = vadd.f32 %v3586_v22, %v3130_v19  ;;  %3388 = vst [vmem:[%s7043_s19 + $0x250] sm:$0xff] %v3132_v13  ;;  %v2341_v33 = vadd.f32 %v2340_v8, %v7025_v43  ;;  %v2790_v12 = vadd.f32 %v2789_v44, %v7132_v52  ;;  %v2342_v24 = vpop.f32.mrb[103].mxu0  ;;  %2722 = vmatmul.mubr.f32.gmra.mrb[208].mxu0 %v5043_v4  ;;  %v2791_v53 = vpop.f32.mrb[141].mxu1  ;;  %v5049_v19 = vld [vmem:[%s6743_s30 + $0xb0] sm:$0xff]  ;;  %v5050_v44 = vld [vmem:[%s6743_s30 + $0xc8] sm:$0xff] }
 0x30c   : > { %3387 = vst [vmem:[%s7043_s19 + $0x248] sm:$0xff] %v3131_v25  ;;  %v3656_v23 = vadd.f32 %v3655_v40, %v3131_v25  ;;  %3389 = vst [vmem:[%s7043_s19 + $0x258] sm:$0xff] %v3133_v17  ;;  %v2343_v20 = vadd.f32 %v2342_v24, %v7030_v60  ;;  %v2792_v48 = vadd.f32 %v2791_v53, %v7138_v36  ;;  %2727 = vmatprep.mubr.f32.mxu0 %v5044_v46 }
 0x30d   : > { %v3134_v16 = vmax.f32 %v2341_v33, 0.0  ;;  %v3136_v50 = vmax.f32 %v2790_v12, 0.0 }
 0x30e   : > { %v3135_v51 = vmax.f32 %v2343_v20, 0.0  ;;  %v3137_v9 = vmax.f32 %v2792_v48, 0.0  ;;  %v2346_v15 = vpop.f32.mrb[104].mxu0  ;;  %v2795_v5 = vpop.f32.mrb[142].mxu1 }
 0x30f   : > { %3390 = vst [vmem:[%s7043_s19 + $0x260] sm:$0xff] %v3134_v16  ;;  %v3588_v2 = vadd.f32 %v3587_v39, %v3134_v16  ;;  %3392 = vst [vmem:[%s7043_s19 + $0x270] sm:$0xff] %v3136_v50  ;;  %v2347_v10 = vadd.f32 %v2346_v15, %v7025_v43  ;;  %v2796_v55 = vadd.f32 %v2795_v5, %v7132_v52  ;;  %v2348_v1 = vpop.f32.mrb[105].mxu0  ;;  %2728 = vmatmul.mubr.f32.gmra.mrb[210].mxu0 %v5045_v32  ;;  %v2797_v47 = vpop.f32.mrb[143].mxu1  ;;  %v5051_v16 = vld [vmem:[%s6743_s30 + $0xc0] sm:$0xff] }
 0x310   : > { %3391 = vst [vmem:[%s7043_s19 + $0x268] sm:$0xff] %v3135_v51  ;;  %v3657_v3 = vadd.f32 %v3656_v23, %v3135_v51  ;;  %3393 = vst [vmem:[%s7043_s19 + $0x278] sm:$0xff] %v3137_v9  ;;  %v2349_v11 = vadd.f32 %v2348_v1, %v7030_v60  ;;  %v2798_v31 = vadd.f32 %v2797_v47, %v7138_v36  ;;  %2733 = vmatprep.mubr.f32.mxu0 %v5046_v18 }
 0x311   : > { %v3138_v61 = vmax.f32 %v2347_v10, 0.0  ;;  %v3140_v56 = vmax.f32 %v2796_v55, 0.0 }
 0x312   : > { %v3139_v37 = vmax.f32 %v2349_v11, 0.0  ;;  %v3141_v14 = vmax.f32 %v2798_v31, 0.0  ;;  %v2352_v0 = vpop.f32.mrb[106].mxu0  ;;  %v2801_v38 = vpop.f32.mrb[144].mxu1 }
 0x313   : > { %3394 = vst [vmem:[%s7043_s19 + $0x280] sm:$0xff] %v3138_v61  ;;  %v3589_v28 = vadd.f32 %v3588_v2, %v3138_v61  ;;  %3396 = vst [vmem:[%s7043_s19 + $0x290] sm:$0xff] %v3140_v56  ;;  %v2353_v62 = vadd.f32 %v2352_v0, %v7025_v43  ;;  %v2802_v27 = vadd.f32 %v2801_v38, %v7132_v52  ;;  %v2354_v21 = vpop.f32.mrb[107].mxu0  ;;  %2734 = vmatmul.mubr.f32.gmra.mrb[212].mxu0 %v5047_v30  ;;  %v2803_v29 = vpop.f32.mrb[145].mxu1 }
 0x314   : > { %3395 = vst [vmem:[%s7043_s19 + $0x288] sm:$0xff] %v3139_v37  ;;  %v3658_v59 = vadd.f32 %v3657_v3, %v3139_v37  ;;  %3397 = vst [vmem:[%s7043_s19 + $0x298] sm:$0xff] %v3141_v14  ;;  %v2355_v42 = vadd.f32 %v2354_v21, %v7030_v60  ;;  %v2804_v26 = vadd.f32 %v2803_v29, %v7138_v36  ;;  %2739 = vmatprep.mubr.f32.mxu0 %v5048_v6 }
 0x315   : > { %v3142_v22 = vmax.f32 %v2353_v62, 0.0  ;;  %v3144_v57 = vmax.f32 %v2802_v27, 0.0 }
 0x316   : > { %v3143_v41 = vmax.f32 %v2355_v42, 0.0  ;;  %v3145_v7 = vmax.f32 %v2804_v26, 0.0  ;;  %v2358_v45 = vpop.f32.mrb[108].mxu0  ;;  %v2807_v49 = vpop.f32.mrb[146].mxu1 }
 0x317   : > { %3398 = vst [vmem:[%s7043_s19 + $0x2a0] sm:$0xff] %v3142_v22  ;;  %v3590_v40 = vadd.f32 %v3589_v28, %v3142_v22  ;;  %3400 = vst [vmem:[%s7043_s19 + $0x2b0] sm:$0xff] %v3144_v57  ;;  %v2359_v34 = vadd.f32 %v2358_v45, %v7025_v43  ;;  %v2808_v54 = vadd.f32 %v2807_v49, %v7132_v52  ;;  %v2360_v63 = vpop.f32.mrb[109].mxu0  ;;  %2740 = vmatmul.mubr.f32.gmra.mrb[214].mxu0 %v5049_v19  ;;  %v2809_v13 = vpop.f32.mrb[147].mxu1 }
 0x318   : > { %3399 = vst [vmem:[%s7043_s19 + $0x2a8] sm:$0xff] %v3143_v41  ;;  %v3659_v25 = vadd.f32 %v3658_v59, %v3143_v41  ;;  %3401 = vst [vmem:[%s7043_s19 + $0x2b8] sm:$0xff] %v3145_v7  ;;  %v2361_v17 = vadd.f32 %v2360_v63, %v7030_v60  ;;  %v2810_v8 = vadd.f32 %v2809_v13, %v7138_v36  ;;  %2745 = vmatprep.mubr.f32.mxu0 %v5050_v44 }
 0x319   : > { %v3146_v39 = vmax.f32 %v2359_v34, 0.0  ;;  %v3148_v33 = vmax.f32 %v2808_v54, 0.0 }
 0x31a   : > { %v3147_v12 = vmax.f32 %v2361_v17, 0.0  ;;  %v3149_v24 = vmax.f32 %v2810_v8, 0.0  ;;  %v2364_v4 = vpop.f32.mrb[110].mxu0  ;;  %v2813_v53 = vpop.f32.mrb[148].mxu1 }
 0x31b   : > { %3402 = vst [vmem:[%s7043_s19 + $0x2c0] sm:$0xff] %v3146_v39  ;;  %v3591_v23 = vadd.f32 %v3590_v40, %v3146_v39  ;;  %3404 = vst [vmem:[%s7043_s19 + $0x2d0] sm:$0xff] %v3148_v33  ;;  %v2365_v20 = vadd.f32 %v2364_v4, %v7025_v43  ;;  %v2814_v48 = vadd.f32 %v2813_v53, %v7132_v52  ;;  %v2366_v46 = vpop.f32.mrb[111].mxu0  ;;  %2746 = vmatmul.mubr.f32.gmra.mrb[216].mxu0 %v5051_v16  ;;  %v2815_v50 = vpop.f32.mrb[149].mxu1 }
 0x31c   : > { %3403 = vst [vmem:[%s7043_s19 + $0x2c8] sm:$0xff] %v3147_v12  ;;  %v3660_v51 = vadd.f32 %v3659_v25, %v3147_v12  ;;  %3405 = vst [vmem:[%s7043_s19 + $0x2d8] sm:$0xff] %v3149_v24  ;;  %v2367_v9 = vadd.f32 %v2366_v46, %v7030_v60  ;;  %v2816_v15 = vadd.f32 %v2815_v50, %v7138_v36 }
 0x31d   : > { %v3150_v5 = vmax.f32 %v2365_v20, 0.0  ;;  %v3152_v2 = vmax.f32 %v2814_v48, 0.0 }
 0x31e   : > { %v3151_v10 = vmax.f32 %v2367_v9, 0.0  ;;  %v3153_v55 = vmax.f32 %v2816_v15, 0.0  ;;  %v2370_v1 = vpop.f32.mrb[112].mxu0  ;;  %v2819_v32 = vpop.f32.mrb[150].mxu1 }
 0x31f   : > { %3406 = vst [vmem:[%s7043_s19 + $0x2e0] sm:$0xff] %v3150_v5  ;;  %v3592_v47 = vadd.f32 %v3591_v23, %v3150_v5  ;;  %3408 = vst [vmem:[%s7043_s19 + $0x2f0] sm:$0xff] %v3152_v2  ;;  %v2371_v3 = vadd.f32 %v2370_v1, %v7025_v43  ;;  %v2820_v11 = vadd.f32 %v2819_v32, %v7132_v52  ;;  %v2372_v31 = vpop.f32.mrb[113].mxu0  ;;  %v2821_v18 = vpop.f32.mrb[151].mxu1  ;;  %v3901_v1 = vld [vmem:[%s8253_s7 + $0x80] sm:$0xff]  ;;  %v3902_v32 = vld [vmem:[%s8253_s7 + $0x88] sm:$0xff] }
 0x320   : > { %3407 = vst [vmem:[%s7043_s19 + $0x2e8] sm:$0xff] %v3151_v10  ;;  %v3661_v61 = vadd.f32 %v3660_v51, %v3151_v10  ;;  %3409 = vst [vmem:[%s7043_s19 + $0x2f8] sm:$0xff] %v3153_v55  ;;  %v2373_v56 = vadd.f32 %v2372_v31, %v7030_v60  ;;  %v2822_v37 = vadd.f32 %v2821_v18, %v7138_v36 }
 0x321   : > { %v3154_v14 = vmax.f32 %v2371_v3, 0.0  ;;  %v3156_v0 = vmax.f32 %v2820_v11, 0.0 }
 0x322   : > { %v3155_v38 = vmax.f32 %v2373_v56, 0.0  ;;  %v3157_v28 = vmax.f32 %v2822_v37, 0.0  ;;  %v2376_v62 = vpop.f32.mrb[114].mxu0  ;;  %v2825_v27 = vpop.f32.mrb[152].mxu1  ;;  %v3885_v56 = vld [vmem:[%s8253_s7] sm:$0xff]  ;;  %v3886_v37 = vld [vmem:[%s8253_s7 + $0x8] sm:$0xff] }
 0x323   : > { %3410 = vst [vmem:[%s7043_s19 + $0x300] sm:$0xff] %v3154_v14  ;;  %v3593_v21 = vadd.f32 %v3592_v47, %v3154_v14  ;;  %3412 = vst [vmem:[%s7043_s19 + $0x310] sm:$0xff] %v3156_v0  ;;  %v2377_v30 = vadd.f32 %v2376_v62, %v7025_v43  ;;  %v2826_v29 = vadd.f32 %v2825_v27, %v7132_v52  ;;  %v2378_v59 = vpop.f32.mrb[115].mxu0  ;;  %v2827_v42 = vpop.f32.mrb[153].mxu1 }
 0x324   : > { %3411 = vst [vmem:[%s7043_s19 + $0x308] sm:$0xff] %v3155_v38  ;;  %v3662_v26 = vadd.f32 %v3661_v61, %v3155_v38  ;;  %3413 = vst [vmem:[%s7043_s19 + $0x318] sm:$0xff] %v3157_v28  ;;  %v2379_v6 = vadd.f32 %v2378_v59, %v7030_v60  ;;  %v2828_v22 = vadd.f32 %v2827_v42, %v7138_v36  ;;  %v3903_v42 = vld [vmem:[%s8253_s7 + $0x90] sm:$0xff] }
 0x325   : > { %v3158_v57 = vmax.f32 %v2377_v30, 0.0  ;;  %v3160_v41 = vmax.f32 %v2826_v29, 0.0  ;;  %v4868_v61 = vpack.c.bf16 %v3902_v32, %v3901_v1  ;;  %v4870_v28 = vpack.c.bf16 %v3886_v37, %v3885_v56 }
 0x326   : > { %v3159_v7 = vmax.f32 %v2379_v6, 0.0  ;;  %v3161_v45 = vmax.f32 %v2828_v22, 0.0  ;;  %v2382_v49 = vpop.f32.mrb[116].mxu0  ;;  %v2831_v40 = vpop.f32.mrb[154].mxu1 }
 0x327   : > { %3414 = vst [vmem:[%s7043_s19 + $0x320] sm:$0xff] %v3158_v57  ;;  %v3594_v34 = vadd.f32 %v3593_v21, %v3158_v57  ;;  %3416 = vst [vmem:[%s7043_s19 + $0x330] sm:$0xff] %v3160_v41  ;;  %v2383_v54 = vadd.f32 %v2382_v49, %v7025_v43  ;;  %v2832_v63 = vadd.f32 %v2831_v40, %v7132_v52  ;;  %v2384_v19 = vpop.f32.mrb[117].mxu0  ;;  %v2833_v13 = vpop.f32.mrb[155].mxu1  ;;  %4869 = vmatprep.subr.bf16.mxu0 %v4868_v61  ;;  %v3887_v49 = vld [vmem:[%s8253_s7 + $0x10] sm:$0xff]  ;;  %v3888_v40 = vld [vmem:[%s8253_s7 + $0x18] sm:$0xff] }
 0x328   : > { %3415 = vst [vmem:[%s7043_s19 + $0x328] sm:$0xff] %v3159_v7  ;;  %v3663_v25 = vadd.f32 %v3662_v26, %v3159_v7  ;;  %3417 = vst [vmem:[%s7043_s19 + $0x338] sm:$0xff] %v3161_v45  ;;  %v2385_v17 = vadd.f32 %v2384_v19, %v7030_v60  ;;  %v2834_v8 = vadd.f32 %v2833_v13, %v7138_v36  ;;  %4871 = vmatpush3.bf16.msra.mxu0 %v4870_v28  ;;  %v3904_v26 = vld [vmem:[%s8253_s7 + $0x98] sm:$0xff] }
 0x329   : > { %v3162_v44 = vmax.f32 %v2383_v54, 0.0  ;;  %v3164_v39 = vmax.f32 %v2832_v63, 0.0  ;;  %v4872_v45 = vpack.c.bf16 %v3904_v26, %v3903_v42  ;;  %v4874_v19 = vpack.c.bf16 %v3888_v40, %v3887_v49 }
 0x32a   : > { %v3163_v33 = vmax.f32 %v2385_v17, 0.0  ;;  %v3165_v12 = vmax.f32 %v2834_v8, 0.0  ;;  %v2388_v24 = vpop.f32.mrb[118].mxu0  ;;  %v2837_v4 = vpop.f32.mrb[156].mxu1 }
 0x32b   : > { %3418 = vst [vmem:[%s7043_s19 + $0x340] sm:$0xff] %v3162_v44  ;;  %v3595_v53 = vadd.f32 %v3594_v34, %v3162_v44  ;;  %3420 = vst [vmem:[%s7043_s19 + $0x350] sm:$0xff] %v3164_v39  ;;  %v2389_v23 = vadd.f32 %v2388_v24, %v7025_v43  ;;  %v2838_v20 = vadd.f32 %v2837_v4, %v7132_v52  ;;  %v2390_v48 = vpop.f32.mrb[119].mxu0  ;;  %v2839_v46 = vpop.f32.mrb[157].mxu1  ;;  %4873 = vmatprep.subr.bf16.mxu0 %v4872_v45 }
 0x32c   : > { %3419 = vst [vmem:[%s7043_s19 + $0x348] sm:$0xff] %v3163_v33  ;;  %v3664_v16 = vadd.f32 %v3663_v25, %v3163_v33  ;;  %3421 = vst [vmem:[%s7043_s19 + $0x358] sm:$0xff] %v3165_v12  ;;  %v2391_v50 = vadd.f32 %v2390_v48, %v7030_v60  ;;  %v2840_v51 = vadd.f32 %v2839_v46, %v7138_v36  ;;  %4875 = vmatpush3.bf16.msra.mxu0 %v4874_v19  ;;  %v3905_v33 = vld [vmem:[%s8253_s7 + $0xa0] sm:$0xff]  ;;  %v3906_v12 = vld [vmem:[%s8253_s7 + $0xa8] sm:$0xff] }
 0x32d   : > { %v3166_v9 = vmax.f32 %v2389_v23, 0.0  ;;  %v3168_v15 = vmax.f32 %v2838_v20, 0.0  ;;  %v4876_v48 = vpack.c.bf16 %v3906_v12, %v3905_v33  ;;  %v3889_v46 = vld [vmem:[%s8253_s7 + $0x20] sm:$0xff] }
 0x32e   : > { %v3167_v5 = vmax.f32 %v2391_v50, 0.0  ;;  %v3169_v2 = vmax.f32 %v2840_v51, 0.0  ;;  %v2394_v10 = vpop.f32.mrb[120].mxu0  ;;  %v2843_v55 = vpop.f32.mrb[158].mxu1 }
 0x32f   : > { %3422 = vst [vmem:[%s7043_s19 + $0x360] sm:$0xff] %v3166_v9  ;;  %v3596_v47 = vadd.f32 %v3595_v53, %v3166_v9  ;;  %3424 = vst [vmem:[%s7043_s19 + $0x370] sm:$0xff] %v3168_v15  ;;  %v2395_v3 = vadd.f32 %v2394_v10, %v7025_v43  ;;  %v2844_v11 = vadd.f32 %v2843_v55, %v7132_v52  ;;  %v2396_v31 = vpop.f32.mrb[121].mxu0  ;;  %v2845_v18 = vpop.f32.mrb[159].mxu1  ;;  %4877 = vmatprep.subr.bf16.mxu0 %v4876_v48 }
 0x330   : > { %3423 = vst [vmem:[%s7043_s19 + $0x368] sm:$0xff] %v3167_v5  ;;  %v3665_v14 = vadd.f32 %v3664_v16, %v3167_v5  ;;  %3425 = vst [vmem:[%s7043_s19 + $0x378] sm:$0xff] %v3169_v2  ;;  %v2397_v0 = vadd.f32 %v2396_v31, %v7030_v60  ;;  %v2846_v38 = vadd.f32 %v2845_v18, %v7138_v36  ;;  %v3890_v16 = vld [vmem:[%s8253_s7 + $0x28] sm:$0xff] }
 0x331   : > { %v3170_v62 = vmax.f32 %v2395_v3, 0.0  ;;  %v3172_v27 = vmax.f32 %v2844_v11, 0.0  ;;  %v4878_v15 = vpack.c.bf16 %v3890_v16, %v3889_v46  ;;  %v3908_v3 = vld [vmem:[%s8253_s7 + $0xb8] sm:$0xff] }
 0x332   : > { %v3171_v21 = vmax.f32 %v2397_v0, 0.0  ;;  %v3173_v30 = vmax.f32 %v2846_v38, 0.0  ;;  %v2400_v29 = vpop.f32.mrb[122].mxu0  ;;  %v2849_v59 = vpop.f32.mrb[160].mxu1  ;;  %v3892_v0 = vld [vmem:[%s8253_s7 + $0x38] sm:$0xff] }
 0x333   : > { %3426 = vst [vmem:[%s7043_s19 + $0x380] sm:$0xff] %v3170_v62  ;;  %v3597_v6 = vadd.f32 %v3596_v47, %v3170_v62  ;;  %3428 = vst [vmem:[%s7043_s19 + $0x390] sm:$0xff] %v3172_v27  ;;  %v2401_v22 = vadd.f32 %v2400_v29, %v7025_v43  ;;  %v2850_v57 = vadd.f32 %v2849_v59, %v7132_v52  ;;  %v2402_v41 = vpop.f32.mrb[123].mxu0  ;;  %v2851_v7 = vpop.f32.mrb[161].mxu1  ;;  %4879 = vmatpush3.bf16.msra.mxu0 %v4878_v15  ;;  %v3907_v47 = vld [vmem:[%s8253_s7 + $0xb0] sm:$0xff] }
 0x334   : > { %3427 = vst [vmem:[%s7043_s19 + $0x388] sm:$0xff] %v3171_v21  ;;  %v3666_v34 = vadd.f32 %v3665_v14, %v3171_v21  ;;  %3429 = vst [vmem:[%s7043_s19 + $0x398] sm:$0xff] %v3173_v30  ;;  %v2403_v54 = vadd.f32 %v2402_v41, %v7030_v60  ;;  %v2852_v63 = vadd.f32 %v2851_v7, %v7138_v36  ;;  %v3891_v14 = vld [vmem:[%s8253_s7 + $0x30] sm:$0xff] }
 0x335   : > { %v3174_v13 = vmax.f32 %v2401_v22, 0.0  ;;  %v3176_v25 = vmax.f32 %v2850_v57, 0.0  ;;  %v4880_v37 = vpack.c.bf16 %v3908_v3, %v3907_v47  ;;  %v4882_v27 = vpack.c.bf16 %v3892_v0, %v3891_v14  ;;  %v3910_v22 = vld [vmem:[%s8253_s7 + $0xc8] sm:$0xff] }
 0x336   : > { %v3175_v17 = vmax.f32 %v2403_v54, 0.0  ;;  %v3177_v8 = vmax.f32 %v2852_v63, 0.0  ;;  %v2406_v44 = vpop.f32.mrb[124].mxu0  ;;  %v2855_v39 = vpop.f32.mrb[162].mxu1  ;;  %v3894_v54 = vld [vmem:[%s8253_s7 + $0x48] sm:$0xff] }
 0x337   : > { %3430 = vst [vmem:[%s7043_s19 + $0x3a0] sm:$0xff] %v3174_v13  ;;  %v3598_v24 = vadd.f32 %v3597_v6, %v3174_v13  ;;  %3432 = vst [vmem:[%s7043_s19 + $0x3b0] sm:$0xff] %v3176_v25  ;;  %v2407_v4 = vadd.f32 %v2406_v44, %v7025_v43  ;;  %v2856_v53 = vadd.f32 %v2855_v39, %v7132_v52  ;;  %v2408_v23 = vpop.f32.mrb[125].mxu0  ;;  %v2857_v20 = vpop.f32.mrb[163].mxu1  ;;  %4881 = vmatprep.subr.bf16.mxu0 %v4880_v37  ;;  %v3909_v6 = vld [vmem:[%s8253_s7 + $0xc0] sm:$0xff] }
 0x338   : > { %3431 = vst [vmem:[%s7043_s19 + $0x3a8] sm:$0xff] %v3175_v17  ;;  %v3667_v50 = vadd.f32 %v3666_v34, %v3175_v17  ;;  %3433 = vst [vmem:[%s7043_s19 + $0x3b8] sm:$0xff] %v3177_v8  ;;  %v2409_v51 = vadd.f32 %v2408_v23, %v7030_v60  ;;  %v2858_v9 = vadd.f32 %v2857_v20, %v7138_v36  ;;  %4883 = vmatpush3.bf16.msra.mxu0 %v4882_v27  ;;  %v3893_v34 = vld [vmem:[%s8253_s7 + $0x40] sm:$0xff] }
 0x339   : > { %v3178_v5 = vmax.f32 %v2407_v4, 0.0  ;;  %v3180_v2 = vmax.f32 %v2856_v53, 0.0  ;;  %v4884_v40 = vpack.c.bf16 %v3910_v22, %v3909_v6  ;;  %v4886_v25 = vpack.c.bf16 %v3894_v54, %v3893_v34  ;;  %v3912_v4 = vld [vmem:[%s8253_s7 + $0xd8] sm:$0xff] }
 0x33a   : > { %v3179_v10 = vmax.f32 %v2409_v51, 0.0  ;;  %v3181_v55 = vmax.f32 %v2858_v9, 0.0  ;;  %v2412_v1 = vpop.f32.mrb[126].mxu0  ;;  %v2861_v32 = vpop.f32.mrb[164].mxu1  ;;  %v3896_v51 = vld [vmem:[%s8253_s7 + $0x58] sm:$0xff] }
 0x33b   : > { %3434 = vst [vmem:[%s7043_s19 + $0x3c0] sm:$0xff] %v3178_v5  ;;  %v3599_v11 = vadd.f32 %v3598_v24, %v3178_v5  ;;  %3436 = vst [vmem:[%s7043_s19 + $0x3d0] sm:$0xff] %v3180_v2  ;;  %v2413_v31 = vadd.f32 %v2412_v1, %v7025_v43  ;;  %v2862_v18 = vadd.f32 %v2861_v32, %v7132_v52  ;;  %v2414_v61 = vpop.f32.mrb[127].mxu0  ;;  %v2863_v56 = vpop.f32.mrb[165].mxu1  ;;  %4885 = vmatprep.subr.bf16.mxu0 %v4884_v40  ;;  %v3911_v24 = vld [vmem:[%s8253_s7 + $0xd0] sm:$0xff] }
 0x33c   : > { %3435 = vst [vmem:[%s7043_s19 + $0x3c8] sm:$0xff] %v3179_v10  ;;  %v3668_v38 = vadd.f32 %v3667_v50, %v3179_v10  ;;  %3437 = vst [vmem:[%s7043_s19 + $0x3d8] sm:$0xff] %v3181_v55  ;;  %v2415_v28 = vadd.f32 %v2414_v61, %v7030_v60  ;;  %v2864_v62 = vadd.f32 %v2863_v56, %v7138_v36  ;;  %4887 = vmatpush3.bf16.msra.mxu0 %v4886_v25  ;;  %v3895_v50 = vld [vmem:[%s8253_s7 + $0x50] sm:$0xff] }
 0x33d   : > { %v3182_v21 = vmax.f32 %v2413_v31, 0.0  ;;  %v3184_v30 = vmax.f32 %v2862_v18, 0.0  ;;  %v4888_v16 = vpack.c.bf16 %v3912_v4, %v3911_v24  ;;  %v4890_v2 = vpack.c.bf16 %v3896_v51, %v3895_v50  ;;  %v3914_v31 = vld [vmem:[%s8253_s7 + $0xe8] sm:$0xff] }
 0x33e   : > { %v3183_v29 = vmax.f32 %v2415_v28, 0.0  ;;  %v3185_v59 = vmax.f32 %v2864_v62, 0.0  ;;  %v2418_v42 = vpop.f32.mrb[128].mxu0  ;;  %v2867_v26 = vpop.f32.mrb[166].mxu1  ;;  %v3898_v28 = vld [vmem:[%s8253_s7 + $0x68] sm:$0xff] }
 0x33f   : > { %3438 = vst [vmem:[%s7043_s19 + $0x3e0] sm:$0xff] %v3182_v21  ;;  %v3600_v57 = vadd.f32 %v3599_v11, %v3182_v21  ;;  %3440 = vst [vmem:[%s7043_s19 + $0x3f0] sm:$0xff] %v3184_v30  ;;  %v2419_v41 = vadd.f32 %v2418_v42, %v7025_v43  ;;  %v2868_v7 = vadd.f32 %v2867_v26, %v7132_v52  ;;  %v2420_v45 = vpop.f32.mrb[129].mxu0  ;;  %v2869_v49 = vpop.f32.mrb[167].mxu1  ;;  %4889 = vmatprep.subr.bf16.mxu0 %v4888_v16  ;;  %v3913_v11 = vld [vmem:[%s8253_s7 + $0xe0] sm:$0xff] }
 0x340   : > { %3439 = vst [vmem:[%s7043_s19 + $0x3e8] sm:$0xff] %v3183_v29  ;;  %v3669_v63 = vadd.f32 %v3668_v38, %v3183_v29  ;;  %3441 = vst [vmem:[%s7043_s19 + $0x3f8] sm:$0xff] %v3185_v59  ;;  %v2421_v19 = vadd.f32 %v2420_v45, %v7030_v60  ;;  %v2870_v13 = vadd.f32 %v2869_v49, %v7138_v36  ;;  %4891 = vmatpush3.bf16.msra.mxu0 %v4890_v2  ;;  %v3897_v38 = vld [vmem:[%s8253_s7 + $0x60] sm:$0xff] }
 0x341   : > { %v3186_v17 = vmax.f32 %v2419_v41, 0.0  ;;  %v3188_v8 = vmax.f32 %v2868_v7, 0.0  ;;  %v4892_v0 = vpack.c.bf16 %v3914_v31, %v3913_v11  ;;  %v4894_v30 = vpack.c.bf16 %v3898_v28, %v3897_v38  ;;  %v3916_v41 = vld [vmem:[%s8253_s7 + $0xf8] sm:$0xff] }
 0x342   : > { %v3187_v44 = vmax.f32 %v2421_v19, 0.0  ;;  %v3189_v39 = vmax.f32 %v2870_v13, 0.0  ;;  %v2424_v33 = vpop.f32.mrb[130].mxu0  ;;  %v2873_v12 = vpop.f32.mrb[168].mxu1  ;;  %v3900_v19 = vld [vmem:[%s8253_s7 + $0x78] sm:$0xff] }
 0x343   : > { %3442 = vst [vmem:[%s7043_s19 + $0x400] sm:$0xff] %v3186_v17  ;;  %v3601_v53 = vadd.f32 %v3600_v57, %v3186_v17  ;;  %3444 = vst [vmem:[%s7043_s19 + $0x410] sm:$0xff] %v3188_v8  ;;  %v2425_v23 = vadd.f32 %v2424_v33, %v7025_v43  ;;  %v2874_v20 = vadd.f32 %v2873_v12, %v7132_v52  ;;  %v2426_v48 = vpop.f32.mrb[131].mxu0  ;;  %v2875_v46 = vpop.f32.mrb[169].mxu1  ;;  %4893 = vmatprep.subr.bf16.mxu0 %v4892_v0  ;;  %v3915_v57 = vld [vmem:[%s8253_s7 + $0xf0] sm:$0xff] }
 0x344   : > { %3443 = vst [vmem:[%s7043_s19 + $0x408] sm:$0xff] %v3187_v44  ;;  %v3670_v9 = vadd.f32 %v3669_v63, %v3187_v44  ;;  %3445 = vst [vmem:[%s7043_s19 + $0x418] sm:$0xff] %v3189_v39  ;;  %v2427_v15 = vadd.f32 %v2426_v48, %v7030_v60  ;;  %v2876_v5 = vadd.f32 %v2875_v46, %v7138_v36  ;;  %4895 = vmatpush3.bf16.msra.mxu0 %v4894_v30  ;;  %v3899_v63 = vld [vmem:[%s8253_s7 + $0x70] sm:$0xff] }
 0x345   : > { %v3190_v10 = vmax.f32 %v2425_v23, 0.0  ;;  %v3192_v55 = vmax.f32 %v2874_v20, 0.0  ;;  %v4896_v54 = vpack.c.bf16 %v3916_v41, %v3915_v57  ;;  %v4898_v8 = vpack.c.bf16 %v3900_v19, %v3899_v63 }
 0x346   : > { %v3191_v1 = vmax.f32 %v2427_v15, 0.0  ;;  %v3193_v32 = vmax.f32 %v2876_v5, 0.0  ;;  %v2430_v47 = vpop.f32.mrb[132].mxu0  ;;  %v2879_v3 = vpop.f32.mrb[170].mxu1 }
 0x347   : > { %3446 = vst [vmem:[%s7043_s19 + $0x420] sm:$0xff] %v3190_v10  ;;  %v3602_v18 = vadd.f32 %v3601_v53, %v3190_v10  ;;  %3448 = vst [vmem:[%s7043_s19 + $0x430] sm:$0xff] %v3192_v55  ;;  %v2431_v61 = vadd.f32 %v2430_v47, %v7025_v43  ;;  %v2880_v56 = vadd.f32 %v2879_v3, %v7132_v52  ;;  %v2432_v37 = vpop.f32.mrb[133].mxu0  ;;  %v2881_v14 = vpop.f32.mrb[171].mxu1  ;;  %4897 = vmatprep.subr.bf16.mxu0 %v4896_v54 }
 0x348   : > { %3447 = vst [vmem:[%s7043_s19 + $0x428] sm:$0xff] %v3191_v1  ;;  %v3671_v62 = vadd.f32 %v3670_v9, %v3191_v1  ;;  %3449 = vst [vmem:[%s7043_s19 + $0x438] sm:$0xff] %v3193_v32  ;;  %v2433_v27 = vadd.f32 %v2432_v37, %v7030_v60  ;;  %v2882_v21 = vadd.f32 %v2881_v14, %v7138_v36  ;;  %4899 = vmatpush3.bf16.msra.mxu0 %v4898_v8 }
 0x349   : > { %v3194_v29 = vmax.f32 %v2431_v61, 0.0  ;;  %v3196_v59 = vmax.f32 %v2880_v56, 0.0 }
 0x34a   : > { %v3195_v42 = vmax.f32 %v2433_v27, 0.0  ;;  %v3197_v26 = vmax.f32 %v2882_v21, 0.0  ;;  %v2436_v6 = vpop.f32.mrb[134].mxu0  ;;  %v2885_v22 = vpop.f32.mrb[172].mxu1 }
 0x34b   : > { %3450 = vst [vmem:[%s7043_s19 + $0x440] sm:$0xff] %v3194_v29  ;;  %v3603_v7 = vadd.f32 %v3602_v18, %v3194_v29  ;;  %3452 = vst [vmem:[%s7043_s19 + $0x450] sm:$0xff] %v3196_v59  ;;  %v2437_v45 = vadd.f32 %v2436_v6, %v7025_v43  ;;  %v2886_v49 = vadd.f32 %v2885_v22, %v7132_v52  ;;  %v2438_v40 = vpop.f32.mrb[135].mxu0  ;;  %v2887_v34 = vpop.f32.mrb[173].mxu1 }
 0x34c   : > { %3451 = vst [vmem:[%s7043_s19 + $0x448] sm:$0xff] %v3195_v42  ;;  %v3672_v13 = vadd.f32 %v3671_v62, %v3195_v42  ;;  %3453 = vst [vmem:[%s7043_s19 + $0x458] sm:$0xff] %v3197_v26  ;;  %v2439_v25 = vadd.f32 %v2438_v40, %v7030_v60  ;;  %v2888_v17 = vadd.f32 %v2887_v34, %v7138_v36 }
 0x34d   : > { %v3198_v44 = vmax.f32 %v2437_v45, 0.0  ;;  %v3200_v39 = vmax.f32 %v2886_v49, 0.0 }
 0x34e   : > { %v3199_v33 = vmax.f32 %v2439_v25, 0.0  ;;  %v3201_v12 = vmax.f32 %v2888_v17, 0.0  ;;  %v2442_v24 = vpop.f32.mrb[136].mxu0  ;;  %v2891_v4 = vpop.f32.mrb[174].mxu1 }
 0x34f   : > { %3454 = vst [vmem:[%s7043_s19 + $0x460] sm:$0xff] %v3198_v44  ;;  %v3604_v53 = vadd.f32 %v3603_v7, %v3198_v44  ;;  %3456 = vst [vmem:[%s7043_s19 + $0x470] sm:$0xff] %v3200_v39  ;;  %v2443_v23 = vadd.f32 %v2442_v24, %v7025_v43  ;;  %v2892_v20 = vadd.f32 %v2891_v4, %v7132_v52  ;;  %v2444_v48 = vpop.f32.mrb[137].mxu0  ;;  %v2893_v46 = vpop.f32.mrb[175].mxu1 }
 0x350   : > { %3455 = vst [vmem:[%s7043_s19 + $0x468] sm:$0xff] %v3199_v33  ;;  %v3673_v16 = vadd.f32 %v3672_v13, %v3199_v33  ;;  %3457 = vst [vmem:[%s7043_s19 + $0x478] sm:$0xff] %v3201_v12  ;;  %v2445_v50 = vadd.f32 %v2444_v48, %v7030_v60  ;;  %v2894_v51 = vadd.f32 %v2893_v46, %v7138_v36 }
 0x351   : > { %v3202_v9 = vmax.f32 %v2443_v23, 0.0  ;;  %v3204_v15 = vmax.f32 %v2892_v20, 0.0 }
 0x352   : > { %v3203_v5 = vmax.f32 %v2445_v50, 0.0  ;;  %v3205_v2 = vmax.f32 %v2894_v51, 0.0  ;;  %v2448_v10 = vpop.f32.mrb[138].mxu0  ;;  %v2897_v55 = vpop.f32.mrb[176].mxu1 }
 0x353   : > { %3458 = vst [vmem:[%s7043_s19 + $0x480] sm:$0xff] %v3202_v9  ;;  %v3605_v1 = vadd.f32 %v3604_v53, %v3202_v9  ;;  %3460 = vst [vmem:[%s7043_s19 + $0x490] sm:$0xff] %v3204_v15  ;;  %v2449_v32 = vadd.f32 %v2448_v10, %v7025_v43  ;;  %v2898_v47 = vadd.f32 %v2897_v55, %v7132_v52  ;;  %v2450_v3 = vpop.f32.mrb[139].mxu0  ;;  %v2899_v11 = vpop.f32.mrb[177].mxu1 }
 0x354   : > { %3459 = vst [vmem:[%s7043_s19 + $0x488] sm:$0xff] %v3203_v5  ;;  %v3674_v31 = vadd.f32 %v3673_v16, %v3203_v5  ;;  %3461 = vst [vmem:[%s7043_s19 + $0x498] sm:$0xff] %v3205_v2  ;;  %v2451_v18 = vadd.f32 %v2450_v3, %v7030_v60  ;;  %v2900_v61 = vadd.f32 %v2899_v11, %v7138_v36 }
 0x355   : > { %v3206_v56 = vmax.f32 %v2449_v32, 0.0  ;;  %v3208_v37 = vmax.f32 %v2898_v47, 0.0 }
 0x356   : > { %v3207_v14 = vmax.f32 %v2451_v18, 0.0  ;;  %v3209_v0 = vmax.f32 %v2900_v61, 0.0  ;;  %v2454_v38 = vpop.f32.mrb[140].mxu0  ;;  %v2903_v28 = vpop.f32.mrb[178].mxu1 }
 0x357   : > { %3462 = vst [vmem:[%s7043_s19 + $0x4a0] sm:$0xff] %v3206_v56  ;;  %v3606_v62 = vadd.f32 %v3605_v1, %v3206_v56  ;;  %3464 = vst [vmem:[%s7043_s19 + $0x4b0] sm:$0xff] %v3208_v37  ;;  %v2455_v27 = vadd.f32 %v2454_v38, %v7025_v43  ;;  %v2904_v21 = vadd.f32 %v2903_v28, %v7132_v52  ;;  %v2456_v30 = vpop.f32.mrb[141].mxu0  ;;  %v2905_v29 = vpop.f32.mrb[179].mxu1 }
 0x358   : > { %3463 = vst [vmem:[%s7043_s19 + $0x4a8] sm:$0xff] %v3207_v14  ;;  %v3675_v59 = vadd.f32 %v3674_v31, %v3207_v14  ;;  %3465 = vst [vmem:[%s7043_s19 + $0x4b8] sm:$0xff] %v3209_v0  ;;  %v2457_v42 = vadd.f32 %v2456_v30, %v7030_v60  ;;  %v2906_v26 = vadd.f32 %v2905_v29, %v7138_v36 }
 0x359   : > { %v3210_v6 = vmax.f32 %v2455_v27, 0.0  ;;  %v3212_v22 = vmax.f32 %v2904_v21, 0.0 }
 0x35a   : > { %v3211_v57 = vmax.f32 %v2457_v42, 0.0  ;;  %v3213_v41 = vmax.f32 %v2906_v26, 0.0  ;;  %v2460_v7 = vpop.f32.mrb[142].mxu0  ;;  %v2909_v45 = vpop.f32.mrb[180].mxu1 }
 0x35b   : > { %3466 = vst [vmem:[%s7043_s19 + $0x4c0] sm:$0xff] %v3210_v6  ;;  %v3607_v49 = vadd.f32 %v3606_v62, %v3210_v6  ;;  %3468 = vst [vmem:[%s7043_s19 + $0x4d0] sm:$0xff] %v3212_v22  ;;  %v2461_v40 = vadd.f32 %v2460_v7, %v7025_v43  ;;  %v2910_v34 = vadd.f32 %v2909_v45, %v7132_v52  ;;  %v2462_v54 = vpop.f32.mrb[143].mxu0  ;;  %v2911_v63 = vpop.f32.mrb[181].mxu1 }
 0x35c   : > { %3467 = vst [vmem:[%s7043_s19 + $0x4c8] sm:$0xff] %v3211_v57  ;;  %v3676_v19 = vadd.f32 %v3675_v59, %v3211_v57  ;;  %3469 = vst [vmem:[%s7043_s19 + $0x4d8] sm:$0xff] %v3213_v41  ;;  %v2463_v13 = vadd.f32 %v2462_v54, %v7030_v60  ;;  %v2912_v25 = vadd.f32 %v2911_v63, %v7138_v36 }
 0x35d   : > { %v3214_v17 = vmax.f32 %v2461_v40, 0.0  ;;  %v3216_v8 = vmax.f32 %v2910_v34, 0.0 }
 0x35e   : > { %v3215_v44 = vmax.f32 %v2463_v13, 0.0  ;;  %v3217_v39 = vmax.f32 %v2912_v25, 0.0  ;;  %v2466_v33 = vpop.f32.mrb[144].mxu0  ;;  %v2915_v12 = vpop.f32.mrb[182].mxu1 }
 0x35f   : > { %3470 = vst [vmem:[%s7043_s19 + $0x4e0] sm:$0xff] %v3214_v17  ;;  %v3608_v24 = vadd.f32 %v3607_v49, %v3214_v17  ;;  %3472 = vst [vmem:[%s7043_s19 + $0x4f0] sm:$0xff] %v3216_v8  ;;  %v2467_v4 = vadd.f32 %v2466_v33, %v7025_v43  ;;  %v2916_v53 = vadd.f32 %v2915_v12, %v7132_v52  ;;  %v2468_v23 = vpop.f32.mrb[145].mxu0  ;;  %v2917_v20 = vpop.f32.mrb[183].mxu1 }
 0x360   : > { %3471 = vst [vmem:[%s7043_s19 + $0x4e8] sm:$0xff] %v3215_v44  ;;  %v3677_v48 = vadd.f32 %v3676_v19, %v3215_v44  ;;  %3473 = vst [vmem:[%s7043_s19 + $0x4f8] sm:$0xff] %v3217_v39  ;;  %v2469_v46 = vadd.f32 %v2468_v23, %v7030_v60  ;;  %v2918_v16 = vadd.f32 %v2917_v20, %v7138_v36 }
 0x361   : > { %v3218_v50 = vmax.f32 %v2467_v4, 0.0  ;;  %v3220_v51 = vmax.f32 %v2916_v53, 0.0 }
 0x362   : > { %v3219_v9 = vmax.f32 %v2469_v46, 0.0  ;;  %v3221_v15 = vmax.f32 %v2918_v16, 0.0  ;;  %v2472_v5 = vpop.f32.mrb[146].mxu0  ;;  %v2921_v2 = vpop.f32.mrb[184].mxu1 }
 0x363   : > { %3474 = vst [vmem:[%s7043_s19 + $0x500] sm:$0xff] %v3218_v50  ;;  %v3609_v10 = vadd.f32 %v3608_v24, %v3218_v50  ;;  %3476 = vst [vmem:[%s7043_s19 + $0x510] sm:$0xff] %v3220_v51  ;;  %v2473_v55 = vadd.f32 %v2472_v5, %v7025_v43  ;;  %v2922_v1 = vadd.f32 %v2921_v2, %v7132_v52  ;;  %v2474_v32 = vpop.f32.mrb[147].mxu0  ;;  %v2923_v47 = vpop.f32.mrb[185].mxu1 }
 0x364   : > { %3475 = vst [vmem:[%s7043_s19 + $0x508] sm:$0xff] %v3219_v9  ;;  %v3678_v3 = vadd.f32 %v3677_v48, %v3219_v9  ;;  %3477 = vst [vmem:[%s7043_s19 + $0x518] sm:$0xff] %v3221_v15  ;;  %v2475_v11 = vadd.f32 %v2474_v32, %v7030_v60  ;;  %v2924_v31 = vadd.f32 %v2923_v47, %v7138_v36 }
 0x365   : > { %v3222_v18 = vmax.f32 %v2473_v55, 0.0  ;;  %v3224_v61 = vmax.f32 %v2922_v1, 0.0 }
 0x366   : > { %v3223_v56 = vmax.f32 %v2475_v11, 0.0  ;;  %v3225_v37 = vmax.f32 %v2924_v31, 0.0  ;;  %v2478_v14 = vpop.f32.mrb[148].mxu0  ;;  %v2927_v0 = vpop.f32.mrb[186].mxu1 }
 0x367   : > { %3478 = vst [vmem:[%s7043_s19 + $0x520] sm:$0xff] %v3222_v18  ;;  %v3610_v38 = vadd.f32 %v3609_v10, %v3222_v18  ;;  %3480 = vst [vmem:[%s7043_s19 + $0x530] sm:$0xff] %v3224_v61  ;;  %v2479_v28 = vadd.f32 %v2478_v14, %v7025_v43  ;;  %v2928_v62 = vadd.f32 %v2927_v0, %v7132_v52  ;;  %v2480_v27 = vpop.f32.mrb[149].mxu0  ;;  %v2929_v21 = vpop.f32.mrb[187].mxu1 }
 0x368   : > { %3479 = vst [vmem:[%s7043_s19 + $0x528] sm:$0xff] %v3223_v56  ;;  %v3679_v30 = vadd.f32 %v3678_v3, %v3223_v56  ;;  %3481 = vst [vmem:[%s7043_s19 + $0x538] sm:$0xff] %v3225_v37  ;;  %v2481_v29 = vadd.f32 %v2480_v27, %v7030_v60  ;;  %v2930_v59 = vadd.f32 %v2929_v21, %v7138_v36 }
 0x369   : > { %v3226_v42 = vmax.f32 %v2479_v28, 0.0  ;;  %v3228_v26 = vmax.f32 %v2928_v62, 0.0 }
 0x36a   : > { %v3227_v6 = vmax.f32 %v2481_v29, 0.0  ;;  %v3229_v22 = vmax.f32 %v2930_v59, 0.0  ;;  %v2484_v57 = vpop.f32.mrb[150].mxu0  ;;  %v2933_v41 = vpop.f32.mrb[188].mxu1 }
 0x36b   : > { %3482 = vst [vmem:[%s7043_s19 + $0x540] sm:$0xff] %v3226_v42  ;;  %v3611_v7 = vadd.f32 %v3610_v38, %v3226_v42  ;;  %3484 = vst [vmem:[%s7043_s19 + $0x550] sm:$0xff] %v3228_v26  ;;  %v2485_v45 = vadd.f32 %v2484_v57, %v7025_v43  ;;  %v2934_v49 = vadd.f32 %v2933_v41, %v7132_v52  ;;  %v2486_v40 = vpop.f32.mrb[151].mxu0  ;;  %v2935_v34 = vpop.f32.mrb[189].mxu1 }
 0x36c   : > { %3483 = vst [vmem:[%s7043_s19 + $0x548] sm:$0xff] %v3227_v6  ;;  %v3680_v54 = vadd.f32 %v3679_v30, %v3227_v6  ;;  %3485 = vst [vmem:[%s7043_s19 + $0x558] sm:$0xff] %v3229_v22  ;;  %v2487_v63 = vadd.f32 %v2486_v40, %v7030_v60  ;;  %v2936_v19 = vadd.f32 %v2935_v34, %v7138_v36 }
 0x36d   : > { %v3230_v13 = vmax.f32 %v2485_v45, 0.0  ;;  %v3232_v25 = vmax.f32 %v2934_v49, 0.0 }
 0x36e   : > { %v3231_v17 = vmax.f32 %v2487_v63, 0.0  ;;  %v3233_v8 = vmax.f32 %v2936_v19, 0.0  ;;  %v2490_v44 = vpop.f32.mrb[152].mxu0  ;;  %v2939_v39 = vpop.f32.mrb[190].mxu1 }
 0x36f   : > { %3486 = vst [vmem:[%s7043_s19 + $0x560] sm:$0xff] %v3230_v13  ;;  %v3612_v33 = vadd.f32 %v3611_v7, %v3230_v13  ;;  %3488 = vst [vmem:[%s7043_s19 + $0x570] sm:$0xff] %v3232_v25  ;;  %v2491_v12 = vadd.f32 %v2490_v44, %v7025_v43  ;;  %v2940_v24 = vadd.f32 %v2939_v39, %v7132_v52  ;;  %v2492_v4 = vpop.f32.mrb[153].mxu0  ;;  %v2941_v53 = vpop.f32.mrb[191].mxu1 }
 0x370   : > { %3487 = vst [vmem:[%s7043_s19 + $0x568] sm:$0xff] %v3231_v17  ;;  %v3681_v23 = vadd.f32 %v3680_v54, %v3231_v17  ;;  %3489 = vst [vmem:[%s7043_s19 + $0x578] sm:$0xff] %v3233_v8  ;;  %v2493_v20 = vadd.f32 %v2492_v4, %v7030_v60  ;;  %v2942_v48 = vadd.f32 %v2941_v53, %v7138_v36 }
 0x371   : > { %v3234_v46 = vmax.f32 %v2491_v12, 0.0  ;;  %v3236_v16 = vmax.f32 %v2940_v24, 0.0 }
 0x372   : > { %v3235_v50 = vmax.f32 %v2493_v20, 0.0  ;;  %v3237_v51 = vmax.f32 %v2942_v48, 0.0  ;;  %v2496_v9 = vpop.f32.mrb[154].mxu0  ;;  %v2945_v15 = vpop.f32.mrb[192].mxu1 }
 0x373   : > { %3490 = vst [vmem:[%s7043_s19 + $0x580] sm:$0xff] %v3234_v46  ;;  %v3613_v5 = vadd.f32 %v3612_v33, %v3234_v46  ;;  %3492 = vst [vmem:[%s7043_s19 + $0x590] sm:$0xff] %v3236_v16  ;;  %v2497_v2 = vadd.f32 %v2496_v9, %v7025_v43  ;;  %v2946_v10 = vadd.f32 %v2945_v15, %v7132_v52  ;;  %v2498_v55 = vpop.f32.mrb[155].mxu0  ;;  %v2947_v1 = vpop.f32.mrb[193].mxu1 }
 0x374   : > { %3491 = vst [vmem:[%s7043_s19 + $0x588] sm:$0xff] %v3235_v50  ;;  %v3682_v32 = vadd.f32 %v3681_v23, %v3235_v50  ;;  %3493 = vst [vmem:[%s7043_s19 + $0x598] sm:$0xff] %v3237_v51  ;;  %v2499_v47 = vadd.f32 %v2498_v55, %v7030_v60  ;;  %v2948_v3 = vadd.f32 %v2947_v1, %v7138_v36 }
 0x375   : > { %v3238_v11 = vmax.f32 %v2497_v2, 0.0  ;;  %v3240_v31 = vmax.f32 %v2946_v10, 0.0 }
 0x376   : > { %v3239_v18 = vmax.f32 %v2499_v47, 0.0  ;;  %v3241_v61 = vmax.f32 %v2948_v3, 0.0  ;;  %v2502_v56 = vpop.f32.mrb[156].mxu0  ;;  %v2951_v37 = vpop.f32.mrb[194].mxu1 }
 0x377   : > { %3494 = vst [vmem:[%s7043_s19 + $0x5a0] sm:$0xff] %v3238_v11  ;;  %v3614_v14 = vadd.f32 %v3613_v5, %v3238_v11  ;;  %3496 = vst [vmem:[%s7043_s19 + $0x5b0] sm:$0xff] %v3240_v31  ;;  %v2503_v0 = vadd.f32 %v2502_v56, %v7025_v43  ;;  %v2952_v38 = vadd.f32 %v2951_v37, %v7132_v52  ;;  %v2504_v28 = vpop.f32.mrb[157].mxu0  ;;  %v2953_v62 = vpop.f32.mrb[195].mxu1 }
 0x378   : > { %3495 = vst [vmem:[%s7043_s19 + $0x5a8] sm:$0xff] %v3239_v18  ;;  %v3683_v27 = vadd.f32 %v3682_v32, %v3239_v18  ;;  %3497 = vst [vmem:[%s7043_s19 + $0x5b8] sm:$0xff] %v3241_v61  ;;  %v2505_v21 = vadd.f32 %v2504_v28, %v7030_v60  ;;  %v2954_v30 = vadd.f32 %v2953_v62, %v7138_v36 }
 0x379   : > { %v3242_v29 = vmax.f32 %v2503_v0, 0.0  ;;  %v3244_v59 = vmax.f32 %v2952_v38, 0.0 }
 0x37a   : > { %v3243_v42 = vmax.f32 %v2505_v21, 0.0  ;;  %v3245_v26 = vmax.f32 %v2954_v30, 0.0  ;;  %v2508_v6 = vpop.f32.mrb[158].mxu0  ;;  %v2957_v22 = vpop.f32.mrb[196].mxu1 }
 0x37b   : > { %3498 = vst [vmem:[%s7043_s19 + $0x5c0] sm:$0xff] %v3242_v29  ;;  %v3615_v57 = vadd.f32 %v3614_v14, %v3242_v29  ;;  %3500 = vst [vmem:[%s7043_s19 + $0x5d0] sm:$0xff] %v3244_v59  ;;  %v2509_v41 = vadd.f32 %v2508_v6, %v7025_v43  ;;  %v2958_v7 = vadd.f32 %v2957_v22, %v7132_v52  ;;  %v2510_v45 = vpop.f32.mrb[159].mxu0  ;;  %v2959_v49 = vpop.f32.mrb[197].mxu1 }
 0x37c   : > { %3499 = vst [vmem:[%s7043_s19 + $0x5c8] sm:$0xff] %v3243_v42  ;;  %v3684_v40 = vadd.f32 %v3683_v27, %v3243_v42  ;;  %3501 = vst [vmem:[%s7043_s19 + $0x5d8] sm:$0xff] %v3245_v26  ;;  %v2511_v34 = vadd.f32 %v2510_v45, %v7030_v60  ;;  %v2960_v54 = vadd.f32 %v2959_v49, %v7138_v36 }
 0x37d   : > { %v3246_v63 = vmax.f32 %v2509_v41, 0.0  ;;  %v3248_v19 = vmax.f32 %v2958_v7, 0.0 }
 0x37e   : > { %v3247_v13 = vmax.f32 %v2511_v34, 0.0  ;;  %v3249_v25 = vmax.f32 %v2960_v54, 0.0  ;;  %v2514_v17 = vpop.f32.mrb[160].mxu0  ;;  %v2963_v8 = vpop.f32.mrb[198].mxu1 }
 0x37f   : > { %3502 = vst [vmem:[%s7043_s19 + $0x5e0] sm:$0xff] %v3246_v63  ;;  %v3616_v44 = vadd.f32 %v3615_v57, %v3246_v63  ;;  %3504 = vst [vmem:[%s7043_s19 + $0x5f0] sm:$0xff] %v3248_v19  ;;  %v2515_v39 = vadd.f32 %v2514_v17, %v7025_v43  ;;  %v2964_v33 = vadd.f32 %v2963_v8, %v7132_v52  ;;  %v2516_v12 = vpop.f32.mrb[161].mxu0  ;;  %v2965_v24 = vpop.f32.mrb[199].mxu1 }
 0x380   : > { %3503 = vst [vmem:[%s7043_s19 + $0x5e8] sm:$0xff] %v3247_v13  ;;  %v3685_v4 = vadd.f32 %v3684_v40, %v3247_v13  ;;  %3505 = vst [vmem:[%s7043_s19 + $0x5f8] sm:$0xff] %v3249_v25  ;;  %v2517_v53 = vadd.f32 %v2516_v12, %v7030_v60  ;;  %v2966_v23 = vadd.f32 %v2965_v24, %v7138_v36 }
 0x381   : > { %v3250_v20 = vmax.f32 %v2515_v39, 0.0  ;;  %v3252_v48 = vmax.f32 %v2964_v33, 0.0 }
 0x382   : > { %v3251_v46 = vmax.f32 %v2517_v53, 0.0  ;;  %v3253_v16 = vmax.f32 %v2966_v23, 0.0  ;;  %v2520_v50 = vpop.f32.mrb[162].mxu0  ;;  %v2969_v51 = vpop.f32.mrb[200].mxu1 }
 0x383   : > { %3506 = vst [vmem:[%s7043_s19 + $0x600] sm:$0xff] %v3250_v20  ;;  %v3617_v9 = vadd.f32 %v3616_v44, %v3250_v20  ;;  %3508 = vst [vmem:[%s7043_s19 + $0x610] sm:$0xff] %v3252_v48  ;;  %v2521_v15 = vadd.f32 %v2520_v50, %v7025_v43  ;;  %v2970_v5 = vadd.f32 %v2969_v51, %v7132_v52  ;;  %v2522_v2 = vpop.f32.mrb[163].mxu0  ;;  %v2971_v10 = vpop.f32.mrb[201].mxu1 }
 0x384   : > { %3507 = vst [vmem:[%s7043_s19 + $0x608] sm:$0xff] %v3251_v46  ;;  %v3686_v55 = vadd.f32 %v3685_v4, %v3251_v46  ;;  %3509 = vst [vmem:[%s7043_s19 + $0x618] sm:$0xff] %v3253_v16  ;;  %v2523_v1 = vadd.f32 %v2522_v2, %v7030_v60  ;;  %v2972_v32 = vadd.f32 %v2971_v10, %v7138_v36 }
 0x385   : > { %v3254_v47 = vmax.f32 %v2521_v15, 0.0  ;;  %v3256_v3 = vmax.f32 %v2970_v5, 0.0 }
 0x386   : > { %v3255_v11 = vmax.f32 %v2523_v1, 0.0  ;;  %v3257_v31 = vmax.f32 %v2972_v32, 0.0  ;;  %v2526_v18 = vpop.f32.mrb[164].mxu0  ;;  %v2975_v61 = vpop.f32.mrb[202].mxu1 }
 0x387   : > { %3510 = vst [vmem:[%s7043_s19 + $0x620] sm:$0xff] %v3254_v47  ;;  %v3618_v56 = vadd.f32 %v3617_v9, %v3254_v47  ;;  %3512 = vst [vmem:[%s7043_s19 + $0x630] sm:$0xff] %v3256_v3  ;;  %v2527_v37 = vadd.f32 %v2526_v18, %v7025_v43  ;;  %v2976_v14 = vadd.f32 %v2975_v61, %v7132_v52  ;;  %v2528_v0 = vpop.f32.mrb[165].mxu0  ;;  %v2977_v38 = vpop.f32.mrb[203].mxu1 }
 0x388   : > { %3511 = vst [vmem:[%s7043_s19 + $0x628] sm:$0xff] %v3255_v11  ;;  %v3687_v28 = vadd.f32 %v3686_v55, %v3255_v11  ;;  %3513 = vst [vmem:[%s7043_s19 + $0x638] sm:$0xff] %v3257_v31  ;;  %v2529_v62 = vadd.f32 %v2528_v0, %v7030_v60  ;;  %v2978_v27 = vadd.f32 %v2977_v38, %v7138_v36 }
 0x389   : > { %v3258_v21 = vmax.f32 %v2527_v37, 0.0  ;;  %v3260_v30 = vmax.f32 %v2976_v14, 0.0 }
 0x38a   : > { %v3259_v29 = vmax.f32 %v2529_v62, 0.0  ;;  %v3261_v59 = vmax.f32 %v2978_v27, 0.0  ;;  %v2532_v42 = vpop.f32.mrb[166].mxu0  ;;  %v2981_v26 = vpop.f32.mrb[204].mxu1 }
 0x38b   : > { %3514 = vst [vmem:[%s7043_s19 + $0x640] sm:$0xff] %v3258_v21  ;;  %v3619_v6 = vadd.f32 %v3618_v56, %v3258_v21  ;;  %3516 = vst [vmem:[%s7043_s19 + $0x650] sm:$0xff] %v3260_v30  ;;  %v2533_v22 = vadd.f32 %v2532_v42, %v7025_v43  ;;  %v7563_v57 = vadd.f32 %v2981_v26, %v7132_v52  ;;  %v2534_v41 = vpop.f32.mrb[167].mxu0  ;;  %v2983_v7 = vpop.f32.mrb[205].mxu1 }
 0x38c   : > { %3515 = vst [vmem:[%s7043_s19 + $0x648] sm:$0xff] %v3259_v29  ;;  %v3688_v45 = vadd.f32 %v3687_v28, %v3259_v29  ;;  %3517 = vst [vmem:[%s7043_s19 + $0x658] sm:$0xff] %v3261_v59  ;;  %v2535_v49 = vadd.f32 %v2534_v41, %v7030_v60  ;;  %v7569_v40 = vadd.f32 %v2983_v7, %v7138_v36 }
 0x38d   : > { %v3262_v34 = vmax.f32 %v2533_v22, 0.0  ;;  %v3264_v54 = vmax.f32 %v7563_v57, 0.0 }
 0x38e   : > { %v3263_v63 = vmax.f32 %v2535_v49, 0.0  ;;  %v3265_v19 = vmax.f32 %v7569_v40, 0.0  ;;  %v2538_v13 = vpop.f32.mrb[168].mxu0  ;;  %v2987_v25 = vpop.f32.mrb[206].mxu1 }
 0x38f   : > { %3518 = vst [vmem:[%s7043_s19 + $0x660] sm:$0xff] %v3262_v34  ;;  %v3620_v17 = vadd.f32 %v3619_v6, %v3262_v34  ;;  %3520 = vst [vmem:[%s7043_s19 + $0x670] sm:$0xff] %v3264_v54  ;;  %v2539_v8 = vadd.f32 %v2538_v13, %v7025_v43  ;;  %v7579_v44 = vadd.f32 %v2987_v25, %v7132_v52  ;;  %v2540_v39 = vpop.f32.mrb[169].mxu0  ;;  %v2989_v33 = vpop.f32.mrb[207].mxu1 }
 0x390   : > { %3519 = vst [vmem:[%s7043_s19 + $0x668] sm:$0xff] %v3263_v63  ;;  %v3689_v12 = vadd.f32 %v3688_v45, %v3263_v63  ;;  %3521 = vst [vmem:[%s7043_s19 + $0x678] sm:$0xff] %v3265_v19  ;;  %v2541_v24 = vadd.f32 %v2540_v39, %v7030_v60  ;;  %v7587_v4 = vadd.f32 %v2989_v33, %v7138_v36 }
 0x391   : > { %v3266_v53 = vmax.f32 %v2539_v8, 0.0  ;;  %v3268_v23 = vmax.f32 %v7579_v44, 0.0 }
 0x392   : > { %v3267_v20 = vmax.f32 %v2541_v24, 0.0  ;;  %v3269_v48 = vmax.f32 %v7587_v4, 0.0  ;;  %v2544_v46 = vpop.f32.mrb[170].mxu0  ;;  %v2993_v16 = vpop.f32.mrb[208].mxu1 }
 0x393   : > { %3522 = vst [vmem:[%s7043_s19 + $0x680] sm:$0xff] %v3266_v53  ;;  %v3621_v50 = vadd.f32 %v3620_v17, %v3266_v53  ;;  %3524 = vst [vmem:[%s7043_s19 + $0x690] sm:$0xff] %v3268_v23  ;;  %v2545_v51 = vadd.f32 %v2544_v46, %v7025_v43  ;;  %v7597_v9 = vadd.f32 %v2993_v16, %v7132_v52  ;;  %v2546_v15 = vpop.f32.mrb[171].mxu0  ;;  %v2995_v5 = vpop.f32.mrb[209].mxu1 }
 0x394   : > { %3523 = vst [vmem:[%s7043_s19 + $0x688] sm:$0xff] %v3267_v20  ;;  %v3690_v2 = vadd.f32 %v3689_v12, %v3267_v20  ;;  %3525 = vst [vmem:[%s7043_s19 + $0x698] sm:$0xff] %v3269_v48  ;;  %v2547_v10 = vadd.f32 %v2546_v15, %v7030_v60  ;;  %v7605_v55 = vadd.f32 %v2995_v5, %v7138_v36 }
 0x395   : > { %v3270_v1 = vmax.f32 %v2545_v51, 0.0  ;;  %v3272_v32 = vmax.f32 %v7597_v9, 0.0 }
 0x396   : > { %v3271_v47 = vmax.f32 %v2547_v10, 0.0  ;;  %v3273_v3 = vmax.f32 %v7605_v55, 0.0  ;;  %v2550_v11 = vpop.f32.mrb[172].mxu0  ;;  %v2999_v31 = vpop.f32.mrb[210].mxu1 }
 0x397   : > { %3526 = vst [vmem:[%s7043_s19 + $0x6a0] sm:$0xff] %v3270_v1  ;;  %v3622_v18 = vadd.f32 %v3621_v50, %v3270_v1  ;;  %3528 = vst [vmem:[%s7043_s19 + $0x6b0] sm:$0xff] %v3272_v32  ;;  %v2551_v61 = vadd.f32 %v2550_v11, %v7025_v43  ;;  %v7615_v56 = vadd.f32 %v2999_v31, %v7132_v52  ;;  %v2552_v37 = vpop.f32.mrb[173].mxu0  ;;  %v3001_v14 = vpop.f32.mrb[211].mxu1 }
 0x398   : > { %3527 = vst [vmem:[%s7043_s19 + $0x6a8] sm:$0xff] %v3271_v47  ;;  %v3691_v0 = vadd.f32 %v3690_v2, %v3271_v47  ;;  %3529 = vst [vmem:[%s7043_s19 + $0x6b8] sm:$0xff] %v3273_v3  ;;  %v2553_v38 = vadd.f32 %v2552_v37, %v7030_v60  ;;  %v7623_v28 = vadd.f32 %v3001_v14, %v7138_v36 }
 0x399   : > { %v3274_v62 = vmax.f32 %v2551_v61, 0.0  ;;  %v3276_v27 = vmax.f32 %v7615_v56, 0.0 }
 0x39a   : > { %v3275_v21 = vmax.f32 %v2553_v38, 0.0  ;;  %v3277_v30 = vmax.f32 %v7623_v28, 0.0  ;;  %v2556_v29 = vpop.f32.mrb[174].mxu0  ;;  %v3005_v59 = vpop.f32.mrb[212].mxu1 }
 0x39b   : > { %3530 = vst [vmem:[%s7043_s19 + $0x6c0] sm:$0xff] %v3274_v62  ;;  %v3623_v42 = vadd.f32 %v3622_v18, %v3274_v62  ;;  %3532 = vst [vmem:[%s7043_s19 + $0x6d0] sm:$0xff] %v3276_v27  ;;  %v2557_v26 = vadd.f32 %v2556_v29, %v7025_v43  ;;  %v7633_v6 = vadd.f32 %v3005_v59, %v7132_v52  ;;  %v2558_v22 = vpop.f32.mrb[175].mxu0  ;;  %v3007_v41 = vpop.f32.mrb[213].mxu1 }
 0x39c   : > { %3531 = vst [vmem:[%s7043_s19 + $0x6c8] sm:$0xff] %v3275_v21  ;;  %v3692_v7 = vadd.f32 %v3691_v0, %v3275_v21  ;;  %3533 = vst [vmem:[%s7043_s19 + $0x6d8] sm:$0xff] %v3277_v30  ;;  %v2559_v45 = vadd.f32 %v2558_v22, %v7030_v60  ;;  %v7641_v49 = vadd.f32 %v3007_v41, %v7138_v36 }
 0x39d   : > { %v3278_v34 = vmax.f32 %v2557_v26, 0.0  ;;  %v3280_v63 = vmax.f32 %v7633_v6, 0.0 }
 0x39e   : > { %v3279_v13 = vmax.f32 %v2559_v45, 0.0  ;;  %v3281_v25 = vmax.f32 %v7641_v49, 0.0  ;;  %v2562_v17 = vpop.f32.mrb[176].mxu0  ;;  %v3011_v8 = vpop.f32.mrb[214].mxu1 }
 0x39f   : > { %3534 = vst [vmem:[%s7043_s19 + $0x6e0] sm:$0xff] %v3278_v34  ;;  %v3624_v39 = vadd.f32 %v3623_v42, %v3278_v34  ;;  %3536 = vst [vmem:[%s7043_s19 + $0x6f0] sm:$0xff] %v3280_v63  ;;  %v2563_v33 = vadd.f32 %v2562_v17, %v7025_v43  ;;  %v7651_v12 = vadd.f32 %v3011_v8, %v7132_v52  ;;  %v2564_v24 = vpop.f32.mrb[177].mxu0  ;;  %v3013_v53 = vpop.f32.mrb[215].mxu1 }
 0x3a0   : > { %3535 = vst [vmem:[%s7043_s19 + $0x6e8] sm:$0xff] %v3279_v13  ;;  %v3693_v20 = vadd.f32 %v3692_v7, %v3279_v13  ;;  %3537 = vst [vmem:[%s7043_s19 + $0x6f8] sm:$0xff] %v3281_v25  ;;  %v2565_v46 = vadd.f32 %v2564_v24, %v7030_v60  ;;  %v7659_v16 = vadd.f32 %v3013_v53, %v7138_v36 }
 0x3a1   : > { %v3282_v50 = vmax.f32 %v2563_v33, 0.0  ;;  %v3284_v51 = vmax.f32 %v7651_v12, 0.0 }
 0x3a2   : > { %v3283_v15 = vmax.f32 %v2565_v46, 0.0  ;;  %v3285_v5 = vmax.f32 %v7659_v16, 0.0  ;;  %v2568_v2 = vpop.f32.mrb[178].mxu0  ;;  %v3017_v10 = vpop.f32.mrb[216].mxu1 }
 0x3a3   : > { %3538 = vst [vmem:[%s7043_s19 + $0x700] sm:$0xff] %v3282_v50  ;;  %v3625_v1 = vadd.f32 %v3624_v39, %v3282_v50  ;;  %3540 = vst [vmem:[%s7043_s19 + $0x710] sm:$0xff] %v3284_v51  ;;  %v2569_v47 = vadd.f32 %v2568_v2, %v7025_v43  ;;  %v7669_v11 = vadd.f32 %v3017_v10, %v7132_v52  ;;  %v2570_v31 = vpop.f32.mrb[179].mxu0  ;;  %v3019_v18 = vpop.f32.mrb[217].mxu1  ;;  %v3933_v10 = vld [vmem:[%s8253_s7 + $0x180] sm:$0xff] }
 0x3a4   : > { %3539 = vst [vmem:[%s7043_s19 + $0x708] sm:$0xff] %v3283_v15  ;;  %v3694_v61 = vadd.f32 %v3693_v20, %v3283_v15  ;;  %3541 = vst [vmem:[%s7043_s19 + $0x718] sm:$0xff] %v3285_v5  ;;  %v2571_v37 = vadd.f32 %v2570_v31, %v7030_v60  ;;  %v7677_v14 = vadd.f32 %v3019_v18, %v7138_v36 }
 0x3a5   : > { %v3286_v0 = vmax.f32 %v2569_v47, 0.0  ;;  %v3288_v38 = vmax.f32 %v7669_v11, 0.0 }
 0x3a6   : > { %v3287_v62 = vmax.f32 %v2571_v37, 0.0  ;;  %v8317_v21 = vmax.f32 %v7677_v14, 0.0  ;;  %v2574_v29 = vpop.f32.mrb[180].mxu0  ;;  %v3023_v59 = vpop.f32.mrb[218].mxu1 }
 0x3a7   : > { %3542 = vst [vmem:[%s7043_s19 + $0x720] sm:$0xff] %v3286_v0  ;;  %v3626_v42 = vadd.f32 %v3625_v1, %v3286_v0  ;;  %3544 = vst [vmem:[%s7043_s19 + $0x730] sm:$0xff] %v3288_v38  ;;  %v2575_v26 = vadd.f32 %v2574_v29, %v7025_v43  ;;  %v7687_v22 = vadd.f32 %v3023_v59, %v7132_v52  ;;  %v2576_v41 = vpop.f32.mrb[181].mxu0  ;;  %v3025_v7 = vpop.f32.mrb[219].mxu1  ;;  %v3934_v1 = vld [vmem:[%s8253_s7 + $0x188] sm:$0xff] }
 0x3a8   : > { %3543 = vst [vmem:[%s7043_s19 + $0x728] sm:$0xff] %v3287_v62  ;;  %v3695_v45 = vadd.f32 %v3694_v61, %v3287_v62  ;;  %3545 = vst [vmem:[%s7043_s19 + $0x738] sm:$0xff] %v8317_v21  ;;  %v2577_v34 = vadd.f32 %v2576_v41, %v7030_v60  ;;  %v7695_v13 = vadd.f32 %v3025_v7, %v7138_v36 }
 0x3a9   : > { %v3290_v17 = vmax.f32 %v2575_v26, 0.0  ;;  %v8316_v8 = vmax.f32 %v7687_v22, 0.0  ;;  %v4900_v61 = vpack.c.bf16 %v3934_v1, %v3933_v10  ;;  %v8372_v9 = vmax.f32 %v7687_v22, 0.0 }
 0x3aa   : > { %v3291_v39 = vmax.f32 %v2577_v34, 0.0  ;;  %v8315_v33 = vmax.f32 %v7695_v13, 0.0  ;;  %v2580_v24 = vpop.f32.mrb[182].mxu0  ;;  %v3029_v53 = vpop.f32.mrb[220].mxu1 }
 0x3ab   : > { %3546 = vst [vmem:[%s7043_s19 + $0x740] sm:$0xff] %v3290_v17  ;;  %v3627_v20 = vadd.f32 %v3626_v42, %v3290_v17  ;;  %3548 = vst [vmem:[%s7043_s19 + $0x750] sm:$0xff] %v8316_v8  ;;  %v2581_v46 = vadd.f32 %v2580_v24, %v7025_v43  ;;  %v7705_v50 = vadd.f32 %v3029_v53, %v7132_v52  ;;  %v2582_v15 = vpop.f32.mrb[183].mxu0  ;;  %v3031_v2 = vpop.f32.mrb[221].mxu1  ;;  %4901 = vmatprep.subr.bf16.mxu0 %v4900_v61 }
 0x3ac   : > { %3547 = vst [vmem:[%s7043_s19 + $0x748] sm:$0xff] %v3291_v39  ;;  %v3696_v47 = vadd.f32 %v3695_v45, %v3291_v39  ;;  %3549 = vst [vmem:[%s7043_s19 + $0x758] sm:$0xff] %v8315_v33  ;;  %v2583_v31 = vadd.f32 %v2582_v15, %v7030_v60  ;;  %v7719_v18 = vadd.f32 %v3031_v2, %v7138_v36 }
 0x3ad   : > { %v3294_v37 = vmax.f32 %v2581_v46, 0.0  ;;  %v8314_v0 = vmax.f32 %v7705_v50, 0.0  ;;  %v8374_v56 = vmax.f32 %v7705_v50, 0.0 }
 0x3ae   : > { %v3295_v62 = vmax.f32 %v2583_v31, 0.0  ;;  %v8313_v29 = vmax.f32 %v7719_v18, 0.0  ;;  %v2586_v59 = vpop.f32.mrb[184].mxu0  ;;  %v3035_v42 = vpop.f32.mrb[222].mxu1 }
 0x3af   : > { %3550 = vst [vmem:[%s7043_s19 + $0x760] sm:$0xff] %v3294_v37  ;;  %v3628_v26 = vadd.f32 %v3627_v20, %v3294_v37  ;;  %3552 = vst [vmem:[%s7043_s19 + $0x770] sm:$0xff] %v8314_v0  ;;  %v2587_v41 = vadd.f32 %v2586_v59, %v7025_v43  ;;  %v7729_v7 = vadd.f32 %v3035_v42, %v7132_v52  ;;  %v2588_v45 = vpop.f32.mrb[185].mxu0  ;;  %v3037_v34 = vpop.f32.mrb[223].mxu1 }
 0x3b0   : > { %3551 = vst [vmem:[%s7043_s19 + $0x768] sm:$0xff] %v3295_v62  ;;  %v3697_v17 = vadd.f32 %v3696_v47, %v3295_v62  ;;  %3553 = vst [vmem:[%s7043_s19 + $0x778] sm:$0xff] %v8313_v29  ;;  %v2589_v39 = vadd.f32 %v2588_v45, %v7030_v60  ;;  %v7737_v24 = vadd.f32 %v3037_v34, %v7138_v36 }
 0x3b1   : > { %v3298_v53 = vmax.f32 %v2587_v41, 0.0  ;;  %v8311_v20 = vmax.f32 %v7729_v7, 0.0  ;;  %v8376_v6 = vmax.f32 %v7729_v7, 0.0 }
 0x3b2   : > { %v3299_v46 = vmax.f32 %v2589_v39, 0.0  ;;  %v8308_v15 = vmax.f32 %v7737_v24, 0.0  ;;  %v2592_v2 = vpop.f32.mrb[186].mxu0  ;;  %v3041_v10 = vpop.f32.mrb[224].mxu1 }
 0x3b3   : > { %3554 = vst [vmem:[%s7043_s19 + $0x780] sm:$0xff] %v3298_v53  ;;  %v3629_v1 = vadd.f32 %v3628_v26, %v3298_v53  ;;  %3556 = vst [vmem:[%s7043_s19 + $0x790] sm:$0xff] %v8311_v20  ;;  %v2593_v47 = vadd.f32 %v2592_v2, %v7025_v43  ;;  %v7747_v31 = vadd.f32 %v3041_v10, %v7132_v52  ;;  %v2594_v61 = vpop.f32.mrb[187].mxu0  ;;  %v3043_v37 = vpop.f32.mrb[225].mxu1 }
 0x3b4   : > { %3555 = vst [vmem:[%s7043_s19 + $0x788] sm:$0xff] %v3299_v46  ;;  %v3698_v62 = vadd.f32 %v3697_v17, %v3299_v46  ;;  %3557 = vst [vmem:[%s7043_s19 + $0x798] sm:$0xff] %v8308_v15  ;;  %v2595_v59 = vadd.f32 %v2594_v61, %v7030_v60  ;;  %v7755_v42 = vadd.f32 %v3043_v37, %v7138_v36 }
 0x3b5   : > { %v3302_v26 = vmax.f32 %v2593_v47, 0.0  ;;  %v8305_v41 = vmax.f32 %v7747_v31, 0.0  ;;  %v8378_v12 = vmax.f32 %v7747_v31, 0.0 }
 0x3b6   : > { %v3303_v45 = vmax.f32 %v2595_v59, 0.0  ;;  %v8307_v34 = vmax.f32 %v7755_v42, 0.0  ;;  %v2598_v39 = vpop.f32.mrb[188].mxu0  ;;  %v3047_v53 = vpop.f32.mrb[226].mxu1 }
 0x3b7   : > { %3558 = vst [vmem:[%s7043_s19 + $0x7a0] sm:$0xff] %v3302_v26  ;;  %v3630_v17 = vadd.f32 %v3629_v1, %v3302_v26  ;;  %3560 = vst [vmem:[%s7043_s19 + $0x7b0] sm:$0xff] %v8305_v41  ;;  %v2599_v46 = vadd.f32 %v2598_v39, %v7025_v43  ;;  %v7765_v2 = vadd.f32 %v3047_v53, %v7132_v52  ;;  %v2600_v10 = vpop.f32.mrb[189].mxu0  ;;  %v3049_v47 = vpop.f32.mrb[227].mxu1 }
 0x3b8   : > { %3559 = vst [vmem:[%s7043_s19 + $0x7a8] sm:$0xff] %v3303_v45  ;;  %v3699_v61 = vadd.f32 %v3698_v62, %v3303_v45  ;;  %3561 = vst [vmem:[%s7043_s19 + $0x7b8] sm:$0xff] %v8307_v34  ;;  %v2601_v1 = vadd.f32 %v2600_v10, %v7030_v60  ;;  %v7773_v37 = vadd.f32 %v3049_v47, %v7138_v36 }
 0x3b9   : > { %v3306_v59 = vmax.f32 %v2599_v46, 0.0  ;;  %v8306_v26 = vmax.f32 %v7765_v2, 0.0  ;;  %v8380_v11 = vmax.f32 %v7765_v2, 0.0 }
 0x3ba   : > { %v3307_v39 = vmax.f32 %v2601_v1, 0.0  ;;  %v8309_v53 = vmax.f32 %v7773_v37, 0.0  ;;  %v2604_v35 = vpop.f32.mrb[190].mxu0  ;;  %v3053_v41 = vpop.f32.mrb[228].mxu1 }
 0x3bb   : > { %3562 = vst [vmem:[%s7043_s19 + $0x7c0] sm:$0xff] %v3306_v59  ;;  %v3631_v62 = vadd.f32 %v3630_v17, %v3306_v59  ;;  %3564 = vst [vmem:[%s7043_s19 + $0x7d0] sm:$0xff] %v8306_v26  ;;  %v2605_v45 = vadd.f32 %v2604_v35, %v7025_v43  ;;  %v7783_v10 = vadd.f32 %v3053_v41, %v7132_v52  ;;  %v2606_v46 = vpop.f32.mrb[191].mxu0  ;;  %v3055_v47 = vpop.f32.mrb[229].mxu1 }
 0x3bc   : > { %3563 = vst [vmem:[%s7043_s19 + $0x7c8] sm:$0xff] %v3307_v39  ;;  %v3700_v1 = vadd.f32 %v3699_v61, %v3307_v39  ;;  %3565 = vst [vmem:[%s7043_s19 + $0x7d8] sm:$0xff] %v8309_v53  ;;  %v2607_v17 = vadd.f32 %v2606_v46, %v7030_v60  ;;  %v7791_v59 = vadd.f32 %v3055_v47, %v7138_v36 }
 0x3bd   : > { %v3310_v26 = vmax.f32 %v2605_v45, 0.0  ;;  %v8310_v35 = vmax.f32 %v7783_v10, 0.0 }
 0x3be   : > { %v3311_v43 = vmax.f32 %v2607_v17, 0.0  ;;  %v8312_v41 = vmax.f32 %v7791_v59, 0.0  ;;  %v2675_v34 = vpop.f32.mrb[192].mxu0 }
 0x3bf   : > { %3566 = vst [vmem:[%s7043_s19 + $0x7e0] sm:$0xff] %v3310_v26  ;;  %v3632_v15 = vadd.f32 %v3631_v62, %v3310_v26  ;;  %3568 = vst [vmem:[%s7043_s19 + $0x7f0] sm:$0xff] %v8310_v35  ;;  %v2676_v61 = vadd.f32 %v2675_v34, %v7132_v52  ;;  %v2677_v60 = vpop.f32.mrb[193].mxu0 }
 0x3c0   : > { %3567 = vst [vmem:[%s7043_s19 + $0x7e8] sm:$0xff] %v3311_v43  ;;  %v3701_v39 = vadd.f32 %v3700_v1, %v3311_v43  ;;  %3569 = vst [vmem:[%s7043_s19 + $0x7f8] sm:$0xff] %v8312_v41  ;;  %v2678_v45 = vadd.f32 %v2677_v60, %v7138_v36 }
 0x3c1   : > { %v3633_v46 = vrot.slane %v3632_v15, 4  ;;  %v3060_v47 = vmax.f32 %v2676_v61, 0.0 }
 0x3c2   : > { %v3702_v17 = vrot.slane %v3701_v39, 4  ;;  %v3061_v53 = vmax.f32 %v2678_v45, 0.0  ;;  %v2681_v26 = vpop.f32.mrb[194].mxu0 }
 0x3c3   : > { %v3634_v62 = vadd.f32 %v3633_v46, %v3632_v15  ;;  %3316 = vst [vmem:[%s7043_s19 + $0x10] sm:$0xff] %v3060_v47  ;;  %v2682_v34 = vadd.f32 %v2681_v26, %v7132_v52  ;;  %v2683_v35 = vpop.f32.mrb[195].mxu0 }
 0x3c4   : > { %v3703_v20 = vadd.f32 %v3702_v17, %v3701_v39  ;;  %3317 = vst [vmem:[%s7043_s19 + $0x18] sm:$0xff] %v3061_v53  ;;  %v2684_v1 = vadd.f32 %v2683_v35, %v7138_v36 }
 0x3c5   : > { %v3635_v43 = vrot.slane %v3634_v62, 2  ;;  %v3064_v41 = vmax.f32 %v2682_v34, 0.0 }
 0x3c6   : > { %v3704_v29 = vrot.slane %v3703_v20, 2  ;;  %v3065_v60 = vmax.f32 %v2684_v1, 0.0  ;;  %v2687_v61 = vpop.f32.mrb[196].mxu0 }
 0x3c7   : > { %v3636_v0 = vadd.f32 %v3635_v43, %v3634_v62  ;;  %3320 = vst [vmem:[%s7043_s19 + $0x30] sm:$0xff] %v3064_v41  ;;  %v3708_v45 = vadd.f32 %v3064_v41, %v3060_v47  ;;  %v2688_v15 = vadd.f32 %v2687_v61, %v7132_v52  ;;  %v2689_v46 = vpop.f32.mrb[197].mxu0  ;;  %v3917_v47 = vld [vmem:[%s8253_s7 + $0x100] sm:$0xff]  ;;  %v3935_v61 = vld [vmem:[%s8253_s7 + $0x190] sm:$0xff] }
 0x3c8   : > { %3321 = vst [vmem:[%s7043_s19 + $0x38] sm:$0xff] %v3065_v60  ;;  %v3777_v26 = vadd.f32 %v3065_v60, %v3061_v53  ;;  %v2690_v39 = vadd.f32 %v2689_v46, %v7138_v36  ;;  %v3705_v17 = vadd.f32 %v3704_v29, %v3703_v20  ;;  %v3918_v29 = vld [vmem:[%s8253_s7 + $0x108] sm:$0xff] }
 0x3c9   : > { %v3637_v33 = vrot.slane %v3636_v0, 1  ;;  %v3068_v35 = vmax.f32 %v2688_v15, 0.0 }
 0x3ca   : > { %v3069_v8 = vmax.f32 %v2690_v39, 0.0  ;;  %v2693_v34 = vpop.f32.mrb[198].mxu0  ;;  %v3706_v21 = vrot.slane %v3705_v17, 1 }
 0x3cb   : > { %3324 = vst [vmem:[%s7043_s19 + $0x50] sm:$0xff] %v3068_v35  ;;  %v3709_v1 = vadd.f32 %v3708_v45, %v3068_v35  ;;  %v2694_v62 = vadd.f32 %v2693_v34, %v7132_v52  ;;  %v2695_v43 = vpop.f32.mrb[199].mxu0  ;;  %v3638_v41 = vadd.f32 %v3637_v33, %v3636_v0  ;;  %v3936_v33 = vld [vmem:[%s8253_s7 + $0x198] sm:$0xff]  ;;  %v3919_v34 = vld [vmem:[%s8253_s7 + $0x110] sm:$0xff] }
 0x3cc   : > { %3325 = vst [vmem:[%s7043_s19 + $0x58] sm:$0xff] %v3069_v8  ;;  %v3778_v20 = vadd.f32 %v3777_v26, %v3069_v8  ;;  %v2696_v53 = vadd.f32 %v2695_v43, %v7138_v36  ;;  %v3707_v60 = vadd.f32 %v3706_v21, %v3705_v17  ;;  %v4902_v8 = vpack.c.bf16 %v3918_v29, %v3917_v47  ;;  %v3937_v47 = vld [vmem:[%s8253_s7 + $0x1a0] sm:$0xff]  ;;  %v3938_v29 = vld [vmem:[%s8253_s7 + $0x1a8] sm:$0xff] }
 0x3cd   : > { %v3072_v0 = vmax.f32 %v2694_v62, 0.0  ;;  %v7829_v45 = vmul.f32 0.001953125, %v3638_v41  ;;  %v4904_v35 = vpack.c.bf16 %v3936_v33, %v3935_v61  ;;  %v3920_v62 = vld [vmem:[%s8253_s7 + $0x118] sm:$0xff] }
 0x3ce   : > { %v3073_v15 = vmax.f32 %v2696_v53, 0.0  ;;  %v2699_v46 = vpop.f32.mrb[200].mxu0  ;;  %v7831_v39 = vmul.f32 0.001953125, %v3707_v60  ;;  %v4906_v61 = vpack.c.bf16 %v3920_v62, %v3919_v34 }
 0x3cf   : > { %3328 = vst [vmem:[%s7043_s19 + $0x70] sm:$0xff] %v3072_v0  ;;  %v3710_v26 = vadd.f32 %v3709_v1, %v3072_v0  ;;  %v2700_v21 = vadd.f32 %v2699_v46, %v7132_v52  ;;  %v2701_v17 = vpop.f32.mrb[201].mxu0  ;;  %v4908_v46 = vpack.c.bf16 %v3938_v29, %v3937_v47 }
 0x3d0   : > { %3329 = vst [vmem:[%s7043_s19 + $0x78] sm:$0xff] %v3073_v15  ;;  %v3779_v43 = vadd.f32 %v3778_v20, %v3073_v15  ;;  %v2702_v41 = vadd.f32 %v2701_v17, %v7138_v36  ;;  %4014 = vmatprep.mubr.f32.mxu0 %v7831_v39  ;;  %v3921_v17 = vld [vmem:[%s8253_s7 + $0x120] sm:$0xff] }
 0x3d1   : > { %v3076_v53 = vmax.f32 %v2700_v21, 0.0  ;;  %4015 = vmatmul.mubr.f32.vlgmr.msra.gmra.mrb[218].mxu0 %v7829_v45  ;;  %v3922_v21 = vld [vmem:[%s8253_s7 + $0x128] sm:$0xff] }
 0x3d2   : > { %v3077_v20 = vmax.f32 %v2702_v41, 0.0  ;;  %v2705_v60 = vpop.f32.mrb[202].mxu0  ;;  %4903 = vmatpush3.bf16.msra.mxu0 %v4902_v8  ;;  %v4910_v29 = vpack.c.bf16 %v3922_v21, %v3921_v17 }
 0x3d3   : > { %3332 = vst [vmem:[%s7043_s19 + $0x90] sm:$0xff] %v3076_v53  ;;  %v3711_v33 = vadd.f32 %v3710_v26, %v3076_v53  ;;  %v2706_v0 = vadd.f32 %v2705_v60, %v7132_v52  ;;  %v2707_v15 = vpop.f32.mrb[203].mxu0  ;;  %4905 = vmatprep.subr.bf16.mxu0 %v4904_v35  ;;  %v3939_v26 = vld [vmem:[%s8253_s7 + $0x1b0] sm:$0xff]  ;;  %v3940_v35 = vld [vmem:[%s8253_s7 + $0x1b8] sm:$0xff] }
 0x3d4   : > { %3333 = vst [vmem:[%s7043_s19 + $0x98] sm:$0xff] %v3077_v20  ;;  %v3780_v41 = vadd.f32 %v3779_v43, %v3077_v20  ;;  %v2708_v8 = vadd.f32 %v2707_v15, %v7138_v36  ;;  %v4912_v60 = vpack.c.bf16 %v3940_v35, %v3939_v26  ;;  %v3923_v15 = vld [vmem:[%s8253_s7 + $0x130] sm:$0xff] }
 0x3d5   : > { %v3080_v34 = vmax.f32 %v2706_v0, 0.0  ;;  %v3924_v0 = vld [vmem:[%s8253_s7 + $0x138] sm:$0xff] }
 0x3d6   : > { %v3081_v62 = vmax.f32 %v2708_v8, 0.0  ;;  %v2711_v47 = vpop.f32.mrb[204].mxu0  ;;  %4907 = vmatpush3.bf16.msra.mxu0 %v4906_v61  ;;  %v4914_v35 = vpack.c.bf16 %v3924_v0, %v3923_v15 }
 0x3d7   : > { %3336 = vst [vmem:[%s7043_s19 + $0xb0] sm:$0xff] %v3080_v34  ;;  %v3712_v53 = vadd.f32 %v3711_v33, %v3080_v34  ;;  %v2712_v43 = vadd.f32 %v2711_v47, %v7132_v52  ;;  %v2713_v20 = vpop.f32.mrb[205].mxu0  ;;  %4909 = vmatprep.subr.bf16.mxu0 %v4908_v46  ;;  %v3941_v33 = vld [vmem:[%s8253_s7 + $0x1c0] sm:$0xff]  ;;  %v3942_v46 = vld [vmem:[%s8253_s7 + $0x1c8] sm:$0xff] }
 0x3d8   : > { %3337 = vst [vmem:[%s7043_s19 + $0xb8] sm:$0xff] %v3081_v62  ;;  %v3781_v8 = vadd.f32 %v3780_v41, %v3081_v62  ;;  %v2714_v61 = vadd.f32 %v2713_v20, %v7138_v36  ;;  %v4916_v47 = vpack.c.bf16 %v3942_v46, %v3941_v33  ;;  %v3925_v20 = vld [vmem:[%s8253_s7 + $0x140] sm:$0xff] }
 0x3d9   : > { %v3084_v17 = vmax.f32 %v2712_v43, 0.0  ;;  %v3926_v43 = vld [vmem:[%s8253_s7 + $0x148] sm:$0xff] }
 0x3da   : > { %v3085_v21 = vmax.f32 %v2714_v61, 0.0  ;;  %v2717_v26 = vpop.f32.mrb[206].mxu0  ;;  %4911 = vmatpush3.bf16.msra.mxu0 %v4910_v29  ;;  %v4918_v46 = vpack.c.bf16 %v3926_v43, %v3925_v20 }
 0x3db   : > { %3340 = vst [vmem:[%s7043_s19 + $0xd0] sm:$0xff] %v3084_v17  ;;  %v3713_v34 = vadd.f32 %v3712_v53, %v3084_v17  ;;  %v2718_v41 = vadd.f32 %v2717_v26, %v7132_v52  ;;  %v2719_v62 = vpop.f32.mrb[207].mxu0  ;;  %4913 = vmatprep.subr.bf16.mxu0 %v4912_v60  ;;  %v3943_v53 = vld [vmem:[%s8253_s7 + $0x1d0] sm:$0xff]  ;;  %v3944_v60 = vld [vmem:[%s8253_s7 + $0x1d8] sm:$0xff] }
 0x3dc   : > { %3341 = vst [vmem:[%s7043_s19 + $0xd8] sm:$0xff] %v3085_v21  ;;  %v3782_v61 = vadd.f32 %v3781_v8, %v3085_v21  ;;  %v2720_v29 = vadd.f32 %v2719_v62, %v7138_v36  ;;  %v4920_v26 = vpack.c.bf16 %v3944_v60, %v3943_v53  ;;  %v3927_v62 = vld [vmem:[%s8253_s7 + $0x150] sm:$0xff] }
 0x3dd   : > { %v3088_v15 = vmax.f32 %v2718_v41, 0.0  ;;  %v3928_v41 = vld [vmem:[%s8253_s7 + $0x158] sm:$0xff] }
 0x3de   : > { %v3089_v0 = vmax.f32 %v2720_v29, 0.0  ;;  %v2723_v33 = vpop.f32.mrb[208].mxu0  ;;  %4915 = vmatpush3.bf16.msra.mxu0 %v4914_v35  ;;  %v4922_v60 = vpack.c.bf16 %v3928_v41, %v3927_v62 }
 0x3df   : > { %3344 = vst [vmem:[%s7043_s19 + $0xf0] sm:$0xff] %v3088_v15  ;;  %v3714_v17 = vadd.f32 %v3713_v34, %v3088_v15  ;;  %v2724_v8 = vadd.f32 %v2723_v33, %v7132_v52  ;;  %v2725_v21 = vpop.f32.mrb[209].mxu0  ;;  %4917 = vmatprep.subr.bf16.mxu0 %v4916_v47  ;;  %v3945_v34 = vld [vmem:[%s8253_s7 + $0x1e0] sm:$0xff]  ;;  %v3946_v47 = vld [vmem:[%s8253_s7 + $0x1e8] sm:$0xff] }
 0x3e0   : > { %3345 = vst [vmem:[%s7043_s19 + $0xf8] sm:$0xff] %v3089_v0  ;;  %v3783_v29 = vadd.f32 %v3782_v61, %v3089_v0  ;;  %v2726_v35 = vadd.f32 %v2725_v21, %v7138_v36  ;;  %v4924_v33 = vpack.c.bf16 %v3946_v47, %v3945_v34  ;;  %v3929_v21 = vld [vmem:[%s8253_s7 + $0x160] sm:$0xff] }
 0x3e1   : > { %v3092_v20 = vmax.f32 %v2724_v8, 0.0  ;;  %v3930_v8 = vld [vmem:[%s8253_s7 + $0x168] sm:$0xff] }
 0x3e2   : > { %v3093_v43 = vmax.f32 %v2726_v35, 0.0  ;;  %v2729_v53 = vpop.f32.mrb[210].mxu0  ;;  %4919 = vmatpush3.bf16.msra.mxu0 %v4918_v46  ;;  %v4926_v47 = vpack.c.bf16 %v3930_v8, %v3929_v21 }
 0x3e3   : > { %3348 = vst [vmem:[%s7043_s19 + $0x110] sm:$0xff] %v3092_v20  ;;  %v3715_v15 = vadd.f32 %v3714_v17, %v3092_v20  ;;  %v2730_v61 = vadd.f32 %v2729_v53, %v7132_v52  ;;  %v2731_v0 = vpop.f32.mrb[211].mxu0  ;;  %4921 = vmatprep.subr.bf16.mxu0 %v4920_v26  ;;  %v3947_v17 = vld [vmem:[%s8253_s7 + $0x1f0] sm:$0xff]  ;;  %v3948_v26 = vld [vmem:[%s8253_s7 + $0x1f8] sm:$0xff] }
 0x3e4   : > { %3349 = vst [vmem:[%s7043_s19 + $0x118] sm:$0xff] %v3093_v43  ;;  %v3784_v35 = vadd.f32 %v3783_v29, %v3093_v43  ;;  %v2732_v46 = vadd.f32 %v2731_v0, %v7138_v36  ;;  %v4928_v53 = vpack.c.bf16 %v3948_v26, %v3947_v17  ;;  %v3931_v0 = vld [vmem:[%s8253_s7 + $0x170] sm:$0xff] }
 0x3e5   : > { %v3096_v62 = vmax.f32 %v2730_v61, 0.0  ;;  %v3932_v61 = vld [vmem:[%s8253_s7 + $0x178] sm:$0xff] }
 0x3e6   : > { %v3097_v41 = vmax.f32 %v2732_v46, 0.0  ;;  %v2735_v34 = vpop.f32.mrb[212].mxu0  ;;  %4923 = vmatpush3.bf16.msra.mxu0 %v4922_v60 }
 0x3e7   : > { %3352 = vst [vmem:[%s7043_s19 + $0x130] sm:$0xff] %v3096_v62  ;;  %v3716_v20 = vadd.f32 %v3715_v15, %v3096_v62  ;;  %v2736_v29 = vadd.f32 %v2735_v34, %v7132_v52  ;;  %v2737_v43 = vpop.f32.mrb[213].mxu0  ;;  %4925 = vmatprep.subr.bf16.mxu0 %v4924_v33  ;;  %v4930_v33 = vpack.c.bf16 %v3932_v61, %v3931_v0 }
 0x3e8   : > { %3353 = vst [vmem:[%s7043_s19 + $0x138] sm:$0xff] %v3097_v41  ;;  %v3785_v60 = vadd.f32 %v3784_v35, %v3097_v41  ;;  %v2738_v21 = vadd.f32 %v2737_v43, %v7138_v36 }
 0x3e9   : > { %v3100_v8 = vmax.f32 %v2736_v29, 0.0 }
 0x3ea   : > { %v3101_v15 = vmax.f32 %v2738_v21, 0.0  ;;  %v2741_v46 = vpop.f32.mrb[214].mxu0  ;;  %4927 = vmatpush3.bf16.msra.mxu0 %v4926_v47 }
 0x3eb   : > { %3356 = vst [vmem:[%s7043_s19 + $0x150] sm:$0xff] %v3100_v8  ;;  %v3717_v17 = vadd.f32 %v3716_v20, %v3100_v8  ;;  %v2742_v26 = vadd.f32 %v2741_v46, %v7132_v52  ;;  %v2743_v62 = vpop.f32.mrb[215].mxu0  ;;  %4929 = vmatprep.subr.bf16.mxu0 %v4928_v53  ;;  %v5052_v46 = vld [vmem:[%s7043_s19 + $0x1b0] sm:$0xff] }
 0x3ec   : > { %3357 = vst [vmem:[%s7043_s19 + $0x158] sm:$0xff] %v3101_v15  ;;  %v3786_v34 = vadd.f32 %v3785_v60, %v3101_v15  ;;  %v2744_v35 = vadd.f32 %v2743_v62, %v7138_v36 }
 0x3ed   : > { %v3104_v41 = vmax.f32 %v2742_v26, 0.0  ;;  %v5054_v26 = vld [vmem:[%s7043_s19 + $0x1d0] sm:$0xff] }
 0x3ee   : > { %v3105_v29 = vmax.f32 %v2744_v35, 0.0  ;;  %v2747_v43 = vpop.f32.mrb[216].mxu0  ;;  %4931 = vmatpush3.bf16.msra.mxu0 %v4930_v33  ;;  %v5056_v35 = vld [vmem:[%s7043_s19 + $0x1f0] sm:$0xff] }
 0x3ef   : > { %3360 = vst [vmem:[%s7043_s19 + $0x170] sm:$0xff] %v3104_v41  ;;  %v3718_v47 = vadd.f32 %v3717_v17, %v3104_v41  ;;  %v2748_v20 = vadd.f32 %v2747_v43, %v7132_v52  ;;  %v2749_v0 = vpop.f32.mrb[217].mxu0  ;;  %v5053_v52 = vld [vmem:[%s7043_s19 + $0x1b8] sm:$0xff] }
 0x3f0   : > { %3361 = vst [vmem:[%s7043_s19 + $0x178] sm:$0xff] %v3105_v29  ;;  %v3787_v53 = vadd.f32 %v3786_v34, %v3105_v29  ;;  %v2750_v61 = vadd.f32 %v2749_v0, %v7138_v36  ;;  %v5055_v34 = vld [vmem:[%s7043_s19 + $0x1d8] sm:$0xff] }
 0x3f1   : > { %v3108_v60 = vmax.f32 %v2748_v20, 0.0  ;;  %v5057_v29 = vld [vmem:[%s7043_s19 + $0x1f8] sm:$0xff] }
 0x3f2   : > { %v3109_v21 = vmax.f32 %v2750_v61, 0.0  ;;  %v5059_v0 = vld [vmem:[%s7043_s19 + $0x218] sm:$0xff]  ;;  %v5060_v61 = vld [vmem:[%s7043_s19 + $0x230] sm:$0xff] }
 0x3f3   : > { %3364 = vst [vmem:[%s7043_s19 + $0x190] sm:$0xff] %v3108_v60  ;;  %v3719_v8 = vadd.f32 %v3718_v47, %v3108_v60  ;;  %v5058_v47 = vld [vmem:[%s7043_s19 + $0x210] sm:$0xff] }
 0x3f4   : > { %3365 = vst [vmem:[%s7043_s19 + $0x198] sm:$0xff] %v3109_v21  ;;  %v3788_v15 = vadd.f32 %v3787_v53, %v3109_v21  ;;  %v5061_v21 = vld [vmem:[%s7043_s19 + $0x238] sm:$0xff] }
 0x3f5   : > { %v3720_v33 = vadd.f32 %v5052_v46, %v3719_v8 }
 0x3f6   : > { %v3789_v17 = vadd.f32 %v5053_v52, %v3788_v15  ;;  %v5062_v15 = vld [vmem:[%s7043_s19 + $0x250] sm:$0xff] }
 0x3f7   : > { %v3721_v62 = vadd.f32 %v5054_v26, %v3720_v33  ;;  %v5063_v33 = vld [vmem:[%s7043_s19 + $0x258] sm:$0xff] }
 0x3f8   : > { %v3790_v36 = vadd.f32 %v5055_v34, %v3789_v17  ;;  %v5064_v17 = vld [vmem:[%s7043_s19 + $0x270] sm:$0xff] }
 0x3f9   : > { %v3722_v41 = vadd.f32 %v5056_v35, %v3721_v62  ;;  %v5065_v62 = vld [vmem:[%s7043_s19 + $0x278] sm:$0xff] }
 0x3fa   : > { %v3791_v43 = vadd.f32 %v5057_v29, %v3790_v36  ;;  %v5066_v36 = vld [vmem:[%s7043_s19 + $0x290] sm:$0xff] }
 0x3fb   : > { %v3723_v20 = vadd.f32 %v5058_v47, %v3722_v41  ;;  %v5067_v41 = vld [vmem:[%s7043_s19 + $0x298] sm:$0xff] }
 0x3fc   : > { %v3792_v53 = vadd.f32 %v5059_v0, %v3791_v43  ;;  %v5068_v43 = vld [vmem:[%s7043_s19 + $0x2b0] sm:$0xff] }
 0x3fd   : > { %v3724_v60 = vadd.f32 %v5060_v61, %v3723_v20  ;;  %v5069_v20 = vld [vmem:[%s7043_s19 + $0x2b8] sm:$0xff] }
 0x3fe   : > { %v3793_v8 = vadd.f32 %v5061_v21, %v3792_v53  ;;  %v5070_v53 = vld [vmem:[%s7043_s19 + $0x2d0] sm:$0xff] }
 0x3ff   : > { %v3725_v46 = vadd.f32 %v5062_v15, %v3724_v60  ;;  %v5071_v60 = vld [vmem:[%s7043_s19 + $0x2d8] sm:$0xff] }
 0x400   : > { %v3794_v52 = vadd.f32 %v5063_v33, %v3793_v8  ;;  %v5072_v8 = vld [vmem:[%s7043_s19 + $0x2f0] sm:$0xff] }
 0x401   : > { %v3726_v26 = vadd.f32 %v5064_v17, %v3725_v46  ;;  %v5073_v46 = vld [vmem:[%s7043_s19 + $0x2f8] sm:$0xff] }
 0x402   : > { %v3795_v34 = vadd.f32 %v5065_v62, %v3794_v52  ;;  %v5074_v52 = vld [vmem:[%s7043_s19 + $0x310] sm:$0xff] }
 0x403   : > { %v3727_v35 = vadd.f32 %v5066_v36, %v3726_v26  ;;  %v5075_v26 = vld [vmem:[%s7043_s19 + $0x318] sm:$0xff] }
 0x404   : > { %v3796_v29 = vadd.f32 %v5067_v41, %v3795_v34  ;;  %v5076_v34 = vld [vmem:[%s7043_s19 + $0x330] sm:$0xff] }
 0x405   : > { %v3728_v47 = vadd.f32 %v5068_v43, %v3727_v35  ;;  %v5077_v35 = vld [vmem:[%s7043_s19 + $0x338] sm:$0xff] }
 0x406   : > { %v3797_v0 = vadd.f32 %v5069_v20, %v3796_v29  ;;  %v5078_v29 = vld [vmem:[%s7043_s19 + $0x350] sm:$0xff] }
 0x407   : > { %v3729_v61 = vadd.f32 %v5070_v53, %v3728_v47  ;;  %v5079_v47 = vld [vmem:[%s7043_s19 + $0x358] sm:$0xff] }
 0x408   : > { %v3798_v21 = vadd.f32 %v5071_v60, %v3797_v0  ;;  %v5080_v0 = vld [vmem:[%s7043_s19 + $0x370] sm:$0xff] }
 0x409   : > { %v3730_v15 = vadd.f32 %v5072_v8, %v3729_v61  ;;  %v5081_v61 = vld [vmem:[%s7043_s19 + $0x378] sm:$0xff] }
 0x40a   : > { %v3799_v33 = vadd.f32 %v5073_v46, %v3798_v21  ;;  %v5082_v21 = vld [vmem:[%s7043_s19 + $0x390] sm:$0xff] }
 0x40b   : > { %v3731_v17 = vadd.f32 %v5074_v52, %v3730_v15  ;;  %v5083_v15 = vld [vmem:[%s7043_s19 + $0x398] sm:$0xff] }
 0x40c   : > { %v3800_v62 = vadd.f32 %v5075_v26, %v3799_v33  ;;  %v5084_v33 = vld [vmem:[%s7043_s19 + $0x3b0] sm:$0xff] }
 0x40d   : > { %v3732_v36 = vadd.f32 %v5076_v34, %v3731_v17  ;;  %v5085_v17 = vld [vmem:[%s7043_s19 + $0x3b8] sm:$0xff] }
 0x40e   : > { %v3801_v41 = vadd.f32 %v5077_v35, %v3800_v62  ;;  %v5086_v62 = vld [vmem:[%s7043_s19 + $0x3d0] sm:$0xff] }
 0x40f   : > { %v3733_v43 = vadd.f32 %v5078_v29, %v3732_v36  ;;  %v5087_v36 = vld [vmem:[%s7043_s19 + $0x3d8] sm:$0xff] }
 0x410   : > { %v3802_v20 = vadd.f32 %v5079_v47, %v3801_v41  ;;  %v5088_v41 = vld [vmem:[%s7043_s19 + $0x3f0] sm:$0xff] }
 0x411   : > { %v3734_v53 = vadd.f32 %v5080_v0, %v3733_v43  ;;  %v5089_v43 = vld [vmem:[%s7043_s19 + $0x3f8] sm:$0xff] }
 0x412   : > { %v3803_v60 = vadd.f32 %v5081_v61, %v3802_v20  ;;  %v5090_v20 = vld [vmem:[%s7043_s19 + $0x410] sm:$0xff] }
 0x413   : > { %v3735_v8 = vadd.f32 %v5082_v21, %v3734_v53  ;;  %v5091_v53 = vld [vmem:[%s7043_s19 + $0x418] sm:$0xff] }
 0x414   : > { %v3804_v46 = vadd.f32 %v5083_v15, %v3803_v60  ;;  %v5092_v60 = vld [vmem:[%s7043_s19 + $0x430] sm:$0xff] }
 0x415   : > { %v3736_v52 = vadd.f32 %v5084_v33, %v3735_v8  ;;  %v5093_v8 = vld [vmem:[%s7043_s19 + $0x438] sm:$0xff] }
 0x416   : > { %v3805_v26 = vadd.f32 %v5085_v17, %v3804_v46  ;;  %v5094_v46 = vld [vmem:[%s7043_s19 + $0x450] sm:$0xff] }
 0x417   : > { %v3737_v34 = vadd.f32 %v5086_v62, %v3736_v52  ;;  %v5095_v52 = vld [vmem:[%s7043_s19 + $0x458] sm:$0xff] }
 0x418   : > { %v3806_v35 = vadd.f32 %v5087_v36, %v3805_v26  ;;  %v5096_v26 = vld [vmem:[%s7043_s19 + $0x470] sm:$0xff] }
 0x419   : > { %v3738_v29 = vadd.f32 %v5088_v41, %v3737_v34  ;;  %v5097_v34 = vld [vmem:[%s7043_s19 + $0x478] sm:$0xff] }
 0x41a   : > { %v3807_v47 = vadd.f32 %v5089_v43, %v3806_v35  ;;  %v5098_v35 = vld [vmem:[%s7043_s19 + $0x490] sm:$0xff] }
 0x41b   : > { %v3739_v0 = vadd.f32 %v5090_v20, %v3738_v29  ;;  %v5099_v29 = vld [vmem:[%s7043_s19 + $0x498] sm:$0xff] }
 0x41c   : > { %v3808_v61 = vadd.f32 %v5091_v53, %v3807_v47  ;;  %v5100_v47 = vld [vmem:[%s7043_s19 + $0x4b0] sm:$0xff] }
 0x41d   : > { %v3740_v21 = vadd.f32 %v5092_v60, %v3739_v0  ;;  %v5101_v0 = vld [vmem:[%s7043_s19 + $0x4b8] sm:$0xff] }
 0x41e   : > { %v3809_v15 = vadd.f32 %v5093_v8, %v3808_v61  ;;  %v5102_v61 = vld [vmem:[%s7043_s19 + $0x4d0] sm:$0xff] }
 0x41f   : > { %v3741_v33 = vadd.f32 %v5094_v46, %v3740_v21  ;;  %v5103_v21 = vld [vmem:[%s7043_s19 + $0x4d8] sm:$0xff] }
 0x420   : > { %v3810_v17 = vadd.f32 %v5095_v52, %v3809_v15  ;;  %v5104_v15 = vld [vmem:[%s7043_s19 + $0x4f0] sm:$0xff] }
 0x421   : > { %v3742_v62 = vadd.f32 %v5096_v26, %v3741_v33  ;;  %v5105_v33 = vld [vmem:[%s7043_s19 + $0x4f8] sm:$0xff] }
 0x422   : > { %v3811_v36 = vadd.f32 %v5097_v34, %v3810_v17  ;;  %v5106_v17 = vld [vmem:[%s7043_s19 + $0x510] sm:$0xff] }
 0x423   : > { %v3743_v41 = vadd.f32 %v5098_v35, %v3742_v62  ;;  %v5107_v62 = vld [vmem:[%s7043_s19 + $0x518] sm:$0xff] }
 0x424   : > { %v3812_v43 = vadd.f32 %v5099_v29, %v3811_v36  ;;  %v5108_v36 = vld [vmem:[%s7043_s19 + $0x530] sm:$0xff] }
 0x425   : > { %v3744_v20 = vadd.f32 %v5100_v47, %v3743_v41  ;;  %v5109_v41 = vld [vmem:[%s7043_s19 + $0x538] sm:$0xff] }
 0x426   : > { %v3813_v53 = vadd.f32 %v5101_v0, %v3812_v43  ;;  %v5110_v43 = vld [vmem:[%s7043_s19 + $0x550] sm:$0xff] }
 0x427   : > { %v3745_v60 = vadd.f32 %v5102_v61, %v3744_v20  ;;  %v5111_v20 = vld [vmem:[%s7043_s19 + $0x558] sm:$0xff] }
 0x428   : > { %v3814_v8 = vadd.f32 %v5103_v21, %v3813_v53  ;;  %v5112_v53 = vld [vmem:[%s7043_s19 + $0x570] sm:$0xff] }
 0x429   : > { %v3746_v46 = vadd.f32 %v5104_v15, %v3745_v60  ;;  %v5113_v60 = vld [vmem:[%s7043_s19 + $0x578] sm:$0xff] }
 0x42a   : > { %v3815_v52 = vadd.f32 %v5105_v33, %v3814_v8  ;;  %v5114_v8 = vld [vmem:[%s7043_s19 + $0x590] sm:$0xff] }
 0x42b   : > { %v3747_v26 = vadd.f32 %v5106_v17, %v3746_v46  ;;  %v5115_v46 = vld [vmem:[%s7043_s19 + $0x598] sm:$0xff] }
 0x42c   : > { %v3816_v34 = vadd.f32 %v5107_v62, %v3815_v52  ;;  %v5116_v52 = vld [vmem:[%s7043_s19 + $0x5b0] sm:$0xff] }
 0x42d   : > { %v3748_v35 = vadd.f32 %v5108_v36, %v3747_v26  ;;  %v5117_v26 = vld [vmem:[%s7043_s19 + $0x5b8] sm:$0xff] }
 0x42e   : > { %v3817_v29 = vadd.f32 %v5109_v41, %v3816_v34  ;;  %v5118_v34 = vld [vmem:[%s7043_s19 + $0x5d0] sm:$0xff] }
 0x42f   : > { %v3749_v47 = vadd.f32 %v5110_v43, %v3748_v35  ;;  %v5119_v35 = vld [vmem:[%s7043_s19 + $0x5d8] sm:$0xff] }
 0x430   : > { %v3818_v0 = vadd.f32 %v5111_v20, %v3817_v29  ;;  %v5120_v29 = vld [vmem:[%s7043_s19 + $0x5f0] sm:$0xff] }
 0x431   : > { %v3750_v61 = vadd.f32 %v5112_v53, %v3749_v47  ;;  %v5121_v47 = vld [vmem:[%s7043_s19 + $0x5f8] sm:$0xff] }
 0x432   : > { %v3819_v21 = vadd.f32 %v5113_v60, %v3818_v0  ;;  %v5122_v0 = vld [vmem:[%s7043_s19 + $0x610] sm:$0xff] }
 0x433   : > { %v3751_v15 = vadd.f32 %v5114_v8, %v3750_v61  ;;  %v5123_v61 = vld [vmem:[%s7043_s19 + $0x618] sm:$0xff] }
 0x434   : > { %v3820_v33 = vadd.f32 %v5115_v46, %v3819_v21  ;;  %v5124_v21 = vld [vmem:[%s7043_s19 + $0x630] sm:$0xff] }
 0x435   : > { %v3752_v17 = vadd.f32 %v5116_v52, %v3751_v15  ;;  %v5125_v15 = vld [vmem:[%s7043_s19 + $0x638] sm:$0xff]  ;;  %v5126_v52 = vld [vmem:[%s7043_s19 + $0x650] sm:$0xff] }
 0x436   : > { %v3821_v62 = vadd.f32 %v5117_v26, %v3820_v33  ;;  %v5127_v26 = vld [vmem:[%s7043_s19 + $0x658] sm:$0xff] }
 0x437   : > { %v3753_v36 = vadd.f32 %v5118_v34, %v3752_v17 }
 0x438   : > { %v3822_v41 = vadd.f32 %v5119_v35, %v3821_v62 }
 0x439   : > { %v3754_v43 = vadd.f32 %v5120_v29, %v3753_v36 }
 0x43a   : > { %v3823_v20 = vadd.f32 %v5121_v47, %v3822_v41 }
 0x43b   : > { %v3755_v53 = vadd.f32 %v5122_v0, %v3754_v43 }
 0x43c   : > { %v3824_v60 = vadd.f32 %v5123_v61, %v3823_v20  ;;  %v5285_v20 = vmov 1966171168  }
 0x43d   : > { %v3756_v8 = vadd.f32 %v5124_v21, %v3755_v53 }
 0x43e   : > { %v3825_v46 = vadd.f32 %v5125_v15, %v3824_v60 }
 0x43f   : > { %v3757_v33 = vadd.f32 %v5126_v52, %v3756_v8  ;;  %v8384_v52 = vcombine.low %v7829_v45, %v7831_v39 }
 0x440   : > { %v3826_v1 = vadd.f32 %v5127_v26, %v3825_v46 }
 0x441   : > { %v3758_v17 = vadd.f32 %v3757_v33, %v3264_v54 }
 0x442   : > { %v3827_v62 = vadd.f32 %v3826_v1, %v3265_v19 }
 0x443   : > { %v3759_v34 = vadd.f32 %v3758_v17, %v3268_v23  ;;  %v8371_v23 = vmax.f32 %v7677_v14, 0.0 }
 0x444   : > { %v3828_v36 = vadd.f32 %v3827_v62, %v3269_v48 }
 0x445   : > { %v3760_v35 = vadd.f32 %v3759_v34, %v3272_v32  ;;  %v8373_v32 = vmax.f32 %v7695_v13, 0.0  ;;  %v8382_v13 = vmax.f32 %v7783_v10, 0.0 }
 0x446   : > { %v3829_v41 = vadd.f32 %v3828_v36, %v3273_v3 }
 0x447   : > { %v3761_v29 = vadd.f32 %v3760_v35, %v3276_v27  ;;  %v8375_v27 = vmax.f32 %v7719_v18, 0.0  ;;  %v8383_v18 = vmax.f32 %v7791_v59, 0.0 }
 0x448   : > { %v3830_v57 = vadd.f32 %v3829_v41, %v3277_v30 }
 0x449   : > { %v3762_v40 = vadd.f32 %v3761_v29, %v3280_v63  ;;  %v8377_v63 = vmax.f32 %v7737_v24, 0.0 }
 0x44a   : > { %v3831_v54 = vadd.f32 %v3830_v57, %v3281_v25 }
 0x44b   : > { %v3763_v19 = vadd.f32 %v3762_v40, %v3284_v51  ;;  %v8379_v51 = vmax.f32 %v7755_v42, 0.0  ;;  %v3858_v42 = vunpack.c.l.s4 %v5285_v20 }
 0x44c   : > { %v3832_v44 = vadd.f32 %v3831_v54, %v3285_v5 }
 0x44d   : > { %v3764_v4 = vadd.f32 %v3763_v19, %v3288_v38  ;;  %v8381_v38 = vmax.f32 %v7773_v37, 0.0  ;;  %v3859_v37 = vunpack.c.0.s8 %v3858_v42 }
 0x44e   : > { %v3833_v48 = vadd.f32 %v3832_v44, %v8371_v23 }
 0x44f   : > { %v3765_v55 = vadd.f32 %v3764_v4, %v8372_v9  ;;  %v3862_v59 = vsub.s32 %v3859_v37, %v6715_v58  ;;  %v8385_v58 = vlaneseq }
 0x450   : > { %v3834_v3 = vadd.f32 %v3833_v48, %v8373_v32 }
 0x451   : > { %v3766_v28 = vadd.f32 %v3765_v55, %v8374_v56  ;;  %v3863_v33 = vrot.slane %v8384_v52, %v3862_v59  ;;  %vm3882_vm1 = vcmp.lt.s32.totalorder %v8385_v58, 512 }
 0x452   : > { %v3835_v30 = vadd.f32 %v3834_v3, %v8375_v27 }
 0x453   : > { %v3767_v49 = vadd.f32 %v3766_v28, %v8376_v6 }
 0x454   : > { %v3836_v25 = vadd.f32 %v3835_v30, %v8377_v63 }
 0x455   : > { %v3768_v16 = vadd.f32 %v3767_v49, %v8378_v12 }
 0x456   : > { %v3837_v5 = vadd.f32 %v3836_v25, %v8379_v51 }
 0x457   : > { %v3769_v14 = vadd.f32 %v3768_v16, %v8380_v11 }
 0x458   : > { %v3838_v22 = vadd.f32 %v3837_v5, %v8381_v38 }
 0x459   : > { %v3770_v50 = vadd.f32 %v3769_v14, %v8382_v13 }
 0x45a   : > { %v3839_v7 = vadd.f32 %v3838_v22, %v8383_v18 }
 0x45b   : > { %v3771_v24 = vrot.slane %v3770_v50, 4 }
 0x45c   : > { %v3840_v1 = vrot.slane %v3839_v7, 4 }
 0x45d   : > { %v3772_v43 = vadd.f32 %v3771_v24, %v3770_v50 }
 0x45e   : > { %v3841_v31 = vadd.f32 %v3840_v1, %v3839_v7 }
 0x45f   : > { %v3773_v47 = vrot.slane %v3772_v43, 2 }
 0x460   : > { %v3842_v0 = vrot.slane %v3841_v31, 2 }
 0x461   : > { %v3774_v2 = vadd.f32 %v3773_v47, %v3772_v43 }
 0x462   : > { %v3843_v53 = vadd.f32 %v3842_v0, %v3841_v31 }
 0x463   : > { %v3775_v61 = vrot.slane %v3774_v2, 1 }
 0x464   : > { %v3844_v60 = vrot.slane %v3843_v53, 1 }
 0x465   : > { %v3776_v21 = vadd.f32 %v3775_v61, %v3774_v2 }
 0x466   : > { %v3845_v10 = vadd.f32 %v3844_v60, %v3843_v53 }
 0x467   : > { %v3849_v8 = vmul.f32 0.001953125, %v3776_v21 }
 0x468   : > { %v3850_v15 = vmul.f32 0.001953125, %v3845_v10 }
 0x46a   : > { %v3856_v46 = vcombine.low %v3849_v8, %v3850_v15  ;;  %4084 = vmatprep.mubr.f32.mxu0 %v3850_v15 }
 0x46b   : > { %4085 = vmatmul.mubr.f32.vlgmr.msra.gmra.mrb[220].mxu0 %v3849_v8 }
 0x46c   : > { %v3870_v26 = vrot.slane %v3856_v46, %v3862_v59 }
 0x46e   : > { %v3871_v17 = vcombine.low %v3863_v33, %v3870_v26 }
 0x470   : > { %v3878_v62 = vrot.slane %v3871_v17, %v3862_v59 }
 0x472   : > { %3884 = vst.msk [vmem:[%s475_s24] sm:$0xf] %vm3882_vm1, %v3878_v62  ;;  %s5132_s24 = sshll.u32 %s5286_s23, 4  ;;  %s5133_s24 = int_to_ptr.vmem [resolvable:$false] %s5132_s24 }
 0x473   : > { %s5134_s1 = scalar_lea.vmem %s5133_s24, 32768  ;;  %p5135_p0 = scmp.lt.s32.totalorder %s8100_s0, %s5133_s24 }
 0x474   : > { %p5136_p1 = scmp.lt.s32.totalorder %s5134_s1, %s5128_s21 }
 0x476   : > { %p5137_p2 = por %p5136_p1, %p5135_p0 }
 0x478   : > { %p5138_p3 = pnand %p5137_p2, %p5131_p13 }
 0x4a4   : > { %v4542_v34 = vpop.f32.mrb[218].mxu0 }
 0x4a5   : > { %v4543_v36 = vpop.f32.mrb[219].mxu0 }
 0x4a6   : > { %v8090_v35 = vadd.f32 %v4543_v36, %v4542_v34 }
 0x4a7   : > { %5141 = shalt.err (!%p5138_p3)
}
 0x4a8   : > { %s5142_s30 = scalar_lea.hbm %s8097_s22, 16384  ;;  %s5146_s16 = scalar_lea.hbm %s8256_s10, 32768 }
 0x4a9   : > { %p5143_p4 = scmp.ne.s32.totalorder %s8097_s22, %s5142_s30  ;;  %p5147_p9 = scmp.lt.u32.totalorder %s8097_s22, %s8256_s10 }
 0x4aa   : > { %p5148_p10 = scmp.lt.u32.totalorder %s5146_s16, %s5142_s30  ;;  %p5150_p12 = scmp.lt.u32.totalorder %s5142_s30, %s8097_s22 }
 0x4ab   : > { %p5144_p7 = pnand %p5143_p4, %p5406_p5 }
 0x4ac   : > { %p5149_p11 = por %p5148_p10, %p5147_p9 }
 0x4ad   : > { %p5145_p8 = pneg %p5144_p7 }
 0x4ae   : > { %p5151_p13 = por %p5150_p12, %p5149_p11 }
 0x4b0   : > { %p5152_p0 = pnand %p5151_p13, %p5145_p8 }
 0x4b2   : > { %5155 = shalt.err (!%p5152_p0)
}
 0x4b3   : > { %s5287_s1 = smov 256   ;;  %s5288_s21 = smov 16  }
 0x4b4   : > { %4965 = dma.vmem_to_hbm [thread:$0]  (%p5406_p5), %s8100_s0, 16384, %s8097_s22, %s8102_s17, %s5287_s1, %s5287_s1, %s5288_s21  }
 0x4b5   : > { %s4435_s24 = sshll.u32 %s5387_s29, 13  ;;  %s4124_s16 = sshll.u32 %s5746_s14, 4  ;;  %s8133_s16 = int_to_ptr.vmem [resolvable:$true] %s4124_s16 }
 0x4b6   : > { %s8130_s30 = scalar_lea.hbm %s8255_s9, %s4435_s24  ;;  %s4437_s25 = sshll.u32 %s5387_s29, 15 }
 0x4b7   : > { %s4093_s23 = scalar_lea.sflag [#allocation3], %s5724_s20  ;;  %s5156_s2 = scalar_lea.vmem %s8133_s16, 8192 }
 0x4b8   : > { %p5157_p1 = scmp.ne.s32.totalorder %s8133_s16, %s5156_s2  ;;  %s5289_s0 = smov [#allocation2]  }
 0x4b9   : > { %s5160_s22 = sshll.u32 %s5289_s0, 4  ;;  %s5161_s22 = int_to_ptr.vmem [resolvable:$false] %s5160_s22 }
 0x4ba   : > { %p5158_p2 = pnand %p5157_p1, %p5406_p5  ;;  %s5162_s1 = scalar_lea.vmem %s5161_s22, 16384 }
 0x4bb   : > { %p5163_p4 = scmp.lt.s32.totalorder %s8133_s16, %s5161_s22  ;;  %p5164_p7 = scmp.lt.s32.totalorder %s5162_s1, %s5156_s2 }
 0x4bc   : > { %p5159_p3 = pneg %p5158_p2 }
 0x4bd   : > { %p5165_p8 = por %p5164_p7, %p5163_p4 }
 0x4bf   : > { %p5166_p9 = pnand %p5165_p8, %p5159_p3 }
 0x4c1   : > { %5169 = shalt.err (!%p5166_p9)
}
 0x4c2   : > { %s5170_s14 = scalar_lea.hbm %s8130_s30, 8192  ;;  %s5174_s15 = scalar_lea.hbm %s8255_s9, 16384 }
 0x4c3   : > { %p5171_p10 = scmp.ne.s32.totalorder %s8130_s30, %s5170_s14  ;;  %p5175_p13 = scmp.lt.u32.totalorder %s8130_s30, %s8255_s9 }
 0x4c4   : > { %p5176_p0 = scmp.lt.u32.totalorder %s5174_s15, %s5170_s14  ;;  %p5178_p2 = scmp.lt.u32.totalorder %s5170_s14, %s8130_s30 }
 0x4c5   : > { %p5172_p11 = pnand %p5171_p10, %p5406_p5 }
 0x4c6   : > { %p5177_p1 = por %p5176_p0, %p5175_p13 }
 0x4c7   : > { %p5173_p12 = pneg %p5172_p11 }
 0x4c8   : > { %p5179_p3 = por %p5178_p2, %p5177_p1 }
 0x4ca   : > { %p5180_p4 = pnand %p5179_p3, %p5173_p12 }
 0x4cc   : > { %5183 = shalt.err (!%p5180_p4)
}
 0x4cd   : > { %s5290_s2 = smov 128   ;;  %s5291_s22 = smov 8  }
 0x4ce   : > { %4964 = dma.vmem_to_hbm [thread:$0]  (%p5406_p5), %s8133_s16, 8192, %s8130_s30, %s4093_s23, %s5290_s2, %s5290_s2, %s5291_s22  }
 0x4cf   : > { %s8165_s14 = scalar_lea.hbm %s8257_s11, %s4437_s25  ;;  %s4156_s24 = sshll.u32 %s7043_s19, 4  ;;  %s8168_s24 = int_to_ptr.vmem [resolvable:$true] %s4156_s24 }
 0x4d0   : > { %s5184_s15 = scalar_lea.vmem %s8168_s24, 32768  ;;  %s5292_s27 = smov [#allocation6]  }
 0x4d1   : > { %p5185_p7 = scmp.ne.s32.totalorder %s8168_s24, %s5184_s15  ;;  %s5188_s0 = sshll.u32 %s5292_s27, 4  ;;  %s5189_s0 = int_to_ptr.vmem [resolvable:$false] %s5188_s0 }
 0x4d2   : > { %s5190_s30 = scalar_lea.vmem %s5189_s0, 65536  ;;  %p5191_p10 = scmp.lt.s32.totalorder %s8168_s24, %s5189_s0 }
 0x4d3   : > { %p5186_p8 = pnand %p5185_p7, %p5406_p5  ;;  %p5192_p11 = scmp.lt.s32.totalorder %s5190_s30, %s5184_s15 }
 0x4d5   : > { %p5187_p9 = pneg %p5186_p8  ;;  %p5193_p12 = por %p5192_p11, %p5191_p10 }
 0x4d7   : > { %p5194_p13 = pnand %p5193_p12, %p5187_p9 }
 0x4d9   : > { %5197 = shalt.err (!%p5194_p13)
}
 0x4da   : > { %s5198_s19 = scalar_lea.hbm %s8165_s14, 32768  ;;  %s5202_s23 = scalar_lea.hbm %s8257_s11, 65536 }
 0x4db   : > { %p5199_p0 = scmp.ne.s32.totalorder %s8165_s14, %s5198_s19  ;;  %p5203_p3 = scmp.lt.u32.totalorder %s8165_s14, %s8257_s11 }
 0x4dc   : > { %p5204_p4 = scmp.lt.u32.totalorder %s5202_s23, %s5198_s19  ;;  %p5206_p8 = scmp.lt.u32.totalorder %s5198_s19, %s8165_s14 }
 0x4dd   : > { %p5200_p1 = pnand %p5199_p0, %p5406_p5 }
 0x4de   : > { %p5205_p7 = por %p5204_p4, %p5203_p3 }
 0x4df   : > { %p5201_p2 = pneg %p5200_p1 }
 0x4e0   : > { %p5207_p9 = por %p5206_p8, %p5205_p7 }
 0x4e2   : > { %p5208_p10 = pnand %p5207_p9, %p5201_p2 }
 0x4e4   : > { %5211 = shalt.err (!%p5208_p10)
}
 0x4e5   : > { %s5293_s1 = smov 512   ;;  %s5294_s21 = smov 32   ;;  %v3949_v45 = vld [vmem:[%s8254_s8] sm:$0x1]  ;;  %vm4090_vm2 = vcmask 73728  }
 0x4e6   : > { %4966 = dma.vmem_to_hbm [thread:$0]  (%p5406_p5), %s8168_s24, 32768, %s8165_s14, %s8102_s17, %s5293_s1, %s5293_s1, %s5294_s21   ;;  %v4017_v29 = vadd.f32 %v8090_v35, %v3949_v45 }
 0x4e7   : > { %s4431_s0 = sshll.u32 %s5387_s29, 4  ;;  %s466_s30 = scalar_lea.vmem [#allocation7], %s5724_s20 }
 0x4e8   : > { %s4175_s19 = sshll.u32 %s466_s30, 4  ;;  %s8201_s23 = scalar_lea.hbm %s8259_s13, %s4431_s0  ;;  %s8203_s19 = int_to_ptr.vmem [resolvable:$true] %s4175_s19 }
 0x4e9   : > { %s4112_s17 = scalar_lea.sflag [#allocation8], %s5724_s20  ;;  %s5212_s29 = scalar_lea.vmem %s8203_s19, 16 }
 0x4ea   : > { %p5213_p11 = scmp.ne.s32.totalorder %s8203_s19, %s5212_s29  ;;  %s5295_s14 = smov [#allocation7]  }
 0x4eb   : > { %s5216_s24 = sshll.u32 %s5295_s14, 4  ;;  %s5217_s24 = int_to_ptr.vmem [resolvable:$false] %s5216_s24 }
 0x4ec   : > { %p5214_p12 = pnand %p5213_p11, %p5406_p5  ;;  %s5218_s2 = scalar_lea.vmem %s5217_s24, 32 }
 0x4ed   : > { %p5219_p0 = scmp.lt.s32.totalorder %s8203_s19, %s5217_s24  ;;  %p5220_p1 = scmp.lt.s32.totalorder %s5218_s2, %s5212_s29 }
 0x4ee   : > { %p5215_p13 = pneg %p5214_p12 }
 0x4ef   : > { %p5221_p2 = por %p5220_p1, %p5219_p0 }
 0x4f1   : > { %p5222_p3 = pnand %p5221_p2, %p5215_p13 }
 0x53e   : > { %v4577_v39 = vpop.f32.mrb[220].mxu0 }
 0x53f   : > { %v4578_v41 = vpop.f32.mrb[221].mxu0 }
 0x540   : > { %v4579_v57 = vadd.f32 %v4578_v41, %v4577_v39 }
 0x542   : > { %v4087_v40 = vadd.f32 %v4579_v57, %v4017_v29 }
 0x544   : > { %4091 = vst.msk [vmem:[%s466_s30] sm:$0x1] %vm4090_vm2, %v4087_v40 }
 0x545   : > { %5225 = shalt.err (!%p5222_p3)
}
 0x546   : > { %s5226_s20 = scalar_lea.hbm %s8201_s23, 16  ;;  %s5230_s21 = scalar_lea.hbm %s8259_s13, 32 }
 0x547   : > { %p5227_p4 = scmp.ne.s32.totalorder %s8201_s23, %s5226_s20  ;;  %p5231_p9 = scmp.lt.u32.totalorder %s8201_s23, %s8259_s13 }
 0x548   : > { %p5232_p10 = scmp.lt.u32.totalorder %s5230_s21, %s5226_s20  ;;  %p5234_p12 = scmp.lt.u32.totalorder %s5226_s20, %s8201_s23 }
 0x549   : > { %p5228_p7 = pnand %p5227_p4, %p5406_p5 }
 0x54a   : > { %p5233_p11 = por %p5232_p10, %p5231_p9 }
 0x54b   : > { %p5229_p8 = pneg %p5228_p7 }
 0x54c   : > { %p5235_p13 = por %p5234_p12, %p5233_p11 }
 0x54e   : > { %p5236_p0 = pnand %p5235_p13, %p5229_p8 }
 0x550   : > { %5239 = shalt.err (!%p5236_p0)
}
 0x551   : > { %4967 = dma.vmem_to_hbm [thread:$0]  (%p5406_p5), %s8203_s19, 16, %s8201_s23, %s4112_s17  }
 0x552 PF: > { %s8386_s0 = sld [smem:[#allocation12_spill]]  ;;  %p4985_p1 = scmp.ge.s32.totalorder %s5282_s28, 2 }
 0x554   : > { %p4973_p2 = pnand %p4985_p1, %p5410_p6 }
 0x558   : > { %s4187_s16 = sand.u32 1, %s8386_s0  }
 0x559   : > { %s4188_s25 = scalar_lea.sflag [#allocation3], %s4187_s16 }
 0x55a   : > { %5257 = dma.done.wait (!%p4973_p2), %s4188_s25, 8192  }
 0x55b   : > { %5259 = vsyncadd (!%p4973_p2), %s4188_s25, 4294959104  ;;  %s8388_s29 = sadd.s32 4294967294, %s5282_s28  }
 0x55c   : > { %s4196_s14 = sand.u32 1, %s8388_s29  }
 0x55d   : > { %s4197_s24 = scalar_lea.sflag [#allocation5], %s4196_s14 }
 0x55e   : > { %5261 = dma.done.wait (!%p4973_p2), %s4197_s24, 49152  }
 0x55f   : > { %5263 = vsyncadd (!%p4973_p2), %s4197_s24, 4294918144  ;;  %s4222_s18 = scalar_lea.sflag [#allocation8], %s4187_s16 }
 0x560   : > { %5265 = dma.done.wait (!%p4973_p2), %s4222_s18, 16  }
 0x561   : > { %5267 = vsyncadd (!%p4973_p2), %s4222_s18, 4294967280  ;;  %s8389_s28 = sld [smem:[#allocation14_spill]]  ;;  %s8390_s19 = sld [smem:[#allocation13_spill]] }
 0x562   : > { %s8391_s27 = sld [smem:[#allocation15_spill]]  ;;  %s8392_s25 = smov %s5274_s26 }
 0x567   : > { %p30_p5 = scmp.ge.s32.totalorder %s8389_s28, 4   ;;  %s8393_s26 = smov %s8390_s19 }
 0x569   :  { %32 = sbr.rel (!%p30_p5) target bundleno = 11 (0xb), region = 152 }
 0x570   :  { %4226 = vsyncpa [#allocation3], 1 }
 0x571   :  { %4228 = vsyncpa [#allocation3 + $0x1], 1 }
 0x572   :  { %4229 = vsyncpa [#allocation5], 1 }
 0x573   :  { %4231 = vsyncpa [#allocation5 + $0x1], 1 }
 0x574   :  { %4232 = vsyncpa [#allocation8], 1 }
 0x575   :  { %4234 = vsyncpa [#allocation8 + $0x1], 1 }

</bundles_post_ra>
